<compile_context>
chip_gen: v7x
topology: tpu7x:2x2x1
jax: 0.10.0
libtpu: 0.0.40
codegen_flags: <defaults>
</compile_context>

<pallas_src>
import functools

import numpy as np
import jax
import jax.numpy as jnp
from jax import lax
from jax.experimental import pallas as pl
from jax.experimental.pallas import tpu as pltpu

L = 0.2
LMBDA = 5e-7
Z = 100.0


# --------------------------------------------------------------------------
# Generation dispatch
# --------------------------------------------------------------------------

def _tpu_generation():
    """Return (use_packed, n_cores, vmem_limit_bytes) for the local device."""
    try:
        kind = jax.devices()[0].device_kind.lower()
    except Exception:  # pragma: no cover - defensive
        kind = ""
    v7 = ("v7" in kind) or ("7x" in kind)
    v6 = "v6" in kind
    # v2-v5 MXUs are 128x128 -> Karatsuba wins; v6e/v7x MXUs are 2x256x256 ->
    # the 2Mx2M block-complex packing wins.  Unknown/future chips default to
    # the packed form (256-wide MXU assumption).
    use_packed = v7 or v6 or (kind == "")
    # Chips exposing 2 TensorCores per device (megacore v4/v5p, dual-TC v7x).
    n_cores = 2 if (v7 or "v4" in kind or "v5p" in kind) else 1
    # v7x has 64 MiB physical VMEM per TC; v5e/v6e have 128 MiB.
    vmem_limit = (48 << 20) if v7 else (100 << 20)
    return use_packed, n_cores, vmem_limit


# --------------------------------------------------------------------------
# Host-side (float64) constant precompute
# --------------------------------------------------------------------------

@functools.lru_cache(maxsize=16)
def _host_matrices(M, L_, lmbda, z):
    """fftshifted H and the folded DFT/shift matrices, in float64."""
    dx = L_ / M
    k = 2.0 * np.pi / lmbda
    fx = np.linspace(-1.0 / (2 * dx), 1.0 / (2 * dx) - 1.0 / L_, M,
                     dtype=np.float64)
    FX, FY = np.meshgrid(fx, fx, indexing="ij")          # torch.meshgrid default
    phase = -np.pi * lmbda * z * (FX ** 2 + FY ** 2) + k * z
    H = np.cos(phase) + 1j * np.sin(phase)
    H = np.fft.fftshift(H, axes=(-2, -1))

    n = np.arange(M)
    F = np.exp(-2j * np.pi * np.outer(n, n) / M)          # forward DFT matrix
    Fi = np.exp(2j * np.pi * np.outer(n, n) / M) / M      # inverse DFT (1/M per axis)
    S = np.fft.fftshift(np.eye(M), axes=(0,))             # S  @ x == fftshift(x, 0)
    Si = np.fft.ifftshift(np.eye(M), axes=(0,))           # Si @ x == ifftshift(x, 0)
    A = F @ S
    B = Si @ Fi
    return H, A, B


_DEVICE_CONST_CACHE = {}


def _split_bf16_const(c):
    """f64/f32 constant -> (hi, lo) bf16 pair capturing ~16 mantissa bits."""
    c32 = jnp.asarray(np.ascontiguousarray(c), jnp.float32)
    hi = c32.astype(jnp.bfloat16)
    lo = (c32 - hi.astype(jnp.float32)).astype(jnp.bfloat16)
    return hi, lo


def _device_constants(M, L_, lmbda, z, packed):
    """Cached device-side constant planes for the selected kernel variant."""
    key = (int(M), float(L_), float(lmbda), float(z), bool(packed))
    consts = _DEVICE_CONST_CACHE.get(key)
    if consts is not None:
        return consts

    H, A, B = _host_matrices(int(M), float(L_), float(lmbda), float(z))
    f32 = lambda a: jnp.asarray(np.ascontiguousarray(a), jnp.float32)

    if packed:
        def blk_r(Q):   # lane-packed row [xr|xi] @ blk_r(Q) == complex x @ Q
            return np.block([[Q.real, Q.imag], [-Q.imag, Q.real]])

        def pack_l(P):  # [Pr|Pi] @ [[Yr,Yi],[-Yi,Yr]] == complex P @ Y (lane-packed)
            return np.concatenate([P.real, P.imag], axis=1)

        crat = _split_bf16_const(blk_r(A.T))
        crbt = _split_bf16_const(blk_r(B.T))
        cla = _split_bf16_const(pack_l(A))
        clb = _split_bf16_const(pack_l(B))
        consts = (*crat, *crbt, *cla, *clb, f32(H.real), f32(H.imag))
    else:
        consts = (
            f32(A.real), f32(A.imag), f32(A.real + A.imag),
            f32(A.T.real), f32(A.T.imag), f32(A.T.real + A.T.imag),
            f32(B.real), f32(B.imag), f32(B.real + B.imag),
            f32(B.T.real), f32(B.T.imag), f32(B.T.real + B.T.imag),
            f32(H.real), f32(H.imag),
        )
    _DEVICE_CONST_CACHE[key] = consts
    return consts


# --------------------------------------------------------------------------
# Packed (2Mx2M block-complex) kernel  --  v6e / v7x
# --------------------------------------------------------------------------

def _split_bf16(x):
    """f32 -> (hi, lo) bf16 pair (in-kernel, VPU-only; hidden under MXU)."""
    hi = x.astype(jnp.bfloat16)
    lo = (x - hi.astype(jnp.float32)).astype(jnp.bfloat16)
    return hi, lo


def _dot3(p_hi, p_lo, q_hi, q_lo):
    """p @ q with operands given as bf16 (hi, lo) splits: explicit 3-pass bf16
    emulation of the f32 matmul (hi*hi + hi*lo + lo*hi, f32 accumulation)."""
    return (jnp.dot(p_hi, q_hi, preferred_element_type=jnp.float32)
            + jnp.dot(p_hi, q_lo, preferred_element_type=jnp.float32)
            + jnp.dot(p_lo, q_hi, preferred_element_type=jnp.float32))


def _prop_kernel_packed(at_hi, at_lo, bt_hi, bt_lo,
                        a_hi, a_lo, b_hi, b_lo,
                        h_re, h_im, x_ref, o_ref, y_scr):
    M = h_re.shape[0]
    BM = x_ref.shape[0]
    nb = BM // M                      # fields per grid step (static)

    # Constant loads hoisted out of the per-field loop.
    ath, atl = at_hi[...], at_lo[...]
    bth, btl = bt_hi[...], bt_lo[...]
    ah, al = a_hi[...], a_lo[...]
    bh, bl = b_hi[...], b_lo[...]
    hr, hi = h_re[...], h_im[...]

    # Y = X @ blk(A^T): one tall lane-packed (BM,2M)@(2M,2M) complex matmul,
    # stored straight into scratch (no full-slab compiler temporaries).
    xh, xl = _split_bf16(x_ref[...])
    y_scr[...] = _dot3(xh, xl, ath, atl)

    def field_body(t):
        if isinstance(t, (int, np.integer)):
            start = t * M
        else:
            start = pl.multiple_of(t * M, M)
        y = y_scr[pl.ds(start, M), :]                        # (M, 2M) [Yr | Yi]
        yr, yi = y[:, :M], y[:, M:]
        # blk(Y) = [[Yr, Yi], [-Yi, Yr]]; top block-row is y itself.
        yblk = jnp.concatenate(
            [y, jnp.concatenate([-yi, yr], axis=1)], axis=0)  # (2M, 2M)
        ybh, ybl = _split_bf16(yblk)
        u1 = _dot3(ah, al, ybh, ybl)                          # (M, 2M) [U1r | U1i]
        u1r, u1i = u1[:, :M], u1[:, M:]
        u2r = hr * u1r - hi * u1i
        u2i = hr * u1i + hi * u1r
        ublk = jnp.concatenate(
            [jnp.concatenate([u2r, u2i], axis=1),
             jnp.concatenate([-u2i, u2r], axis=1)], axis=0)   # (2M, 2M)
        ubh, ubl = _split_bf16(ublk)
        v = _dot3(bh, bl, ubh, ubl)                           # (M, 2M) [Vr | Vi]
        # Overwrite the consumed Y rows with V (scratch reuse).
        y_scr[pl.ds(start, M), :] = v

    if nb <= 8:
        for t in range(nb):           # short static loop: full LLO visibility
            field_body(t)
    else:
        def body(t, carry):           # bound code size / vreg pressure at big nb
            field_body(t)
            return carry
        lax.fori_loop(0, nb, body, 0, unroll=2)

    # u2 = V @ blk(B^T): tall lane-packed matmul, single lane-dense store.
    vh, vl = _split_bf16(y_scr[...])
    o_ref[...] = _dot3(vh, vl, bth, btl)


# --------------------------------------------------------------------------
# Karatsuba kernel  --  v5e and older (128x128 MXUs)
# --------------------------------------------------------------------------

def _kara(pr, pi, ps, qr, qi, qs):
    """(pr + i*pi) @ (qr + i*qi) via Karatsuba: 3 real MXU matmuls.
    Default-precision f32 dots (known to pass the 1e-3 budget); the 3-pass
    bf16 drop is NOT combined with Karatsuba's cancellation here."""
    t1 = jnp.dot(pr, qr, preferred_element_type=jnp.float32)
    t2 = jnp.dot(pi, qi, preferred_element_type=jnp.float32)
    t3 = jnp.dot(ps, qs, preferred_element_type=jnp.float32)
    return t1 - t2, t3 - t1 - t2


def _prop_kernel_kara(a_re, a_im, a_sum, at_re, at_im, at_sum,
                      b_re, b_im, b_sum, bt_re, bt_im, bt_sum,
                      h_re, h_im, x_re, x_im, o_re, o_im, v_re, v_im):
    M = h_re.shape[0]
    BM = x_re.shape[0]
    nb = BM // M

    ar, ai, asm = a_re[...], a_im[...], a_sum[...]
    br, bi, bsm = b_re[...], b_im[...], b_sum[...]
    hr, hi = h_re[...], h_im[...]

    # Y = X @ A^T : one tall complex matmul over the whole (BM, M) slab.
    xr, xi = x_re[...], x_im[...]
    yr, yi = _kara(xr, xi, xr + xi, at_re[...], at_im[...], at_sum[...])

    # Per field: U1 = A @ Y_b ; U2 = H .* U1 ; V_b = B @ U2
    for t in range(nb):
        lo = t * M
        ytr = yr[lo:lo + M, :]
        yti = yi[lo:lo + M, :]
        ur, ui = _kara(ar, ai, asm, ytr, yti, ytr + yti)
        u2r = hr * ur - hi * ui
        u2i = hr * ui + hi * ur
        vtr, vti = _kara(br, bi, bsm, u2r, u2i, u2r + u2i)
        v_re[lo:lo + M, :] = vtr
        v_im[lo:lo + M, :] = vti

    # u2 = V @ B^T : one tall complex matmul, lane-dense stores.
    vr, vi = v_re[...], v_im[...]
    wr, wi = _kara(vr, vi, vr + vi, bt_re[...], bt_im[...], bt_sum[...])
    o_re[...] = wr
    o_im[...] = wi


# --------------------------------------------------------------------------
# Block-size selection (VMEM-budget and generation aware)
# --------------------------------------------------------------------------

def _pick_bblk(Bn, M, n_cores, budget_bytes):
    """Fields per grid step.  Rules: divide Bn, respect the (8,128) sublane
    rule, keep the per-step working set under the VMEM budget, and on
    dual-TensorCore chips prefer an even number of grid steps so both cores
    get work.  Single-core chips may take the whole batch in one step."""
    per_field = 80 * M * M            # conservative per-step bytes per field
    cap = max(1, budget_bytes // per_field)
    divs = [d for d in range(1, Bn + 1) if Bn % d == 0]
    ok = [d for d in divs if ((d * M) % 8 == 0 or d == Bn) and d <= cap]
    if not ok:
        ok = [min(divs)]
    if n_cores > 1:
        even = [d for d in ok if (Bn // d) % n_cores == 0]
        if even:
            return max(even)
        multi = [d for d in ok if Bn // d >= n_cores]
        if multi:
            return max(multi)
    return max(ok)


# --------------------------------------------------------------------------
# Wrapper
# --------------------------------------------------------------------------

def propagation_layer(u1, L=L, lmbda=LMBDA, z=Z, bblk=None):
    """u1: (B, M, M) complex -> (B, M, M) complex64 angular-spectrum propagation."""
    Bn, Mh, Mw = u1.shape
    assert Mh == Mw, "propagation_layer requires square spatial dims"
    M = Mh

    use_packed, n_cores, vmem_limit = _tpu_generation()
    consts = _device_constants(M, L, lmbda, z, use_packed)

    budget = vmem_limit // 2                      # headroom for temporaries
    Bblk = _pick_bblk(Bn, M, n_cores, budget) if bblk is None else bblk
    assert Bn % Bblk == 0, "bblk must divide the batch size"
    steps = Bn // Bblk
    BM = Bblk * M

    # Constants stay VMEM-resident (constant index_map).  Single-buffer them
    # only once they are big enough to matter on v7x's 64 MiB VMEM.
    const_mode = pl.Buffered(1) if M >= 256 else None

    def const_spec(shape):
        if const_mode is None:
            return pl.BlockSpec(shape, lambda i: (0, 0))
        return pl.BlockSpec(shape, lambda i: (0, 0), pipeline_mode=const_mode)

    cparams = pltpu.CompilerParams(
        dimension_semantics=("parallel",),
        vmem_limit_bytes=int(vmem_limit))

    xr = jnp.real(u1).astype(jnp.float32)
    xi = jnp.imag(u1).astype(jnp.float32)

    if use_packed:
        # Lane-concatenated (Bn*M, 2M) slab: per-field row block = [Xr | Xi].
        x = jnp.concatenate([xr, xi], axis=-1).reshape(Bn * M, 2 * M)
        fld_spec = pl.BlockSpec((BM, 2 * M), lambda i: (i, 0))
        in_specs = ([const_spec((2 * M, 2 * M))] * 4      # blk(A^T), blk(B^T) hi/lo
                    + [const_spec((M, 2 * M))] * 4        # [Ar|Ai], [Br|Bi] hi/lo
                    + [const_spec((M, M))] * 2            # H re / im
                    + [fld_spec])

        flops = int(32 * Bn * M ** 3 + 16 * Bn * M * M)
        bytes_accessed = int((56 + 16 * Bn) * M * M)
        cost = pl.CostEstimate(flops=flops, transcendentals=0,
                               bytes_accessed=bytes_accessed)

        out = pl.pallas_call(
            _prop_kernel_packed,
            out_shape=jax.ShapeDtypeStruct((Bn * M, 2 * M), jnp.float32),
            grid_spec=pltpu.PrefetchScalarGridSpec(
                num_scalar_prefetch=0,
                grid=(steps,),
                in_specs=in_specs,
                out_specs=fld_spec,
                scratch_shapes=[pltpu.VMEM((BM, 2 * M), jnp.float32)]),
            compiler_params=cparams,
            cost_estimate=cost,
        )(*consts, x)

        out = out.reshape(Bn, M, 2 * M)
        return jax.lax.complex(out[..., :M], out[..., M:])

    # ---- Karatsuba path (v5e and older) ----
    x_re = xr.reshape(Bn * M, M)
    x_im = xi.reshape(Bn * M, M)
    fld_spec = pl.BlockSpec((BM, M), lambda i: (i, 0))
    in_specs = [const_spec((M, M))] * 14 + [fld_spec, fld_spec]

    flops = int(12 * Bn * 2 * M ** 3 + 16 * Bn * M * M)
    bytes_accessed = int((14 * M * M + 4 * Bn * M * M) * 4)
    cost = pl.CostEstimate(flops=flops, transcendentals=0,
                           bytes_accessed=bytes_accessed)

    out_re, out_im = pl.pallas_call(
        _prop_kernel_kara,
        out_shape=(jax.ShapeDtypeStruct((Bn * M, M), jnp.float32),
                   jax.ShapeDtypeStruct((Bn * M, M), jnp.float32)),
        grid_spec=pltpu.PrefetchScalarGridSpec(
            num_scalar_prefetch=0,
            grid=(steps,),
            in_specs=in_specs,
            out_specs=(fld_spec, fld_spec),
            scratch_shapes=[pltpu.VMEM((BM, M), jnp.float32),
                            pltpu.VMEM((BM, M), jnp.float32)]),
        compiler_params=cparams,
        cost_estimate=cost,
    )(*consts, x_re, x_im)

    return jax.lax.complex(out_re, out_im).reshape(Bn, M, M)


if __name__ == "__main__":
    Bn, M = 4, 128
    key = jax.random.PRNGKey(0)
    k1, k2 = jax.random.split(key)
    xr = jax.random.normal(k1, (Bn, M, M), dtype=jnp.float32)
    xi = jax.random.normal(k2, (Bn, M, M), dtype=jnp.float32)
    u1 = jax.lax.complex(xr, xi)

    u2 = propagation_layer(u1)
    u2 = jax.block_until_ready(u2)

    # Host float64 reference (same math as the PyTorch forward).
    H_ref, _, _ = _host_matrices(M, float(L), float(LMBDA), float(Z))
    u1_np = np.asarray(xr, np.float64) + 1j * np.asarray(xi, np.float64)
    U1 = np.fft.fft2(np.fft.fftshift(u1_np, axes=(-2, -1)))
    ref = np.fft.ifftshift(np.fft.ifft2(H_ref * U1), axes=(-2, -1))
    rel_err = np.max(np.abs(np.asarray(u2) - ref)) / np.max(np.abs(ref))
    assert rel_err < 1e-3, f"relative error too large: {rel_err}"

    print("KERNEL_OK")
</pallas_src>

<mosaic_0001>
module attributes {stable_mosaic.version = 11 : i64} {
  func.func @_prop_kernel_kara(%arg0: i32, %arg1: memref<128x128xf32, #tpu.memory_space<vmem>>, %arg2: memref<128x128xf32, #tpu.memory_space<vmem>>, %arg3: memref<128x128xf32, #tpu.memory_space<vmem>>, %arg4: memref<128x128xf32, #tpu.memory_space<vmem>>, %arg5: memref<128x128xf32, #tpu.memory_space<vmem>>, %arg6: memref<128x128xf32, #tpu.memory_space<vmem>>, %arg7: memref<128x128xf32, #tpu.memory_space<vmem>>, %arg8: memref<128x128xf32, #tpu.memory_space<vmem>>, %arg9: memref<128x128xf32, #tpu.memory_space<vmem>>, %arg10: memref<128x128xf32, #tpu.memory_space<vmem>>, %arg11: memref<128x128xf32, #tpu.memory_space<vmem>>, %arg12: memref<128x128xf32, #tpu.memory_space<vmem>>, %arg13: memref<128x128xf32, #tpu.memory_space<vmem>>, %arg14: memref<128x128xf32, #tpu.memory_space<vmem>>, %arg15: memref<512x128xf32, #tpu.memory_space<vmem>>, %arg16: memref<512x128xf32, #tpu.memory_space<vmem>>, %arg17: memref<512x128xf32, #tpu.memory_space<vmem>>, %arg18: memref<512x128xf32, #tpu.memory_space<vmem>>, %arg19: memref<512x128xf32, #tpu.memory_space<vmem>>, %arg20: memref<512x128xf32, #tpu.memory_space<vmem>>) attributes {dimension_semantics = [#tpu.dimension_semantics<parallel>], iteration_bounds = array<i64: 1>, scalar_prefetch = 0 : i64, scratch_operands = 2 : i64, tpu.core_type = #tpu.core_type<tc>, window_params = [{pipeline_mode = #tpu.pipeline_mode<synchronous>, transform_indices = @transform_0, window_bounds = array<i64: 128, 128>}, {pipeline_mode = #tpu.pipeline_mode<synchronous>, transform_indices = @transform_1, window_bounds = array<i64: 128, 128>}, {pipeline_mode = #tpu.pipeline_mode<synchronous>, transform_indices = @transform_2, window_bounds = array<i64: 128, 128>}, {pipeline_mode = #tpu.pipeline_mode<synchronous>, transform_indices = @transform_3, window_bounds = array<i64: 128, 128>}, {pipeline_mode = #tpu.pipeline_mode<synchronous>, transform_indices = @transform_4, window_bounds = array<i64: 128, 128>}, {pipeline_mode = #tpu.pipeline_mode<synchronous>, transform_indices = @transform_5, window_bounds = array<i64: 128, 128>}, {pipeline_mode = #tpu.pipeline_mode<synchronous>, transform_indices = @transform_6, window_bounds = array<i64: 128, 128>}, {pipeline_mode = #tpu.pipeline_mode<synchronous>, transform_indices = @transform_7, window_bounds = array<i64: 128, 128>}, {pipeline_mode = #tpu.pipeline_mode<synchronous>, transform_indices = @transform_8, window_bounds = array<i64: 128, 128>}, {pipeline_mode = #tpu.pipeline_mode<synchronous>, transform_indices = @transform_9, window_bounds = array<i64: 128, 128>}, {pipeline_mode = #tpu.pipeline_mode<synchronous>, transform_indices = @transform_10, window_bounds = array<i64: 128, 128>}, {pipeline_mode = #tpu.pipeline_mode<synchronous>, transform_indices = @transform_11, window_bounds = array<i64: 128, 128>}, {pipeline_mode = #tpu.pipeline_mode<synchronous>, transform_indices = @transform_12, window_bounds = array<i64: 128, 128>}, {pipeline_mode = #tpu.pipeline_mode<synchronous>, transform_indices = @transform_13, window_bounds = array<i64: 128, 128>}, {transform_indices = @transform_14, window_bounds = array<i64: 512, 128>}, {transform_indices = @transform_15, window_bounds = array<i64: 512, 128>}, {transform_indices = @transform_16, window_bounds = array<i64: 512, 128>}, {transform_indices = @transform_17, window_bounds = array<i64: 512, 128>}]} {
    %c0 = arith.constant 0 : index
    %c0_0 = arith.constant 0 : index
    %0 = vector.load %arg1[%c0, %c0_0] : memref<128x128xf32, #tpu.memory_space<vmem>>, vector<128x128xf32>
    %c0_1 = arith.constant 0 : index
    %c0_2 = arith.constant 0 : index
    %1 = vector.load %arg2[%c0_1, %c0_2] : memref<128x128xf32, #tpu.memory_space<vmem>>, vector<128x128xf32>
    %c0_3 = arith.constant 0 : index
    %c0_4 = arith.constant 0 : index
    %2 = vector.load %arg3[%c0_3, %c0_4] : memref<128x128xf32, #tpu.memory_space<vmem>>, vector<128x128xf32>
    %c0_5 = arith.constant 0 : index
    %c0_6 = arith.constant 0 : index
    %3 = vector.load %arg7[%c0_5, %c0_6] : memref<128x128xf32, #tpu.memory_space<vmem>>, vector<128x128xf32>
    %c0_7 = arith.constant 0 : index
    %c0_8 = arith.constant 0 : index
    %4 = vector.load %arg8[%c0_7, %c0_8] : memref<128x128xf32, #tpu.memory_space<vmem>>, vector<128x128xf32>
    %c0_9 = arith.constant 0 : index
    %c0_10 = arith.constant 0 : index
    %5 = vector.load %arg9[%c0_9, %c0_10] : memref<128x128xf32, #tpu.memory_space<vmem>>, vector<128x128xf32>
    %c0_11 = arith.constant 0 : index
    %c0_12 = arith.constant 0 : index
    %6 = vector.load %arg13[%c0_11, %c0_12] : memref<128x128xf32, #tpu.memory_space<vmem>>, vector<128x128xf32>
    %c0_13 = arith.constant 0 : index
    %c0_14 = arith.constant 0 : index
    %7 = vector.load %arg14[%c0_13, %c0_14] : memref<128x128xf32, #tpu.memory_space<vmem>>, vector<128x128xf32>
    %c0_15 = arith.constant 0 : index
    %c0_16 = arith.constant 0 : index
    %8 = vector.load %arg15[%c0_15, %c0_16] : memref<512x128xf32, #tpu.memory_space<vmem>>, vector<512x128xf32>
    %c0_17 = arith.constant 0 : index
    %c0_18 = arith.constant 0 : index
    %9 = vector.load %arg16[%c0_17, %c0_18] : memref<512x128xf32, #tpu.memory_space<vmem>>, vector<512x128xf32>
    %10 = arith.addf %8, %9 : vector<512x128xf32>
    %c0_19 = arith.constant 0 : index
    %c0_20 = arith.constant 0 : index
    %11 = vector.load %arg4[%c0_19, %c0_20] : memref<128x128xf32, #tpu.memory_space<vmem>>, vector<128x128xf32>
    %c0_21 = arith.constant 0 : index
    %c0_22 = arith.constant 0 : index
    %12 = vector.load %arg5[%c0_21, %c0_22] : memref<128x128xf32, #tpu.memory_space<vmem>>, vector<128x128xf32>
    %c0_23 = arith.constant 0 : index
    %c0_24 = arith.constant 0 : index
    %13 = vector.load %arg6[%c0_23, %c0_24] : memref<128x128xf32, #tpu.memory_space<vmem>>, vector<128x128xf32>
    %cst = arith.constant dense<0.000000e+00> : vector<512x128xf32>
    %14 = tpu.matmul %8, %11, %cst {dimension_numbers = #tpu.dot_dimension_numbers<[1], [0], [0], [1], [0, 0, 1, 1], [], []>} : vector<512x128xf32>, vector<128x128xf32>, vector<512x128xf32> -> vector<512x128xf32>
    %cst_25 = arith.constant dense<0.000000e+00> : vector<512x128xf32>
    %15 = tpu.matmul %9, %12, %cst_25 {dimension_numbers = #tpu.dot_dimension_numbers<[1], [0], [0], [1], [0, 0, 1, 1], [], []>} : vector<512x128xf32>, vector<128x128xf32>, vector<512x128xf32> -> vector<512x128xf32>
    %cst_26 = arith.constant dense<0.000000e+00> : vector<512x128xf32>
    %16 = tpu.matmul %10, %13, %cst_26 {dimension_numbers = #tpu.dot_dimension_numbers<[1], [0], [0], [1], [0, 0, 1, 1], [], []>} : vector<512x128xf32>, vector<128x128xf32>, vector<512x128xf32> -> vector<512x128xf32>
    %17 = arith.subf %14, %15 : vector<512x128xf32>
    %18 = arith.subf %16, %14 : vector<512x128xf32>
    %19 = arith.subf %18, %15 : vector<512x128xf32>
    %20 = vector.extract_strided_slice %17 {offsets = [0, 0], sizes = [128, 128], strides = [1, 1]} : vector<512x128xf32> to vector<128x128xf32>
    %21 = vector.extract_strided_slice %19 {offsets = [0, 0], sizes = [128, 128], strides = [1, 1]} : vector<512x128xf32> to vector<128x128xf32>
    %22 = arith.addf %20, %21 : vector<128x128xf32>
    %cst_27 = arith.constant dense<0.000000e+00> : vector<128x128xf32>
    %23 = tpu.matmul %0, %20, %cst_27 {dimension_numbers = #tpu.dot_dimension_numbers<[1], [0], [0], [1], [0, 0, 1, 1], [], []>} : vector<128x128xf32>, vector<128x128xf32>, vector<128x128xf32> -> vector<128x128xf32>
    %cst_28 = arith.constant dense<0.000000e+00> : vector<128x128xf32>
    %24 = tpu.matmul %1, %21, %cst_28 {dimension_numbers = #tpu.dot_dimension_numbers<[1], [0], [0], [1], [0, 0, 1, 1], [], []>} : vector<128x128xf32>, vector<128x128xf32>, vector<128x128xf32> -> vector<128x128xf32>
    %cst_29 = arith.constant dense<0.000000e+00> : vector<128x128xf32>
    %25 = tpu.matmul %2, %22, %cst_29 {dimension_numbers = #tpu.dot_dimension_numbers<[1], [0], [0], [1], [0, 0, 1, 1], [], []>} : vector<128x128xf32>, vector<128x128xf32>, vector<128x128xf32> -> vector<128x128xf32>
    %26 = arith.subf %23, %24 : vector<128x128xf32>
    %27 = arith.subf %25, %23 : vector<128x128xf32>
    %28 = arith.subf %27, %24 : vector<128x128xf32>
    %29 = arith.mulf %6, %26 : vector<128x128xf32>
    %30 = arith.mulf %7, %28 : vector<128x128xf32>
    %31 = arith.subf %29, %30 : vector<128x128xf32>
    %32 = arith.mulf %6, %28 : vector<128x128xf32>
    %33 = arith.mulf %7, %26 : vector<128x128xf32>
    %34 = arith.addf %32, %33 : vector<128x128xf32>
    %35 = arith.addf %31, %34 : vector<128x128xf32>
    %cst_30 = arith.constant dense<0.000000e+00> : vector<128x128xf32>
    %36 = tpu.matmul %3, %31, %cst_30 {dimension_numbers = #tpu.dot_dimension_numbers<[1], [0], [0], [1], [0, 0, 1, 1], [], []>} : vector<128x128xf32>, vector<128x128xf32>, vector<128x128xf32> -> vector<128x128xf32>
    %cst_31 = arith.constant dense<0.000000e+00> : vector<128x128xf32>
    %37 = tpu.matmul %4, %34, %cst_31 {dimension_numbers = #tpu.dot_dimension_numbers<[1], [0], [0], [1], [0, 0, 1, 1], [], []>} : vector<128x128xf32>, vector<128x128xf32>, vector<128x128xf32> -> vector<128x128xf32>
    %cst_32 = arith.constant dense<0.000000e+00> : vector<128x128xf32>
    %38 = tpu.matmul %5, %35, %cst_32 {dimension_numbers = #tpu.dot_dimension_numbers<[1], [0], [0], [1], [0, 0, 1, 1], [], []>} : vector<128x128xf32>, vector<128x128xf32>, vector<128x128xf32> -> vector<128x128xf32>
    %39 = arith.subf %36, %37 : vector<128x128xf32>
    %40 = arith.subf %38, %36 : vector<128x128xf32>
    %41 = arith.subf %40, %37 : vector<128x128xf32>
    %c0_33 = arith.constant 0 : index
    %c0_34 = arith.constant 0 : index
    %42 = vector.load %arg19[%c0_33, %c0_34] : memref<512x128xf32, #tpu.memory_space<vmem>>, vector<128x128xf32>
    tpu.vector_store %arg19[%c0_33, %c0_34], %39 {strides = array<i32>} : memref<512x128xf32, #tpu.memory_space<vmem>>, vector<128x128xf32>,
    %c0_35 = arith.constant 0 : index
    %c0_36 = arith.constant 0 : index
    %43 = vector.load %arg20[%c0_35, %c0_36] : memref<512x128xf32, #tpu.memory_space<vmem>>, vector<128x128xf32>
    tpu.vector_store %arg20[%c0_35, %c0_36], %41 {strides = array<i32>} : memref<512x128xf32, #tpu.memory_space<vmem>>, vector<128x128xf32>,
    %44 = vector.extract_strided_slice %17 {offsets = [128, 0], sizes = [128, 128], strides = [1, 1]} : vector<512x128xf32> to vector<128x128xf32>
    %45 = vector.extract_strided_slice %19 {offsets = [128, 0], sizes = [128, 128], strides = [1, 1]} : vector<512x128xf32> to vector<128x128xf32>
    %46 = arith.addf %44, %45 : vector<128x128xf32>
    %cst_37 = arith.constant dense<0.000000e+00> : vector<128x128xf32>
    %47 = tpu.matmul %0, %44, %cst_37 {dimension_numbers = #tpu.dot_dimension_numbers<[1], [0], [0], [1], [0, 0, 1, 1], [], []>} : vector<128x128xf32>, vector<128x128xf32>, vector<128x128xf32> -> vector<128x128xf32>
    %cst_38 = arith.constant dense<0.000000e+00> : vector<128x128xf32>
    %48 = tpu.matmul %1, %45, %cst_38 {dimension_numbers = #tpu.dot_dimension_numbers<[1], [0], [0], [1], [0, 0, 1, 1], [], []>} : vector<128x128xf32>, vector<128x128xf32>, vector<128x128xf32> -> vector<128x128xf32>
    %cst_39 = arith.constant dense<0.000000e+00> : vector<128x128xf32>
    %49 = tpu.matmul %2, %46, %cst_39 {dimension_numbers = #tpu.dot_dimension_numbers<[1], [0], [0], [1], [0, 0, 1, 1], [], []>} : vector<128x128xf32>, vector<128x128xf32>, vector<128x128xf32> -> vector<128x128xf32>
    %50 = arith.subf %47, %48 : vector<128x128xf32>
    %51 = arith.subf %49, %47 : vector<128x128xf32>
    %52 = arith.subf %51, %48 : vector<128x128xf32>
    %53 = arith.mulf %6, %50 : vector<128x128xf32>
    %54 = arith.mulf %7, %52 : vector<128x128xf32>
    %55 = arith.subf %53, %54 : vector<128x128xf32>
    %56 = arith.mulf %6, %52 : vector<128x128xf32>
    %57 = arith.mulf %7, %50 : vector<128x128xf32>
    %58 = arith.addf %56, %57 : vector<128x128xf32>
    %59 = arith.addf %55, %58 : vector<128x128xf32>
    %cst_40 = arith.constant dense<0.000000e+00> : vector<128x128xf32>
    %60 = tpu.matmul %3, %55, %cst_40 {dimension_numbers = #tpu.dot_dimension_numbers<[1], [0], [0], [1], [0, 0, 1, 1], [], []>} : vector<128x128xf32>, vector<128x128xf32>, vector<128x128xf32> -> vector<128x128xf32>
    %cst_41 = arith.constant dense<0.000000e+00> : vector<128x128xf32>
    %61 = tpu.matmul %4, %58, %cst_41 {dimension_numbers = #tpu.dot_dimension_numbers<[1], [0], [0], [1], [0, 0, 1, 1], [], []>} : vector<128x128xf32>, vector<128x128xf32>, vector<128x128xf32> -> vector<128x128xf32>
    %cst_42 = arith.constant dense<0.000000e+00> : vector<128x128xf32>
    %62 = tpu.matmul %5, %59, %cst_42 {dimension_numbers = #tpu.dot_dimension_numbers<[1], [0], [0], [1], [0, 0, 1, 1], [], []>} : vector<128x128xf32>, vector<128x128xf32>, vector<128x128xf32> -> vector<128x128xf32>
    %63 = arith.subf %60, %61 : vector<128x128xf32>
    %64 = arith.subf %62, %60 : vector<128x128xf32>
    %65 = arith.subf %64, %61 : vector<128x128xf32>
    %c128 = arith.constant 128 : index
    %c0_43 = arith.constant 0 : index
    %66 = vector.load %arg19[%c128, %c0_43] : memref<512x128xf32, #tpu.memory_space<vmem>>, vector<128x128xf32>
    tpu.vector_store %arg19[%c128, %c0_43], %63 {strides = array<i32>} : memref<512x128xf32, #tpu.memory_space<vmem>>, vector<128x128xf32>,
    %c128_44 = arith.constant 128 : index
    %c0_45 = arith.constant 0 : index
    %67 = vector.load %arg20[%c128_44, %c0_45] : memref<512x128xf32, #tpu.memory_space<vmem>>, vector<128x128xf32>
    tpu.vector_store %arg20[%c128_44, %c0_45], %65 {strides = array<i32>} : memref<512x128xf32, #tpu.memory_space<vmem>>, vector<128x128xf32>,
    %68 = vector.extract_strided_slice %17 {offsets = [256, 0], sizes = [128, 128], strides = [1, 1]} : vector<512x128xf32> to vector<128x128xf32>
    %69 = vector.extract_strided_slice %19 {offsets = [256, 0], sizes = [128, 128], strides = [1, 1]} : vector<512x128xf32> to vector<128x128xf32>
    %70 = arith.addf %68, %69 : vector<128x128xf32>
    %cst_46 = arith.constant dense<0.000000e+00> : vector<128x128xf32>
    %71 = tpu.matmul %0, %68, %cst_46 {dimension_numbers = #tpu.dot_dimension_numbers<[1], [0], [0], [1], [0, 0, 1, 1], [], []>} : vector<128x128xf32>, vector<128x128xf32>, vector<128x128xf32> -> vector<128x128xf32>
    %cst_47 = arith.constant dense<0.000000e+00> : vector<128x128xf32>
    %72 = tpu.matmul %1, %69, %cst_47 {dimension_numbers = #tpu.dot_dimension_numbers<[1], [0], [0], [1], [0, 0, 1, 1], [], []>} : vector<128x128xf32>, vector<128x128xf32>, vector<128x128xf32> -> vector<128x128xf32>
    %cst_48 = arith.constant dense<0.000000e+00> : vector<128x128xf32>
    %73 = tpu.matmul %2, %70, %cst_48 {dimension_numbers = #tpu.dot_dimension_numbers<[1], [0], [0], [1], [0, 0, 1, 1], [], []>} : vector<128x128xf32>, vector<128x128xf32>, vector<128x128xf32> -> vector<128x128xf32>
    %74 = arith.subf %71, %72 : vector<128x128xf32>
    %75 = arith.subf %73, %71 : vector<128x128xf32>
    %76 = arith.subf %75, %72 : vector<128x128xf32>
    %77 = arith.mulf %6, %74 : vector<128x128xf32>
    %78 = arith.mulf %7, %76 : vector<128x128xf32>
    %79 = arith.subf %77, %78 : vector<128x128xf32>
    %80 = arith.mulf %6, %76 : vector<128x128xf32>
    %81 = arith.mulf %7, %74 : vector<128x128xf32>
    %82 = arith.addf %80, %81 : vector<128x128xf32>
    %83 = arith.addf %79, %82 : vector<128x128xf32>
    %cst_49 = arith.constant dense<0.000000e+00> : vector<128x128xf32>
    %84 = tpu.matmul %3, %79, %cst_49 {dimension_numbers = #tpu.dot_dimension_numbers<[1], [0], [0], [1], [0, 0, 1, 1], [], []>} : vector<128x128xf32>, vector<128x128xf32>, vector<128x128xf32> -> vector<128x128xf32>
    %cst_50 = arith.constant dense<0.000000e+00> : vector<128x128xf32>
    %85 = tpu.matmul %4, %82, %cst_50 {dimension_numbers = #tpu.dot_dimension_numbers<[1], [0], [0], [1], [0, 0, 1, 1], [], []>} : vector<128x128xf32>, vector<128x128xf32>, vector<128x128xf32> -> vector<128x128xf32>
    %cst_51 = arith.constant dense<0.000000e+00> : vector<128x128xf32>
    %86 = tpu.matmul %5, %83, %cst_51 {dimension_numbers = #tpu.dot_dimension_numbers<[1], [0], [0], [1], [0, 0, 1, 1], [], []>} : vector<128x128xf32>, vector<128x128xf32>, vector<128x128xf32> -> vector<128x128xf32>
    %87 = arith.subf %84, %85 : vector<128x128xf32>
    %88 = arith.subf %86, %84 : vector<128x128xf32>
    %89 = arith.subf %88, %85 : vector<128x128xf32>
    %c256 = arith.constant 256 : index
    %c0_52 = arith.constant 0 : index
    %90 = vector.load %arg19[%c256, %c0_52] : memref<512x128xf32, #tpu.memory_space<vmem>>, vector<128x128xf32>
    tpu.vector_store %arg19[%c256, %c0_52], %87 {strides = array<i32>} : memref<512x128xf32, #tpu.memory_space<vmem>>, vector<128x128xf32>,
    %c256_53 = arith.constant 256 : index
    %c0_54 = arith.constant 0 : index
    %91 = vector.load %arg20[%c256_53, %c0_54] : memref<512x128xf32, #tpu.memory_space<vmem>>, vector<128x128xf32>
    tpu.vector_store %arg20[%c256_53, %c0_54], %89 {strides = array<i32>} : memref<512x128xf32, #tpu.memory_space<vmem>>, vector<128x128xf32>,
    %92 = vector.extract_strided_slice %17 {offsets = [384, 0], sizes = [128, 128], strides = [1, 1]} : vector<512x128xf32> to vector<128x128xf32>
    %93 = vector.extract_strided_slice %19 {offsets = [384, 0], sizes = [128, 128], strides = [1, 1]} : vector<512x128xf32> to vector<128x128xf32>
    %94 = arith.addf %92, %93 : vector<128x128xf32>
    %cst_55 = arith.constant dense<0.000000e+00> : vector<128x128xf32>
    %95 = tpu.matmul %0, %92, %cst_55 {dimension_numbers = #tpu.dot_dimension_numbers<[1], [0], [0], [1], [0, 0, 1, 1], [], []>} : vector<128x128xf32>, vector<128x128xf32>, vector<128x128xf32> -> vector<128x128xf32>
    %cst_56 = arith.constant dense<0.000000e+00> : vector<128x128xf32>
    %96 = tpu.matmul %1, %93, %cst_56 {dimension_numbers = #tpu.dot_dimension_numbers<[1], [0], [0], [1], [0, 0, 1, 1], [], []>} : vector<128x128xf32>, vector<128x128xf32>, vector<128x128xf32> -> vector<128x128xf32>
    %cst_57 = arith.constant dense<0.000000e+00> : vector<128x128xf32>
    %97 = tpu.matmul %2, %94, %cst_57 {dimension_numbers = #tpu.dot_dimension_numbers<[1], [0], [0], [1], [0, 0, 1, 1], [], []>} : vector<128x128xf32>, vector<128x128xf32>, vector<128x128xf32> -> vector<128x128xf32>
    %98 = arith.subf %95, %96 : vector<128x128xf32>
    %99 = arith.subf %97, %95 : vector<128x128xf32>
    %100 = arith.subf %99, %96 : vector<128x128xf32>
    %101 = arith.mulf %6, %98 : vector<128x128xf32>
    %102 = arith.mulf %7, %100 : vector<128x128xf32>
    %103 = arith.subf %101, %102 : vector<128x128xf32>
    %104 = arith.mulf %6, %100 : vector<128x128xf32>
    %105 = arith.mulf %7, %98 : vector<128x128xf32>
    %106 = arith.addf %104, %105 : vector<128x128xf32>
    %107 = arith.addf %103, %106 : vector<128x128xf32>
    %cst_58 = arith.constant dense<0.000000e+00> : vector<128x128xf32>
    %108 = tpu.matmul %3, %103, %cst_58 {dimension_numbers = #tpu.dot_dimension_numbers<[1], [0], [0], [1], [0, 0, 1, 1], [], []>} : vector<128x128xf32>, vector<128x128xf32>, vector<128x128xf32> -> vector<128x128xf32>
    %cst_59 = arith.constant dense<0.000000e+00> : vector<128x128xf32>
    %109 = tpu.matmul %4, %106, %cst_59 {dimension_numbers = #tpu.dot_dimension_numbers<[1], [0], [0], [1], [0, 0, 1, 1], [], []>} : vector<128x128xf32>, vector<128x128xf32>, vector<128x128xf32> -> vector<128x128xf32>
    %cst_60 = arith.constant dense<0.000000e+00> : vector<128x128xf32>
    %110 = tpu.matmul %5, %107, %cst_60 {dimension_numbers = #tpu.dot_dimension_numbers<[1], [0], [0], [1], [0, 0, 1, 1], [], []>} : vector<128x128xf32>, vector<128x128xf32>, vector<128x128xf32> -> vector<128x128xf32>
    %111 = arith.subf %108, %109 : vector<128x128xf32>
    %112 = arith.subf %110, %108 : vector<128x128xf32>
    %113 = arith.subf %112, %109 : vector<128x128xf32>
    %c384 = arith.constant 384 : index
    %c0_61 = arith.constant 0 : index
    %114 = vector.load %arg19[%c384, %c0_61] : memref<512x128xf32, #tpu.memory_space<vmem>>, vector<128x128xf32>
    tpu.vector_store %arg19[%c384, %c0_61], %111 {strides = array<i32>} : memref<512x128xf32, #tpu.memory_space<vmem>>, vector<128x128xf32>,
    %c384_62 = arith.constant 384 : index
    %c0_63 = arith.constant 0 : index
    %115 = vector.load %arg20[%c384_62, %c0_63] : memref<512x128xf32, #tpu.memory_space<vmem>>, vector<128x128xf32>
    tpu.vector_store %arg20[%c384_62, %c0_63], %113 {strides = array<i32>} : memref<512x128xf32, #tpu.memory_space<vmem>>, vector<128x128xf32>,
    %c0_64 = arith.constant 0 : index
    %c0_65 = arith.constant 0 : index
    %116 = vector.load %arg19[%c0_64, %c0_65] : memref<512x128xf32, #tpu.memory_space<vmem>>, vector<512x128xf32>
    %c0_66 = arith.constant 0 : index
    %c0_67 = arith.constant 0 : index
    %117 = vector.load %arg20[%c0_66, %c0_67] : memref<512x128xf32, #tpu.memory_space<vmem>>, vector<512x128xf32>
    %118 = arith.addf %116, %117 : vector<512x128xf32>
    %c0_68 = arith.constant 0 : index
    %c0_69 = arith.constant 0 : index
    %119 = vector.load %arg10[%c0_68, %c0_69] : memref<128x128xf32, #tpu.memory_space<vmem>>, vector<128x128xf32>
    %c0_70 = arith.constant 0 : index
    %c0_71 = arith.constant 0 : index
    %120 = vector.load %arg11[%c0_70, %c0_71] : memref<128x128xf32, #tpu.memory_space<vmem>>, vector<128x128xf32>
    %c0_72 = arith.constant 0 : index
    %c0_73 = arith.constant 0 : index
    %121 = vector.load %arg12[%c0_72, %c0_73] : memref<128x128xf32, #tpu.memory_space<vmem>>, vector<128x128xf32>
    %cst_74 = arith.constant dense<0.000000e+00> : vector<512x128xf32>
    %122 = tpu.matmul %116, %119, %cst_74 {dimension_numbers = #tpu.dot_dimension_numbers<[1], [0], [0], [1], [0, 0, 1, 1], [], []>} : vector<512x128xf32>, vector<128x128xf32>, vector<512x128xf32> -> vector<512x128xf32>
    %cst_75 = arith.constant dense<0.000000e+00> : vector<512x128xf32>
    %123 = tpu.matmul %117, %120, %cst_75 {dimension_numbers = #tpu.dot_dimension_numbers<[1], [0], [0], [1], [0, 0, 1, 1], [], []>} : vector<512x128xf32>, vector<128x128xf32>, vector<512x128xf32> -> vector<512x128xf32>
    %cst_76 = arith.constant dense<0.000000e+00> : vector<512x128xf32>
    %124 = tpu.matmul %118, %121, %cst_76 {dimension_numbers = #tpu.dot_dimension_numbers<[1], [0], [0], [1], [0, 0, 1, 1], [], []>} : vector<512x128xf32>, vector<128x128xf32>, vector<512x128xf32> -> vector<512x128xf32>
    %125 = arith.subf %122, %123 : vector<512x128xf32>
    %126 = arith.subf %124, %122 : vector<512x128xf32>
    %127 = arith.subf %126, %123 : vector<512x128xf32>
    %c0_77 = arith.constant 0 : index
    %c0_78 = arith.constant 0 : index
    %128 = vector.load %arg17[%c0_77, %c0_78] : memref<512x128xf32, #tpu.memory_space<vmem>>, vector<512x128xf32>
    tpu.vector_store %arg17[%c0_77, %c0_78], %125 {strides = array<i32>} : memref<512x128xf32, #tpu.memory_space<vmem>>, vector<512x128xf32>,
    %c0_79 = arith.constant 0 : index
    %c0_80 = arith.constant 0 : index
    %129 = vector.load %arg18[%c0_79, %c0_80] : memref<512x128xf32, #tpu.memory_space<vmem>>, vector<512x128xf32>
    tpu.vector_store %arg18[%c0_79, %c0_80], %127 {strides = array<i32>} : memref<512x128xf32, #tpu.memory_space<vmem>>, vector<512x128xf32>,
    return
  }
  func.func @transform_0(%arg0: i32) -> (i32, i32) {
    %c0_i32 = arith.constant 0 : i32
    %c0_i32_0 = arith.constant 0 : i32
    %c0_i32_1 = arith.constant 0 : i32
    return %c0_i32, %c0_i32_0 : i32, i32
  }
  func.func @transform_1(%arg0: i32) -> (i32, i32) {
    %c0_i32 = arith.constant 0 : i32
    %c0_i32_0 = arith.constant 0 : i32
    %c0_i32_1 = arith.constant 0 : i32
    return %c0_i32, %c0_i32_0 : i32, i32
  }
  func.func @transform_2(%arg0: i32) -> (i32, i32) {
    %c0_i32 = arith.constant 0 : i32
    %c0_i32_0 = arith.constant 0 : i32
    %c0_i32_1 = arith.constant 0 : i32
    return %c0_i32, %c0_i32_0 : i32, i32
  }
  func.func @transform_3(%arg0: i32) -> (i32, i32) {
    %c0_i32 = arith.constant 0 : i32
    %c0_i32_0 = arith.constant 0 : i32
    %c0_i32_1 = arith.constant 0 : i32
    return %c0_i32, %c0_i32_0 : i32, i32
  }
  func.func @transform_4(%arg0: i32) -> (i32, i32) {
    %c0_i32 = arith.constant 0 : i32
    %c0_i32_0 = arith.constant 0 : i32
    %c0_i32_1 = arith.constant 0 : i32
    return %c0_i32, %c0_i32_0 : i32, i32
  }
  func.func @transform_5(%arg0: i32) -> (i32, i32) {
    %c0_i32 = arith.constant 0 : i32
    %c0_i32_0 = arith.constant 0 : i32
    %c0_i32_1 = arith.constant 0 : i32
    return %c0_i32, %c0_i32_0 : i32, i32
  }
  func.func @transform_6(%arg0: i32) -> (i32, i32) {
    %c0_i32 = arith.constant 0 : i32
    %c0_i32_0 = arith.constant 0 : i32
    %c0_i32_1 = arith.constant 0 : i32
    return %c0_i32, %c0_i32_0 : i32, i32
  }
  func.func @transform_7(%arg0: i32) -> (i32, i32) {
    %c0_i32 = arith.constant 0 : i32
    %c0_i32_0 = arith.constant 0 : i32
    %c0_i32_1 = arith.constant 0 : i32
    return %c0_i32, %c0_i32_0 : i32, i32
  }
  func.func @transform_8(%arg0: i32) -> (i32, i32) {
    %c0_i32 = arith.constant 0 : i32
    %c0_i32_0 = arith.constant 0 : i32
    %c0_i32_1 = arith.constant 0 : i32
    return %c0_i32, %c0_i32_0 : i32, i32
  }
  func.func @transform_9(%arg0: i32) -> (i32, i32) {
    %c0_i32 = arith.constant 0 : i32
    %c0_i32_0 = arith.constant 0 : i32
    %c0_i32_1 = arith.constant 0 : i32
    return %c0_i32, %c0_i32_0 : i32, i32
  }
  func.func @transform_10(%arg0: i32) -> (i32, i32) {
    %c0_i32 = arith.constant 0 : i32
    %c0_i32_0 = arith.constant 0 : i32
    %c0_i32_1 = arith.constant 0 : i32
    return %c0_i32, %c0_i32_0 : i32, i32
  }
  func.func @transform_11(%arg0: i32) -> (i32, i32) {
    %c0_i32 = arith.constant 0 : i32
    %c0_i32_0 = arith.constant 0 : i32
    %c0_i32_1 = arith.constant 0 : i32
    return %c0_i32, %c0_i32_0 : i32, i32
  }
  func.func @transform_12(%arg0: i32) -> (i32, i32) {
    %c0_i32 = arith.constant 0 : i32
    %c0_i32_0 = arith.constant 0 : i32
    %c0_i32_1 = arith.constant 0 : i32
    return %c0_i32, %c0_i32_0 : i32, i32
  }
  func.func @transform_13(%arg0: i32) -> (i32, i32) {
    %c0_i32 = arith.constant 0 : i32
    %c0_i32_0 = arith.constant 0 : i32
    %c0_i32_1 = arith.constant 0 : i32
    return %c0_i32, %c0_i32_0 : i32, i32
  }
  func.func @transform_14(%arg0: i32) -> (i32, i32) {
    %c0_i32 = arith.constant 0 : i32
    %c0_i32_0 = arith.constant 0 : i32
    return %arg0, %c0_i32 : i32, i32
  }
  func.func @transform_15(%arg0: i32) -> (i32, i32) {
    %c0_i32 = arith.constant 0 : i32
    %c0_i32_0 = arith.constant 0 : i32
    return %arg0, %c0_i32 : i32, i32
  }
  func.func @transform_16(%arg0: i32) -> (i32, i32) {
    %c0_i32 = arith.constant 0 : i32
    %c0_i32_0 = arith.constant 0 : i32
    return %arg0, %c0_i32 : i32, i32
  }
  func.func @transform_17(%arg0: i32) -> (i32, i32) {
    %c0_i32 = arith.constant 0 : i32
    %c0_i32_0 = arith.constant 0 : i32
    return %arg0, %c0_i32 : i32, i32
  }
}

</mosaic_0001>

<bundles_post_ra>
// kernel: tpu_custom_call.1
= control target key start
LH: loop header
LB: loop body
LE: loop exit
PB: predicated region body
PF: predicated region fallthrough
CT: control target
= control target key end

     0   :  { %s17000_s0 = inlined_call_operand.hbm [shape: f32[128,128], index: 0, kind: input, shape index: {}]   ;;  %s17001_s1 = inlined_call_operand.hbm [shape: f32[128,128], index: 1, kind: input, shape index: {}]   ;;  %s17002_s2 = inlined_call_operand.hbm [shape: f32[128,128], index: 2, kind: input, shape index: {}]   ;;  %s17003_s3 = inlined_call_operand.hbm [shape: f32[128,128], index: 3, kind: input, shape index: {}]   ;;  %s17004_s4 = inlined_call_operand.hbm [shape: f32[128,128], index: 4, kind: input, shape index: {}]   ;;  %s17005_s5 = inlined_call_operand.hbm [shape: f32[128,128], index: 5, kind: input, shape index: {}]   ;;  %s17006_s6 = inlined_call_operand.hbm [shape: f32[128,128], index: 6, kind: input, shape index: {}]   ;;  %s17007_s7 = inlined_call_operand.hbm [shape: f32[128,128], index: 7, kind: input, shape index: {}]   ;;  %s17008_s8 = inlined_call_operand.hbm [shape: f32[128,128], index: 8, kind: input, shape index: {}]   ;;  %s17009_s9 = inlined_call_operand.hbm [shape: f32[128,128], index: 9, kind: input, shape index: {}]   ;;  %s17010_s10 = inlined_call_operand.hbm [shape: f32[128,128], index: 10, kind: input, shape index: {}]   ;;  %s17011_s11 = inlined_call_operand.hbm [shape: f32[128,128], index: 11, kind: input, shape index: {}]   ;;  %s17012_s12 = inlined_call_operand.hbm [shape: f32[128,128], index: 12, kind: input, shape index: {}]   ;;  %s17013_s13 = inlined_call_operand.hbm [shape: f32[128,128], index: 13, kind: input, shape index: {}]   ;;  %s17014_s14 = inlined_call_operand.hbm [shape: f32[512,128], index: 14, kind: input, shape index: {}]   ;;  %s17015_s15 = inlined_call_operand.hbm [shape: f32[512,128], index: 15, kind: input, shape index: {}]   ;;  %s17016_s16 = inlined_call_operand.hbm [shape: f32[512,128], index: 16, kind: output, shape index: {0}]   ;;  %s17017_s17 = inlined_call_operand.hbm [shape: f32[512,128], index: 17, kind: output, shape index: {1}]  }
   0x1   :  { %17317 = sst [smem:[#allocation159_spill]] %s17000_s0 }
   0x2   :  { %17318 = sst [smem:[#allocation160_spill]] %s17001_s1 }
   0x3   :  { %17319 = sst [smem:[#allocation161_spill]] %s17017_s17 }
   0x4   :  { %23 = vsyncpa [#allocation5], 0 }
   0x5   :  { %24 = vsyncpa [#allocation8], 0 }
   0x6   :  { %25 = vsyncpa [#allocation11], 0 }
   0x7   :  { %26 = vsyncpa [#allocation14], 0 }
   0x8   :  { %27 = vsyncpa [#allocation17], 0 }
   0x9   :  { %28 = vsyncpa [#allocation20], 0 }
   0xa   :  { %29 = vsyncpa [#allocation23], 0 }
   0xb   :  { %30 = vsyncpa [#allocation26], 0 }
   0xc   :  { %31 = vsyncpa [#allocation29], 0 }
   0xd   :  { %32 = vsyncpa [#allocation6], 0 }
   0xe   :  { %33 = vsyncpa [#allocation32], 0  ;;  %s13404_s24 = smov [#allocation7]   ;;  %s13405_s26 = smov [#allocation10]  }
   0xf   :  { %s51_s25 = sshll.u32 %s13404_s24, 4  ;;  %s75_s27 = sshll.u32 %s13405_s26, 4  ;;  %s52_s25 = int_to_ptr.vmem [resolvable:$true] %s51_s25  ;;  %s13514_s27 = int_to_ptr.vmem [resolvable:$true] %s75_s27 }
  0x10   :  { %s17320_s0 = sld [smem:[#allocation160_spill]] }
  0x16   :  { %s12986_s30 = scalar_lea.hbm %s17320_s0, 2048 }
  0x17   :  { %p12987_p0 = scmp.ne.s32.totalorder %s17320_s0, %s12986_s30  ;;  %p12990_p1 = scmp.lt.u32.totalorder %s12986_s30, %s17320_s0 }
  0x19   :  { %p12992_p2 = pnand %p12990_p1, %p12987_p0 }
  0x1b   :  { %12995 = shalt.err (!%p12992_p2)
}
  0x1c   :  { %s12996_s21 = scalar_lea.vmem %s52_s25, 2048  ;;  %p13001_p4 = scmp.lt.s32.totalorder %s52_s25, %s52_s25 }
  0x1d   :  { %p12997_p3 = scmp.ne.s32.totalorder %s52_s25, %s12996_s21  ;;  %p13002_p5 = scmp.lt.s32.totalorder %s12996_s21, %s12996_s21 }
  0x1f   :  { %p13003_p6 = por %p13002_p5, %p13001_p4 }
  0x21   :  { %p13004_p7 = pnand %p13003_p6, %p12997_p3 }
  0x23   :  { %13007 = shalt.err (!%p13004_p7)
}
  0x24   :  { %s13406_s22 = smov 128   ;;  %s13407_s23 = smov 8  }
  0x25   :  { %57 = dma.hbm_to_vmem [thread:$0]  %s17320_s0, 2048, %s52_s25, [#allocation8], %s13406_s22, %s13406_s22, %s13407_s23  }
  0x26   :  { %s13008_s30 = scalar_lea.hbm %s17003_s3, 2048 }
  0x27   :  { %p13009_p8 = scmp.ne.s32.totalorder %s17003_s3, %s13008_s30  ;;  %p13012_p9 = scmp.lt.u32.totalorder %s13008_s30, %s17003_s3 }
  0x29   :  { %p13014_p10 = pnand %p13012_p9, %p13009_p8 }
  0x2b   :  { %13017 = shalt.err (!%p13014_p10)
}
  0x2c   :  { %s13018_s21 = scalar_lea.vmem %s13514_s27, 2048  ;;  %p13023_p12 = scmp.lt.s32.totalorder %s13514_s27, %s13514_s27 }
  0x2d   :  { %p13019_p11 = scmp.ne.s32.totalorder %s13514_s27, %s13018_s21  ;;  %p13024_p13 = scmp.lt.s32.totalorder %s13018_s21, %s13018_s21 }
  0x2f   :  { %p13025_p0 = por %p13024_p13, %p13023_p12 }
  0x31   :  { %p13026_p1 = pnand %p13025_p0, %p13019_p11 }
  0x33   :  { %13029 = shalt.err (!%p13026_p1)
}
  0x34   :  { %81 = dma.hbm_to_vmem [thread:$0]  %s17003_s3, 2048, %s13514_s27, [#allocation11], %s13406_s22, %s13406_s22, %s13407_s23  }
  0x35   :  { %s13408_s24 = smov [#allocation13]   ;;  %s13409_s28 = smov [#allocation16]  }
  0x36   :  { %s99_s26 = sshll.u32 %s13408_s24, 4  ;;  %s123_s29 = sshll.u32 %s13409_s28, 4  ;;  %s100_s26 = int_to_ptr.vmem [resolvable:$true] %s99_s26  ;;  %s13551_s29 = int_to_ptr.vmem [resolvable:$true] %s123_s29 }
  0x37   :  { %s13030_s19 = scalar_lea.hbm %s17005_s5, 2048 }
  0x38   :  { %p13031_p2 = scmp.ne.s32.totalorder %s17005_s5, %s13030_s19  ;;  %p13034_p3 = scmp.lt.u32.totalorder %s13030_s19, %s17005_s5 }
  0x3a   :  { %p13036_p4 = pnand %p13034_p3, %p13031_p2 }
  0x3c   :  { %13039 = shalt.err (!%p13036_p4)
}
  0x3d   :  { %s13040_s3 = scalar_lea.vmem %s100_s26, 2048  ;;  %p13045_p6 = scmp.lt.s32.totalorder %s100_s26, %s100_s26 }
  0x3e   :  { %p13041_p5 = scmp.ne.s32.totalorder %s100_s26, %s13040_s3  ;;  %p13046_p7 = scmp.lt.s32.totalorder %s13040_s3, %s13040_s3 }
  0x40   :  { %p13047_p8 = por %p13046_p7, %p13045_p6 }
  0x42   :  { %p13048_p9 = pnand %p13047_p8, %p13041_p5 }
  0x44   :  { %13051 = shalt.err (!%p13048_p9)
}
  0x45   :  { %105 = dma.hbm_to_vmem [thread:$0]  %s17005_s5, 2048, %s100_s26, [#allocation14], %s13406_s22, %s13406_s22, %s13407_s23  }
  0x46   :  { %s13052_s17 = scalar_lea.hbm %s17007_s7, 2048 }
  0x47   :  { %p13053_p10 = scmp.ne.s32.totalorder %s17007_s7, %s13052_s17  ;;  %p13056_p11 = scmp.lt.u32.totalorder %s13052_s17, %s17007_s7 }
  0x49   :  { %p13058_p12 = pnand %p13056_p11, %p13053_p10 }
  0x4b   :  { %13061 = shalt.err (!%p13058_p12)
}
  0x4c   :  { %s13062_s1 = scalar_lea.vmem %s13551_s29, 2048  ;;  %p13067_p0 = scmp.lt.s32.totalorder %s13551_s29, %s13551_s29 }
  0x4d   :  { %p13063_p13 = scmp.ne.s32.totalorder %s13551_s29, %s13062_s1  ;;  %p13068_p1 = scmp.lt.s32.totalorder %s13062_s1, %s13062_s1 }
  0x4f   :  { %p13069_p2 = por %p13068_p1, %p13067_p0 }
  0x51   :  { %p13070_p3 = pnand %p13069_p2, %p13063_p13 }
  0x53   :  { %13073 = shalt.err (!%p13070_p3)
}
  0x54   :  { %129 = dma.hbm_to_vmem [thread:$0]  %s17007_s7, 2048, %s13551_s29, [#allocation17], %s13406_s22, %s13406_s22, %s13407_s23  }
  0x55   :  { %s13410_s20 = smov [#allocation19]   ;;  %s13411_s3 = smov [#allocation22]  }
  0x56   :  { %s147_s21 = sshll.u32 %s13410_s20, 4  ;;  %s171_s27 = sshll.u32 %s13411_s3, 4  ;;  %s148_s21 = int_to_ptr.vmem [resolvable:$true] %s147_s21  ;;  %s13588_s27 = int_to_ptr.vmem [resolvable:$true] %s171_s27 }
  0x57   :  { %s13074_s24 = scalar_lea.hbm %s17009_s9, 2048 }
  0x58   :  { %p13075_p4 = scmp.ne.s32.totalorder %s17009_s9, %s13074_s24  ;;  %p13078_p5 = scmp.lt.u32.totalorder %s13074_s24, %s17009_s9 }
  0x5a   :  { %p13080_p6 = pnand %p13078_p5, %p13075_p4 }
  0x5c   :  { %13083 = shalt.err (!%p13080_p6)
}
  0x5d   :  { %s13084_s7 = scalar_lea.vmem %s148_s21, 2048  ;;  %p13089_p8 = scmp.lt.s32.totalorder %s148_s21, %s148_s21 }
  0x5e   :  { %p13085_p7 = scmp.ne.s32.totalorder %s148_s21, %s13084_s7  ;;  %p13090_p9 = scmp.lt.s32.totalorder %s13084_s7, %s13084_s7 }
  0x60   :  { %p13091_p10 = por %p13090_p9, %p13089_p8 }
  0x62   :  { %p13092_p11 = pnand %p13091_p10, %p13085_p7 }
  0x64   :  { %13095 = shalt.err (!%p13092_p11)
}
  0x65   :  { %153 = dma.hbm_to_vmem [thread:$0]  %s17009_s9, 2048, %s148_s21, [#allocation20], %s13406_s22, %s13406_s22, %s13407_s23  }
  0x66   :  { %s13096_s26 = scalar_lea.hbm %s17011_s11, 2048 }
  0x67   :  { %p13097_p12 = scmp.ne.s32.totalorder %s17011_s11, %s13096_s26  ;;  %p13100_p13 = scmp.lt.u32.totalorder %s13096_s26, %s17011_s11 }
  0x69   :  { %p13102_p0 = pnand %p13100_p13, %p13097_p12 }
  0x6b   :  { %13105 = shalt.err (!%p13102_p0)
}
  0x6c   :  { %s13106_s24 = scalar_lea.vmem %s13588_s27, 2048  ;;  %p13111_p2 = scmp.lt.s32.totalorder %s13588_s27, %s13588_s27 }
  0x6d   :  { %p13107_p1 = scmp.ne.s32.totalorder %s13588_s27, %s13106_s24  ;;  %p13112_p3 = scmp.lt.s32.totalorder %s13106_s24, %s13106_s24 }
  0x6f   :  { %p13113_p4 = por %p13112_p3, %p13111_p2 }
  0x71   :  { %p13114_p5 = pnand %p13113_p4, %p13107_p1 }
  0x73   :  { %13117 = shalt.err (!%p13114_p5)
}
  0x74   :  { %177 = dma.hbm_to_vmem [thread:$0]  %s17011_s11, 2048, %s13588_s27, [#allocation23], %s13406_s22, %s13406_s22, %s13407_s23  }
  0x75   :  { %s13412_s17 = smov [#allocation25]   ;;  %s13413_s30 = smov [#allocation4]  }
  0x76   :  { %s195_s28 = sshll.u32 %s13412_s17, 4  ;;  %s39_s18 = sshll.u32 %s13413_s30, 4  ;;  %s196_s28 = int_to_ptr.vmem [resolvable:$true] %s195_s28  ;;  %s13625_s18 = int_to_ptr.vmem [resolvable:$true] %s39_s18 }
  0x77   :  { %s13118_s19 = scalar_lea.hbm %s17013_s13, 2048 }
  0x78   :  { %p13119_p6 = scmp.ne.s32.totalorder %s17013_s13, %s13118_s19  ;;  %p13122_p7 = scmp.lt.u32.totalorder %s13118_s19, %s17013_s13 }
  0x7a   :  { %p13124_p8 = pnand %p13122_p7, %p13119_p6 }
  0x7c   :  { %13127 = shalt.err (!%p13124_p8)
}
  0x7d   :  { %s13128_s11 = scalar_lea.vmem %s196_s28, 2048  ;;  %p13133_p10 = scmp.lt.s32.totalorder %s196_s28, %s196_s28 }
  0x7e   :  { %p13129_p9 = scmp.ne.s32.totalorder %s196_s28, %s13128_s11  ;;  %p13134_p11 = scmp.lt.s32.totalorder %s13128_s11, %s13128_s11 }
  0x80   :  { %p13135_p12 = por %p13134_p11, %p13133_p10 }
  0x82   :  { %p13136_p13 = pnand %p13135_p12, %p13129_p9 }
  0x84   :  { %13139 = shalt.err (!%p13136_p13)
}
  0x85   :  { %201 = dma.hbm_to_vmem [thread:$0]  %s17013_s13, 2048, %s196_s28, [#allocation26], %s13406_s22, %s13406_s22, %s13407_s23  }
  0x86   :  { %s17321_s24 = sld [smem:[#allocation159_spill]] }
  0x8c   :  { %s13140_s9 = scalar_lea.hbm %s17321_s24, 2048 }
  0x8d   :  { %p13141_p0 = scmp.ne.s32.totalorder %s17321_s24, %s13140_s9  ;;  %p13144_p1 = scmp.lt.u32.totalorder %s13140_s9, %s17321_s24 }
  0x8f   :  { %p13146_p2 = pnand %p13144_p1, %p13141_p0 }
  0x91   :  { %13149 = shalt.err (!%p13146_p2)
}
  0x92   :  { %s13150_s29 = scalar_lea.vmem %s13625_s18, 2048  ;;  %p13155_p4 = scmp.lt.s32.totalorder %s13625_s18, %s13625_s18 }
  0x93   :  { %p13151_p3 = scmp.ne.s32.totalorder %s13625_s18, %s13150_s29  ;;  %p13156_p5 = scmp.lt.s32.totalorder %s13150_s29, %s13150_s29 }
  0x95   :  { %p13157_p6 = por %p13156_p5, %p13155_p4 }
  0x97   :  { %p13158_p7 = pnand %p13157_p6, %p13151_p3 }
  0x99   :  { %13161 = shalt.err (!%p13158_p7)
}
  0x9a   :  { %45 = dma.hbm_to_vmem [thread:$0]  %s17321_s24, 2048, %s13625_s18, [#allocation5], %s13406_s22, %s13406_s22, %s13407_s23  }
  0x9b   :  { %s13414_s19 = smov [#allocation9]   ;;  %s13415_s5 = smov [#allocation12]  }
  0x9c   :  { %s63_s1 = sshll.u32 %s13414_s19, 4  ;;  %s87_s26 = sshll.u32 %s13415_s5, 4  ;;  %s64_s1 = int_to_ptr.vmem [resolvable:$true] %s63_s1  ;;  %s13662_s26 = int_to_ptr.vmem [resolvable:$true] %s87_s26 }
  0x9d   :  { %s13162_s27 = scalar_lea.hbm %s17002_s2, 2048 }
  0x9e   :  { %p13163_p8 = scmp.ne.s32.totalorder %s17002_s2, %s13162_s27  ;;  %p13166_p9 = scmp.lt.u32.totalorder %s13162_s27, %s17002_s2 }
  0xa0   :  { %p13168_p10 = pnand %p13166_p9, %p13163_p8 }
  0xa2   :  { %13171 = shalt.err (!%p13168_p10)
}
  0xa3   :  { %s13172_s18 = scalar_lea.vmem %s64_s1, 2048  ;;  %p13177_p12 = scmp.lt.s32.totalorder %s64_s1, %s64_s1 }
  0xa4   :  { %p13173_p11 = scmp.ne.s32.totalorder %s64_s1, %s13172_s18  ;;  %p13178_p13 = scmp.lt.s32.totalorder %s13172_s18, %s13172_s18 }
  0xa6   :  { %p13179_p0 = por %p13178_p13, %p13177_p12 }
  0xa8   :  { %p13180_p1 = pnand %p13179_p0, %p13173_p11 }
  0xaa   :  { %13183 = shalt.err (!%p13180_p1)
}
  0xab   :  { %69 = dma.hbm_to_vmem [thread:$0]  %s17002_s2, 2048, %s64_s1, [#allocation8], %s13406_s22, %s13406_s22, %s13407_s23  }
  0xac   :  { %s13184_s7 = scalar_lea.hbm %s17004_s4, 2048 }
  0xad   :  { %p13185_p2 = scmp.ne.s32.totalorder %s17004_s4, %s13184_s7  ;;  %p13188_p3 = scmp.lt.u32.totalorder %s13184_s7, %s17004_s4 }
  0xaf   :  { %p13190_p4 = pnand %p13188_p3, %p13185_p2 }
  0xb1   :  { %13193 = shalt.err (!%p13190_p4)
}
  0xb2   :  { %s13194_s5 = scalar_lea.vmem %s13662_s26, 2048  ;;  %p13199_p6 = scmp.lt.s32.totalorder %s13662_s26, %s13662_s26 }
  0xb3   :  { %p13195_p5 = scmp.ne.s32.totalorder %s13662_s26, %s13194_s5  ;;  %p13200_p7 = scmp.lt.s32.totalorder %s13194_s5, %s13194_s5 }
  0xb5   :  { %p13201_p8 = por %p13200_p7, %p13199_p6 }
  0xb7   :  { %p13202_p9 = pnand %p13201_p8, %p13195_p5 }
  0xb9   :  { %13205 = shalt.err (!%p13202_p9)
}
  0xba   :  { %93 = dma.hbm_to_vmem [thread:$0]  %s17004_s4, 2048, %s13662_s26, [#allocation11], %s13406_s22, %s13406_s22, %s13407_s23  }
  0xbb   :  { %s13416_s20 = smov [#allocation15]   ;;  %s13417_s27 = smov [#allocation18]  }
  0xbc   :  { %s111_s11 = sshll.u32 %s13416_s20, 4  ;;  %s135_s3 = sshll.u32 %s13417_s27, 4  ;;  %s112_s11 = int_to_ptr.vmem [resolvable:$true] %s111_s11  ;;  %s13699_s3 = int_to_ptr.vmem [resolvable:$true] %s135_s3 }
  0xbd   :  { %s13206_s9 = scalar_lea.hbm %s17006_s6, 2048 }
  0xbe   :  { %p13207_p10 = scmp.ne.s32.totalorder %s17006_s6, %s13206_s9  ;;  %p13210_p11 = scmp.lt.u32.totalorder %s13206_s9, %s17006_s6 }
  0xc0   :  { %p13212_p12 = pnand %p13210_p11, %p13207_p10 }
  0xc2   :  { %13215 = shalt.err (!%p13212_p12)
}
  0xc3   :  { %s13216_s4 = scalar_lea.vmem %s112_s11, 2048  ;;  %p13221_p0 = scmp.lt.s32.totalorder %s112_s11, %s112_s11 }
  0xc4   :  { %p13217_p13 = scmp.ne.s32.totalorder %s112_s11, %s13216_s4  ;;  %p13222_p1 = scmp.lt.s32.totalorder %s13216_s4, %s13216_s4 }
  0xc6   :  { %p13223_p2 = por %p13222_p1, %p13221_p0 }
  0xc8   :  { %p13224_p3 = pnand %p13223_p2, %p13217_p13 }
  0xca   :  { %13227 = shalt.err (!%p13224_p3)
}
  0xcb   :  { %117 = dma.hbm_to_vmem [thread:$0]  %s17006_s6, 2048, %s112_s11, [#allocation14], %s13406_s22, %s13406_s22, %s13407_s23  }
  0xcc   :  { %s13228_s13 = scalar_lea.hbm %s17008_s8, 2048 }
  0xcd   :  { %p13229_p4 = scmp.ne.s32.totalorder %s17008_s8, %s13228_s13  ;;  %p13232_p5 = scmp.lt.u32.totalorder %s13228_s13, %s17008_s8 }
  0xcf   :  { %p13234_p6 = pnand %p13232_p5, %p13229_p4 }
  0xd1   :  { %13237 = shalt.err (!%p13234_p6)
}
  0xd2   :  { %s13238_s1 = scalar_lea.vmem %s13699_s3, 2048  ;;  %p13243_p8 = scmp.lt.s32.totalorder %s13699_s3, %s13699_s3 }
  0xd3   :  { %p13239_p7 = scmp.ne.s32.totalorder %s13699_s3, %s13238_s1  ;;  %p13244_p9 = scmp.lt.s32.totalorder %s13238_s1, %s13238_s1 }
  0xd5   :  { %p13245_p10 = por %p13244_p9, %p13243_p8 }
  0xd7   :  { %p13246_p11 = pnand %p13245_p10, %p13239_p7 }
  0xd9   :  { %13249 = shalt.err (!%p13246_p11)
}
  0xda   :  { %141 = dma.hbm_to_vmem [thread:$0]  %s17008_s8, 2048, %s13699_s3, [#allocation17], %s13406_s22, %s13406_s22, %s13407_s23  }
  0xdb   :  { %s13418_s11 = smov [#allocation21]   ;;  %s13419_s25 = smov [#allocation24]  }
  0xdc   :  { %s159_s27 = sshll.u32 %s13418_s11, 4  ;;  %s183_s0 = sshll.u32 %s13419_s25, 4  ;;  %s160_s27 = int_to_ptr.vmem [resolvable:$true] %s159_s27  ;;  %s13736_s0 = int_to_ptr.vmem [resolvable:$true] %s183_s0 }
  0xdd   :  { %s13250_s24 = scalar_lea.hbm %s17010_s10, 2048 }
  0xde   :  { %p13251_p12 = scmp.ne.s32.totalorder %s17010_s10, %s13250_s24  ;;  %p13254_p13 = scmp.lt.u32.totalorder %s13250_s24, %s17010_s10 }
  0xe0   :  { %p13256_p0 = pnand %p13254_p13, %p13251_p12 }
  0xe2   :  { %13259 = shalt.err (!%p13256_p0)
}
  0xe3   :  { %s13260_s8 = scalar_lea.vmem %s160_s27, 2048  ;;  %p13265_p2 = scmp.lt.s32.totalorder %s160_s27, %s160_s27 }
  0xe4   :  { %p13261_p1 = scmp.ne.s32.totalorder %s160_s27, %s13260_s8  ;;  %p13266_p3 = scmp.lt.s32.totalorder %s13260_s8, %s13260_s8 }
  0xe6   :  { %p13267_p4 = por %p13266_p3, %p13265_p2 }
  0xe8   :  { %p13268_p5 = pnand %p13267_p4, %p13261_p1 }
  0xea   :  { %13271 = shalt.err (!%p13268_p5)
}
  0xeb   :  { %165 = dma.hbm_to_vmem [thread:$0]  %s17010_s10, 2048, %s160_s27, [#allocation20], %s13406_s22, %s13406_s22, %s13407_s23  }
  0xec   :  { %s13272_s13 = scalar_lea.hbm %s17012_s12, 2048 }
  0xed   :  { %p13273_p6 = scmp.ne.s32.totalorder %s17012_s12, %s13272_s13  ;;  %p13276_p7 = scmp.lt.u32.totalorder %s13272_s13, %s17012_s12 }
  0xef   :  { %p13278_p8 = pnand %p13276_p7, %p13273_p6 }
  0xf1   :  { %13281 = shalt.err (!%p13278_p8)
}
  0xf2   :  { %s13282_s1 = scalar_lea.vmem %s13736_s0, 2048  ;;  %p13287_p10 = scmp.lt.s32.totalorder %s13736_s0, %s13736_s0 }
  0xf3   :  { %p13283_p9 = scmp.ne.s32.totalorder %s13736_s0, %s13282_s1  ;;  %p13288_p11 = scmp.lt.s32.totalorder %s13282_s1, %s13282_s1 }
  0xf5   :  { %p13289_p12 = por %p13288_p11, %p13287_p10 }
  0xf7   :  { %p13290_p13 = pnand %p13289_p12, %p13283_p9 }
  0xf9   :  { %13293 = shalt.err (!%p13290_p13)
}
  0xfa   :  { %189 = dma.hbm_to_vmem [thread:$0]  %s17012_s12, 2048, %s13736_s0, [#allocation23], %s13406_s22, %s13406_s22, %s13407_s23  }
  0xfb   :  { %s13420_s20 = smov [#allocation27]   ;;  %s13421_s27 = smov [#allocation28]  }
  0xfc   :  { %s207_s11 = sshll.u32 %s13420_s20, 4  ;;  %s219_s25 = sshll.u32 %s13421_s27, 4  ;;  %s208_s11 = int_to_ptr.vmem [resolvable:$true] %s207_s11  ;;  %s13773_s25 = int_to_ptr.vmem [resolvable:$true] %s219_s25 }
  0xfd   :  { %s13294_s24 = scalar_lea.hbm %s17014_s14, 8192 }
  0xfe   :  { %p13295_p0 = scmp.ne.s32.totalorder %s17014_s14, %s13294_s24  ;;  %p13298_p1 = scmp.lt.u32.totalorder %s13294_s24, %s17014_s14 }
 0x100   :  { %p13300_p2 = pnand %p13298_p1, %p13295_p0 }
 0x102   :  { %13303 = shalt.err (!%p13300_p2)
}
 0x103   :  { %s13304_s12 = scalar_lea.vmem %s208_s11, 8192  ;;  %p13309_p4 = scmp.lt.s32.totalorder %s208_s11, %s208_s11 }
 0x104   :  { %p13305_p3 = scmp.ne.s32.totalorder %s208_s11, %s13304_s12  ;;  %p13310_p5 = scmp.lt.s32.totalorder %s13304_s12, %s13304_s12 }
 0x106   :  { %p13311_p6 = por %p13310_p5, %p13309_p4 }
 0x108   :  { %p13312_p7 = pnand %p13311_p6, %p13305_p3 }
 0x10a   :  { %13315 = shalt.err (!%p13312_p7)
}
 0x10b   :  { %213 = dma.hbm_to_vmem [thread:$0]  %s17014_s14, 8192, %s208_s11, [#allocation26], %s13406_s22, %s13406_s22, %s13407_s23  }
 0x10c   :  { %s13316_s7 = scalar_lea.hbm %s17015_s15, 8192 }
 0x10d   :  { %p13317_p8 = scmp.ne.s32.totalorder %s17015_s15, %s13316_s7  ;;  %p13320_p9 = scmp.lt.u32.totalorder %s13316_s7, %s17015_s15 }
 0x10f   :  { %p13322_p10 = pnand %p13320_p9, %p13317_p8 }
 0x111   :  { %13325 = shalt.err (!%p13322_p10)
}
 0x112   :  { %s13326_s5 = scalar_lea.vmem %s13773_s25, 8192  ;;  %p13331_p12 = scmp.lt.s32.totalorder %s13773_s25, %s13773_s25 }
 0x113   :  { %p13327_p11 = scmp.ne.s32.totalorder %s13773_s25, %s13326_s5  ;;  %p13332_p13 = scmp.lt.s32.totalorder %s13326_s5, %s13326_s5 }
 0x115   :  { %p13333_p0 = por %p13332_p13, %p13331_p12 }
 0x117   :  { %p13334_p1 = pnand %p13333_p0, %p13327_p11 }
 0x119   :  { %13337 = shalt.err (!%p13334_p1)
}
 0x11a   :  { %225 = dma.hbm_to_vmem [thread:$0]  %s17015_s15, 8192, %s13773_s25, [#allocation29], %s13406_s22, %s13406_s22, %s13407_s23  }
 0x11b   :  { %13382 = dma.done.wait [#allocation5], 2048  }
 0x11c   :  { %13383 = vsyncadd [#allocation5], 4294965248 }
 0x11d   :  { %13384 = dma.done.wait [#allocation8], 4096  }
 0x11e   :  { %13385 = vsyncadd [#allocation8], 4294963200 }
 0x11f   :  { %13386 = dma.done.wait [#allocation11], 4096  }
 0x120   :  { %13387 = vsyncadd [#allocation11], 4294963200 }
 0x121   :  { %13388 = dma.done.wait [#allocation14], 4096  }
 0x122   :  { %13389 = vsyncadd [#allocation14], 4294963200 }
 0x123   :  { %13390 = dma.done.wait [#allocation17], 4096  }
 0x124   :  { %13391 = vsyncadd [#allocation17], 4294963200 }
 0x125   :  { %13392 = dma.done.wait [#allocation20], 4096  }
 0x126   :  { %13393 = vsyncadd [#allocation20], 4294963200 }
 0x127   :  { %13394 = dma.done.wait [#allocation23], 4096  }
 0x128   :  { %13395 = vsyncadd [#allocation23], 4294963200 }
 0x129   :  { %13396 = dma.done.wait [#allocation26], 10240  }
 0x12a   :  { %13397 = vsyncadd [#allocation26], 4294957056 }
 0x12b   :  { %13398 = dma.done.wait [#allocation29], 8192  }
 0x12c   :  { %13399 = vsyncadd [#allocation29], 4294959104  ;;  %v594_v0 = vld [vmem:[#allocation10] sm:$0xff]  ;;  %v595_v1 = vld [vmem:[#allocation10 + $0x8] sm:$0xff]  ;;  %s13422_s15 = smov [#allocation30]  }
 0x12d   :  { %v596_v2 = vld [vmem:[#allocation10 + $0x10] sm:$0xff]  ;;  %v11609_v3 = vpack.c.bf16 %v595_v1, %v594_v0  ;;  %v597_v4 = vld [vmem:[#allocation10 + $0x18] sm:$0xff]  ;;  %v598_v6 = vld [vmem:[#allocation10 + $0x20] sm:$0xff]  ;;  %s8213_s1 = sshll.u32 %s13422_s15, 4  ;;  %s8214_s1 = int_to_ptr.vmem [resolvable:$true] %s8213_s1 }
 0x12e   :  { %v11613_v5 = vpack.c.bf16 %v597_v4, %v596_v2  ;;  %v599_v7 = vld [vmem:[#allocation10 + $0x28] sm:$0xff]  ;;  %v13810_v9 = vld [vmem:[#allocation27] sm:$0xff]  ;;  %v600_v10 = vld [vmem:[#allocation10 + $0x30] sm:$0xff]  ;;  %s13338_s10 = scalar_lea.vmem %s8214_s1, 8192  ;;  %p13343_p3 = scmp.lt.s32.totalorder %s8214_s1, %s8214_s1 }
 0x12f   :  { %11610 = vmatprep.subr.bf16.mxu0 %v11609_v3  ;;  %12569 = vmatprep.subr.bf16.mxu1 %v11609_v3  ;;  %v11617_v8 = vpack.c.bf16 %v599_v7, %v598_v6  ;;  %v601_v11 = vld [vmem:[#allocation10 + $0x38] sm:$0xff]  ;;  %v13813_v12 = vld [vmem:[#allocation27 + $0x100] sm:$0xff]  ;;  %v603_v15 = vld [vmem:[#allocation10 + $0x48] sm:$0xff]  ;;  %p13339_p2 = scmp.ne.s32.totalorder %s8214_s1, %s13338_s10  ;;  %p13344_p4 = scmp.lt.s32.totalorder %s13338_s10, %s13338_s10 }
 0x130   :  { %11612 = vmatpush3.bf16.msra.mxu0 %v11609_v3  ;;  %12577 = vmatpush3.bf16.msra.mxu1 %v11609_v3  ;;  %v11621_v13 = vpack.c.bf16 %v601_v11, %v600_v10  ;;  %v602_v14 = vld [vmem:[#allocation10 + $0x40] sm:$0xff]  ;;  %v604_v17 = vld [vmem:[#allocation10 + $0x50] sm:$0xff]  ;;  %v605_v18 = vld [vmem:[#allocation10 + $0x58] sm:$0xff] }
 0x131   :  { %11614 = vmatprep.subr.bf16.mxu0 %v11613_v5  ;;  %12570 = vmatprep.subr.bf16.mxu1 %v11613_v5  ;;  %v11625_v16 = vpack.c.bf16 %v603_v15, %v602_v14  ;;  %v11629_v19 = vpack.c.bf16 %v605_v18, %v604_v17  ;;  %v606_v20 = vld [vmem:[#allocation10 + $0x60] sm:$0xff]  ;;  %v607_v21 = vld [vmem:[#allocation10 + $0x68] sm:$0xff]  ;;  %v608_v23 = vld [vmem:[#allocation10 + $0x70] sm:$0xff]  ;;  %p13345_p5 = por %p13344_p4, %p13343_p3 }
 0x132   :  { %9529 = vmatprep.mubr.f32.mxu0 %v13810_v9  ;;  %9577 = vmatprep.mubr.f32.mxu1 %v13813_v12  ;;  %v11633_v22 = vpack.c.bf16 %v607_v21, %v606_v20  ;;  %v609_v24 = vld [vmem:[#allocation10 + $0x78] sm:$0xff]  ;;  %v610_v26 = vld [vmem:[#allocation12] sm:$0xff]  ;;  %v611_v27 = vld [vmem:[#allocation12 + $0x8] sm:$0xff] }
 0x133   :  { %v11637_v25 = vpack.c.bf16 %v609_v24, %v608_v23  ;;  %v626_v28 = vld [vmem:[#allocation13] sm:$0xff]  ;;  %v627_v29 = vld [vmem:[#allocation13 + $0x8] sm:$0xff]  ;;  %v11641_v30 = vpack.c.bf16 %v611_v27, %v610_v26  ;;  %v612_v32 = vld [vmem:[#allocation12 + $0x10] sm:$0xff]  ;;  %p13346_p6 = pnand %p13345_p5, %p13339_p2 }
 0x134   :  { %11616 = vmatpush3.bf16.msra.mxu0 %v11613_v5  ;;  %12578 = vmatpush3.bf16.msra.mxu1 %v11613_v5  ;;  %v11673_v31 = vpack.c.bf16 %v627_v29, %v626_v28  ;;  %v613_v33 = vld [vmem:[#allocation12 + $0x18] sm:$0xff]  ;;  %v628_v34 = vld [vmem:[#allocation13 + $0x10] sm:$0xff]  ;;  %v13816_v36 = vld [vmem:[#allocation27 + $0x8] sm:$0xff] }
 0x135   :  { %11618 = vmatprep.subr.bf16.mxu0 %v11617_v8  ;;  %12571 = vmatprep.subr.bf16.mxu1 %v11617_v8  ;;  %v629_v35 = vld [vmem:[#allocation13 + $0x18] sm:$0xff]  ;;  %v13818_v37 = vld [vmem:[#allocation27 + $0x108] sm:$0xff]  ;;  %v13820_v38 = vld [vmem:[#allocation27 + $0x10] sm:$0xff]  ;;  %v11645_v40 = vpack.c.bf16 %v613_v33, %v612_v32 }
 0x136   :  { %v13822_v39 = vld [vmem:[#allocation27 + $0x110] sm:$0xff]  ;;  %v11677_v41 = vpack.c.bf16 %v629_v35, %v628_v34  ;;  %v614_v42 = vld [vmem:[#allocation12 + $0x20] sm:$0xff]  ;;  %v615_v43 = vld [vmem:[#allocation12 + $0x28] sm:$0xff] }
 0x137   :  { %v630_v44 = vld [vmem:[#allocation13 + $0x20] sm:$0xff]  ;;  %v631_v45 = vld [vmem:[#allocation13 + $0x28] sm:$0xff]  ;;  %v13828_v46 = vld [vmem:[#allocation27 + $0x18] sm:$0xff]  ;;  %v11649_v50 = vpack.c.bf16 %v615_v43, %v614_v42 }
 0x138   :  { %11620 = vmatpush3.bf16.msra.mxu0 %v11617_v8  ;;  %12579 = vmatpush3.bf16.msra.mxu1 %v11617_v8  ;;  %v13830_v47 = vld [vmem:[#allocation27 + $0x118] sm:$0xff]  ;;  %v13832_v48 = vld [vmem:[#allocation27 + $0x20] sm:$0xff]  ;;  %v11681_v51 = vpack.c.bf16 %v631_v45, %v630_v44  ;;  %v616_v52 = vld [vmem:[#allocation12 + $0x30] sm:$0xff] }
 0x139   :  { %11622 = vmatprep.subr.bf16.mxu0 %v11621_v13  ;;  %12572 = vmatprep.subr.bf16.mxu1 %v11621_v13  ;;  %v13834_v49 = vld [vmem:[#allocation27 + $0x120] sm:$0xff]  ;;  %v617_v53 = vld [vmem:[#allocation12 + $0x38] sm:$0xff]  ;;  %v632_v54 = vld [vmem:[#allocation13 + $0x30] sm:$0xff] }
 0x13a   :  { %v633_v55 = vld [vmem:[#allocation13 + $0x38] sm:$0xff]  ;;  %v13840_v56 = vld [vmem:[#allocation27 + $0x28] sm:$0xff]  ;;  %v13844_v58 = vld [vmem:[#allocation27 + $0x30] sm:$0xff]  ;;  %v11653_v60 = vpack.c.bf16 %v617_v53, %v616_v52 }
 0x13b   :  { %v13842_v57 = vld [vmem:[#allocation27 + $0x128] sm:$0xff]  ;;  %v13846_v59 = vld [vmem:[#allocation27 + $0x130] sm:$0xff]  ;;  %v11685_v61 = vpack.c.bf16 %v633_v55, %v632_v54  ;;  %v618_v62 = vld [vmem:[#allocation12 + $0x40] sm:$0xff] }
 0x13c   :  { %11624 = vmatpush3.bf16.msra.mxu0 %v11621_v13  ;;  %12580 = vmatpush3.bf16.msra.mxu1 %v11621_v13  ;;  %v619_v63 = vld [vmem:[#allocation12 + $0x48] sm:$0xff]  ;;  %v634_v0 = vld [vmem:[#allocation13 + $0x40] sm:$0xff]  ;;  %v13852_v2 = vld [vmem:[#allocation27 + $0x38] sm:$0xff] }
 0x13d   :  { %11626 = vmatprep.subr.bf16.mxu0 %v11625_v16  ;;  %12573 = vmatprep.subr.bf16.mxu1 %v11625_v16  ;;  %v635_v1 = vld [vmem:[#allocation13 + $0x48] sm:$0xff]  ;;  %v13854_v3 = vld [vmem:[#allocation27 + $0x138] sm:$0xff]  ;;  %v13856_v4 = vld [vmem:[#allocation27 + $0x40] sm:$0xff]  ;;  %v11657_v6 = vpack.c.bf16 %v619_v63, %v618_v62 }
 0x13e   :  { %v13858_v5 = vld [vmem:[#allocation27 + $0x140] sm:$0xff]  ;;  %v11689_v7 = vpack.c.bf16 %v635_v1, %v634_v0  ;;  %v620_v8 = vld [vmem:[#allocation12 + $0x50] sm:$0xff]  ;;  %v621_v10 = vld [vmem:[#allocation12 + $0x58] sm:$0xff] }
 0x13f   :  { %v636_v11 = vld [vmem:[#allocation13 + $0x50] sm:$0xff]  ;;  %v637_v13 = vld [vmem:[#allocation13 + $0x58] sm:$0xff]  ;;  %v13864_v14 = vld [vmem:[#allocation27 + $0x48] sm:$0xff]  ;;  %v11661_v18 = vpack.c.bf16 %v621_v10, %v620_v8 }
 0x140   :  { %11628 = vmatpush3.bf16.msra.mxu0 %v11625_v16  ;;  %12581 = vmatpush3.bf16.msra.mxu1 %v11625_v16  ;;  %v13866_v15 = vld [vmem:[#allocation27 + $0x148] sm:$0xff]  ;;  %v13868_v16 = vld [vmem:[#allocation27 + $0x50] sm:$0xff]  ;;  %v622_v20 = vld [vmem:[#allocation12 + $0x60] sm:$0xff] }
 0x141   :  { %11630 = vmatprep.subr.bf16.mxu0 %v11629_v19  ;;  %12574 = vmatprep.subr.bf16.mxu1 %v11629_v19  ;;  %v13870_v17 = vld [vmem:[#allocation27 + $0x150] sm:$0xff]  ;;  %v623_v21 = vld [vmem:[#allocation12 + $0x68] sm:$0xff]  ;;  %v13876_v24 = vld [vmem:[#allocation27 + $0x58] sm:$0xff] }
 0x142   :  { %v639_v23 = vld [vmem:[#allocation13 + $0x68] sm:$0xff]  ;;  %v13880_v26 = vld [vmem:[#allocation27 + $0x60] sm:$0xff]  ;;  %v11665_v28 = vpack.c.bf16 %v623_v21, %v622_v20  ;;  %v640_v32 = vld [vmem:[#allocation13 + $0x70] sm:$0xff] }
 0x143   :  { %v13882_v27 = vld [vmem:[#allocation27 + $0x160] sm:$0xff]  ;;  %v641_v33 = vld [vmem:[#allocation13 + $0x78] sm:$0xff]  ;;  %v13888_v34 = vld [vmem:[#allocation27 + $0x68] sm:$0xff] }
 0x144   :  { %11632 = vmatpush3.bf16.msra.mxu0 %v11629_v19  ;;  %12582 = vmatpush3.bf16.msra.mxu1 %v11629_v19  ;;  %v11693_v19 = vpack.c.bf16 %v637_v13, %v636_v11  ;;  %v13890_v35 = vld [vmem:[#allocation27 + $0x168] sm:$0xff]  ;;  %v11701_v43 = vpack.c.bf16 %v641_v33, %v640_v32  ;;  %v13900_v44 = vld [vmem:[#allocation27 + $0x78] sm:$0xff]  ;;  %v13916_v54 = vld [vmem:[#allocation27 + $0x90] sm:$0xff] }
 0x145   :  { %11634 = vmatprep.subr.bf16.mxu0 %v11633_v22  ;;  %12575 = vmatprep.subr.bf16.mxu1 %v11633_v22  ;;  %v13902_v45 = vld [vmem:[#allocation27 + $0x178] sm:$0xff]  ;;  %v13912_v52 = vld [vmem:[#allocation27 + $0x88] sm:$0xff]  ;;  %v13918_v55 = vld [vmem:[#allocation27 + $0x190] sm:$0xff] }
 0x146   :  { %v13914_v53 = vld [vmem:[#allocation27 + $0x188] sm:$0xff]  ;;  %v13928_v62 = vld [vmem:[#allocation27 + $0xa0] sm:$0xff]  ;;  %v13948_v8 = vld [vmem:[#allocation27 + $0xb8] sm:$0xff] }
 0x147   :  { %v13930_v63 = vld [vmem:[#allocation27 + $0x1a0] sm:$0xff]  ;;  %v13936_v0 = vld [vmem:[#allocation27 + $0xa8] sm:$0xff]  ;;  %v13950_v10 = vld [vmem:[#allocation27 + $0x1b8] sm:$0xff] }
 0x148   :  { %11636 = vmatpush3.bf16.msra.mxu0 %v11633_v22  ;;  %12583 = vmatpush3.bf16.msra.mxu1 %v11633_v22  ;;  %v638_v22 = vld [vmem:[#allocation13 + $0x60] sm:$0xff]  ;;  %v13938_v1 = vld [vmem:[#allocation27 + $0x1a8] sm:$0xff]  ;;  %17324 = vst [vmem:[#allocation46_spill] sm:$0xff] %v13950_v10  ;;  %v13964_v20 = vld [vmem:[#allocation27 + $0xd0] sm:$0xff] }
 0x149   :  { %11638 = vmatprep.subr.bf16.mxu0 %v11637_v25  ;;  %12576 = vmatprep.subr.bf16.mxu1 %v11637_v25  ;;  %v11697_v29 = vpack.c.bf16 %v639_v23, %v638_v22  ;;  %17322 = vst [vmem:[#allocation44_spill] sm:$0xff] %v13938_v1  ;;  %v13952_v11 = vld [vmem:[#allocation27 + $0xc0] sm:$0xff]  ;;  %v13966_v21 = vld [vmem:[#allocation27 + $0x1d0] sm:$0xff]  ;;  %v13972_v22 = vld [vmem:[#allocation27 + $0xd8] sm:$0xff] }
 0x14a   :  { %v13954_v13 = vld [vmem:[#allocation27 + $0x1c0] sm:$0xff]  ;;  %17327 = vst [vmem:[#allocation49_spill] sm:$0xff] %v13966_v21  ;;  %v13974_v23 = vld [vmem:[#allocation27 + $0x1d8] sm:$0xff]  ;;  %v13988_v33 = vld [vmem:[#allocation27 + $0xf0] sm:$0xff] }
 0x14b   :  { %17325 = vst [vmem:[#allocation47_spill] sm:$0xff] %v13954_v13  ;;  %17328 = vst [vmem:[#allocation50_spill] sm:$0xff] %v13974_v23  ;;  %v466_v32 = vld [vmem:[#allocation28] sm:$0xff] }
 0x14c   :  { %11640 = vmatpush3.bf16.msra.mxu0 %v11637_v25  ;;  %12584 = vmatpush3.bf16.msra.mxu1 %v11637_v25  ;;  %v13878_v25 = vld [vmem:[#allocation27 + $0x158] sm:$0xff] }
 0x14d   :  { %11642 = vmatprep.subr.bf16.mxu1 %v11641_v30  ;;  %11674 = vmatprep.subr.bf16.mxu0 %v11673_v31 }
 0x14f   :  { %9530 = vmatmul.mubr.f32.vlgmr.msra.gmra.mrb[0].mxu0 %v13816_v36  ;;  %9578 = vmatmul.mubr.f32.vlgmr.msra.gmra.mrb[0].mxu1 %v13818_v37 }
 0x150   :  { %9532 = vmatprep.mubr.f32.mxu0 %v13820_v38  ;;  %9580 = vmatprep.mubr.f32.mxu1 %v13822_v39 }
 0x151   :  { %11644 = vmatpush3.bf16.msra.mxu1 %v11641_v30  ;;  %11676 = vmatpush3.bf16.msra.mxu0 %v11673_v31  ;;  %v624_v30 = vld [vmem:[#allocation12 + $0x70] sm:$0xff]  ;;  %v625_v31 = vld [vmem:[#allocation12 + $0x78] sm:$0xff] }
 0x152   :  { %11646 = vmatprep.subr.bf16.mxu1 %v11645_v40  ;;  %11678 = vmatprep.subr.bf16.mxu0 %v11677_v41  ;;  %v11669_v42 = vpack.c.bf16 %v625_v31, %v624_v30  ;;  %v13984_v30 = vld [vmem:[#allocation27 + $0xe8] sm:$0xff] }
 0x153   :  { %9533 = vmatmul.mubr.f32.gmra.mrb[2].mxu0 %v13828_v46  ;;  %9581 = vmatmul.mubr.f32.gmra.mrb[2].mxu1 %v13830_v47  ;;  %v13986_v31 = vld [vmem:[#allocation27 + $0x1e8] sm:$0xff] }
 0x154   :  { %9535 = vmatprep.mubr.f32.mxu0 %v13832_v48  ;;  %9583 = vmatprep.mubr.f32.mxu1 %v13834_v49  ;;  %17330 = vst [vmem:[#allocation52_spill] sm:$0xff] %v13986_v31 }
 0x155   :  { %11648 = vmatpush3.bf16.msra.mxu1 %v11645_v40  ;;  %11680 = vmatpush3.bf16.msra.mxu0 %v11677_v41  ;;  %v13892_v40 = vld [vmem:[#allocation27 + $0x70] sm:$0xff] }
 0x156   :  { %11650 = vmatprep.subr.bf16.mxu1 %v11649_v50  ;;  %11682 = vmatprep.subr.bf16.mxu0 %v11681_v51  ;;  %v13894_v41 = vld [vmem:[#allocation27 + $0x170] sm:$0xff] }
 0x157   :  { %9536 = vmatmul.mubr.f32.gmra.mrb[4].mxu0 %v13840_v56  ;;  %9584 = vmatmul.mubr.f32.gmra.mrb[4].mxu1 %v13842_v57 }
 0x158   :  { %9538 = vmatprep.mubr.f32.mxu0 %v13844_v58  ;;  %9586 = vmatprep.mubr.f32.mxu1 %v13846_v59 }
 0x159   :  { %11652 = vmatpush3.bf16.msra.mxu1 %v11649_v50  ;;  %11684 = vmatpush3.bf16.msra.mxu0 %v11681_v51  ;;  %v13904_v50 = vld [vmem:[#allocation27 + $0x80] sm:$0xff] }
 0x15a   :  { %11654 = vmatprep.subr.bf16.mxu1 %v11653_v60  ;;  %11686 = vmatprep.subr.bf16.mxu0 %v11685_v61  ;;  %v13906_v51 = vld [vmem:[#allocation27 + $0x180] sm:$0xff] }
 0x15b   :  { %9539 = vmatmul.mubr.f32.gmra.mrb[6].mxu0 %v13852_v2  ;;  %9587 = vmatmul.mubr.f32.gmra.mrb[6].mxu1 %v13854_v3 }
 0x15c   :  { %9541 = vmatprep.mubr.f32.mxu0 %v13856_v4  ;;  %9589 = vmatprep.mubr.f32.mxu1 %v13858_v5 }
 0x15d   :  { %11656 = vmatpush3.bf16.msra.mxu1 %v11653_v60  ;;  %11688 = vmatpush3.bf16.msra.mxu0 %v11685_v61  ;;  %v13924_v60 = vld [vmem:[#allocation27 + $0x98] sm:$0xff] }
 0x15e   :  { %11658 = vmatprep.subr.bf16.mxu1 %v11657_v6  ;;  %11690 = vmatprep.subr.bf16.mxu0 %v11689_v7  ;;  %v13926_v61 = vld [vmem:[#allocation27 + $0x198] sm:$0xff] }
 0x15f   :  { %9542 = vmatmul.mubr.f32.gmra.mrb[8].mxu0 %v13864_v14  ;;  %9590 = vmatmul.mubr.f32.gmra.mrb[8].mxu1 %v13866_v15 }
 0x160   :  { %9544 = vmatprep.mubr.f32.mxu0 %v13868_v16  ;;  %9592 = vmatprep.mubr.f32.mxu1 %v13870_v17 }
 0x161   :  { %11660 = vmatpush3.bf16.msra.mxu1 %v11657_v6  ;;  %11692 = vmatpush3.bf16.msra.mxu0 %v11689_v7  ;;  %v13940_v6 = vld [vmem:[#allocation27 + $0xb0] sm:$0xff] }
 0x162   :  { %11662 = vmatprep.subr.bf16.mxu1 %v11661_v18  ;;  %11694 = vmatprep.subr.bf16.mxu0 %v11693_v19  ;;  %v13942_v7 = vld [vmem:[#allocation27 + $0x1b0] sm:$0xff] }
 0x163   :  { %9545 = vmatmul.mubr.f32.gmra.mrb[10].mxu0 %v13876_v24  ;;  %9593 = vmatmul.mubr.f32.gmra.mrb[10].mxu1 %v13878_v25  ;;  %17323 = vst [vmem:[#allocation45_spill] sm:$0xff] %v13942_v7 }
 0x164   :  { %9547 = vmatprep.mubr.f32.mxu0 %v13880_v26  ;;  %9595 = vmatprep.mubr.f32.mxu1 %v13882_v27 }
 0x165   :  { %11664 = vmatpush3.bf16.msra.mxu1 %v11661_v18  ;;  %11696 = vmatpush3.bf16.msra.mxu0 %v11693_v19  ;;  %v13960_v18 = vld [vmem:[#allocation27 + $0xc8] sm:$0xff] }
 0x166   :  { %11666 = vmatprep.subr.bf16.mxu1 %v11665_v28  ;;  %11698 = vmatprep.subr.bf16.mxu0 %v11697_v29  ;;  %v13962_v19 = vld [vmem:[#allocation27 + $0x1c8] sm:$0xff] }
 0x167   :  { %9548 = vmatmul.mubr.f32.gmra.mrb[12].mxu0 %v13888_v34  ;;  %9596 = vmatmul.mubr.f32.gmra.mrb[12].mxu1 %v13890_v35  ;;  %17326 = vst [vmem:[#allocation48_spill] sm:$0xff] %v13962_v19 }
 0x168   :  { %9550 = vmatprep.mubr.f32.mxu0 %v13892_v40  ;;  %9598 = vmatprep.mubr.f32.mxu1 %v13894_v41 }
 0x169   :  { %11668 = vmatpush3.bf16.msra.mxu1 %v11665_v28  ;;  %11700 = vmatpush3.bf16.msra.mxu0 %v11697_v29  ;;  %v13976_v28 = vld [vmem:[#allocation27 + $0xe0] sm:$0xff] }
 0x16a   :  { %11670 = vmatprep.subr.bf16.mxu1 %v11669_v42  ;;  %11702 = vmatprep.subr.bf16.mxu0 %v11701_v43  ;;  %v13978_v29 = vld [vmem:[#allocation27 + $0x1e0] sm:$0xff] }
 0x16b   :  { %9551 = vmatmul.mubr.f32.gmra.mrb[14].mxu0 %v13900_v44  ;;  %9599 = vmatmul.mubr.f32.gmra.mrb[14].mxu1 %v13902_v45  ;;  %17329 = vst [vmem:[#allocation51_spill] sm:$0xff] %v13978_v29 }
 0x16c   :  { %9553 = vmatprep.mubr.f32.mxu0 %v13904_v50  ;;  %9601 = vmatprep.mubr.f32.mxu1 %v13906_v51 }
 0x16d   :  { %11672 = vmatpush3.bf16.msra.mxu1 %v11669_v42  ;;  %11704 = vmatpush3.bf16.msra.mxu0 %v11701_v43  ;;  %v13990_v42 = vld [vmem:[#allocation27 + $0x1f0] sm:$0xff]  ;;  %v530_v43 = vadd.f32 %v466_v32, %v13810_v9 }
 0x16e   :  { %17331 = vst [vmem:[#allocation53_spill] sm:$0xff] %v13990_v42 }
 0x16f   :  { %9554 = vmatmul.mubr.f32.gmra.mrb[16].mxu0 %v13912_v52  ;;  %9602 = vmatmul.mubr.f32.gmra.mrb[16].mxu1 %v13914_v53 }
 0x170   :  { %9556 = vmatprep.mubr.f32.mxu0 %v13916_v54  ;;  %9604 = vmatprep.mubr.f32.mxu1 %v13918_v55 }
 0x173   :  { %9557 = vmatmul.mubr.f32.gmra.mrb[18].mxu0 %v13924_v60  ;;  %9605 = vmatmul.mubr.f32.gmra.mrb[18].mxu1 %v13926_v61 }
 0x174   :  { %9559 = vmatprep.mubr.f32.mxu0 %v13928_v62  ;;  %9607 = vmatprep.mubr.f32.mxu1 %v13930_v63 }
 0x177   :  { %9560 = vmatmul.mubr.f32.gmra.mrb[20].mxu0 %v13936_v0  ;;  %9608 = vmatmul.mubr.f32.gmra.mrb[20].mxu1 %v13938_v1  ;;  %v471_v1 = vld [vmem:[#allocation28 + $0x28] sm:$0xff] }
 0x178   :  { %9562 = vmatprep.mubr.f32.mxu0 %v13940_v6  ;;  %9610 = vmatprep.mubr.f32.mxu1 %v13942_v7 }
 0x17b   :  { %9563 = vmatmul.mubr.f32.gmra.mrb[22].mxu0 %v13948_v8  ;;  %9611 = vmatmul.mubr.f32.gmra.mrb[22].mxu1 %v13950_v10  ;;  %v470_v10 = vld [vmem:[#allocation28 + $0x20] sm:$0xff] }
 0x17c   :  { %9565 = vmatprep.mubr.f32.mxu0 %v13952_v11  ;;  %9613 = vmatprep.mubr.f32.mxu1 %v13954_v13  ;;  %v534_v7 = vadd.f32 %v470_v10, %v13832_v48 }
 0x17f   :  { %9566 = vmatmul.mubr.f32.gmra.mrb[24].mxu0 %v13960_v18  ;;  %9614 = vmatmul.mubr.f32.gmra.mrb[24].mxu1 %v13962_v19  ;;  %v468_v19 = vld [vmem:[#allocation28 + $0x10] sm:$0xff] }
 0x180   :  { %9568 = vmatprep.mubr.f32.mxu0 %v13964_v20  ;;  %9616 = vmatprep.mubr.f32.mxu1 %v13966_v21  ;;  %v13999_v21 = vld [vmem:[#allocation27 + $0x1f8] sm:$0xff]  ;;  %v532_v9 = vadd.f32 %v468_v19, %v13820_v38 }
 0x181   :  { %17332 = vst [vmem:[#allocation54_spill] sm:$0xff] %v13999_v21 }
 0x183   :  { %9569 = vmatmul.mubr.f32.gmra.mrb[26].mxu0 %v13972_v22  ;;  %9617 = vmatmul.mubr.f32.gmra.mrb[26].mxu1 %v13974_v23  ;;  %v467_v23 = vld [vmem:[#allocation28 + $0x8] sm:$0xff] }
 0x184   :  { %9571 = vmatprep.mubr.f32.mxu0 %v13976_v28  ;;  %9619 = vmatprep.mubr.f32.mxu1 %v13978_v29  ;;  %v13997_v29 = vld [vmem:[#allocation27 + $0xf8] sm:$0xff]  ;;  %v531_v13 = vadd.f32 %v467_v23, %v13816_v36  ;;  %v472_v36 = vld [vmem:[#allocation28 + $0x30] sm:$0xff] }
 0x185   :  { %v536_v38 = vadd.f32 %v472_v36, %v13844_v58 }
 0x187   :  { %9572 = vmatmul.mubr.f32.gmra.mrb[28].mxu0 %v13984_v30  ;;  %9620 = vmatmul.mubr.f32.gmra.mrb[28].mxu1 %v13986_v31  ;;  %v469_v31 = vld [vmem:[#allocation28 + $0x18] sm:$0xff] }
 0x188   :  { %9574 = vmatprep.mubr.f32.mxu0 %v13988_v33  ;;  %9622 = vmatprep.mubr.f32.mxu1 %v13990_v42  ;;  %v533_v42 = vadd.f32 %v469_v31, %v13828_v46 }
 0x18b   :  { %9575 = vmatmul.mubr.f32.gmra.mrb[30].mxu0 %v13997_v29  ;;  %9623 = vmatmul.mubr.f32.gmra.mrb[30].mxu1 %v13999_v21  ;;  %v535_v21 = vadd.f32 %v471_v1, %v13840_v56 }
 0x18c   :  { %9657 = vmatprep.mubr.f32.mxu1 %v466_v32  ;;  %9785 = vmatprep.mubr.f32.mxu0 %v530_v43  ;;  %v473_v32 = vld [vmem:[#allocation28 + $0x38] sm:$0xff]  ;;  %v474_v43 = vld [vmem:[#allocation28 + $0x40] sm:$0xff] }
 0x18d   :  { %v537_v46 = vadd.f32 %v473_v32, %v13852_v2  ;;  %v538_v48 = vadd.f32 %v474_v43, %v13856_v4 }
 0x18f   :  { %9658 = vmatmul.mubr.f32.vlgmr.msra.gmra.mrb[32].mxu1 %v467_v23  ;;  %9786 = vmatmul.mubr.f32.vlgmr.msra.gmra.mrb[32].mxu0 %v531_v13  ;;  %v475_v13 = vld [vmem:[#allocation28 + $0x48] sm:$0xff]  ;;  %v481_v23 = vld [vmem:[#allocation28 + $0x78] sm:$0xff] }
 0x190   :  { %9660 = vmatprep.mubr.f32.mxu1 %v468_v19  ;;  %9788 = vmatprep.mubr.f32.mxu0 %v532_v9  ;;  %v476_v19 = vld [vmem:[#allocation28 + $0x50] sm:$0xff]  ;;  %v539_v56 = vadd.f32 %v475_v13, %v13864_v14 }
 0x191   :  { %v540_v58 = vadd.f32 %v476_v19, %v13868_v16  ;;  %v484_v9 = vld [vmem:[#allocation28 + $0x90] sm:$0xff] }
 0x193   :  { %9661 = vmatmul.mubr.f32.gmra.mrb[34].mxu1 %v469_v31  ;;  %9789 = vmatmul.mubr.f32.gmra.mrb[34].mxu0 %v533_v42  ;;  %v482_v31 = vld [vmem:[#allocation28 + $0x80] sm:$0xff]  ;;  %v483_v42 = vld [vmem:[#allocation28 + $0x88] sm:$0xff] }
 0x194   :  { %9663 = vmatprep.mubr.f32.mxu1 %v470_v10  ;;  %9791 = vmatprep.mubr.f32.mxu0 %v534_v7  ;;  %v477_v7 = vld [vmem:[#allocation28 + $0x58] sm:$0xff]  ;;  %v478_v10 = vld [vmem:[#allocation28 + $0x60] sm:$0xff] }
 0x195   :  { %v541_v2 = vadd.f32 %v477_v7, %v13876_v24  ;;  %v542_v4 = vadd.f32 %v478_v10, %v13880_v26  ;;  %v545_v24 = vadd.f32 %v481_v23, %v13900_v44  ;;  %v546_v26 = vadd.f32 %v482_v31, %v13904_v50 }
 0x197   :  { %9664 = vmatmul.mubr.f32.gmra.mrb[36].mxu1 %v471_v1  ;;  %9792 = vmatmul.mubr.f32.gmra.mrb[36].mxu0 %v535_v21  ;;  %v479_v1 = vld [vmem:[#allocation28 + $0x68] sm:$0xff]  ;;  %v480_v21 = vld [vmem:[#allocation28 + $0x70] sm:$0xff] }
 0x198   :  { %9666 = vmatprep.mubr.f32.mxu1 %v472_v36  ;;  %9794 = vmatprep.mubr.f32.mxu0 %v536_v38  ;;  %v543_v14 = vadd.f32 %v479_v1, %v13888_v34  ;;  %v544_v16 = vadd.f32 %v480_v21, %v13892_v40  ;;  %v547_v34 = vadd.f32 %v483_v42, %v13912_v52  ;;  %v485_v36 = vld [vmem:[#allocation28 + $0x98] sm:$0xff]  ;;  %v486_v38 = vld [vmem:[#allocation28 + $0xa0] sm:$0xff] }
 0x199   :  { %v548_v40 = vadd.f32 %v484_v9, %v13916_v54  ;;  %v549_v44 = vadd.f32 %v485_v36, %v13924_v60  ;;  %v550_v50 = vadd.f32 %v486_v38, %v13928_v62 }
 0x19b   :  { %9667 = vmatmul.mubr.f32.gmra.mrb[38].mxu1 %v473_v32  ;;  %9795 = vmatmul.mubr.f32.gmra.mrb[38].mxu0 %v537_v46  ;;  %v487_v32 = vld [vmem:[#allocation28 + $0xa8] sm:$0xff]  ;;  %v489_v46 = vld [vmem:[#allocation28 + $0xb8] sm:$0xff] }
 0x19c   :  { %9669 = vmatprep.mubr.f32.mxu1 %v474_v43  ;;  %9797 = vmatprep.mubr.f32.mxu0 %v538_v48  ;;  %v488_v43 = vld [vmem:[#allocation28 + $0xb0] sm:$0xff]  ;;  %v551_v52 = vadd.f32 %v487_v32, %v13936_v0  ;;  %v490_v48 = vld [vmem:[#allocation28 + $0xc0] sm:$0xff]  ;;  %v553_v60 = vadd.f32 %v489_v46, %v13948_v8 }
 0x19d   :  { %v552_v54 = vadd.f32 %v488_v43, %v13940_v6  ;;  %v554_v62 = vadd.f32 %v490_v48, %v13952_v11 }
 0x19f   :  { %9670 = vmatmul.mubr.f32.gmra.mrb[40].mxu1 %v475_v13  ;;  %9798 = vmatmul.mubr.f32.gmra.mrb[40].mxu0 %v539_v56  ;;  %v491_v13 = vld [vmem:[#allocation28 + $0xc8] sm:$0xff]  ;;  %v493_v56 = vld [vmem:[#allocation28 + $0xd8] sm:$0xff] }
 0x1a0   :  { %9672 = vmatprep.mubr.f32.mxu1 %v476_v19  ;;  %9800 = vmatprep.mubr.f32.mxu0 %v540_v58  ;;  %v492_v19 = vld [vmem:[#allocation28 + $0xd0] sm:$0xff]  ;;  %v555_v0 = vadd.f32 %v491_v13, %v13960_v18  ;;  %v494_v58 = vld [vmem:[#allocation28 + $0xe0] sm:$0xff]  ;;  %v557_v8 = vadd.f32 %v493_v56, %v13972_v22 }
 0x1a1   :  { %v556_v6 = vadd.f32 %v492_v19, %v13964_v20  ;;  %v558_v11 = vadd.f32 %v494_v58, %v13976_v28  ;;  %v499_v28 = vld [vmem:[#allocation28 + $0x108] sm:$0xff] }
 0x1a3   :  { %9673 = vmatmul.mubr.f32.gmra.mrb[42].mxu1 %v477_v7  ;;  %9801 = vmatmul.mubr.f32.gmra.mrb[42].mxu0 %v541_v2  ;;  %v495_v7 = vld [vmem:[#allocation28 + $0xe8] sm:$0xff]  ;;  %v497_v2 = vld [vmem:[#allocation28 + $0xf8] sm:$0xff] }
 0x1a4   :  { %9675 = vmatprep.mubr.f32.mxu1 %v478_v10  ;;  %9803 = vmatprep.mubr.f32.mxu0 %v542_v4  ;;  %v496_v10 = vld [vmem:[#allocation28 + $0xf0] sm:$0xff]  ;;  %v559_v18 = vadd.f32 %v495_v7, %v13984_v30  ;;  %v498_v4 = vld [vmem:[#allocation28 + $0x100] sm:$0xff]  ;;  %v561_v22 = vadd.f32 %v497_v2, %v13997_v29  ;;  %v563_v30 = vadd.f32 %v499_v28, %v13818_v37 }
 0x1a5   :  { %v560_v20 = vadd.f32 %v496_v10, %v13988_v33 }
 0x1a7   :  { %9676 = vmatmul.mubr.f32.gmra.mrb[44].mxu1 %v479_v1  ;;  %9804 = vmatmul.mubr.f32.gmra.mrb[44].mxu0 %v543_v14  ;;  %v562_v1 = vadd.f32 %v498_v4, %v13813_v12  ;;  %v501_v14 = vld [vmem:[#allocation28 + $0x118] sm:$0xff] }
 0x1a8   :  { %9678 = vmatprep.mubr.f32.mxu1 %v480_v21  ;;  %9806 = vmatprep.mubr.f32.mxu0 %v544_v16  ;;  %v500_v21 = vld [vmem:[#allocation28 + $0x110] sm:$0xff]  ;;  %v502_v16 = vld [vmem:[#allocation28 + $0x120] sm:$0xff]  ;;  %v565_v29 = vadd.f32 %v501_v14, %v13830_v47 }
 0x1a9   :  { %v564_v33 = vadd.f32 %v500_v21, %v13822_v39  ;;  %v566_v12 = vadd.f32 %v502_v16, %v13834_v49 }
 0x1ab   :  { %9679 = vmatmul.mubr.f32.gmra.mrb[46].mxu1 %v481_v23  ;;  %9807 = vmatmul.mubr.f32.gmra.mrb[46].mxu0 %v545_v24  ;;  %v503_v23 = vld [vmem:[#allocation28 + $0x128] sm:$0xff]  ;;  %v505_v24 = vld [vmem:[#allocation28 + $0x138] sm:$0xff] }
 0x1ac   :  { %9681 = vmatprep.mubr.f32.mxu1 %v482_v31  ;;  %9809 = vmatprep.mubr.f32.mxu0 %v546_v26  ;;  %v504_v31 = vld [vmem:[#allocation28 + $0x130] sm:$0xff]  ;;  %v567_v37 = vadd.f32 %v503_v23, %v13842_v57  ;;  %v506_v26 = vld [vmem:[#allocation28 + $0x140] sm:$0xff]  ;;  %v569_v47 = vadd.f32 %v505_v24, %v13854_v3 }
 0x1ad   :  { %v568_v39 = vadd.f32 %v504_v31, %v13846_v59  ;;  %v570_v49 = vadd.f32 %v506_v26, %v13858_v5 }
 0x1af   :  { %9682 = vmatmul.mubr.f32.gmra.mrb[48].mxu1 %v483_v42  ;;  %9810 = vmatmul.mubr.f32.gmra.mrb[48].mxu0 %v547_v34  ;;  %v507_v42 = vld [vmem:[#allocation28 + $0x148] sm:$0xff]  ;;  %v509_v34 = vld [vmem:[#allocation28 + $0x158] sm:$0xff] }
 0x1b0   :  { %9684 = vmatprep.mubr.f32.mxu1 %v484_v9  ;;  %9812 = vmatprep.mubr.f32.mxu0 %v548_v40  ;;  %v508_v9 = vld [vmem:[#allocation28 + $0x150] sm:$0xff]  ;;  %v571_v57 = vadd.f32 %v507_v42, %v13866_v15  ;;  %v510_v40 = vld [vmem:[#allocation28 + $0x160] sm:$0xff]  ;;  %v573_v3 = vadd.f32 %v509_v34, %v13878_v25 }
 0x1b1   :  { %v572_v59 = vadd.f32 %v508_v9, %v13870_v17  ;;  %v574_v5 = vadd.f32 %v510_v40, %v13882_v27 }
 0x1b3   :  { %9685 = vmatmul.mubr.f32.gmra.mrb[50].mxu1 %v485_v36  ;;  %9813 = vmatmul.mubr.f32.gmra.mrb[50].mxu0 %v549_v44  ;;  %v511_v36 = vld [vmem:[#allocation28 + $0x168] sm:$0xff]  ;;  %v513_v44 = vld [vmem:[#allocation28 + $0x178] sm:$0xff] }
 0x1b4   :  { %9687 = vmatprep.mubr.f32.mxu1 %v486_v38  ;;  %9815 = vmatprep.mubr.f32.mxu0 %v550_v50  ;;  %v512_v38 = vld [vmem:[#allocation28 + $0x170] sm:$0xff]  ;;  %v575_v15 = vadd.f32 %v511_v36, %v13890_v35  ;;  %v514_v50 = vld [vmem:[#allocation28 + $0x180] sm:$0xff]  ;;  %v577_v25 = vadd.f32 %v513_v44, %v13902_v45 }
 0x1b5   :  { %v576_v17 = vadd.f32 %v512_v38, %v13894_v41  ;;  %v578_v27 = vadd.f32 %v514_v50, %v13906_v51 }
 0x1b7   :  { %9688 = vmatmul.mubr.f32.gmra.mrb[52].mxu1 %v487_v32  ;;  %9816 = vmatmul.mubr.f32.gmra.mrb[52].mxu0 %v551_v52  ;;  %v515_v32 = vld [vmem:[#allocation28 + $0x188] sm:$0xff]  ;;  %v517_v52 = vld [vmem:[#allocation28 + $0x198] sm:$0xff] }
 0x1b8   :  { %9690 = vmatprep.mubr.f32.mxu1 %v488_v43  ;;  %9818 = vmatprep.mubr.f32.mxu0 %v552_v54  ;;  %v516_v43 = vld [vmem:[#allocation28 + $0x190] sm:$0xff]  ;;  %v579_v35 = vadd.f32 %v515_v32, %v13914_v53  ;;  %v518_v54 = vld [vmem:[#allocation28 + $0x1a0] sm:$0xff]  ;;  %v581_v45 = vadd.f32 %v517_v52, %v13926_v61 }
 0x1b9   :  { %v580_v41 = vadd.f32 %v516_v43, %v13918_v55  ;;  %v582_v51 = vadd.f32 %v518_v54, %v13930_v63 }
 0x1bb   :  { %9691 = vmatmul.mubr.f32.gmra.mrb[54].mxu1 %v489_v46  ;;  %9819 = vmatmul.mubr.f32.gmra.mrb[54].mxu0 %v553_v60  ;;  %v519_v46 = vld [vmem:[#allocation28 + $0x1a8] sm:$0xff]  ;;  %v17333_v60 = vld [vmem:[#allocation44_spill] sm:$0xff] }
 0x1bc   :  { %9693 = vmatprep.mubr.f32.mxu1 %v490_v48  ;;  %9821 = vmatprep.mubr.f32.mxu0 %v554_v62  ;;  %v520_v48 = vld [vmem:[#allocation28 + $0x1b0] sm:$0xff]  ;;  %v583_v53 = vadd.f32 %v519_v46, %v17333_v60  ;;  %v17334_v62 = vld [vmem:[#allocation45_spill] sm:$0xff] }
 0x1bd   :  { %v584_v55 = vadd.f32 %v520_v48, %v17334_v62 }
 0x1bf   :  { %9694 = vmatmul.mubr.f32.gmra.mrb[56].mxu1 %v491_v13  ;;  %9822 = vmatmul.mubr.f32.gmra.mrb[56].mxu0 %v555_v0  ;;  %v521_v13 = vld [vmem:[#allocation28 + $0x1b8] sm:$0xff]  ;;  %v17335_v0 = vld [vmem:[#allocation46_spill] sm:$0xff] }
 0x1c0   :  { %9696 = vmatprep.mubr.f32.mxu1 %v492_v19  ;;  %9824 = vmatprep.mubr.f32.mxu0 %v556_v6  ;;  %v522_v19 = vld [vmem:[#allocation28 + $0x1c0] sm:$0xff]  ;;  %v585_v61 = vadd.f32 %v521_v13, %v17335_v0  ;;  %v17336_v6 = vld [vmem:[#allocation47_spill] sm:$0xff] }
 0x1c1   :  { %v586_v63 = vadd.f32 %v522_v19, %v17336_v6 }
 0x1c3   :  { %9697 = vmatmul.mubr.f32.gmra.mrb[58].mxu1 %v493_v56  ;;  %9825 = vmatmul.mubr.f32.gmra.mrb[58].mxu0 %v557_v8  ;;  %v523_v56 = vld [vmem:[#allocation28 + $0x1c8] sm:$0xff]  ;;  %v17337_v8 = vld [vmem:[#allocation48_spill] sm:$0xff] }
 0x1c4   :  { %9699 = vmatprep.mubr.f32.mxu1 %v494_v58  ;;  %9827 = vmatprep.mubr.f32.mxu0 %v558_v11  ;;  %v524_v58 = vld [vmem:[#allocation28 + $0x1d0] sm:$0xff]  ;;  %v587_v11 = vadd.f32 %v523_v56, %v17337_v8 }
 0x1c7   :  { %9700 = vmatmul.mubr.f32.gmra.mrb[60].mxu1 %v495_v7  ;;  %9828 = vmatmul.mubr.f32.gmra.mrb[60].mxu0 %v559_v18  ;;  %v17338_v7 = vld [vmem:[#allocation49_spill] sm:$0xff]  ;;  %v525_v18 = vld [vmem:[#allocation28 + $0x1d8] sm:$0xff] }
 0x1c8   :  { %9702 = vmatprep.mubr.f32.mxu1 %v496_v10  ;;  %9830 = vmatprep.mubr.f32.mxu0 %v560_v20  ;;  %v588_v10 = vadd.f32 %v524_v58, %v17338_v7  ;;  %v526_v20 = vld [vmem:[#allocation28 + $0x1e0] sm:$0xff] }
 0x1cb   :  { %9703 = vmatmul.mubr.f32.gmra.mrb[62].mxu1 %v497_v2  ;;  %9831 = vmatmul.mubr.f32.gmra.mrb[62].mxu0 %v561_v22  ;;  %v17339_v2 = vld [vmem:[#allocation50_spill] sm:$0xff]  ;;  %v17340_v22 = vld [vmem:[#allocation51_spill] sm:$0xff] }
 0x1cc   :  { %9705 = vmatprep.mubr.f32.mxu1 %v498_v4  ;;  %9833 = vmatprep.mubr.f32.mxu0 %v562_v1  ;;  %v589_v4 = vadd.f32 %v525_v18, %v17339_v2  ;;  %v590_v1 = vadd.f32 %v526_v20, %v17340_v22 }
 0x1cf   :  { %9706 = vmatmul.mubr.f32.gmra.mrb[64].mxu1 %v499_v28  ;;  %9834 = vmatmul.mubr.f32.gmra.mrb[64].mxu0 %v563_v30  ;;  %v527_v28 = vld [vmem:[#allocation28 + $0x1e8] sm:$0xff]  ;;  %v17341_v30 = vld [vmem:[#allocation52_spill] sm:$0xff] }
 0x1d0   :  { %9708 = vmatprep.mubr.f32.mxu1 %v500_v21  ;;  %9836 = vmatprep.mubr.f32.mxu0 %v564_v33  ;;  %v528_v21 = vld [vmem:[#allocation28 + $0x1f0] sm:$0xff]  ;;  %v591_v33 = vadd.f32 %v527_v28, %v17341_v30 }
 0x1d3   :  { %9709 = vmatmul.mubr.f32.gmra.mrb[66].mxu1 %v501_v14  ;;  %9837 = vmatmul.mubr.f32.gmra.mrb[66].mxu0 %v565_v29  ;;  %v17342_v14 = vld [vmem:[#allocation53_spill] sm:$0xff]  ;;  %v529_v29 = vld [vmem:[#allocation28 + $0x1f8] sm:$0xff] }
 0x1d4   :  { %9711 = vmatprep.mubr.f32.mxu1 %v502_v16  ;;  %9839 = vmatprep.mubr.f32.mxu0 %v566_v12  ;;  %v592_v16 = vadd.f32 %v528_v21, %v17342_v14  ;;  %v17343_v12 = vld [vmem:[#allocation54_spill] sm:$0xff] }
 0x1d7   :  { %9712 = vmatmul.mubr.f32.gmra.mrb[68].mxu1 %v503_v23  ;;  %9840 = vmatmul.mubr.f32.gmra.mrb[68].mxu0 %v567_v37  ;;  %v593_v23 = vadd.f32 %v529_v29, %v17343_v12 }
 0x1d8   :  { %9714 = vmatprep.mubr.f32.mxu1 %v504_v31  ;;  %9842 = vmatprep.mubr.f32.mxu0 %v568_v39  ;;  %v274_v31 = vld [vmem:[#allocation4] sm:$0xff] }
 0x1db   :  { %9715 = vmatmul.mubr.f32.gmra.mrb[70].mxu1 %v505_v24  ;;  %9843 = vmatmul.mubr.f32.gmra.mrb[70].mxu0 %v569_v47 }
 0x1dc   :  { %9717 = vmatprep.mubr.f32.mxu1 %v506_v26  ;;  %9845 = vmatprep.mubr.f32.mxu0 %v570_v49 }
 0x1df   :  { %9718 = vmatmul.mubr.f32.gmra.mrb[72].mxu1 %v507_v42  ;;  %9846 = vmatmul.mubr.f32.gmra.mrb[72].mxu0 %v571_v57 }
 0x1e0   :  { %9720 = vmatprep.mubr.f32.mxu1 %v508_v9  ;;  %9848 = vmatprep.mubr.f32.mxu0 %v572_v59 }
 0x1e3   :  { %9721 = vmatmul.mubr.f32.gmra.mrb[74].mxu1 %v509_v34  ;;  %9849 = vmatmul.mubr.f32.gmra.mrb[74].mxu0 %v573_v3 }
 0x1e4   :  { %9723 = vmatprep.mubr.f32.mxu1 %v510_v40  ;;  %9851 = vmatprep.mubr.f32.mxu0 %v574_v5 }
 0x1e7   :  { %9724 = vmatmul.mubr.f32.gmra.mrb[76].mxu1 %v511_v36  ;;  %9852 = vmatmul.mubr.f32.gmra.mrb[76].mxu0 %v575_v15 }
 0x1e8   :  { %9726 = vmatprep.mubr.f32.mxu1 %v512_v38  ;;  %9854 = vmatprep.mubr.f32.mxu0 %v576_v17 }
 0x1eb   :  { %9727 = vmatmul.mubr.f32.gmra.mrb[78].mxu1 %v513_v44  ;;  %9855 = vmatmul.mubr.f32.gmra.mrb[78].mxu0 %v577_v25 }
 0x1ec   :  { %9729 = vmatprep.mubr.f32.mxu1 %v514_v50  ;;  %9857 = vmatprep.mubr.f32.mxu0 %v578_v27 }
 0x1ef   :  { %9730 = vmatmul.mubr.f32.gmra.mrb[80].mxu1 %v515_v32  ;;  %9858 = vmatmul.mubr.f32.gmra.mrb[80].mxu0 %v579_v35 }
 0x1f0   :  { %9732 = vmatprep.mubr.f32.mxu1 %v516_v43  ;;  %9860 = vmatprep.mubr.f32.mxu0 %v580_v41 }
 0x1f3   :  { %9733 = vmatmul.mubr.f32.gmra.mrb[82].mxu1 %v517_v52  ;;  %9861 = vmatmul.mubr.f32.gmra.mrb[82].mxu0 %v581_v45 }
 0x1f4   :  { %9735 = vmatprep.mubr.f32.mxu1 %v518_v54  ;;  %9863 = vmatprep.mubr.f32.mxu0 %v582_v51 }
 0x1f7   :  { %9736 = vmatmul.mubr.f32.gmra.mrb[84].mxu1 %v519_v46  ;;  %9864 = vmatmul.mubr.f32.gmra.mrb[84].mxu0 %v583_v53 }
 0x1f8   :  { %9738 = vmatprep.mubr.f32.mxu1 %v520_v48  ;;  %9866 = vmatprep.mubr.f32.mxu0 %v584_v55 }
 0x1fb   :  { %9739 = vmatmul.mubr.f32.gmra.mrb[86].mxu1 %v521_v13  ;;  %9867 = vmatmul.mubr.f32.gmra.mrb[86].mxu0 %v585_v61 }
 0x1fc   :  { %9741 = vmatprep.mubr.f32.mxu1 %v522_v19  ;;  %9869 = vmatprep.mubr.f32.mxu0 %v586_v63 }
 0x1ff   :  { %9742 = vmatmul.mubr.f32.gmra.mrb[88].mxu1 %v523_v56  ;;  %9870 = vmatmul.mubr.f32.gmra.mrb[88].mxu0 %v587_v11 }
 0x200   :  { %9744 = vmatprep.mubr.f32.mxu1 %v524_v58  ;;  %9872 = vmatprep.mubr.f32.mxu0 %v588_v10 }
 0x203   :  { %9745 = vmatmul.mubr.f32.gmra.mrb[90].mxu1 %v525_v18  ;;  %9873 = vmatmul.mubr.f32.gmra.mrb[90].mxu0 %v589_v4 }
 0x204   :  { %9747 = vmatprep.mubr.f32.mxu1 %v526_v20  ;;  %9875 = vmatprep.mubr.f32.mxu0 %v590_v1 }
 0x207   :  { %9748 = vmatmul.mubr.f32.gmra.mrb[92].mxu1 %v527_v28  ;;  %9876 = vmatmul.mubr.f32.gmra.mrb[92].mxu0 %v591_v33 }
 0x208   :  { %9750 = vmatprep.mubr.f32.mxu1 %v528_v21  ;;  %9878 = vmatprep.mubr.f32.mxu0 %v592_v16 }
 0x20b   :  { %9751 = vmatmul.mubr.f32.gmra.mrb[94].mxu1 %v529_v29  ;;  %9879 = vmatmul.mubr.f32.gmra.mrb[94].mxu0 %v593_v23 }
 0x20c   :  { %9913 = vmatprep.mubr.f32.mxu1 %v274_v31 }
 0x222   :  { %v14066_v37 = vpop.f32.mrb[0].mxu1  ;;  %v14068_v39 = vpop.f32.mrb[0].mxu0 }
 0x223   :  { %v14070_v24 = vpop.f32.mrb[1].mxu1  ;;  %v14072_v26 = vpop.f32.mrb[1].mxu0 }
 0x226   :  { %v14074_v47 = vpop.f32.mrb[2].mxu1  ;;  %v14076_v49 = vpop.f32.mrb[2].mxu0 }
 0x227   :  { %v14078_v42 = vpop.f32.mrb[3].mxu1  ;;  %v14080_v9 = vpop.f32.mrb[3].mxu0 }
 0x22a   :  { %v14082_v57 = vpop.f32.mrb[4].mxu1  ;;  %v14084_v59 = vpop.f32.mrb[4].mxu0 }
 0x22b   :  { %v14086_v34 = vpop.f32.mrb[5].mxu1  ;;  %v14088_v40 = vpop.f32.mrb[5].mxu0 }
 0x22e   :  { %v14090_v3 = vpop.f32.mrb[6].mxu1  ;;  %v14092_v5 = vpop.f32.mrb[6].mxu0 }
 0x22f   :  { %v14094_v36 = vpop.f32.mrb[7].mxu1  ;;  %v14096_v38 = vpop.f32.mrb[7].mxu0 }
 0x232   :  { %v14098_v15 = vpop.f32.mrb[8].mxu1  ;;  %v14100_v17 = vpop.f32.mrb[8].mxu0 }
 0x233   :  { %v14102_v44 = vpop.f32.mrb[9].mxu1  ;;  %v14104_v50 = vpop.f32.mrb[9].mxu0 }
 0x236   :  { %v14106_v25 = vpop.f32.mrb[10].mxu1  ;;  %v14108_v27 = vpop.f32.mrb[10].mxu0 }
 0x237   :  { %17344 = vst [vmem:[#allocation44_spill] sm:$0xff] %v14106_v25  ;;  %v14110_v32 = vpop.f32.mrb[11].mxu1  ;;  %v14112_v43 = vpop.f32.mrb[11].mxu0 }
 0x238   :  { %17345 = vst [vmem:[#allocation45_spill] sm:$0xff] %v14110_v32 }
 0x23a   :  { %v14114_v35 = vpop.f32.mrb[12].mxu1  ;;  %v14116_v41 = vpop.f32.mrb[12].mxu0 }
 0x23b   :  { %17346 = vst [vmem:[#allocation46_spill] sm:$0xff] %v14114_v35  ;;  %v14118_v52 = vpop.f32.mrb[13].mxu1  ;;  %v14120_v54 = vpop.f32.mrb[13].mxu0 }
 0x23c   :  { %17347 = vst [vmem:[#allocation47_spill] sm:$0xff] %v14118_v52 }
 0x23e   :  { %v14122_v45 = vpop.f32.mrb[14].mxu1  ;;  %v14124_v51 = vpop.f32.mrb[14].mxu0 }
 0x23f   :  { %17348 = vst [vmem:[#allocation48_spill] sm:$0xff] %v14122_v45  ;;  %v14126_v46 = vpop.f32.mrb[15].mxu1  ;;  %v14128_v48 = vpop.f32.mrb[15].mxu0 }
 0x240   :  { %17349 = vst [vmem:[#allocation49_spill] sm:$0xff] %v14126_v46 }
 0x242   :  { %v14130_v60 = vpop.f32.mrb[16].mxu1  ;;  %v14132_v53 = vpop.f32.mrb[16].mxu0 }
 0x243   :  { %17350 = vst [vmem:[#allocation50_spill] sm:$0xff] %v14130_v60  ;;  %v14134_v62 = vpop.f32.mrb[17].mxu1  ;;  %v14136_v55 = vpop.f32.mrb[17].mxu0 }
 0x244   :  { %17351 = vst [vmem:[#allocation51_spill] sm:$0xff] %v14134_v62 }
 0x246   :  { %v14138_v13 = vpop.f32.mrb[18].mxu1  ;;  %v14140_v19 = vpop.f32.mrb[18].mxu0 }
 0x247   :  { %17352 = vst [vmem:[#allocation52_spill] sm:$0xff] %v14138_v13  ;;  %v14142_v0 = vpop.f32.mrb[19].mxu1  ;;  %v14144_v61 = vpop.f32.mrb[19].mxu0 }
 0x248   :  { %17353 = vst [vmem:[#allocation53_spill] sm:$0xff] %v14142_v0 }
 0x24a   :  { %v14146_v6 = vpop.f32.mrb[20].mxu1  ;;  %v14148_v63 = vpop.f32.mrb[20].mxu0 }
 0x24b   :  { %17354 = vst [vmem:[#allocation54_spill] sm:$0xff] %v14146_v6  ;;  %v14150_v56 = vpop.f32.mrb[21].mxu1  ;;  %v14152_v58 = vpop.f32.mrb[21].mxu0 }
 0x24c   :  { %17355 = vst [vmem:[#allocation55_spill] sm:$0xff] %v14150_v56 }
 0x24e   :  { %v14154_v8 = vpop.f32.mrb[22].mxu1  ;;  %v14156_v11 = vpop.f32.mrb[22].mxu0 }
 0x24f   :  { %17356 = vst [vmem:[#allocation56_spill] sm:$0xff] %v14154_v8  ;;  %v14158_v7 = vpop.f32.mrb[23].mxu1  ;;  %v14160_v10 = vpop.f32.mrb[23].mxu0 }
 0x250   :  { %17357 = vst [vmem:[#allocation57_spill] sm:$0xff] %v14158_v7 }
 0x252   :  { %v14162_v18 = vpop.f32.mrb[24].mxu1  ;;  %v14164_v20 = vpop.f32.mrb[24].mxu0 }
 0x253   :  { %17358 = vst [vmem:[#allocation58_spill] sm:$0xff] %v14162_v18  ;;  %v14166_v2 = vpop.f32.mrb[25].mxu1  ;;  %v14168_v4 = vpop.f32.mrb[25].mxu0 }
 0x254   :  { %17359 = vst [vmem:[#allocation59_spill] sm:$0xff] %v14166_v2 }
 0x256   :  { %v14170_v22 = vpop.f32.mrb[26].mxu1  ;;  %v14172_v1 = vpop.f32.mrb[26].mxu0 }
 0x257   :  { %17360 = vst [vmem:[#allocation60_spill] sm:$0xff] %v14170_v22  ;;  %v14174_v28 = vpop.f32.mrb[27].mxu1  ;;  %v14176_v21 = vpop.f32.mrb[27].mxu0 }
 0x258   :  { %17361 = vst [vmem:[#allocation61_spill] sm:$0xff] %v14174_v28 }
 0x25a   :  { %v14178_v30 = vpop.f32.mrb[28].mxu1  ;;  %v14180_v33 = vpop.f32.mrb[28].mxu0 }
 0x25b   :  { %17362 = vst [vmem:[#allocation62_spill] sm:$0xff] %v14178_v30  ;;  %v14182_v14 = vpop.f32.mrb[29].mxu1  ;;  %v14184_v16 = vpop.f32.mrb[29].mxu0 }
 0x25c   :  { %17363 = vst [vmem:[#allocation63_spill] sm:$0xff] %v14182_v14 }
 0x25e   :  { %v14186_v29 = vpop.f32.mrb[30].mxu1  ;;  %v14188_v12 = vpop.f32.mrb[30].mxu0 }
 0x25f   :  { %17364 = vst [vmem:[#allocation64_spill] sm:$0xff] %v14186_v29  ;;  %v14190_v23 = vpop.f32.mrb[31].mxu1  ;;  %v14192_v31 = vpop.f32.mrb[31].mxu0 }
 0x260   :  { %17365 = vst [vmem:[#allocation65_spill] sm:$0xff] %v14190_v23 }
 0x262   :  { %v9659_v22 = vpop.f32.mrb[32].mxu1  ;;  %v9787_v28 = vpop.f32.mrb[32].mxu0 }
 0x263   :  { %v1798_v2 = vsub.f32 %v14068_v39, %v9659_v22  ;;  %v1862_v30 = vsub.f32 %v9787_v28, %v14068_v39  ;;  %v1093_v18 = vpop.f32.mrb[33].mxu1  ;;  %v1478_v7 = vpop.f32.mrb[33].mxu0 }
 0x264   :  { %v1797_v14 = vsub.f32 %v14072_v26, %v1093_v18  ;;  %v1861_v8 = vsub.f32 %v1478_v7, %v14072_v26 }
 0x265   :  { %v1926_v56 = vsub.f32 %v1862_v30, %v9659_v22 }
 0x266   :  { %v1925_v29 = vsub.f32 %v1861_v8, %v1093_v18  ;;  %v9662_v6 = vpop.f32.mrb[34].mxu1  ;;  %v9790_v0 = vpop.f32.mrb[34].mxu0  ;;  %v11705_v13 = vpack.c.bf16 %v1798_v2, %v1797_v14 }
 0x267   :  { %v1800_v23 = vsub.f32 %v14076_v49, %v9662_v6  ;;  %v1864_v62 = vsub.f32 %v9790_v0, %v14076_v49  ;;  %v1103_v60 = vpop.f32.mrb[35].mxu1  ;;  %v1488_v46 = vpop.f32.mrb[35].mxu0  ;;  %v1990_v45 = vadd.f32 %v1926_v56, %v1798_v2 }
 0x268   :  { %v1799_v39 = vsub.f32 %v14080_v9, %v1103_v60  ;;  %v1863_v28 = vsub.f32 %v1488_v46, %v14080_v9  ;;  %11706 = vmatprep.subr.bf16.mxu1 %v11705_v13  ;;  %v14202_v52 = vpack.c.bf16 %v1926_v56, %v1925_v29  ;;  %v1989_v26 = vadd.f32 %v1925_v29, %v1797_v14 }
 0x269   :  { %v1928_v7 = vsub.f32 %v1864_v62, %v9662_v6  ;;  %11708 = vmatpush3.bf16.msra.mxu1 %v11705_v13 }
 0x26a   :  { %v1927_v8 = vsub.f32 %v1863_v28, %v1103_v60  ;;  %v9665_v18 = vpop.f32.mrb[36].mxu1  ;;  %v9793_v22 = vpop.f32.mrb[36].mxu0  ;;  %v11709_v30 = vpack.c.bf16 %v1800_v23, %v1799_v39  ;;  %v14204_v35 = vpack.c.bf16 %v1990_v45, %v1989_v26 }
 0x26b   :  { %v1802_v49 = vsub.f32 %v14084_v59, %v9665_v18  ;;  %v1866_v0 = vsub.f32 %v9793_v22, %v14084_v59  ;;  %v1113_v2 = vpop.f32.mrb[37].mxu1  ;;  %v1498_v32 = vpop.f32.mrb[37].mxu0  ;;  %v1992_v25 = vadd.f32 %v1928_v7, %v1800_v23 }
 0x26c   :  { %v1801_v9 = vsub.f32 %v14088_v40, %v1113_v2  ;;  %v1865_v46 = vsub.f32 %v1498_v32, %v14088_v40  ;;  %11710 = vmatprep.subr.bf16.mxu1 %v11709_v30  ;;  %v14210_v62 = vpack.c.bf16 %v1928_v7, %v1927_v8  ;;  %v1991_v60 = vadd.f32 %v1927_v8, %v1799_v39 }
 0x26d   :  { %v1930_v13 = vsub.f32 %v1866_v0, %v9665_v18  ;;  %11712 = vmatpush3.bf16.msra.mxu1 %v11709_v30 }
 0x26e   :  { %v1929_v6 = vsub.f32 %v1865_v46, %v1113_v2  ;;  %v9668_v45 = vpop.f32.mrb[38].mxu1  ;;  %v9796_v56 = vpop.f32.mrb[38].mxu0  ;;  %v11713_v14 = vpack.c.bf16 %v1802_v49, %v1801_v9  ;;  %v14212_v29 = vpack.c.bf16 %v1992_v25, %v1991_v60 }
 0x26f   :  { %v1804_v59 = vsub.f32 %v14092_v5, %v9668_v45  ;;  %v1868_v23 = vsub.f32 %v9796_v56, %v14092_v5  ;;  %v1123_v28 = vpop.f32.mrb[39].mxu1  ;;  %v1508_v26 = vpop.f32.mrb[39].mxu0  ;;  %v1994_v22 = vadd.f32 %v1930_v13, %v1802_v49 }
 0x270   :  { %v1803_v40 = vsub.f32 %v14096_v38, %v1123_v28  ;;  %v1867_v32 = vsub.f32 %v1508_v26, %v14096_v38  ;;  %11714 = vmatprep.subr.bf16.mxu1 %v11713_v14  ;;  %v14218_v39 = vpack.c.bf16 %v1930_v13, %v1929_v6  ;;  %v1993_v7 = vadd.f32 %v1929_v6, %v1801_v9 }
 0x271   :  { %v1932_v8 = vsub.f32 %v1868_v23, %v9668_v45  ;;  %11716 = vmatpush3.bf16.msra.mxu1 %v11713_v14 }
 0x272   :  { %v1931_v18 = vsub.f32 %v1867_v32, %v1123_v28  ;;  %v9671_v25 = vpop.f32.mrb[40].mxu1  ;;  %v9799_v30 = vpop.f32.mrb[40].mxu0  ;;  %v11717_v0 = vpack.c.bf16 %v1804_v59, %v1803_v40  ;;  %v14220_v2 = vpack.c.bf16 %v1994_v22, %v1993_v7 }
 0x273   :  { %v1806_v5 = vsub.f32 %v14100_v17, %v9671_v25  ;;  %v1870_v49 = vsub.f32 %v9799_v30, %v14100_v17  ;;  %v1133_v46 = vpop.f32.mrb[41].mxu1  ;;  %v1518_v60 = vpop.f32.mrb[41].mxu0  ;;  %v1996_v56 = vadd.f32 %v1932_v8, %v1804_v59 }
 0x274   :  { %v1805_v38 = vsub.f32 %v14104_v50, %v1133_v46  ;;  %v1869_v13 = vsub.f32 %v1518_v60, %v14104_v50  ;;  %11718 = vmatprep.subr.bf16.mxu1 %v11717_v0  ;;  %v14226_v9 = vpack.c.bf16 %v1932_v8, %v1931_v18  ;;  %v1995_v6 = vadd.f32 %v1931_v18, %v1803_v40 }
 0x275   :  { %v1934_v45 = vsub.f32 %v1870_v49, %v9671_v25  ;;  %11720 = vmatpush3.bf16.msra.mxu1 %v11717_v0 }
 0x276   :  { %v1933_v14 = vsub.f32 %v1869_v13, %v1133_v46  ;;  %v9674_v23 = vpop.f32.mrb[42].mxu1  ;;  %v9802_v28 = vpop.f32.mrb[42].mxu0  ;;  %v11721_v26 = vpack.c.bf16 %v1806_v5, %v1805_v38  ;;  %v14228_v22 = vpack.c.bf16 %v1996_v56, %v1995_v6 }
 0x277   :  { %v1808_v17 = vsub.f32 %v14108_v27, %v9674_v23  ;;  %v1872_v59 = vsub.f32 %v9802_v28, %v14108_v27  ;;  %v1143_v32 = vpop.f32.mrb[43].mxu1  ;;  %v1528_v7 = vpop.f32.mrb[43].mxu0  ;;  %v1998_v30 = vadd.f32 %v1934_v45, %v1806_v5 }
 0x278   :  { %v1807_v50 = vsub.f32 %v14112_v43, %v1143_v32  ;;  %v1871_v8 = vsub.f32 %v1528_v7, %v14112_v43  ;;  %11722 = vmatprep.subr.bf16.mxu1 %v11721_v26  ;;  %v14234_v40 = vpack.c.bf16 %v1934_v45, %v1933_v14  ;;  %v1997_v18 = vadd.f32 %v1933_v14, %v1805_v38 }
 0x279   :  { %v1936_v25 = vsub.f32 %v1872_v59, %v9674_v23  ;;  %11724 = vmatpush3.bf16.msra.mxu1 %v11721_v26 }
 0x27a   :  { %v1935_v0 = vsub.f32 %v1871_v8, %v1143_v32  ;;  %v9677_v49 = vpop.f32.mrb[44].mxu1  ;;  %v9805_v46 = vpop.f32.mrb[44].mxu0  ;;  %v11725_v60 = vpack.c.bf16 %v1808_v17, %v1807_v50  ;;  %v14236_v56 = vpack.c.bf16 %v1998_v30, %v1997_v18 }
 0x27b   :  { %v1810_v27 = vsub.f32 %v14116_v41, %v9677_v49  ;;  %v1874_v5 = vsub.f32 %v9805_v46, %v14116_v41  ;;  %v1153_v13 = vpop.f32.mrb[45].mxu1  ;;  %v1538_v6 = vpop.f32.mrb[45].mxu0  ;;  %v2000_v28 = vadd.f32 %v1936_v25, %v1808_v17 }
 0x27c   :  { %v1809_v43 = vsub.f32 %v14120_v54, %v1153_v13  ;;  %v1873_v45 = vsub.f32 %v1538_v6, %v14120_v54  ;;  %11726 = vmatprep.subr.bf16.mxu1 %v11725_v60  ;;  %v14242_v38 = vpack.c.bf16 %v1936_v25, %v1935_v0  ;;  %v1999_v14 = vadd.f32 %v1935_v0, %v1807_v50 }
 0x27d   :  { %v1938_v23 = vsub.f32 %v1874_v5, %v9677_v49  ;;  %11728 = vmatpush3.bf16.msra.mxu1 %v11725_v60 }
 0x27e   :  { %v1937_v26 = vsub.f32 %v1873_v45, %v1153_v13  ;;  %v9680_v59 = vpop.f32.mrb[46].mxu1  ;;  %v9808_v32 = vpop.f32.mrb[46].mxu0  ;;  %v11729_v7 = vpack.c.bf16 %v1810_v27, %v1809_v43  ;;  %v14244_v30 = vpack.c.bf16 %v2000_v28, %v1999_v14 }
 0x27f   :  { %v1812_v41 = vsub.f32 %v14124_v51, %v9680_v59  ;;  %v1876_v17 = vsub.f32 %v9808_v32, %v14124_v51  ;;  %v1163_v8 = vpop.f32.mrb[47].mxu1  ;;  %v1548_v18 = vpop.f32.mrb[47].mxu0  ;;  %v2002_v46 = vadd.f32 %v1938_v23, %v1810_v27 }
 0x280   :  { %v1811_v54 = vsub.f32 %v14128_v48, %v1163_v8  ;;  %v1875_v25 = vsub.f32 %v1548_v18, %v14128_v48  ;;  %11730 = vmatprep.subr.bf16.mxu1 %v11729_v7  ;;  %v14250_v50 = vpack.c.bf16 %v1938_v23, %v1937_v26  ;;  %v2001_v0 = vadd.f32 %v1937_v26, %v1809_v43 }
 0x281   :  { %v1940_v49 = vsub.f32 %v1876_v17, %v9680_v59  ;;  %11732 = vmatpush3.bf16.msra.mxu1 %v11729_v7  ;;  %v275_v7 = vld [vmem:[#allocation4 + $0x8] sm:$0xff] }
 0x282   :  { %v1939_v60 = vsub.f32 %v1875_v25, %v1163_v8  ;;  %v9683_v5 = vpop.f32.mrb[48].mxu1  ;;  %v9811_v13 = vpop.f32.mrb[48].mxu0  ;;  %v11733_v6 = vpack.c.bf16 %v1812_v41, %v1811_v54  ;;  %v14252_v28 = vpack.c.bf16 %v2002_v46, %v2001_v0 }
 0x283   :  { %v1814_v51 = vsub.f32 %v14132_v53, %v9683_v5  ;;  %v1878_v27 = vsub.f32 %v9811_v13, %v14132_v53  ;;  %v1173_v45 = vpop.f32.mrb[49].mxu1  ;;  %v1558_v14 = vpop.f32.mrb[49].mxu0  ;;  %v2004_v32 = vadd.f32 %v1940_v49, %v1812_v41  ;;  %v276_v53 = vld [vmem:[#allocation4 + $0x10] sm:$0xff] }
 0x284   :  { %v1813_v48 = vsub.f32 %v14136_v55, %v1173_v45  ;;  %v1877_v23 = vsub.f32 %v1558_v14, %v14136_v55  ;;  %11734 = vmatprep.subr.bf16.mxu1 %v11733_v6  ;;  %v14258_v43 = vpack.c.bf16 %v1940_v49, %v1939_v60  ;;  %v2003_v26 = vadd.f32 %v1939_v60, %v1811_v54 }
 0x285   :  { %v1942_v59 = vsub.f32 %v1878_v27, %v9683_v5  ;;  %11736 = vmatpush3.bf16.msra.mxu1 %v11733_v6 }
 0x286   :  { %v1941_v17 = vsub.f32 %v1877_v23, %v1173_v45  ;;  %v9686_v8 = vpop.f32.mrb[50].mxu1  ;;  %v9814_v18 = vpop.f32.mrb[50].mxu0  ;;  %11738 = vmatprep.subr.bf16.mxu1 %v14202_v52  ;;  %v14261_v46 = vpack.c.bf16 %v2004_v32, %v2003_v26  ;;  %v14263_v41 = vpack.c.bf16 %v1814_v51, %v1813_v48  ;;  %v277_v45 = vld [vmem:[#allocation4 + $0x18] sm:$0xff] }
 0x287   :  { %v1816_v25 = vsub.f32 %v14140_v19, %v9686_v8  ;;  %v1880_v55 = vsub.f32 %v9814_v18, %v14140_v19  ;;  %v1183_v0 = vpop.f32.mrb[51].mxu1  ;;  %v1568_v49 = vpop.f32.mrb[51].mxu0  ;;  %v3116_v54 = vadd.f32 %v1942_v59, %v1814_v51  ;;  %v278_v19 = vld [vmem:[#allocation4 + $0x20] sm:$0xff] }
 0x288   :  { %17366 = vst [vmem:[#allocation66_spill] sm:$0xff] %v14263_v41  ;;  %v1815_v60 = vsub.f32 %v14144_v61, %v1183_v0  ;;  %v1879_v5 = vsub.f32 %v1568_v49, %v14144_v61  ;;  %9914 = vmatmul.mubr.f32.vlgmr.msra.gmra.mrb[96].mxu1 %v275_v7  ;;  %v14269_v13 = vpack.c.bf16 %v1942_v59, %v1941_v17  ;;  %v14678_v41 = vld [vmem:[#allocation25 + $0x38] sm:$0xff] }
 0x289   :  { %v3115_v6 = vadd.f32 %v1941_v17, %v1813_v48  ;;  %v1944_v27 = vsub.f32 %v1880_v55, %v9686_v8  ;;  %11740 = vmatpush3.bf16.msra.mxu1 %v14202_v52  ;;  %9916 = vmatprep.mubr.f32.mxu1 %v276_v53 }
 0x28a   :  { %17367 = vst [vmem:[#allocation67_spill] sm:$0xff] %v14269_v13  ;;  %v1943_v14 = vsub.f32 %v1879_v5, %v1183_v0  ;;  %v9689_v32 = vpop.f32.mrb[52].mxu1  ;;  %v9817_v23 = vpop.f32.mrb[52].mxu0  ;;  %11742 = vmatprep.subr.bf16.mxu1 %v14210_v62  ;;  %v14273_v51 = vpack.c.bf16 %v1816_v25, %v1815_v60  ;;  %v279_v0 = vld [vmem:[#allocation4 + $0x28] sm:$0xff] }
 0x28b   :  { %v14275_v26 = vpack.c.bf16 %v3116_v54, %v3115_v6  ;;  %v1818_v61 = vsub.f32 %v14148_v63, %v9689_v32  ;;  %v1882_v59 = vsub.f32 %v9817_v23, %v14148_v63  ;;  %v1193_v48 = vpop.f32.mrb[53].mxu1  ;;  %v1578_v7 = vpop.f32.mrb[53].mxu0  ;;  %v3118_v17 = vadd.f32 %v1944_v27, %v1816_v25  ;;  %v280_v63 = vld [vmem:[#allocation4 + $0x30] sm:$0xff] }
 0x28c   :  { %17368 = vst [vmem:[#allocation68_spill] sm:$0xff] %v14273_v51  ;;  %v1817_v52 = vsub.f32 %v14152_v58, %v1193_v48  ;;  %v1881_v8 = vsub.f32 %v1578_v7, %v14152_v58  ;;  %9917 = vmatmul.mubr.f32.gmra.mrb[98].mxu1 %v277_v45  ;;  %v14281_v18 = vpack.c.bf16 %v1944_v27, %v1943_v14 }
 0x28d   :  { %17369 = vst [vmem:[#allocation69_spill] sm:$0xff] %v14275_v26  ;;  %v3117_v53 = vadd.f32 %v1943_v14, %v1815_v60  ;;  %v1946_v55 = vsub.f32 %v1882_v59, %v9689_v32  ;;  %11744 = vmatpush3.bf16.msra.mxu1 %v14210_v62  ;;  %9919 = vmatprep.mubr.f32.mxu1 %v278_v19 }
 0x28e   :  { %17370 = vst [vmem:[#allocation70_spill] sm:$0xff] %v14281_v18  ;;  %v1945_v49 = vsub.f32 %v1881_v8, %v1193_v48  ;;  %v9692_v54 = vpop.f32.mrb[54].mxu1  ;;  %v9820_v5 = vpop.f32.mrb[54].mxu0  ;;  %11746 = vmatprep.subr.bf16.mxu1 %v14218_v39  ;;  %v14285_v25 = vpack.c.bf16 %v1818_v61, %v1817_v52  ;;  %v281_v48 = vld [vmem:[#allocation4 + $0x38] sm:$0xff]  ;;  %v14653_v18 = vld [vmem:[#allocation25 + $0x28] sm:$0xff] }
 0x28f   :  { %v14287_v6 = vpack.c.bf16 %v3118_v17, %v3117_v53  ;;  %v1820_v58 = vsub.f32 %v14156_v11, %v9692_v54  ;;  %v1884_v27 = vsub.f32 %v9820_v5, %v14156_v11  ;;  %v1203_v60 = vpop.f32.mrb[55].mxu1  ;;  %v1588_v45 = vpop.f32.mrb[55].mxu0  ;;  %v3120_v14 = vadd.f32 %v1946_v55, %v1818_v61  ;;  %v282_v11 = vld [vmem:[#allocation4 + $0x40] sm:$0xff] }
 0x290   :  { %17371 = vst [vmem:[#allocation71_spill] sm:$0xff] %v14285_v25  ;;  %v1819_v62 = vsub.f32 %v14160_v10, %v1203_v60  ;;  %v1883_v32 = vsub.f32 %v1588_v45, %v14160_v10  ;;  %9920 = vmatmul.mubr.f32.gmra.mrb[100].mxu1 %v279_v0  ;;  %v14293_v23 = vpack.c.bf16 %v1946_v55, %v1945_v49 }
 0x291   :  { %17372 = vst [vmem:[#allocation72_spill] sm:$0xff] %v14287_v6  ;;  %v3119_v19 = vadd.f32 %v1945_v49, %v1817_v52  ;;  %v1948_v59 = vsub.f32 %v1884_v27, %v9692_v54  ;;  %11748 = vmatpush3.bf16.msra.mxu1 %v14218_v39  ;;  %9922 = vmatprep.mubr.f32.mxu1 %v280_v63  ;;  %v14651_v6 = vld [vmem:[#allocation24 + $0x28] sm:$0xff] }
 0x292   :  { %17373 = vst [vmem:[#allocation73_spill] sm:$0xff] %v14293_v23  ;;  %v1947_v7 = vsub.f32 %v1883_v32, %v1203_v60  ;;  %v9695_v17 = vpop.f32.mrb[56].mxu1  ;;  %v9823_v8 = vpop.f32.mrb[56].mxu0  ;;  %11750 = vmatprep.subr.bf16.mxu1 %v14226_v9  ;;  %v14297_v61 = vpack.c.bf16 %v1820_v58, %v1819_v62  ;;  %v283_v60 = vld [vmem:[#allocation4 + $0x48] sm:$0xff]  ;;  %v14649_v23 = vld [vmem:[#allocation25 + $0x10] sm:$0xff] }
 0x293   :  { %v14299_v53 = vpack.c.bf16 %v3120_v14, %v3119_v19  ;;  %v1822_v10 = vsub.f32 %v14164_v20, %v9695_v17  ;;  %v1886_v55 = vsub.f32 %v9823_v8, %v14164_v20  ;;  %v1213_v52 = vpop.f32.mrb[57].mxu1  ;;  %v1598_v0 = vpop.f32.mrb[57].mxu0  ;;  %v3122_v49 = vadd.f32 %v1948_v59, %v1820_v58  ;;  %v284_v20 = vld [vmem:[#allocation4 + $0x50] sm:$0xff] }
 0x294   :  { %17374 = vst [vmem:[#allocation74_spill] sm:$0xff] %v14297_v61  ;;  %v1821_v39 = vsub.f32 %v14168_v4, %v1213_v52  ;;  %v1885_v54 = vsub.f32 %v1598_v0, %v14168_v4  ;;  %9923 = vmatmul.mubr.f32.gmra.mrb[102].mxu1 %v281_v48  ;;  %v14305_v5 = vpack.c.bf16 %v1948_v59, %v1947_v7 }
 0x295   :  { %17375 = vst [vmem:[#allocation75_spill] sm:$0xff] %v14299_v53  ;;  %v3121_v63 = vadd.f32 %v1947_v7, %v1819_v62  ;;  %v1950_v27 = vsub.f32 %v1886_v55, %v9695_v17  ;;  %11752 = vmatpush3.bf16.msra.mxu1 %v14226_v9  ;;  %9925 = vmatprep.mubr.f32.mxu1 %v282_v11 }
 0x296   :  { %17376 = vst [vmem:[#allocation76_spill] sm:$0xff] %v14305_v5  ;;  %v1949_v45 = vsub.f32 %v1885_v54, %v1213_v52  ;;  %v9698_v14 = vpop.f32.mrb[58].mxu1  ;;  %v9826_v32 = vpop.f32.mrb[58].mxu0  ;;  %11754 = vmatprep.subr.bf16.mxu1 %v14234_v40  ;;  %v14309_v58 = vpack.c.bf16 %v1822_v10, %v1821_v39  ;;  %v285_v52 = vld [vmem:[#allocation4 + $0x58] sm:$0xff]  ;;  %v14645_v5 = vld [vmem:[#allocation24 + $0x10] sm:$0xff] }
 0x297   :  { %v14311_v19 = vpack.c.bf16 %v3122_v49, %v3121_v63  ;;  %v1824_v4 = vsub.f32 %v14172_v1, %v9698_v14  ;;  %v1888_v59 = vsub.f32 %v9826_v32, %v14172_v1  ;;  %v1223_v62 = vpop.f32.mrb[59].mxu1  ;;  %v1608_v48 = vpop.f32.mrb[59].mxu0  ;;  %v3124_v7 = vadd.f32 %v1950_v27, %v1822_v10  ;;  %v286_v1 = vld [vmem:[#allocation4 + $0x60] sm:$0xff] }
 0x298   :  { %17377 = vst [vmem:[#allocation77_spill] sm:$0xff] %v14309_v58  ;;  %v1823_v9 = vsub.f32 %v14176_v21, %v1223_v62  ;;  %v1887_v17 = vsub.f32 %v1608_v48, %v14176_v21  ;;  %9926 = vmatmul.mubr.f32.gmra.mrb[104].mxu1 %v283_v60  ;;  %v14317_v8 = vpack.c.bf16 %v1950_v27, %v1949_v45 }
 0x299   :  { %17378 = vst [vmem:[#allocation78_spill] sm:$0xff] %v14311_v19  ;;  %v3123_v11 = vadd.f32 %v1949_v45, %v1821_v39  ;;  %v1952_v55 = vsub.f32 %v1888_v59, %v9698_v14  ;;  %11756 = vmatpush3.bf16.msra.mxu1 %v14234_v40  ;;  %9928 = vmatprep.mubr.f32.mxu1 %v284_v20  ;;  %v14643_v19 = vld [vmem:[#allocation25 + $0x18] sm:$0xff] }
 0x29a   :  { %17379 = vst [vmem:[#allocation79_spill] sm:$0xff] %v14317_v8  ;;  %v1951_v0 = vsub.f32 %v1887_v17, %v1223_v62  ;;  %v9701_v49 = vpop.f32.mrb[60].mxu1  ;;  %v9829_v54 = vpop.f32.mrb[60].mxu0  ;;  %11758 = vmatprep.subr.bf16.mxu1 %v14242_v38  ;;  %v14321_v10 = vpack.c.bf16 %v1824_v4, %v1823_v9  ;;  %v287_v62 = vld [vmem:[#allocation4 + $0x68] sm:$0xff]  ;;  %v14641_v8 = vld [vmem:[#allocation24 + $0x18] sm:$0xff] }
 0x29b   :  { %v14323_v63 = vpack.c.bf16 %v3124_v7, %v3123_v11  ;;  %v1826_v21 = vsub.f32 %v14180_v33, %v9701_v49  ;;  %v1890_v27 = vsub.f32 %v9829_v54, %v14180_v33  ;;  %v1233_v39 = vpop.f32.mrb[61].mxu1  ;;  %v1618_v60 = vpop.f32.mrb[61].mxu0  ;;  %v3126_v45 = vadd.f32 %v1952_v55, %v1824_v4  ;;  %v288_v33 = vld [vmem:[#allocation4 + $0x70] sm:$0xff] }
 0x29c   :  { %17380 = vst [vmem:[#allocation80_spill] sm:$0xff] %v14321_v10  ;;  %v1825_v40 = vsub.f32 %v14184_v16, %v1233_v39  ;;  %v1889_v14 = vsub.f32 %v1618_v60, %v14184_v16  ;;  %9929 = vmatmul.mubr.f32.gmra.mrb[106].mxu1 %v285_v52  ;;  %v14329_v32 = vpack.c.bf16 %v1952_v55, %v1951_v0  ;;  %v14665_v10 = vld [vmem:[#allocation24 + $0x38] sm:$0xff] }
 0x29d   :  { %17381 = vst [vmem:[#allocation81_spill] sm:$0xff] %v14323_v63  ;;  %v3125_v20 = vadd.f32 %v1951_v0, %v1823_v9  ;;  %v1954_v59 = vsub.f32 %v1890_v27, %v9701_v49  ;;  %11760 = vmatpush3.bf16.msra.mxu1 %v14242_v38  ;;  %9931 = vmatprep.mubr.f32.mxu1 %v286_v1 }
 0x29e   :  { %17382 = vst [vmem:[#allocation82_spill] sm:$0xff] %v14329_v32  ;;  %v1953_v48 = vsub.f32 %v1889_v14, %v1233_v39  ;;  %v9704_v7 = vpop.f32.mrb[62].mxu1  ;;  %v9832_v17 = vpop.f32.mrb[62].mxu0  ;;  %11762 = vmatprep.subr.bf16.mxu1 %v14250_v50  ;;  %v14333_v4 = vpack.c.bf16 %v1826_v21, %v1825_v40  ;;  %v289_v39 = vld [vmem:[#allocation4 + $0x78] sm:$0xff] }
 0x29f   :  { %v14335_v11 = vpack.c.bf16 %v3126_v45, %v3125_v20  ;;  %v1828_v16 = vsub.f32 %v14188_v12, %v9704_v7  ;;  %v1892_v55 = vsub.f32 %v9832_v17, %v14188_v12  ;;  %v1243_v9 = vpop.f32.mrb[63].mxu1  ;;  %v1628_v52 = vpop.f32.mrb[63].mxu0  ;;  %v3128_v0 = vadd.f32 %v1954_v59, %v1826_v21  ;;  %v290_v12 = vld [vmem:[#allocation7] sm:$0xff] }
 0x2a0   :  { %17383 = vst [vmem:[#allocation83_spill] sm:$0xff] %v14333_v4  ;;  %v1827_v38 = vsub.f32 %v14192_v31, %v1243_v9  ;;  %v1891_v49 = vsub.f32 %v1628_v52, %v14192_v31  ;;  %9932 = vmatmul.mubr.f32.gmra.mrb[108].mxu1 %v287_v62  ;;  %v14341_v54 = vpack.c.bf16 %v1954_v59, %v1953_v48  ;;  %v14663_v4 = vld [vmem:[#allocation25 + $0x20] sm:$0xff] }
 0x2a1   :  { %17384 = vst [vmem:[#allocation84_spill] sm:$0xff] %v14335_v11  ;;  %v3127_v1 = vadd.f32 %v1953_v48, %v1825_v40  ;;  %v1956_v27 = vsub.f32 %v1892_v55, %v9704_v7  ;;  %11764 = vmatpush3.bf16.msra.mxu1 %v14250_v50  ;;  %9934 = vmatprep.mubr.f32.mxu1 %v288_v33  ;;  %v14633_v11 = vld [vmem:[#allocation25] sm:$0xff] }
 0x2a2   :  { %17385 = vst [vmem:[#allocation85_spill] sm:$0xff] %v14341_v54  ;;  %v1955_v60 = vsub.f32 %v1891_v49, %v1243_v9  ;;  %v9707_v45 = vpop.f32.mrb[64].mxu1  ;;  %v9835_v14 = vpop.f32.mrb[64].mxu0  ;;  %11766 = vmatprep.subr.bf16.mxu1 %v14258_v43  ;;  %v14345_v21 = vpack.c.bf16 %v1828_v16, %v1827_v38  ;;  %v291_v9 = vld [vmem:[#allocation7 + $0x8] sm:$0xff]  ;;  %v14631_v54 = vld [vmem:[#allocation24] sm:$0xff] }
 0x2a3   :  { %v14347_v20 = vpack.c.bf16 %v3128_v0, %v3127_v1  ;;  %v1830_v31 = vsub.f32 %v14066_v37, %v9707_v45  ;;  %v1894_v59 = vsub.f32 %v9835_v14, %v14066_v37  ;;  %v1253_v40 = vpop.f32.mrb[65].mxu1  ;;  %v1638_v62 = vpop.f32.mrb[65].mxu0  ;;  %v3130_v48 = vadd.f32 %v1956_v27, %v1828_v16  ;;  %v292_v37 = vld [vmem:[#allocation7 + $0x10] sm:$0xff] }
 0x2a4   :  { %17386 = vst [vmem:[#allocation86_spill] sm:$0xff] %v14345_v21  ;;  %v1829_v50 = vsub.f32 %v14070_v24, %v1253_v40  ;;  %v1893_v7 = vsub.f32 %v1638_v62, %v14070_v24  ;;  %9935 = vmatmul.mubr.f32.gmra.mrb[110].mxu1 %v289_v39  ;;  %v14353_v17 = vpack.c.bf16 %v1956_v27, %v1955_v60  ;;  %v14661_v21 = vld [vmem:[#allocation24 + $0x20] sm:$0xff] }
 0x2a5   :  { %17387 = vst [vmem:[#allocation87_spill] sm:$0xff] %v14347_v20  ;;  %v3129_v33 = vadd.f32 %v1955_v60, %v1827_v38  ;;  %v1958_v55 = vsub.f32 %v1894_v59, %v9707_v45  ;;  %11768 = vmatpush3.bf16.msra.mxu1 %v14258_v43  ;;  %9969 = vmatprep.mubr.f32.mxu1 %v290_v12  ;;  %v14629_v20 = vld [vmem:[#allocation25 + $0x8] sm:$0xff] }
 0x2a6   :  { %17388 = vst [vmem:[#allocation88_spill] sm:$0xff] %v14353_v17  ;;  %v1957_v52 = vsub.f32 %v1893_v7, %v1253_v40  ;;  %v9710_v0 = vpop.f32.mrb[66].mxu1  ;;  %v9838_v49 = vpop.f32.mrb[66].mxu0  ;;  %11770 = vmatprep.subr.bf16.mxu1 %v14204_v35  ;;  %v14359_v1 = vpack.c.bf16 %v1830_v31, %v1829_v50  ;;  %v293_v40 = vld [vmem:[#allocation7 + $0x18] sm:$0xff] }
 0x2a7   :  { %v14357_v16 = vpack.c.bf16 %v3130_v48, %v3129_v33  ;;  %v1832_v24 = vsub.f32 %v14074_v47, %v9710_v0  ;;  %v1896_v27 = vsub.f32 %v9838_v49, %v14074_v47  ;;  %v1263_v38 = vpop.f32.mrb[67].mxu1  ;;  %v1648_v39 = vpop.f32.mrb[67].mxu0  ;;  %v4242_v60 = vadd.f32 %v1958_v55, %v1830_v31  ;;  %v294_v47 = vld [vmem:[#allocation7 + $0x20] sm:$0xff] }
 0x2a8   :  { %17390 = vst [vmem:[#allocation90_spill] sm:$0xff] %v14359_v1  ;;  %v1831_v43 = vsub.f32 %v14078_v42, %v1263_v38  ;;  %v1895_v45 = vsub.f32 %v1648_v39, %v14078_v42  ;;  %9970 = vmatmul.mubr.f32.vlgmr.msra.gmra.mrb[112].mxu1 %v291_v9  ;;  %v14365_v14 = vpack.c.bf16 %v1958_v55, %v1957_v52 }
 0x2a9   :  { %17389 = vst [vmem:[#allocation89_spill] sm:$0xff] %v14357_v16  ;;  %v4241_v12 = vadd.f32 %v1957_v52, %v1829_v50  ;;  %v1960_v59 = vsub.f32 %v1896_v27, %v9710_v0  ;;  %11772 = vmatpush3.bf16.msra.mxu1 %v14204_v35  ;;  %9972 = vmatprep.mubr.f32.mxu1 %v292_v37  ;;  %v14625_v16 = vld [vmem:[#allocation24 + $0x8] sm:$0xff] }
 0x2aa   :  { %17391 = vst [vmem:[#allocation91_spill] sm:$0xff] %v14365_v14  ;;  %v1959_v62 = vsub.f32 %v1895_v45, %v1263_v38  ;;  %v9713_v48 = vpop.f32.mrb[68].mxu1  ;;  %v9841_v7 = vpop.f32.mrb[68].mxu0  ;;  %11774 = vmatprep.subr.bf16.mxu1 %v14212_v29  ;;  %v14369_v31 = vpack.c.bf16 %v1832_v24, %v1831_v43  ;;  %v295_v38 = vld [vmem:[#allocation7 + $0x28] sm:$0xff] }
 0x2ab   :  { %v14371_v33 = vpack.c.bf16 %v4242_v60, %v4241_v12  ;;  %v1834_v42 = vsub.f32 %v14082_v57, %v9713_v48  ;;  %v1898_v55 = vsub.f32 %v9841_v7, %v14082_v57  ;;  %v1273_v50 = vpop.f32.mrb[69].mxu1  ;;  %v1658_v9 = vpop.f32.mrb[69].mxu0  ;;  %v4244_v52 = vadd.f32 %v1960_v59, %v1832_v24  ;;  %v296_v57 = vld [vmem:[#allocation7 + $0x30] sm:$0xff] }
 0x2ac   :  { %17392 = vst [vmem:[#allocation92_spill] sm:$0xff] %v14369_v31  ;;  %v1833_v35 = vsub.f32 %v14086_v34, %v1273_v50  ;;  %v1897_v0 = vsub.f32 %v1658_v9, %v14086_v34  ;;  %9973 = vmatmul.mubr.f32.gmra.mrb[114].mxu1 %v293_v40  ;;  %v14377_v49 = vpack.c.bf16 %v1960_v59, %v1959_v62 }
 0x2ad   :  { %17393 = vst [vmem:[#allocation93_spill] sm:$0xff] %v14371_v33  ;;  %v4243_v37 = vadd.f32 %v1959_v62, %v1831_v43  ;;  %v1962_v27 = vsub.f32 %v1898_v55, %v9713_v48  ;;  %11776 = vmatpush3.bf16.msra.mxu1 %v14212_v29  ;;  %9975 = vmatprep.mubr.f32.mxu1 %v294_v47 }
 0x2ae   :  { %17394 = vst [vmem:[#allocation94_spill] sm:$0xff] %v14377_v49  ;;  %v1961_v39 = vsub.f32 %v1897_v0, %v1273_v50  ;;  %v9716_v60 = vpop.f32.mrb[70].mxu1  ;;  %v9844_v45 = vpop.f32.mrb[70].mxu0  ;;  %11778 = vmatprep.subr.bf16.mxu1 %v14220_v2  ;;  %v14381_v24 = vpack.c.bf16 %v1834_v42, %v1833_v35  ;;  %v297_v50 = vld [vmem:[#allocation7 + $0x38] sm:$0xff] }
 0x2af   :  { %v14383_v12 = vpack.c.bf16 %v4244_v52, %v4243_v37  ;;  %v1836_v34 = vsub.f32 %v14090_v3, %v9716_v60  ;;  %v1900_v59 = vsub.f32 %v9844_v45, %v14090_v3  ;;  %v1283_v43 = vpop.f32.mrb[71].mxu1  ;;  %v1668_v40 = vpop.f32.mrb[71].mxu0  ;;  %v4246_v62 = vadd.f32 %v1962_v27, %v1834_v42  ;;  %v298_v3 = vld [vmem:[#allocation7 + $0x40] sm:$0xff] }
 0x2b0   :  { %17395 = vst [vmem:[#allocation95_spill] sm:$0xff] %v14381_v24  ;;  %v1835_v29 = vsub.f32 %v14094_v36, %v1283_v43  ;;  %v1899_v48 = vsub.f32 %v1668_v40, %v14094_v36  ;;  %9976 = vmatmul.mubr.f32.gmra.mrb[116].mxu1 %v295_v38  ;;  %v14389_v7 = vpack.c.bf16 %v1962_v27, %v1961_v39 }
 0x2b1   :  { %17396 = vst [vmem:[#allocation96_spill] sm:$0xff] %v14383_v12  ;;  %v4245_v47 = vadd.f32 %v1961_v39, %v1833_v35  ;;  %v1964_v55 = vsub.f32 %v1900_v59, %v9716_v60  ;;  %11780 = vmatpush3.bf16.msra.mxu1 %v14220_v2  ;;  %9978 = vmatprep.mubr.f32.mxu1 %v296_v57 }
 0x2b2   :  { %17397 = vst [vmem:[#allocation97_spill] sm:$0xff] %v14389_v7  ;;  %v1963_v9 = vsub.f32 %v1899_v48, %v1283_v43  ;;  %v9719_v52 = vpop.f32.mrb[72].mxu1  ;;  %v9847_v0 = vpop.f32.mrb[72].mxu0  ;;  %11782 = vmatprep.subr.bf16.mxu1 %v14228_v22  ;;  %v14393_v42 = vpack.c.bf16 %v1836_v34, %v1835_v29  ;;  %v299_v43 = vld [vmem:[#allocation7 + $0x48] sm:$0xff] }
 0x2b3   :  { %v14395_v37 = vpack.c.bf16 %v4246_v62, %v4245_v47  ;;  %v1838_v36 = vsub.f32 %v14098_v15, %v9719_v52  ;;  %v1902_v27 = vsub.f32 %v9847_v0, %v14098_v15  ;;  %v1293_v35 = vpop.f32.mrb[73].mxu1  ;;  %v1678_v38 = vpop.f32.mrb[73].mxu0  ;;  %v4248_v39 = vadd.f32 %v1964_v55, %v1836_v34  ;;  %v300_v15 = vld [vmem:[#allocation7 + $0x50] sm:$0xff] }
 0x2b4   :  { %17398 = vst [vmem:[#allocation98_spill] sm:$0xff] %v14393_v42  ;;  %v1837_v2 = vsub.f32 %v14102_v44, %v1293_v35  ;;  %v1901_v60 = vsub.f32 %v1678_v38, %v14102_v44  ;;  %9979 = vmatmul.mubr.f32.gmra.mrb[118].mxu1 %v297_v50  ;;  %v14401_v45 = vpack.c.bf16 %v1964_v55, %v1963_v9  ;;  %v17403_v44 = vld [vmem:[#allocation44_spill] sm:$0xff] }
 0x2b5   :  { %17399 = vst [vmem:[#allocation99_spill] sm:$0xff] %v14395_v37  ;;  %v4247_v57 = vadd.f32 %v1963_v9, %v1835_v29  ;;  %v1966_v59 = vsub.f32 %v1902_v27, %v9719_v52  ;;  %11784 = vmatpush3.bf16.msra.mxu1 %v14228_v22  ;;  %9981 = vmatprep.mubr.f32.mxu1 %v298_v3  ;;  %v17404_v22 = vld [vmem:[#allocation45_spill] sm:$0xff] }
 0x2b6   :  { %17400 = vst [vmem:[#allocation100_spill] sm:$0xff] %v14401_v45  ;;  %v1965_v40 = vsub.f32 %v1901_v60, %v1293_v35  ;;  %v9722_v62 = vpop.f32.mrb[74].mxu1  ;;  %v9850_v48 = vpop.f32.mrb[74].mxu0  ;;  %11786 = vmatprep.subr.bf16.mxu1 %v14236_v56  ;;  %v14405_v34 = vpack.c.bf16 %v1838_v36, %v1837_v2  ;;  %v17423_v45 = vld [vmem:[#allocation52_spill] sm:$0xff] }
 0x2b7   :  { %v14407_v47 = vpack.c.bf16 %v4248_v39, %v4247_v57  ;;  %v1840_v50 = vsub.f32 %v17403_v44, %v9722_v62  ;;  %v1904_v55 = vsub.f32 %v9850_v48, %v17403_v44  ;;  %v1303_v29 = vpop.f32.mrb[75].mxu1  ;;  %v1688_v9 = vpop.f32.mrb[75].mxu0  ;;  %v4250_v52 = vadd.f32 %v1966_v59, %v1838_v36  ;;  %v301_v39 = vld [vmem:[#allocation7 + $0x58] sm:$0xff]  ;;  %v302_v48 = vld [vmem:[#allocation7 + $0x60] sm:$0xff] }
 0x2b8   :  { %17401 = vst [vmem:[#allocation101_spill] sm:$0xff] %v14405_v34  ;;  %v1839_v0 = vsub.f32 %v17404_v22, %v1303_v29  ;;  %v1903_v3 = vsub.f32 %v1688_v9, %v17404_v22  ;;  %9982 = vmatmul.mubr.f32.gmra.mrb[120].mxu1 %v299_v43  ;;  %v14413_v27 = vpack.c.bf16 %v1966_v59, %v1965_v40  ;;  %v17408_v9 = vld [vmem:[#allocation46_spill] sm:$0xff] }
 0x2b9   :  { %17402 = vst [vmem:[#allocation102_spill] sm:$0xff] %v14407_v47  ;;  %v4249_v35 = vadd.f32 %v1965_v40, %v1837_v2  ;;  %v1968_v38 = vsub.f32 %v1904_v55, %v9722_v62  ;;  %11788 = vmatpush3.bf16.msra.mxu1 %v14236_v56  ;;  %9984 = vmatprep.mubr.f32.mxu1 %v300_v15  ;;  %v17409_v56 = vld [vmem:[#allocation47_spill] sm:$0xff] }
 0x2ba   :  { %17405 = vst [vmem:[#allocation44_spill] sm:$0xff] %v14413_v27  ;;  %v1967_v60 = vsub.f32 %v1903_v3, %v1303_v29  ;;  %v9725_v57 = vpop.f32.mrb[76].mxu1  ;;  %v9853_v47 = vpop.f32.mrb[76].mxu0  ;;  %11790 = vmatprep.subr.bf16.mxu1 %v14244_v30  ;;  %v14417_v36 = vpack.c.bf16 %v1840_v50, %v1839_v0 }
 0x2bb   :  { %v14419_v44 = vpack.c.bf16 %v4250_v52, %v4249_v35  ;;  %v1842_v43 = vsub.f32 %v17408_v9, %v9725_v57  ;;  %v1906_v59 = vsub.f32 %v9853_v47, %v17408_v9  ;;  %v1313_v2 = vpop.f32.mrb[77].mxu1  ;;  %v1698_v40 = vpop.f32.mrb[77].mxu0  ;;  %v4252_v62 = vadd.f32 %v1968_v38, %v1840_v50  ;;  %v303_v52 = vld [vmem:[#allocation7 + $0x68] sm:$0xff]  ;;  %v304_v47 = vld [vmem:[#allocation7 + $0x70] sm:$0xff] }
 0x2bc   :  { %17406 = vst [vmem:[#allocation45_spill] sm:$0xff] %v14417_v36  ;;  %v1841_v15 = vsub.f32 %v17409_v56, %v1313_v2  ;;  %v1905_v55 = vsub.f32 %v1698_v40, %v17409_v56  ;;  %9985 = vmatmul.mubr.f32.gmra.mrb[122].mxu1 %v301_v39  ;;  %v14425_v29 = vpack.c.bf16 %v1968_v38, %v1967_v60  ;;  %v17413_v40 = vld [vmem:[#allocation48_spill] sm:$0xff] }
 0x2bd   :  { %17407 = vst [vmem:[#allocation103_spill] sm:$0xff] %v14419_v44  ;;  %v4251_v22 = vadd.f32 %v1967_v60, %v1839_v0  ;;  %v1970_v3 = vsub.f32 %v1906_v59, %v9725_v57  ;;  %11792 = vmatpush3.bf16.msra.mxu1 %v14244_v30  ;;  %9987 = vmatprep.mubr.f32.mxu1 %v302_v48  ;;  %v17414_v30 = vld [vmem:[#allocation49_spill] sm:$0xff] }
 0x2be   :  { %17410 = vst [vmem:[#allocation46_spill] sm:$0xff] %v14425_v29  ;;  %v1969_v35 = vsub.f32 %v1905_v55, %v1313_v2  ;;  %v9728_v44 = vpop.f32.mrb[78].mxu1  ;;  %v9856_v27 = vpop.f32.mrb[78].mxu0  ;;  %11794 = vmatprep.subr.bf16.mxu1 %v14252_v28  ;;  %v14429_v50 = vpack.c.bf16 %v1842_v43, %v1841_v15 }
 0x2bf   :  { %v14431_v9 = vpack.c.bf16 %v4252_v62, %v4251_v22  ;;  %v1844_v39 = vsub.f32 %v17413_v40, %v9728_v44  ;;  %v1908_v38 = vsub.f32 %v9856_v27, %v17413_v40  ;;  %v1323_v0 = vpop.f32.mrb[79].mxu1  ;;  %v1708_v60 = vpop.f32.mrb[79].mxu0  ;;  %v4254_v57 = vadd.f32 %v1970_v3, %v1842_v43  ;;  %v305_v62 = vld [vmem:[#allocation7 + $0x78] sm:$0xff]  ;;  %v306_v27 = vld [vmem:[#allocation9] sm:$0xff] }
 0x2c0   :  { %17411 = vst [vmem:[#allocation47_spill] sm:$0xff] %v14429_v50  ;;  %v1843_v48 = vsub.f32 %v17414_v30, %v1323_v0  ;;  %v1907_v59 = vsub.f32 %v1708_v60, %v17414_v30  ;;  %9988 = vmatmul.mubr.f32.gmra.mrb[124].mxu1 %v303_v52  ;;  %v14437_v2 = vpack.c.bf16 %v1970_v3, %v1969_v35  ;;  %v17418_v60 = vld [vmem:[#allocation50_spill] sm:$0xff] }
 0x2c1   :  { %17412 = vst [vmem:[#allocation104_spill] sm:$0xff] %v14431_v9  ;;  %v4253_v56 = vadd.f32 %v1969_v35, %v1841_v15  ;;  %v1972_v55 = vsub.f32 %v1908_v38, %v9728_v44  ;;  %11796 = vmatpush3.bf16.msra.mxu1 %v14252_v28  ;;  %9990 = vmatprep.mubr.f32.mxu1 %v304_v47  ;;  %v17419_v28 = vld [vmem:[#allocation51_spill] sm:$0xff] }
 0x2c2   :  { %17415 = vst [vmem:[#allocation48_spill] sm:$0xff] %v14437_v2  ;;  %v1971_v22 = vsub.f32 %v1907_v59, %v1323_v0  ;;  %v9731_v9 = vpop.f32.mrb[80].mxu1  ;;  %v9859_v29 = vpop.f32.mrb[80].mxu0  ;;  %11798 = vmatprep.subr.bf16.mxu1 %v14261_v46  ;;  %v14441_v43 = vpack.c.bf16 %v1844_v39, %v1843_v48 }
 0x2c3   :  { %v14443_v40 = vpack.c.bf16 %v4254_v57, %v4253_v56  ;;  %v1846_v52 = vsub.f32 %v17418_v60, %v9731_v9  ;;  %v1910_v3 = vsub.f32 %v9859_v29, %v17418_v60  ;;  %v1333_v15 = vpop.f32.mrb[81].mxu1  ;;  %v1718_v44 = vpop.f32.mrb[81].mxu0  ;;  %v4256_v35 = vadd.f32 %v1972_v55, %v1844_v39  ;;  %v307_v57 = vld [vmem:[#allocation9 + $0x8] sm:$0xff]  ;;  %v308_v29 = vld [vmem:[#allocation9 + $0x10] sm:$0xff] }
 0x2c4   :  { %17416 = vst [vmem:[#allocation49_spill] sm:$0xff] %v14441_v43  ;;  %v1845_v47 = vsub.f32 %v17419_v28, %v1333_v15  ;;  %v1909_v38 = vsub.f32 %v1718_v44, %v17419_v28  ;;  %9991 = vmatmul.mubr.f32.gmra.mrb[126].mxu1 %v305_v62  ;;  %v14449_v0 = vpack.c.bf16 %v1972_v55, %v1971_v22 }
 0x2c5   :  { %17417 = vst [vmem:[#allocation105_spill] sm:$0xff] %v14443_v40  ;;  %v4255_v30 = vadd.f32 %v1971_v22, %v1843_v48  ;;  %v1974_v59 = vsub.f32 %v1910_v3, %v9731_v9  ;;  %11800 = vmatpush3.bf16.msra.mxu1 %v14261_v46  ;;  %10025 = vmatprep.mubr.f32.mxu1 %v306_v27  ;;  %v17424_v9 = vld [vmem:[#allocation53_spill] sm:$0xff] }
 0x2c6   :  { %17420 = vst [vmem:[#allocation50_spill] sm:$0xff] %v14449_v0  ;;  %v1973_v56 = vsub.f32 %v1909_v38, %v1333_v15  ;;  %v9734_v40 = vpop.f32.mrb[82].mxu1  ;;  %v9862_v2 = vpop.f32.mrb[82].mxu0  ;;  %v14454_v39 = vpack.c.bf16 %v1846_v52, %v1845_v47 }
 0x2c7   :  { %v14452_v60 = vpack.c.bf16 %v4256_v35, %v4255_v30  ;;  %v1848_v37 = vsub.f32 %v17423_v45, %v9734_v40  ;;  %v1912_v62 = vsub.f32 %v9862_v2, %v17423_v45  ;;  %v1343_v55 = vpop.f32.mrb[83].mxu1  ;;  %v1728_v44 = vpop.f32.mrb[83].mxu0  ;;  %v5368_v48 = vadd.f32 %v1974_v59, %v1846_v52  ;;  %v309_v35 = vld [vmem:[#allocation9 + $0x18] sm:$0xff]  ;;  %v17428_v2 = vld [vmem:[#allocation54_spill] sm:$0xff] }
 0x2c8   :  { %17422 = vst [vmem:[#allocation106_spill] sm:$0xff] %v14454_v39  ;;  %v1847_v22 = vsub.f32 %v17424_v9, %v1343_v55  ;;  %v1911_v46 = vsub.f32 %v1728_v44, %v17424_v9  ;;  %10026 = vmatmul.mubr.f32.vlgmr.msra.gmra.mrb[128].mxu1 %v307_v57  ;;  %v14460_v27 = vpack.c.bf16 %v1974_v59, %v1973_v56  ;;  %v310_v39 = vld [vmem:[#allocation9 + $0x20] sm:$0xff]  ;;  %v17429_v9 = vld [vmem:[#allocation55_spill] sm:$0xff] }
 0x2c9   :  { %17421 = vst [vmem:[#allocation51_spill] sm:$0xff] %v14452_v60  ;;  %v5367_v3 = vadd.f32 %v1973_v56, %v1845_v47  ;;  %v1976_v15 = vsub.f32 %v1912_v62, %v9734_v40  ;;  %10028 = vmatprep.mubr.f32.mxu1 %v308_v29 }
 0x2ca   :  { %17425 = vst [vmem:[#allocation52_spill] sm:$0xff] %v14460_v27  ;;  %v1975_v28 = vsub.f32 %v1911_v46, %v1343_v55  ;;  %v9737_v38 = vpop.f32.mrb[84].mxu1  ;;  %v9865_v30 = vpop.f32.mrb[84].mxu0  ;;  %v14462_v60 = vpack.c.bf16 %v1848_v37, %v1847_v22  ;;  %v311_v55 = vld [vmem:[#allocation9 + $0x28] sm:$0xff] }
 0x2cb   :  { %v14464_v45 = vpack.c.bf16 %v5368_v48, %v5367_v3  ;;  %v1850_v52 = vsub.f32 %v17428_v2, %v9737_v38  ;;  %v1914_v0 = vsub.f32 %v9865_v30, %v17428_v2  ;;  %v1353_v44 = vpop.f32.mrb[85].mxu1  ;;  %v1738_v57 = vpop.f32.mrb[85].mxu0  ;;  %v5370_v59 = vadd.f32 %v1976_v15, %v1848_v37  ;;  %v17433_v37 = vld [vmem:[#allocation56_spill] sm:$0xff] }
 0x2cc   :  { %17426 = vst [vmem:[#allocation53_spill] sm:$0xff] %v14462_v60  ;;  %v1849_v47 = vsub.f32 %v17429_v9, %v1353_v44  ;;  %v1913_v40 = vsub.f32 %v1738_v57, %v17429_v9  ;;  %10029 = vmatmul.mubr.f32.gmra.mrb[130].mxu1 %v309_v35  ;;  %v14470_v56 = vpack.c.bf16 %v1976_v15, %v1975_v28  ;;  %v17434_v9 = vld [vmem:[#allocation57_spill] sm:$0xff] }
 0x2cd   :  { %17427 = vst [vmem:[#allocation107_spill] sm:$0xff] %v14464_v45  ;;  %v5369_v29 = vadd.f32 %v1975_v28, %v1847_v22  ;;  %v1978_v62 = vsub.f32 %v1914_v0, %v9737_v38  ;;  %10031 = vmatprep.mubr.f32.mxu1 %v310_v39  ;;  %v312_v45 = vld [vmem:[#allocation9 + $0x30] sm:$0xff] }
 0x2ce   :  { %17430 = vst [vmem:[#allocation54_spill] sm:$0xff] %v14470_v56  ;;  %v1977_v48 = vsub.f32 %v1913_v40, %v1353_v44  ;;  %v9740_v46 = vpop.f32.mrb[86].mxu1  ;;  %v9868_v3 = vpop.f32.mrb[86].mxu0  ;;  %v14472_v27 = vpack.c.bf16 %v1850_v52, %v1849_v47  ;;  %v313_v44 = vld [vmem:[#allocation9 + $0x38] sm:$0xff] }
 0x2cf   :  { %v14474_v30 = vpack.c.bf16 %v5370_v59, %v5369_v29  ;;  %v1852_v2 = vsub.f32 %v17433_v37, %v9740_v46  ;;  %v1916_v60 = vsub.f32 %v9868_v3, %v17433_v37  ;;  %v1363_v57 = vpop.f32.mrb[87].mxu1  ;;  %v1748_v35 = vpop.f32.mrb[87].mxu0  ;;  %v5372_v15 = vadd.f32 %v1978_v62, %v1850_v52  ;;  %v17438_v52 = vld [vmem:[#allocation58_spill] sm:$0xff] }
 0x2d0   :  { %17431 = vst [vmem:[#allocation55_spill] sm:$0xff] %v14472_v27  ;;  %v1851_v22 = vsub.f32 %v17434_v9, %v1363_v57  ;;  %v1915_v0 = vsub.f32 %v1748_v35, %v17434_v9  ;;  %10032 = vmatmul.mubr.f32.gmra.mrb[132].mxu1 %v311_v55  ;;  %v14480_v39 = vpack.c.bf16 %v1978_v62, %v1977_v48  ;;  %v17439_v9 = vld [vmem:[#allocation59_spill] sm:$0xff] }
 0x2d1   :  { %17432 = vst [vmem:[#allocation108_spill] sm:$0xff] %v14474_v30  ;;  %v5371_v28 = vadd.f32 %v1977_v48, %v1849_v47  ;;  %v1980_v38 = vsub.f32 %v1916_v60, %v9740_v46  ;;  %10034 = vmatprep.mubr.f32.mxu1 %v312_v45  ;;  %v314_v30 = vld [vmem:[#allocation9 + $0x40] sm:$0xff] }
 0x2d2   :  { %17435 = vst [vmem:[#allocation56_spill] sm:$0xff] %v14480_v39  ;;  %v1979_v59 = vsub.f32 %v1915_v0, %v1363_v57  ;;  %v9743_v40 = vpop.f32.mrb[88].mxu1  ;;  %v9871_v29 = vpop.f32.mrb[88].mxu0  ;;  %v14482_v56 = vpack.c.bf16 %v1852_v2, %v1851_v22  ;;  %v315_v57 = vld [vmem:[#allocation9 + $0x48] sm:$0xff] }
 0x2d3   :  { %v14484_v3 = vpack.c.bf16 %v5372_v15, %v5371_v28  ;;  %v1854_v37 = vsub.f32 %v17438_v52, %v9743_v40  ;;  %v1918_v27 = vsub.f32 %v9871_v29, %v17438_v52  ;;  %v1373_v35 = vpop.f32.mrb[89].mxu1  ;;  %v1758_v55 = vpop.f32.mrb[89].mxu0  ;;  %v5374_v62 = vadd.f32 %v1980_v38, %v1852_v2  ;;  %v17443_v2 = vld [vmem:[#allocation60_spill] sm:$0xff] }
 0x2d4   :  { %17436 = vst [vmem:[#allocation57_spill] sm:$0xff] %v14482_v56  ;;  %v1853_v47 = vsub.f32 %v17439_v9, %v1373_v35  ;;  %v1917_v60 = vsub.f32 %v1758_v55, %v17439_v9  ;;  %10035 = vmatmul.mubr.f32.gmra.mrb[134].mxu1 %v313_v44  ;;  %v14490_v45 = vpack.c.bf16 %v1980_v38, %v1979_v59  ;;  %v17444_v9 = vld [vmem:[#allocation61_spill] sm:$0xff] }
 0x2d5   :  { %17437 = vst [vmem:[#allocation109_spill] sm:$0xff] %v14484_v3  ;;  %v5373_v48 = vadd.f32 %v1979_v59, %v1851_v22  ;;  %v1982_v46 = vsub.f32 %v1918_v27, %v9743_v40  ;;  %10037 = vmatprep.mubr.f32.mxu1 %v314_v30  ;;  %v316_v3 = vld [vmem:[#allocation9 + $0x50] sm:$0xff] }
 0x2d6   :  { %17440 = vst [vmem:[#allocation58_spill] sm:$0xff] %v14490_v45  ;;  %v1981_v15 = vsub.f32 %v1917_v60, %v1373_v35  ;;  %v9746_v0 = vpop.f32.mrb[90].mxu1  ;;  %v9874_v28 = vpop.f32.mrb[90].mxu0  ;;  %v14492_v39 = vpack.c.bf16 %v1854_v37, %v1853_v47  ;;  %v317_v35 = vld [vmem:[#allocation9 + $0x58] sm:$0xff] }
 0x2d7   :  { %v14494_v29 = vpack.c.bf16 %v5374_v62, %v5373_v48  ;;  %v1856_v52 = vsub.f32 %v17443_v2, %v9746_v0  ;;  %v1920_v56 = vsub.f32 %v9874_v28, %v17443_v2  ;;  %v1383_v55 = vpop.f32.mrb[91].mxu1  ;;  %v1768_v44 = vpop.f32.mrb[91].mxu0  ;;  %v5376_v38 = vadd.f32 %v1982_v46, %v1854_v37  ;;  %v17448_v37 = vld [vmem:[#allocation62_spill] sm:$0xff] }
 0x2d8   :  { %17441 = vst [vmem:[#allocation59_spill] sm:$0xff] %v14492_v39  ;;  %v1855_v22 = vsub.f32 %v17444_v9, %v1383_v55  ;;  %v1919_v27 = vsub.f32 %v1768_v44, %v17444_v9  ;;  %10038 = vmatmul.mubr.f32.gmra.mrb[136].mxu1 %v315_v57  ;;  %v14500_v30 = vpack.c.bf16 %v1982_v46, %v1981_v15  ;;  %v17449_v9 = vld [vmem:[#allocation63_spill] sm:$0xff] }
 0x2d9   :  { %17442 = vst [vmem:[#allocation110_spill] sm:$0xff] %v14494_v29  ;;  %v5375_v59 = vadd.f32 %v1981_v15, %v1853_v47  ;;  %v1984_v40 = vsub.f32 %v1920_v56, %v9746_v0  ;;  %10040 = vmatprep.mubr.f32.mxu1 %v316_v3  ;;  %v318_v29 = vld [vmem:[#allocation9 + $0x60] sm:$0xff] }
 0x2da   :  { %17445 = vst [vmem:[#allocation60_spill] sm:$0xff] %v14500_v30  ;;  %v1983_v62 = vsub.f32 %v1919_v27, %v1383_v55  ;;  %v9749_v60 = vpop.f32.mrb[92].mxu1  ;;  %v9877_v48 = vpop.f32.mrb[92].mxu0  ;;  %v14502_v45 = vpack.c.bf16 %v1856_v52, %v1855_v22  ;;  %v319_v55 = vld [vmem:[#allocation9 + $0x68] sm:$0xff] }
 0x2db   :  { %v14504_v28 = vpack.c.bf16 %v5376_v38, %v5375_v59  ;;  %v1858_v2 = vsub.f32 %v17448_v37, %v9749_v60  ;;  %v1922_v39 = vsub.f32 %v9877_v48, %v17448_v37  ;;  %v1393_v44 = vpop.f32.mrb[93].mxu1  ;;  %v1778_v57 = vpop.f32.mrb[93].mxu0  ;;  %v5378_v46 = vadd.f32 %v1984_v40, %v1856_v52  ;;  %v17453_v52 = vld [vmem:[#allocation64_spill] sm:$0xff] }
 0x2dc   :  { %17446 = vst [vmem:[#allocation61_spill] sm:$0xff] %v14502_v45  ;;  %v1857_v47 = vsub.f32 %v17449_v9, %v1393_v44  ;;  %v1921_v56 = vsub.f32 %v1778_v57, %v17449_v9  ;;  %10041 = vmatmul.mubr.f32.gmra.mrb[138].mxu1 %v317_v35  ;;  %v14510_v3 = vpack.c.bf16 %v1984_v40, %v1983_v62  ;;  %v17454_v9 = vld [vmem:[#allocation65_spill] sm:$0xff] }
 0x2dd   :  { %17447 = vst [vmem:[#allocation111_spill] sm:$0xff] %v14504_v28  ;;  %v5377_v15 = vadd.f32 %v1983_v62, %v1855_v22  ;;  %v1986_v0 = vsub.f32 %v1922_v39, %v9749_v60  ;;  %10043 = vmatprep.mubr.f32.mxu1 %v318_v29  ;;  %v320_v28 = vld [vmem:[#allocation9 + $0x70] sm:$0xff] }
 0x2de   :  { %17450 = vst [vmem:[#allocation62_spill] sm:$0xff] %v14510_v3  ;;  %v1985_v38 = vsub.f32 %v1921_v56, %v1393_v44  ;;  %v9752_v27 = vpop.f32.mrb[94].mxu1  ;;  %v9880_v59 = vpop.f32.mrb[94].mxu0  ;;  %v14512_v30 = vpack.c.bf16 %v1858_v2, %v1857_v47  ;;  %v14522_v44 = vld [vmem:[#allocation9 + $0x78] sm:$0xff] }
 0x2df   :  { %v14514_v48 = vpack.c.bf16 %v5378_v46, %v5377_v15  ;;  %v1860_v37 = vsub.f32 %v17453_v52, %v9752_v27  ;;  %v1924_v45 = vsub.f32 %v9880_v59, %v17453_v52  ;;  %v1403_v57 = vpop.f32.mrb[95].mxu1  ;;  %v1788_v35 = vpop.f32.mrb[95].mxu0  ;;  %v5380_v40 = vadd.f32 %v1986_v0, %v1858_v2  ;;  %17456 = vst [vmem:[#allocation65_spill] sm:$0xff] %v14522_v44 }
 0x2e0   :  { %17451 = vst [vmem:[#allocation63_spill] sm:$0xff] %v14512_v30  ;;  %v1859_v22 = vsub.f32 %v17454_v9, %v1403_v57  ;;  %v1923_v39 = vsub.f32 %v1788_v35, %v17454_v9  ;;  %10044 = vmatmul.mubr.f32.gmra.mrb[140].mxu1 %v319_v55  ;;  %v14520_v29 = vpack.c.bf16 %v1986_v0, %v1985_v38  ;;  %v14533_v0 = vld [vmem:[#allocation16] sm:$0xff] }
 0x2e1   :  { %17452 = vst [vmem:[#allocation112_spill] sm:$0xff] %v14514_v48  ;;  %v5379_v62 = vadd.f32 %v1985_v38, %v1857_v47  ;;  %v1988_v60 = vsub.f32 %v1924_v45, %v9752_v27  ;;  %10046 = vmatprep.mubr.f32.mxu1 %v320_v28  ;;  %17461 = vst [vmem:[#allocation117_spill] sm:$0xff] %v14533_v0  ;;  %v14535_v47 = vld [vmem:[#allocation15] sm:$0xff]  ;;  %10137 = vmatprep.mubr.f32.mxu0 %v14533_v0 }
 0x2e2   :  { %17455 = vst [vmem:[#allocation64_spill] sm:$0xff] %v14520_v29  ;;  %v1987_v46 = vsub.f32 %v1923_v39, %v1403_v57  ;;  %v14524_v56 = vpack.c.bf16 %v1860_v37, %v1859_v22  ;;  %17462 = vst [vmem:[#allocation118_spill] sm:$0xff] %v14535_v47 }
 0x2e3   :  { %v14526_v15 = vpack.c.bf16 %v5380_v40, %v5379_v62  ;;  %v5382_v59 = vadd.f32 %v1988_v60, %v1860_v37 }
 0x2e4   :  { %17457 = vst [vmem:[#allocation113_spill] sm:$0xff] %v14524_v56  ;;  %10047 = vmatmul.mubr.f32.gmra.mrb[142].mxu1 %v14522_v44  ;;  %v14529_v2 = vpack.c.bf16 %v1988_v60, %v1987_v46  ;;  %v5381_v52 = vadd.f32 %v1987_v46, %v1859_v22 }
 0x2e5   :  { %17458 = vst [vmem:[#allocation114_spill] sm:$0xff] %v14526_v15  ;;  %10081 = vmatprep.mubr.f32.mxu1 %v14535_v47 }
 0x2e6   :  { %17459 = vst [vmem:[#allocation115_spill] sm:$0xff] %v14529_v2  ;;  %v14531_v35 = vpack.c.bf16 %v5382_v59, %v5381_v52 }
 0x2e8   :  { %17460 = vst [vmem:[#allocation116_spill] sm:$0xff] %v14531_v35 }
 0x35b   :  { %v14539_v45 = vpop.f32.mrb[96].mxu1 }
 0x35c   :  { %v14541_v28 = vpop.f32.mrb[97].mxu1 }
 0x35f   :  { %v14543_v55 = vpop.f32.mrb[98].mxu1 }
 0x360   :  { %v14545_v38 = vpop.f32.mrb[99].mxu1 }
 0x363   :  { %v14547_v27 = vpop.f32.mrb[100].mxu1 }
 0x364   :  { %v14549_v37 = vpop.f32.mrb[101].mxu1 }
 0x367   :  { %v14551_v57 = vpop.f32.mrb[102].mxu1 }
 0x368   :  { %v14553_v40 = vpop.f32.mrb[103].mxu1 }
 0x36b   :  { %v14555_v9 = vpop.f32.mrb[104].mxu1 }
 0x36c   :  { %17463 = vst [vmem:[#allocation119_spill] sm:$0xff] %v14555_v9  ;;  %v14557_v22 = vpop.f32.mrb[105].mxu1 }
 0x36d   :  { %17464 = vst [vmem:[#allocation120_spill] sm:$0xff] %v14557_v22 }
 0x36f   :  { %v14559_v39 = vpop.f32.mrb[106].mxu1 }
 0x370   :  { %17465 = vst [vmem:[#allocation121_spill] sm:$0xff] %v14559_v39  ;;  %v14561_v62 = vpop.f32.mrb[107].mxu1 }
 0x371   :  { %17466 = vst [vmem:[#allocation122_spill] sm:$0xff] %v14561_v62 }
 0x373   :  { %v14563_v60 = vpop.f32.mrb[108].mxu1 }
 0x374   :  { %17467 = vst [vmem:[#allocation123_spill] sm:$0xff] %v14563_v60  ;;  %v14565_v46 = vpop.f32.mrb[109].mxu1 }
 0x375   :  { %17468 = vst [vmem:[#allocation124_spill] sm:$0xff] %v14565_v46 }
 0x377   :  { %v14567_v59 = vpop.f32.mrb[110].mxu1 }
 0x378   :  { %17469 = vst [vmem:[#allocation125_spill] sm:$0xff] %v14567_v59  ;;  %v14569_v52 = vpop.f32.mrb[111].mxu1 }
 0x379   :  { %17470 = vst [vmem:[#allocation126_spill] sm:$0xff] %v14569_v52 }
 0x37b   :  { %v14571_v35 = vpop.f32.mrb[112].mxu1 }
 0x37c   :  { %v2441_v2 = vsub.f32 %v14539_v45, %v14571_v35  ;;  %v14575_v15 = vpop.f32.mrb[113].mxu1 }
 0x37d   :  { %v2440_v29 = vsub.f32 %v14541_v28, %v14575_v15 }
 0x37e   :  { %v14656_v26 = vmul.f32 %v2441_v2, %v14625_v16  ;;  %v14659_v13 = vmul.f32 %v2441_v2, %v14629_v20  ;;  %v14680_v2 = vld [vmem:[#allocation24 + $0x30] sm:$0xff] }
 0x37f   :  { %v14579_v48 = vpop.f32.mrb[114].mxu1  ;;  %v14670_v61 = vmul.f32 %v2440_v29, %v14631_v54  ;;  %v14673_v25 = vmul.f32 %v2440_v29, %v14633_v11  ;;  %17479 = vst [vmem:[#allocation135_spill] sm:$0xff] %v14680_v2 }
 0x380   :  { %v2443_v3 = vsub.f32 %v14543_v55, %v14579_v48  ;;  %v14583_v56 = vpop.f32.mrb[115].mxu1 }
 0x381   :  { %v2442_v30 = vsub.f32 %v14545_v38, %v14583_v56 }
 0x382   :  { %v14676_v51 = vmul.f32 %v2443_v3, %v14641_v8 }
 0x383   :  { %v14587_v7 = vpop.f32.mrb[116].mxu1  ;;  %v14692_v29 = vmul.f32 %v2442_v30, %v14645_v5 }
 0x384   :  { %v2445_v12 = vsub.f32 %v14547_v27, %v14587_v7  ;;  %v14591_v49 = vpop.f32.mrb[117].mxu1 }
 0x385   :  { %v2444_v33 = vsub.f32 %v14549_v37, %v14591_v49 }
 0x387   :  { %v14595_v14 = vpop.f32.mrb[118].mxu1 }
 0x388   :  { %v2447_v43 = vsub.f32 %v14551_v57, %v14595_v14  ;;  %v14599_v50 = vpop.f32.mrb[119].mxu1 }
 0x389   :  { %17471 = vst [vmem:[#allocation127_spill] sm:$0xff] %v14599_v50  ;;  %v2446_v36 = vsub.f32 %v14553_v40, %v14599_v50  ;;  %v14739_v50 = vld [vmem:[#allocation24 + $0x68] sm:$0xff] }
 0x38a   :  { %17490 = vst [vmem:[#allocation146_spill] sm:$0xff] %v14739_v50 }
 0x38b   :  { %v14603_v34 = vpop.f32.mrb[120].mxu1 }
 0x38c   :  { %17472 = vst [vmem:[#allocation128_spill] sm:$0xff] %v14603_v34  ;;  %v2449_v42 = vsub.f32 %v14555_v9, %v14603_v34  ;;  %v14607_v24 = vpop.f32.mrb[121].mxu1  ;;  %v14717_v34 = vld [vmem:[#allocation25 + $0x40] sm:$0xff]  ;;  %v14721_v9 = vld [vmem:[#allocation25 + $0x58] sm:$0xff] }
 0x38d   :  { %17473 = vst [vmem:[#allocation129_spill] sm:$0xff] %v14607_v24  ;;  %v14611_v31 = vsub.f32 %v14557_v22, %v14607_v24  ;;  %v14712_v24 = vmul.f32 %v2444_v33, %v14661_v21  ;;  %v14719_v22 = vld [vmem:[#allocation24 + $0x58] sm:$0xff] }
 0x38f   :  { %v14613_v1 = vpop.f32.mrb[122].mxu1  ;;  %17484 = vst [vmem:[#allocation140_spill] sm:$0xff] %v14712_v24 }
 0x390   :  { %17474 = vst [vmem:[#allocation130_spill] sm:$0xff] %v14613_v1  ;;  %v14617_v47 = vsub.f32 %v14559_v39, %v14613_v1  ;;  %v14619_v0 = vpop.f32.mrb[123].mxu1  ;;  %v14697_v1 = vld [vmem:[#allocation24 + $0x48] sm:$0xff]  ;;  %v14701_v39 = vld [vmem:[#allocation24 + $0x40] sm:$0xff] }
 0x391   :  { %17475 = vst [vmem:[#allocation131_spill] sm:$0xff] %v14619_v0  ;;  %v14623_v44 = vsub.f32 %v14561_v62, %v14619_v0  ;;  %v14695_v0 = vmul.f32 %v2442_v30, %v14649_v23  ;;  %17481 = vst [vmem:[#allocation137_spill] sm:$0xff] %v14697_v1  ;;  %v14699_v62 = vld [vmem:[#allocation25 + $0x48] sm:$0xff]  ;;  %v14715_v30 = vmul.f32 %v2444_v33, %v14663_v4  ;;  %v14735_v33 = vld [vmem:[#allocation24 + $0x50] sm:$0xff] }
 0x393   :  { %v14627_v17 = vpop.f32.mrb[124].mxu1  ;;  %17485 = vst [vmem:[#allocation141_spill] sm:$0xff] %v14715_v30  ;;  %v14737_v30 = vld [vmem:[#allocation25 + $0x50] sm:$0xff] }
 0x394   :  { %17476 = vst [vmem:[#allocation132_spill] sm:$0xff] %v14627_v17  ;;  %v14637_v32 = vsub.f32 %v14563_v60, %v14627_v17  ;;  %v14639_v63 = vpop.f32.mrb[125].mxu1  ;;  %v14689_v60 = vmul.f32 %v2443_v3, %v14643_v19  ;;  %v14709_v3 = vmul.f32 %v2445_v12, %v14653_v18 }
 0x395   :  { %17477 = vst [vmem:[#allocation133_spill] sm:$0xff] %v14639_v63  ;;  %v2452_v53 = vsub.f32 %v14565_v46, %v14639_v63  ;;  %v14682_v63 = vld [vmem:[#allocation25 + $0x30] sm:$0xff] }
 0x396   :  { %17483 = vst [vmem:[#allocation139_spill] sm:$0xff] %v14709_v3  ;;  %v14733_v24 = vmul.f32 %v2446_v36, %v14682_v63 }
 0x397   :  { %v14667_v58 = vpop.f32.mrb[126].mxu1 }
 0x398   :  { %17478 = vst [vmem:[#allocation134_spill] sm:$0xff] %v14667_v58  ;;  %v2455_v17 = vsub.f32 %v14567_v59, %v14667_v58  ;;  %v14686_v46 = vpop.f32.mrb[127].mxu1  ;;  %v14706_v59 = vmul.f32 %v2445_v12, %v14651_v6  ;;  %v14730_v12 = vmul.f32 %v2446_v36, %v14680_v2  ;;  %17489 = vst [vmem:[#allocation145_spill] sm:$0xff] %v14733_v24  ;;  %v14753_v36 = vld [vmem:[#allocation24 + $0x60] sm:$0xff] }
 0x399   :  { %17480 = vst [vmem:[#allocation136_spill] sm:$0xff] %v14686_v46  ;;  %v2454_v58 = vsub.f32 %v14569_v52, %v14686_v46  ;;  %v14724_v46 = vmul.f32 %v2447_v43, %v14665_v10  ;;  %v14727_v52 = vmul.f32 %v2447_v43, %v14678_v41  ;;  %v14749_v43 = vmul.f32 %v14611_v31, %v14701_v39  ;;  %v14755_v24 = vld [vmem:[#allocation25 + $0x60] sm:$0xff] }
 0x39a   :  { %17482 = vst [vmem:[#allocation138_spill] sm:$0xff] %v14706_v59  ;;  %17488 = vst [vmem:[#allocation144_spill] sm:$0xff] %v14730_v12  ;;  %v14742_v59 = vmul.f32 %v2449_v42, %v14697_v1  ;;  %v14751_v12 = vld [vmem:[#allocation25 + $0x68] sm:$0xff]  ;;  %v14760_v1 = vmul.f32 %v14611_v31, %v14717_v34  ;;  %v14779_v31 = vmul.f32 %v14623_v44, %v14737_v30 }
 0x39b   :  { %17486 = vst [vmem:[#allocation142_spill] sm:$0xff] %v14724_v46  ;;  %17487 = vst [vmem:[#allocation143_spill] sm:$0xff] %v14727_v52  ;;  %v10027_v3 = vpop.f32.mrb[128].mxu1  ;;  %v14745_v46 = vmul.f32 %v2449_v42, %v14699_v62  ;;  %v14764_v42 = vmul.f32 %v14617_v47, %v14719_v22 }
 0x39c   :  { %17491 = vst [vmem:[#allocation147_spill] sm:$0xff] %v14742_v59  ;;  %17493 = vst [vmem:[#allocation149_spill] sm:$0xff] %v14749_v43  ;;  %v2457_v52 = vsub.f32 %v10027_v3, %v14539_v45  ;;  %v2361_v2 = vpop.f32.mrb[129].mxu1  ;;  %v14768_v43 = vmul.f32 %v14617_v47, %v14721_v9  ;;  %v14775_v45 = vmul.f32 %v14623_v44, %v14735_v33  ;;  %v14798_v44 = vld [vmem:[#allocation24 + $0x70] sm:$0xff] }
 0x39d   :  { %17492 = vst [vmem:[#allocation148_spill] sm:$0xff] %v14745_v46  ;;  %17494 = vst [vmem:[#allocation150_spill] sm:$0xff] %v14764_v42  ;;  %v14770_v46 = vld [vmem:[#allocation24 + $0x78] sm:$0xff]  ;;  %v2456_v59 = vsub.f32 %v2361_v2, %v14541_v28  ;;  %v14783_v3 = vmul.f32 %v14637_v32, %v14739_v50  ;;  %v14793_v28 = vmul.f32 %v2452_v53, %v14753_v36 }
 0x39e   :  { %17495 = vst [vmem:[#allocation151_spill] sm:$0xff] %v14768_v43  ;;  %17496 = vst [vmem:[#allocation152_spill] sm:$0xff] %v14770_v46  ;;  %v14785_v42 = vld [vmem:[#allocation25 + $0x78] sm:$0xff]  ;;  %v2473_v47 = vsub.f32 %v2457_v52, %v14571_v35  ;;  %v14790_v43 = vmul.f32 %v14637_v32, %v14751_v12  ;;  %v14796_v2 = vmul.f32 %v2452_v53, %v14755_v24 }
 0x39f   :  { %17497 = vst [vmem:[#allocation153_spill] sm:$0xff] %v14775_v45  ;;  %17498 = vst [vmem:[#allocation154_spill] sm:$0xff] %v14779_v31  ;;  %v2472_v31 = vsub.f32 %v2456_v59, %v14575_v15  ;;  %v10030_v50 = vpop.f32.mrb[130].mxu1  ;;  %v14804_v45 = vld [vmem:[#allocation25 + $0x70] sm:$0xff]  ;;  %v14810_v53 = vmul.f32 %v2455_v17, %v14785_v42 }
 0x3a0   :  { %17499 = vst [vmem:[#allocation155_spill] sm:$0xff] %v14783_v3  ;;  %17500 = vst [vmem:[#allocation156_spill] sm:$0xff] %v14793_v28  ;;  %v14802_v3 = vmul.f32 %v2455_v17, %v14770_v46  ;;  %v2505_v35 = vmul.f32 %v2473_v47, %v14629_v20  ;;  %v2537_v32 = vmul.f32 %v2473_v47, %v14625_v16  ;;  %v2371_v28 = vpop.f32.mrb[131].mxu1 }
 0x3a1   :  { %17501 = vst [vmem:[#allocation157_spill] sm:$0xff] %v14796_v2  ;;  %v2459_v52 = vsub.f32 %v10030_v50, %v14543_v55  ;;  %v2504_v2 = vmul.f32 %v2472_v31, %v14633_v11  ;;  %v2536_v15 = vmul.f32 %v2472_v31, %v14631_v54  ;;  %v2458_v59 = vsub.f32 %v2371_v28, %v14545_v38 }
 0x3a2   :  { %17502 = vst [vmem:[#allocation158_spill] sm:$0xff] %v14802_v3  ;;  %v14816_v3 = vmul.f32 %v2454_v58, %v14798_v44  ;;  %v2521_v20 = vsub.f32 %v14656_v26, %v2505_v35  ;;  %v2569_v16 = vadd.f32 %v14659_v13, %v2537_v32  ;;  %v14822_v50 = vmul.f32 %v2454_v58, %v14804_v45 }
 0x3a3   :  { %v2475_v46 = vsub.f32 %v2459_v52, %v14579_v48  ;;  %v2474_v17 = vsub.f32 %v2458_v59, %v14583_v56  ;;  %v10033_v55 = vpop.f32.mrb[132].mxu1  ;;  %v2520_v11 = vsub.f32 %v14670_v61, %v2504_v2  ;;  %v2568_v54 = vadd.f32 %v14673_v25, %v2536_v15  ;;  %v17503_v52 = vld [vmem:[#allocation138_spill] sm:$0xff]  ;;  %v17505_v59 = vld [vmem:[#allocation127_spill] sm:$0xff] }
 0x3a4   :  { %v2461_v48 = vsub.f32 %v10033_v55, %v14547_v27  ;;  %v2381_v47 = vpop.f32.mrb[133].mxu1  ;;  %v2585_v26 = vadd.f32 %v2569_v16, %v2521_v20 }
 0x3a5   :  { %v2507_v38 = vmul.f32 %v2475_v46, %v14643_v19  ;;  %v2539_v31 = vmul.f32 %v2475_v46, %v14641_v8  ;;  %v2506_v13 = vmul.f32 %v2474_v17, %v14649_v23  ;;  %v2538_v58 = vmul.f32 %v2474_v17, %v14645_v5 }
 0x3a6   :  { %v2460_v28 = vsub.f32 %v2381_v47, %v14549_v37  ;;  %v11801_v56 = vpack.c.bf16 %v2521_v20, %v2520_v11  ;;  %v2477_v35 = vsub.f32 %v2461_v48, %v14587_v7  ;;  %v11833_v61 = vpack.c.bf16 %v2569_v16, %v2568_v54  ;;  %v17509_v47 = vld [vmem:[#allocation135_spill] sm:$0xff] }
 0x3a7   :  { %v14835_v25 = vsub.f32 %v14676_v51, %v2507_v38  ;;  %v14838_v19 = vadd.f32 %v14689_v60, %v2539_v31  ;;  %v10036_v27 = vpop.f32.mrb[134].mxu1  ;;  %v2522_v23 = vsub.f32 %v14692_v29, %v2506_v13  ;;  %v2570_v5 = vadd.f32 %v14695_v0, %v2538_v58  ;;  %v17510_v58 = vld [vmem:[#allocation120_spill] sm:$0xff] }
 0x3a8   :  { %v2476_v8 = vsub.f32 %v2460_v28, %v14591_v49  ;;  %11802 = vmatprep.subr.bf16.mxu1 %v11801_v56  ;;  %v2584_v46 = vadd.f32 %v2568_v54, %v2520_v11  ;;  %v2509_v37 = vmul.f32 %v2477_v35, %v14653_v18  ;;  %v2541_v7 = vmul.f32 %v2477_v35, %v14651_v6  ;;  %v2391_v51 = vpop.f32.mrb[135].mxu1  ;;  %v17508_v54 = vld [vmem:[#allocation119_spill] sm:$0xff] }
 0x3a9   :  { %v2463_v2 = vsub.f32 %v10036_v27, %v14551_v57  ;;  %11834 = vmatprep.subr.bf16.mxu0 %v11833_v61  ;;  %11804 = vmatpush3.bf16.msra.mxu1 %v11801_v56  ;;  %v2462_v32 = vsub.f32 %v2391_v51, %v14553_v40  ;;  %v11805_v29 = vpack.c.bf16 %v14835_v25, %v2522_v23  ;;  %v17504_v57 = vld [vmem:[#allocation139_spill] sm:$0xff]  ;;  %v17507_v40 = vld [vmem:[#allocation141_spill] sm:$0xff]  ;;  %v17511_v56 = vld [vmem:[#allocation128_spill] sm:$0xff] }
 0x3aa   :  { %v2508_v60 = vmul.f32 %v2476_v8, %v14663_v4  ;;  %v2540_v49 = vmul.f32 %v2476_v8, %v14661_v21  ;;  %11836 = vmatpush3.bf16.msra.mxu0 %v11833_v61  ;;  %v11837_v18 = vpack.c.bf16 %v14838_v19, %v2570_v5  ;;  %v14853_v6 = vsub.f32 %v17503_v52, %v2509_v37  ;;  %v17506_v21 = vld [vmem:[#allocation140_spill] sm:$0xff]  ;;  %v17513_v8 = vld [vmem:[#allocation143_spill] sm:$0xff]  ;;  %v17516_v51 = vld [vmem:[#allocation145_spill] sm:$0xff] }
 0x3ab   :  { %v2479_v0 = vsub.f32 %v2463_v2, %v14595_v14  ;;  %v14856_v15 = vadd.f32 %v17504_v57, %v2541_v7  ;;  %v2478_v20 = vsub.f32 %v2462_v32, %v17505_v59  ;;  %v10039_v4 = vpop.f32.mrb[136].mxu1  ;;  %11806 = vmatprep.subr.bf16.mxu1 %v11805_v29  ;;  %v14865_v55 = vpack.c.bf16 %v2585_v26, %v2584_v46  ;;  %v17515_v7 = vld [vmem:[#allocation144_spill] sm:$0xff] }
 0x3ac   :  { %v14860_v16 = vsub.f32 %v17506_v21, %v2508_v60  ;;  %v14863_v17 = vadd.f32 %v17507_v40, %v2540_v49  ;;  %v2465_v38 = vsub.f32 %v10039_v4, %v17508_v54  ;;  %11838 = vmatprep.subr.bf16.mxu0 %v11837_v18  ;;  %v2401_v31 = vpop.f32.mrb[137].mxu1  ;;  %v2586_v49 = vadd.f32 %v2570_v5, %v2522_v23  ;;  %v17519_v4 = vld [vmem:[#allocation122_spill] sm:$0xff]  ;;  %v17522_v54 = vld [vmem:[#allocation148_spill] sm:$0xff] }
 0x3ad   :  { %v2511_v14 = vmul.f32 %v2479_v0, %v14678_v41  ;;  %v2543_v11 = vmul.f32 %v2479_v0, %v14665_v10  ;;  %11808 = vmatpush3.bf16.msra.mxu1 %v11805_v29  ;;  %v2510_v48 = vmul.f32 %v2478_v20, %v14682_v63  ;;  %v2542_v13 = vmul.f32 %v2478_v20, %v17509_v47  ;;  %v17512_v10 = vld [vmem:[#allocation142_spill] sm:$0xff]  ;;  %v17514_v63 = vld [vmem:[#allocation129_spill] sm:$0xff] }
 0x3ae   :  { %v2464_v28 = vsub.f32 %v2401_v31, %v17510_v58  ;;  %11840 = vmatpush3.bf16.msra.mxu0 %v11837_v18  ;;  %v11809_v26 = vpack.c.bf16 %v14853_v6, %v14860_v16  ;;  %v2481_v35 = vsub.f32 %v2465_v38, %v17511_v56  ;;  %v11841_v41 = vpack.c.bf16 %v14856_v15, %v14863_v17  ;;  %v17517_v29 = vld [vmem:[#allocation137_spill] sm:$0xff]  ;;  %v17520_v23 = vld [vmem:[#allocation130_spill] sm:$0xff]  ;;  %v17525_v56 = vld [vmem:[#allocation123_spill] sm:$0xff] }
 0x3af   :  { %v14879_v61 = vsub.f32 %v17512_v10, %v2511_v14  ;;  %v14882_v27 = vadd.f32 %v17513_v8, %v2543_v11  ;;  %v10042_v37 = vpop.f32.mrb[138].mxu1  ;;  %v14886_v2 = vsub.f32 %v17515_v7, %v2510_v48  ;;  %v14889_v60 = vadd.f32 %v17516_v51, %v2542_v13  ;;  %v17518_v18 = vld [vmem:[#allocation121_spill] sm:$0xff]  ;;  %v17521_v14 = vld [vmem:[#allocation147_spill] sm:$0xff] }
 0x3b0   :  { %v2480_v46 = vsub.f32 %v2464_v28, %v17514_v63  ;;  %11810 = vmatprep.subr.bf16.mxu1 %v11809_v26  ;;  %v2513_v32 = vmul.f32 %v2481_v35, %v14699_v62  ;;  %v2545_v0 = vmul.f32 %v2481_v35, %v17517_v29  ;;  %v2467_v52 = vsub.f32 %v10042_v37, %v17518_v18  ;;  %v2411_v57 = vpop.f32.mrb[139].mxu1  ;;  %v17524_v48 = vld [vmem:[#allocation149_spill] sm:$0xff]  ;;  %v17526_v63 = vld [vmem:[#allocation124_spill] sm:$0xff]  ;;  %v17529_v7 = vld [vmem:[#allocation151_spill] sm:$0xff] }
 0x3b1   :  { %11842 = vmatprep.subr.bf16.mxu0 %v11841_v41  ;;  %11812 = vmatpush3.bf16.msra.mxu1 %v11809_v26  ;;  %v2466_v21 = vsub.f32 %v2411_v57, %v17519_v4  ;;  %v11813_v40 = vpack.c.bf16 %v14879_v61, %v14886_v2  ;;  %v11845_v62 = vpack.c.bf16 %v14882_v27, %v14889_v60  ;;  %v17532_v18 = vld [vmem:[#allocation154_spill] sm:$0xff] }
 0x3b2   :  { %v2512_v59 = vmul.f32 %v2480_v46, %v14717_v34  ;;  %v2544_v20 = vmul.f32 %v2480_v46, %v14701_v39  ;;  %11844 = vmatpush3.bf16.msra.mxu0 %v11841_v41  ;;  %v2483_v5 = vsub.f32 %v2467_v52, %v17520_v23  ;;  %v14903_v11 = vsub.f32 %v17521_v14, %v2513_v32  ;;  %v17523_v34 = vld [vmem:[#allocation131_spill] sm:$0xff]  ;;  %v17530_v32 = vld [vmem:[#allocation133_spill] sm:$0xff]  ;;  %v17535_v14 = vld [vmem:[#allocation126_spill] sm:$0xff] }
 0x3b3   :  { %v14906_v38 = vadd.f32 %v17522_v54, %v2545_v0  ;;  %v2482_v31 = vsub.f32 %v2466_v21, %v17523_v34  ;;  %v10045_v39 = vpop.f32.mrb[140].mxu1  ;;  %11814 = vmatprep.subr.bf16.mxu1 %v11813_v40  ;;  %v2587_v58 = vadd.f32 %v14838_v19, %v14835_v25  ;;  %11846 = vmatprep.subr.bf16.mxu0 %v11845_v62  ;;  %v17527_v25 = vld [vmem:[#allocation132_spill] sm:$0xff]  ;;  %v17534_v21 = vld [vmem:[#allocation125_spill] sm:$0xff] }
 0x3b4   :  { %v14910_v47 = vsub.f32 %v17524_v48, %v2512_v59  ;;  %v14913_v13 = vadd.f32 %v14760_v1, %v2544_v20  ;;  %v2515_v28 = vmul.f32 %v2483_v5, %v14721_v9  ;;  %v2547_v26 = vmul.f32 %v2483_v5, %v14719_v22  ;;  %v2421_v41 = vpop.f32.mrb[141].mxu1  ;;  %v17528_v22 = vld [vmem:[#allocation150_spill] sm:$0xff]  ;;  %v17537_v48 = vld [vmem:[#allocation155_spill] sm:$0xff] }
 0x3b5   :  { %v2469_v35 = vsub.f32 %v10045_v39, %v17525_v56  ;;  %11816 = vmatpush3.bf16.msra.mxu1 %v11813_v40  ;;  %v2514_v10 = vmul.f32 %v2482_v31, %v14737_v30  ;;  %v2546_v8 = vmul.f32 %v2482_v31, %v14735_v33  ;;  %v2468_v46 = vsub.f32 %v2421_v41, %v17526_v63  ;;  %v17531_v33 = vld [vmem:[#allocation153_spill] sm:$0xff]  ;;  %v17533_v20 = vld [vmem:[#allocation146_spill] sm:$0xff]  ;;  %v17539_v56 = vld [vmem:[#allocation156_spill] sm:$0xff] }
 0x3b6   :  { %11848 = vmatpush3.bf16.msra.mxu0 %v11845_v62  ;;  %v11817_v1 = vpack.c.bf16 %v14903_v11, %v14910_v47  ;;  %v11849_v9 = vpack.c.bf16 %v14906_v38, %v14913_v13  ;;  %v2531_v37 = vsub.f32 %v17528_v22, %v2515_v28  ;;  %v2579_v51 = vadd.f32 %v17529_v7, %v2547_v26  ;;  %v17536_v31 = vld [vmem:[#allocation134_spill] sm:$0xff]  ;;  %v17538_v28 = vld [vmem:[#allocation136_spill] sm:$0xff]  ;;  %v17540_v41 = vld [vmem:[#allocation157_spill] sm:$0xff] }
 0x3b7   :  { %v2485_v19 = vsub.f32 %v2469_v35, %v17527_v25  ;;  %v2484_v29 = vsub.f32 %v2468_v46, %v17530_v32  ;;  %v10048_v30 = vpop.f32.mrb[142].mxu1  ;;  %v2530_v0 = vsub.f32 %v17531_v33, %v2514_v10  ;;  %v2578_v52 = vadd.f32 %v17532_v18, %v2546_v8  ;;  %v17541_v8 = vld [vmem:[#allocation152_spill] sm:$0xff]  ;;  %v341_v18 = vld [vmem:[#allocation16 + $0x18] sm:$0xff] }
 0x3b8   :  { %11818 = vmatprep.subr.bf16.mxu1 %v11817_v1  ;;  %v14933_v57 = vpack.c.bf16 %v2587_v58, %v2586_v49  ;;  %v2471_v40 = vsub.f32 %v10048_v30, %v17534_v21  ;;  %11850 = vmatprep.subr.bf16.mxu0 %v11849_v9  ;;  %v2431_v23 = vpop.f32.mrb[143].mxu1  ;;  %v2589_v46 = vadd.f32 %v14856_v15, %v14853_v6  ;;  %v327_v21 = vld [vmem:[#allocation15 + $0x28] sm:$0xff] }
 0x3b9   :  { %v2517_v59 = vmul.f32 %v2485_v19, %v14751_v12  ;;  %v2549_v4 = vmul.f32 %v2485_v19, %v17533_v20  ;;  %11820 = vmatpush3.bf16.msra.mxu1 %v11817_v1  ;;  %v2516_v5 = vmul.f32 %v2484_v29, %v14755_v24  ;;  %v2548_v62 = vmul.f32 %v2484_v29, %v14753_v36  ;;  %v342_v20 = vld [vmem:[#allocation16 + $0x20] sm:$0xff] }
 0x3ba   :  { %v2470_v54 = vsub.f32 %v2431_v23, %v17535_v14  ;;  %11852 = vmatpush3.bf16.msra.mxu0 %v11849_v9  ;;  %v11821_v34 = vpack.c.bf16 %v2531_v37, %v2530_v0  ;;  %v2487_v49 = vsub.f32 %v2471_v40, %v17536_v31  ;;  %v11853_v39 = vpack.c.bf16 %v2579_v51, %v2578_v52  ;;  %v17542_v9 = vld [vmem:[#allocation158_spill] sm:$0xff]  ;;  %v17545_v40 = vld [vmem:[#allocation71_spill] sm:$0xff]  ;;  %v347_v31 = vld [vmem:[#allocation16 + $0x48] sm:$0xff] }
 0x3bb   :  { %v2533_v12 = vsub.f32 %v17537_v48, %v2517_v59  ;;  %v2581_v58 = vadd.f32 %v14790_v43, %v2549_v4  ;;  %v2532_v35 = vsub.f32 %v17539_v56, %v2516_v5  ;;  %v2580_v24 = vadd.f32 %v17540_v41, %v2548_v62  ;;  %v17544_v59 = vld [vmem:[#allocation68_spill] sm:$0xff]  ;;  %v344_v23 = vld [vmem:[#allocation16 + $0x30] sm:$0xff]  ;;  %v345_v62 = vld [vmem:[#allocation16 + $0x38] sm:$0xff] }
 0x3bc   :  { %v2486_v26 = vsub.f32 %v2470_v54, %v17538_v28  ;;  %11822 = vmatprep.subr.bf16.mxu1 %v11821_v34  ;;  %v2588_v36 = vadd.f32 %v14863_v17, %v14860_v16  ;;  %v2519_v10 = vmul.f32 %v2487_v49, %v14785_v42  ;;  %v2551_v63 = vmul.f32 %v2487_v49, %v17541_v8  ;;  %v326_v4 = vld [vmem:[#allocation15 + $0x20] sm:$0xff]  ;;  %v328_v5 = vld [vmem:[#allocation15 + $0x30] sm:$0xff]  ;;  %v329_v14 = vld [vmem:[#allocation15 + $0x38] sm:$0xff] }
 0x3bd   :  { %11854 = vmatprep.subr.bf16.mxu0 %v11853_v39  ;;  %11824 = vmatpush3.bf16.msra.mxu1 %v11821_v34  ;;  %v11825_v25 = vpack.c.bf16 %v2533_v12, %v2532_v35  ;;  %v11857_v19 = vpack.c.bf16 %v2581_v58, %v2580_v24  ;;  %v2590_v42 = vadd.f32 %v14889_v60, %v14886_v2  ;;  %v346_v54 = vld [vmem:[#allocation16 + $0x40] sm:$0xff]  ;;  %v331_v49 = vld [vmem:[#allocation15 + $0x48] sm:$0xff]  ;;  %v348_v48 = vld [vmem:[#allocation16 + $0x50] sm:$0xff] }
 0x3be   :  { %v2518_v43 = vmul.f32 %v2486_v26, %v14804_v45  ;;  %v2550_v1 = vmul.f32 %v2486_v26, %v14798_v44  ;;  %11856 = vmatpush3.bf16.msra.mxu0 %v11853_v39  ;;  %v2535_v22 = vsub.f32 %v17542_v9, %v2519_v10  ;;  %v2583_v16 = vadd.f32 %v14810_v53, %v2551_v63  ;;  %v330_v34 = vld [vmem:[#allocation15 + $0x40] sm:$0xff]  ;;  %v17547_v39 = vld [vmem:[#allocation77_spill] sm:$0xff]  ;;  %v333_v28 = vld [vmem:[#allocation15 + $0x58] sm:$0xff] }
 0x3bf   :  { %v11873_v17 = vpack.c.bf16 %v2589_v46, %v2588_v36  ;;  %11826 = vmatprep.subr.bf16.mxu1 %v11825_v25  ;;  %11858 = vmatprep.subr.bf16.mxu0 %v11857_v19  ;;  %v2591_v45 = vadd.f32 %v14882_v27, %v14879_v61  ;;  %v2592_v44 = vadd.f32 %v14913_v13, %v14910_v47  ;;  %v323_v47 = vld [vmem:[#allocation15 + $0x8] sm:$0xff]  ;;  %v17548_v26 = vld [vmem:[#allocation80_spill] sm:$0xff]  ;;  %v17549_v36 = vld [vmem:[#allocation83_spill] sm:$0xff] }
 0x3c0   :  { %v2534_v7 = vsub.f32 %v14816_v3, %v2518_v43  ;;  %v2582_v6 = vadd.f32 %v14822_v50, %v2550_v1  ;;  %v2593_v53 = vadd.f32 %v14906_v38, %v14903_v11  ;;  %v2594_v15 = vadd.f32 %v2578_v52, %v2530_v0  ;;  %v339_v11 = vld [vmem:[#allocation16 + $0x8] sm:$0xff]  ;;  %v324_v0 = vld [vmem:[#allocation15 + $0x10] sm:$0xff]  ;;  %v325_v52 = vld [vmem:[#allocation15 + $0x18] sm:$0xff] }
 0x3c1   :  { %11828 = vmatpush3.bf16.msra.mxu1 %v11825_v25  ;;  %v2595_v32 = vadd.f32 %v2579_v51, %v2531_v37  ;;  %v11877_v29 = vpack.c.bf16 %v2591_v45, %v2590_v42  ;;  %v2596_v30 = vadd.f32 %v2580_v24, %v2532_v35  ;;  %v2597_v33 = vadd.f32 %v2581_v58, %v2533_v12  ;;  %v17543_v37 = vld [vmem:[#allocation66_spill] sm:$0xff]  ;;  %v349_v58 = vld [vmem:[#allocation16 + $0x58] sm:$0xff]  ;;  %v350_v56 = vld [vmem:[#allocation16 + $0x60] sm:$0xff] }
 0x3c2   :  { %11860 = vmatpush3.bf16.msra.mxu0 %v11857_v19  ;;  %v11829_v2 = vpack.c.bf16 %v2535_v22, %v2534_v7  ;;  %v11861_v60 = vpack.c.bf16 %v2583_v16, %v2582_v6  ;;  %v14967_v3 = vpack.c.bf16 %v2593_v53, %v2592_v44  ;;  %v2598_v61 = vadd.f32 %v2582_v6, %v2534_v7  ;;  %v340_v51 = vld [vmem:[#allocation16 + $0x10] sm:$0xff]  ;;  %v334_v35 = vld [vmem:[#allocation15 + $0x60] sm:$0xff]  ;;  %v351_v41 = vld [vmem:[#allocation16 + $0x68] sm:$0xff] }
 0x3c3   :  { %v14969_v50 = vpack.c.bf16 %v2595_v32, %v2594_v15  ;;  %v2599_v27 = vadd.f32 %v2583_v16, %v2535_v22  ;;  %v14971_v13 = vpack.c.bf16 %v2597_v33, %v2596_v30  ;;  %v332_v12 = vld [vmem:[#allocation15 + $0x50] sm:$0xff]  ;;  %v335_v24 = vld [vmem:[#allocation15 + $0x68] sm:$0xff]  ;;  %v353_v63 = vld [vmem:[#allocation16 + $0x78] sm:$0xff] }
 0x3c4   :  { %11830 = vmatprep.subr.bf16.mxu1 %v11829_v2  ;;  %11862 = vmatprep.subr.bf16.mxu0 %v11861_v60  ;;  %v352_v10 = vld [vmem:[#allocation16 + $0x70] sm:$0xff]  ;;  %v337_v46 = vld [vmem:[#allocation15 + $0x78] sm:$0xff]  ;;  %v354_v1 = vld [vmem:[#allocation18] sm:$0xff] }
 0x3c5   :  { %11832 = vmatpush3.bf16.msra.mxu1 %v11829_v2  ;;  %v14974_v38 = vpack.c.bf16 %v2599_v27, %v2598_v61  ;;  %v336_v8 = vld [vmem:[#allocation15 + $0x70] sm:$0xff]  ;;  %v355_v25 = vld [vmem:[#allocation18 + $0x8] sm:$0xff]  ;;  %v17551_v19 = vld [vmem:[#allocation67_spill] sm:$0xff] }
 0x3c6   :  { %11864 = vmatpush3.bf16.msra.mxu0 %v11861_v60  ;;  %11866 = vmatprep.subr.bf16.mxu1 %v14865_v55  ;;  %v17550_v43 = vld [vmem:[#allocation86_spill] sm:$0xff]  ;;  %v17552_v9 = vld [vmem:[#allocation69_spill] sm:$0xff]  ;;  %v12605_v22 = vld [vmem:[#allocation4] sm:$0xff] }
 0x3c7   :  { %11898 = vmatprep.subr.bf16.mxu0 %v17543_v37  ;;  %v12606_v16 = vld [vmem:[#allocation4 + $0x8] sm:$0xff]  ;;  %v357_v42 = vld [vmem:[#allocation18 + $0x18] sm:$0xff]  ;;  %v17553_v7 = vld [vmem:[#allocation70_spill] sm:$0xff] }
 0x3c8   :  { %10082 = vmatmul.mubr.f32.vlgmr.msra.gmra.mrb[144].mxu1 %v323_v47  ;;  %v17554_v6 = vld [vmem:[#allocation72_spill] sm:$0xff]  ;;  %v12607_v45 = vld [vmem:[#allocation4 + $0x10] sm:$0xff]  ;;  %v12608_v44 = vld [vmem:[#allocation4 + $0x18] sm:$0xff] }
 0x3c9   :  { %10138 = vmatmul.mubr.f32.vlgmr.msra.gmra.mrb[96].mxu0 %v339_v11  ;;  %11868 = vmatpush3.bf16.msra.mxu1 %v14865_v55  ;;  %v343_v55 = vld [vmem:[#allocation16 + $0x28] sm:$0xff]  ;;  %v358_v53 = vld [vmem:[#allocation18 + $0x20] sm:$0xff]  ;;  %v17556_v2 = vld [vmem:[#allocation75_spill] sm:$0xff] }
 0x3ca   :  { %11900 = vmatpush3.bf16.msra.mxu0 %v17543_v37  ;;  %11870 = vmatprep.subr.bf16.mxu1 %v14933_v57  ;;  %v359_v15 = vld [vmem:[#allocation18 + $0x28] sm:$0xff]  ;;  %v12609_v60 = vld [vmem:[#allocation4 + $0x20] sm:$0xff]  ;;  %v360_v30 = vld [vmem:[#allocation18 + $0x30] sm:$0xff] }
 0x3cb   :  { %11902 = vmatprep.subr.bf16.mxu0 %v17544_v59  ;;  %10140 = vmatprep.mubr.f32.mxu0 %v340_v51  ;;  %v17555_v32 = vld [vmem:[#allocation73_spill] sm:$0xff]  ;;  %v17558_v33 = vld [vmem:[#allocation78_spill] sm:$0xff]  ;;  %v12612_v27 = vld [vmem:[#allocation4 + $0x38] sm:$0xff] }
 0x3cc   :  { %10084 = vmatprep.mubr.f32.mxu1 %v324_v0  ;;  %v12611_v61 = vld [vmem:[#allocation4 + $0x30] sm:$0xff]  ;;  %v362_v47 = vld [vmem:[#allocation18 + $0x40] sm:$0xff]  ;;  %v17559_v11 = vld [vmem:[#allocation79_spill] sm:$0xff] }
 0x3cd   :  { %10141 = vmatmul.mubr.f32.gmra.mrb[98].mxu0 %v341_v18  ;;  %10085 = vmatmul.mubr.f32.gmra.mrb[146].mxu1 %v325_v52  ;;  %v12613_v37 = vld [vmem:[#allocation4 + $0x40] sm:$0xff]  ;;  %v12614_v51 = vld [vmem:[#allocation4 + $0x48] sm:$0xff]  ;;  %v364_v0 = vld [vmem:[#allocation18 + $0x50] sm:$0xff] }
 0x3ce   :  { %11872 = vmatpush3.bf16.msra.mxu1 %v14933_v57  ;;  %11904 = vmatpush3.bf16.msra.mxu0 %v17544_v59  ;;  %v17546_v57 = vld [vmem:[#allocation74_spill] sm:$0xff]  ;;  %v365_v18 = vld [vmem:[#allocation18 + $0x58] sm:$0xff]  ;;  %v17562_v59 = vld [vmem:[#allocation84_spill] sm:$0xff] }
 0x3cf   :  { %11874 = vmatprep.subr.bf16.mxu1 %v11873_v17  ;;  %11906 = vmatprep.subr.bf16.mxu0 %v17545_v40  ;;  %v17561_v52 = vld [vmem:[#allocation82_spill] sm:$0xff] }
 0x3d0   :  { %10143 = vmatprep.mubr.f32.mxu0 %v342_v20  ;;  %10087 = vmatprep.mubr.f32.mxu1 %v326_v4  ;;  %v12615_v20 = vld [vmem:[#allocation4 + $0x50] sm:$0xff]  ;;  %v12616_v4 = vld [vmem:[#allocation4 + $0x58] sm:$0xff] }
 0x3d1   :  { %10144 = vmatmul.mubr.f32.gmra.mrb[100].mxu0 %v343_v55  ;;  %10088 = vmatmul.mubr.f32.gmra.mrb[148].mxu1 %v327_v21  ;;  %v366_v55 = vld [vmem:[#allocation18 + $0x60] sm:$0xff]  ;;  %v367_v21 = vld [vmem:[#allocation18 + $0x68] sm:$0xff] }
 0x3d2   :  { %11876 = vmatpush3.bf16.msra.mxu1 %v11873_v17  ;;  %11908 = vmatpush3.bf16.msra.mxu0 %v17545_v40  ;;  %v356_v17 = vld [vmem:[#allocation18 + $0x10] sm:$0xff]  ;;  %v17563_v40 = vld [vmem:[#allocation85_spill] sm:$0xff] }
 0x3d3   :  { %11878 = vmatprep.subr.bf16.mxu1 %v11877_v29  ;;  %11910 = vmatprep.subr.bf16.mxu0 %v17546_v57 }
 0x3d4   :  { %10146 = vmatprep.mubr.f32.mxu0 %v344_v23  ;;  %10090 = vmatprep.mubr.f32.mxu1 %v328_v5  ;;  %v17564_v23 = vld [vmem:[#allocation87_spill] sm:$0xff]  ;;  %v12617_v5 = vld [vmem:[#allocation4 + $0x60] sm:$0xff] }
 0x3d5   :  { %10147 = vmatmul.mubr.f32.gmra.mrb[102].mxu0 %v345_v62  ;;  %10091 = vmatmul.mubr.f32.gmra.mrb[150].mxu1 %v329_v14  ;;  %v12618_v62 = vld [vmem:[#allocation4 + $0x68] sm:$0xff]  ;;  %v368_v14 = vld [vmem:[#allocation18 + $0x70] sm:$0xff] }
 0x3d6   :  { %11880 = vmatpush3.bf16.msra.mxu1 %v11877_v29  ;;  %11912 = vmatpush3.bf16.msra.mxu0 %v17546_v57  ;;  %v12610_v29 = vld [vmem:[#allocation4 + $0x28] sm:$0xff]  ;;  %v369_v57 = vld [vmem:[#allocation18 + $0x78] sm:$0xff] }
 0x3d7   :  { %11882 = vmatprep.subr.bf16.mxu1 %v14967_v3  ;;  %11914 = vmatprep.subr.bf16.mxu0 %v17547_v39 }
 0x3d8   :  { %10149 = vmatprep.mubr.f32.mxu0 %v346_v54  ;;  %10093 = vmatprep.mubr.f32.mxu1 %v330_v34  ;;  %v17565_v54 = vld [vmem:[#allocation88_spill] sm:$0xff]  ;;  %v17566_v34 = vld [vmem:[#allocation89_spill] sm:$0xff] }
 0x3d9   :  { %10150 = vmatmul.mubr.f32.gmra.mrb[104].mxu0 %v347_v31  ;;  %10094 = vmatmul.mubr.f32.gmra.mrb[152].mxu1 %v331_v49  ;;  %v12619_v31 = vld [vmem:[#allocation4 + $0x70] sm:$0xff]  ;;  %v12620_v49 = vld [vmem:[#allocation4 + $0x78] sm:$0xff] }
 0x3da   :  { %11884 = vmatpush3.bf16.msra.mxu1 %v14967_v3  ;;  %11916 = vmatpush3.bf16.msra.mxu0 %v17547_v39  ;;  %v361_v3 = vld [vmem:[#allocation18 + $0x38] sm:$0xff]  ;;  %v12621_v39 = vld [vmem:[#allocation9] sm:$0xff] }
 0x3db   :  { %11886 = vmatprep.subr.bf16.mxu1 %v14969_v50  ;;  %11918 = vmatprep.subr.bf16.mxu0 %v17548_v26 }
 0x3dc   :  { %10152 = vmatprep.mubr.f32.mxu0 %v348_v48  ;;  %10096 = vmatprep.mubr.f32.mxu1 %v332_v12  ;;  %v12622_v48 = vld [vmem:[#allocation7] sm:$0xff]  ;;  %v12623_v12 = vld [vmem:[#allocation9 + $0x8] sm:$0xff] }
 0x3dd   :  { %10153 = vmatmul.mubr.f32.gmra.mrb[106].mxu0 %v349_v58  ;;  %10097 = vmatmul.mubr.f32.gmra.mrb[154].mxu1 %v333_v28  ;;  %v12624_v58 = vld [vmem:[#allocation7 + $0x8] sm:$0xff]  ;;  %v12625_v28 = vld [vmem:[#allocation9 + $0x10] sm:$0xff] }
 0x3de   :  { %11888 = vmatpush3.bf16.msra.mxu1 %v14969_v50  ;;  %11920 = vmatpush3.bf16.msra.mxu0 %v17548_v26  ;;  %v17557_v50 = vld [vmem:[#allocation76_spill] sm:$0xff]  ;;  %v12626_v26 = vld [vmem:[#allocation7 + $0x10] sm:$0xff] }
 0x3df   :  { %11890 = vmatprep.subr.bf16.mxu1 %v14971_v13  ;;  %11922 = vmatprep.subr.bf16.mxu0 %v17549_v36 }
 0x3e0   :  { %10155 = vmatprep.mubr.f32.mxu0 %v350_v56  ;;  %10099 = vmatprep.mubr.f32.mxu1 %v334_v35  ;;  %v12627_v56 = vld [vmem:[#allocation9 + $0x18] sm:$0xff] }
 0x3e1   :  { %10156 = vmatmul.mubr.f32.gmra.mrb[108].mxu0 %v351_v41  ;;  %10100 = vmatmul.mubr.f32.gmra.mrb[156].mxu1 %v335_v24  ;;  %v12628_v35 = vld [vmem:[#allocation7 + $0x18] sm:$0xff]  ;;  %v12629_v41 = vld [vmem:[#allocation9 + $0x20] sm:$0xff] }
 0x3e2   :  { %11892 = vmatpush3.bf16.msra.mxu1 %v14971_v13  ;;  %11924 = vmatpush3.bf16.msra.mxu0 %v17549_v36  ;;  %v363_v13 = vld [vmem:[#allocation18 + $0x48] sm:$0xff]  ;;  %v12630_v24 = vld [vmem:[#allocation7 + $0x20] sm:$0xff] }
 0x3e3   :  { %11894 = vmatprep.subr.bf16.mxu1 %v14974_v38  ;;  %11926 = vmatprep.subr.bf16.mxu0 %v17550_v43  ;;  %v12631_v36 = vld [vmem:[#allocation9 + $0x28] sm:$0xff] }
 0x3e4   :  { %10158 = vmatprep.mubr.f32.mxu0 %v352_v10  ;;  %10102 = vmatprep.mubr.f32.mxu1 %v336_v8  ;;  %v12632_v10 = vld [vmem:[#allocation7 + $0x28] sm:$0xff]  ;;  %v12633_v8 = vld [vmem:[#allocation9 + $0x30] sm:$0xff] }
 0x3e5   :  { %10159 = vmatmul.mubr.f32.gmra.mrb[110].mxu0 %v353_v63  ;;  %10103 = vmatmul.mubr.f32.gmra.mrb[158].mxu1 %v337_v46  ;;  %v12634_v63 = vld [vmem:[#allocation7 + $0x30] sm:$0xff]  ;;  %v12635_v46 = vld [vmem:[#allocation9 + $0x38] sm:$0xff] }
 0x3e6   :  { %11896 = vmatpush3.bf16.msra.mxu1 %v14974_v38  ;;  %11928 = vmatpush3.bf16.msra.mxu0 %v17550_v43  ;;  %v17560_v38 = vld [vmem:[#allocation81_spill] sm:$0xff]  ;;  %v12636_v43 = vld [vmem:[#allocation7 + $0x38] sm:$0xff] }
 0x3e7   :  { %11930 = vmatprep.subr.bf16.mxu1 %v17551_v19  ;;  %11962 = vmatprep.subr.bf16.mxu0 %v17552_v9 }
 0x3e8   :  { %10249 = vmatprep.mubr.f32.mxu0 %v12605_v22  ;;  %10193 = vmatprep.mubr.f32.mxu1 %v354_v1  ;;  %v12637_v1 = vld [vmem:[#allocation9 + $0x40] sm:$0xff]  ;;  %v12641_v22 = vld [vmem:[#allocation9 + $0x50] sm:$0xff] }
 0x3e9   :  { %10250 = vmatmul.mubr.f32.vlgmr.msra.gmra.mrb[112].mxu0 %v12606_v16  ;;  %10194 = vmatmul.mubr.f32.vlgmr.msra.gmra.mrb[160].mxu1 %v355_v25  ;;  %v12638_v25 = vld [vmem:[#allocation7 + $0x40] sm:$0xff]  ;;  %v12642_v16 = vld [vmem:[#allocation7 + $0x50] sm:$0xff] }
 0x3ea   :  { %11932 = vmatpush3.bf16.msra.mxu1 %v17551_v19  ;;  %11964 = vmatpush3.bf16.msra.mxu0 %v17552_v9  ;;  %v12639_v19 = vld [vmem:[#allocation9 + $0x48] sm:$0xff] }
 0x3eb   :  { %11934 = vmatprep.subr.bf16.mxu1 %v17553_v7  ;;  %11966 = vmatprep.subr.bf16.mxu0 %v17554_v6  ;;  %v12640_v9 = vld [vmem:[#allocation7 + $0x48] sm:$0xff] }
 0x3ec   :  { %10252 = vmatprep.mubr.f32.mxu0 %v12607_v45  ;;  %10196 = vmatprep.mubr.f32.mxu1 %v356_v17  ;;  %v12643_v17 = vld [vmem:[#allocation9 + $0x58] sm:$0xff]  ;;  %v12647_v45 = vld [vmem:[#allocation9 + $0x68] sm:$0xff] }
 0x3ed   :  { %10253 = vmatmul.mubr.f32.gmra.mrb[114].mxu0 %v12608_v44  ;;  %10197 = vmatmul.mubr.f32.gmra.mrb[162].mxu1 %v357_v42  ;;  %v12644_v42 = vld [vmem:[#allocation7 + $0x58] sm:$0xff]  ;;  %v12648_v44 = vld [vmem:[#allocation7 + $0x68] sm:$0xff] }
 0x3ee   :  { %11936 = vmatpush3.bf16.msra.mxu1 %v17553_v7  ;;  %11968 = vmatpush3.bf16.msra.mxu0 %v17554_v6  ;;  %v12645_v7 = vld [vmem:[#allocation9 + $0x60] sm:$0xff] }
 0x3ef   :  { %11938 = vmatprep.subr.bf16.mxu1 %v17555_v32  ;;  %11970 = vmatprep.subr.bf16.mxu0 %v17556_v2  ;;  %v12646_v6 = vld [vmem:[#allocation7 + $0x60] sm:$0xff] }
 0x3f0   :  { %10255 = vmatprep.mubr.f32.mxu0 %v12609_v60  ;;  %10199 = vmatprep.mubr.f32.mxu1 %v358_v53  ;;  %v12649_v53 = vld [vmem:[#allocation9 + $0x70] sm:$0xff]  ;;  %v17568_v60 = vld [vmem:[#allocation117_spill] sm:$0xff] }
 0x3f1   :  { %10256 = vmatmul.mubr.f32.gmra.mrb[116].mxu0 %v12610_v29  ;;  %10200 = vmatmul.mubr.f32.gmra.mrb[164].mxu1 %v359_v15  ;;  %v12650_v15 = vld [vmem:[#allocation7 + $0x70] sm:$0xff] }
 0x3f2   :  { %11940 = vmatpush3.bf16.msra.mxu1 %v17555_v32  ;;  %11972 = vmatpush3.bf16.msra.mxu0 %v17556_v2  ;;  %v17567_v32 = vld [vmem:[#allocation65_spill] sm:$0xff]  ;;  %v12651_v2 = vld [vmem:[#allocation7 + $0x78] sm:$0xff]  ;;  %v17569_v29 = vld [vmem:[#allocation118_spill] sm:$0xff] }
 0x3f3   :  { %11942 = vmatprep.subr.bf16.mxu1 %v17557_v50  ;;  %11974 = vmatprep.subr.bf16.mxu0 %v17558_v33 }
 0x3f4   :  { %10258 = vmatprep.mubr.f32.mxu0 %v12611_v61  ;;  %10202 = vmatprep.mubr.f32.mxu1 %v360_v30 }
 0x3f5   :  { %10259 = vmatmul.mubr.f32.gmra.mrb[118].mxu0 %v12612_v27  ;;  %10203 = vmatmul.mubr.f32.gmra.mrb[166].mxu1 %v361_v3 }
 0x3f6   :  { %11944 = vmatpush3.bf16.msra.mxu1 %v17557_v50  ;;  %11976 = vmatpush3.bf16.msra.mxu0 %v17558_v33 }
 0x3f7   :  { %11946 = vmatprep.subr.bf16.mxu1 %v17559_v11  ;;  %11978 = vmatprep.subr.bf16.mxu0 %v17560_v38 }
 0x3f8   :  { %10261 = vmatprep.mubr.f32.mxu0 %v12613_v37  ;;  %10205 = vmatprep.mubr.f32.mxu1 %v362_v47 }
 0x3f9   :  { %10262 = vmatmul.mubr.f32.gmra.mrb[120].mxu0 %v12614_v51  ;;  %10206 = vmatmul.mubr.f32.gmra.mrb[168].mxu1 %v363_v13 }
 0x3fa   :  { %11948 = vmatpush3.bf16.msra.mxu1 %v17559_v11  ;;  %11980 = vmatpush3.bf16.msra.mxu0 %v17560_v38 }
 0x3fb   :  { %11950 = vmatprep.subr.bf16.mxu1 %v17561_v52  ;;  %11982 = vmatprep.subr.bf16.mxu0 %v17562_v59 }
 0x3fc   :  { %10264 = vmatprep.mubr.f32.mxu0 %v12615_v20  ;;  %10208 = vmatprep.mubr.f32.mxu1 %v364_v0 }
 0x3fd   :  { %10265 = vmatmul.mubr.f32.gmra.mrb[122].mxu0 %v12616_v4  ;;  %10209 = vmatmul.mubr.f32.gmra.mrb[170].mxu1 %v365_v18 }
 0x3fe   :  { %11952 = vmatpush3.bf16.msra.mxu1 %v17561_v52  ;;  %11984 = vmatpush3.bf16.msra.mxu0 %v17562_v59 }
 0x3ff   :  { %11954 = vmatprep.subr.bf16.mxu1 %v17563_v40  ;;  %11986 = vmatprep.subr.bf16.mxu0 %v17564_v23 }
 0x400   :  { %10267 = vmatprep.mubr.f32.mxu0 %v12617_v5  ;;  %10211 = vmatprep.mubr.f32.mxu1 %v366_v55 }
 0x401   :  { %10268 = vmatmul.mubr.f32.gmra.mrb[124].mxu0 %v12618_v62  ;;  %10212 = vmatmul.mubr.f32.gmra.mrb[172].mxu1 %v367_v21 }
 0x402   :  { %11956 = vmatpush3.bf16.msra.mxu1 %v17563_v40  ;;  %11988 = vmatpush3.bf16.msra.mxu0 %v17564_v23 }
 0x403   :  { %11958 = vmatprep.subr.bf16.mxu1 %v17565_v54  ;;  %11990 = vmatprep.subr.bf16.mxu0 %v17566_v34 }
 0x404   :  { %10270 = vmatprep.mubr.f32.mxu0 %v12619_v31  ;;  %10214 = vmatprep.mubr.f32.mxu1 %v368_v14 }
 0x405   :  { %10271 = vmatmul.mubr.f32.gmra.mrb[126].mxu0 %v12620_v49  ;;  %10215 = vmatmul.mubr.f32.gmra.mrb[174].mxu1 %v369_v57 }
 0x406   :  { %11960 = vmatpush3.bf16.msra.mxu1 %v17565_v54  ;;  %11992 = vmatpush3.bf16.msra.mxu0 %v17566_v34 }
 0x407   :  { %10361 = vmatprep.mubr.f32.mxu0 %v12621_v39  ;;  %10305 = vmatprep.mubr.f32.mxu1 %v12622_v48 }
 0x409   :  { %10362 = vmatmul.mubr.f32.vlgmr.msra.gmra.mrb[128].mxu0 %v12623_v12  ;;  %10306 = vmatmul.mubr.f32.vlgmr.msra.gmra.mrb[176].mxu1 %v12624_v58 }
 0x40a   :  { %10364 = vmatprep.mubr.f32.mxu0 %v12625_v28  ;;  %10308 = vmatprep.mubr.f32.mxu1 %v12626_v26 }
 0x40d   :  { %10365 = vmatmul.mubr.f32.gmra.mrb[130].mxu0 %v12627_v56  ;;  %10309 = vmatmul.mubr.f32.gmra.mrb[178].mxu1 %v12628_v35 }
 0x40e   :  { %10367 = vmatprep.mubr.f32.mxu0 %v12629_v41  ;;  %10311 = vmatprep.mubr.f32.mxu1 %v12630_v24 }
 0x411   :  { %10368 = vmatmul.mubr.f32.gmra.mrb[132].mxu0 %v12631_v36  ;;  %10312 = vmatmul.mubr.f32.gmra.mrb[180].mxu1 %v12632_v10 }
 0x412   :  { %10370 = vmatprep.mubr.f32.mxu0 %v12633_v8  ;;  %10314 = vmatprep.mubr.f32.mxu1 %v12634_v63 }
 0x415   :  { %10371 = vmatmul.mubr.f32.gmra.mrb[134].mxu0 %v12635_v46  ;;  %10315 = vmatmul.mubr.f32.gmra.mrb[182].mxu1 %v12636_v43 }
 0x416   :  { %10373 = vmatprep.mubr.f32.mxu0 %v12637_v1  ;;  %10317 = vmatprep.mubr.f32.mxu1 %v12638_v25 }
 0x419   :  { %10374 = vmatmul.mubr.f32.gmra.mrb[136].mxu0 %v12639_v19  ;;  %10318 = vmatmul.mubr.f32.gmra.mrb[184].mxu1 %v12640_v9 }
 0x41a   :  { %10376 = vmatprep.mubr.f32.mxu0 %v12641_v22  ;;  %10320 = vmatprep.mubr.f32.mxu1 %v12642_v16 }
 0x41d   :  { %10377 = vmatmul.mubr.f32.gmra.mrb[138].mxu0 %v12643_v17  ;;  %10321 = vmatmul.mubr.f32.gmra.mrb[186].mxu1 %v12644_v42 }
 0x41e   :  { %10379 = vmatprep.mubr.f32.mxu0 %v12645_v7  ;;  %10323 = vmatprep.mubr.f32.mxu1 %v12646_v6 }
 0x421   :  { %10380 = vmatmul.mubr.f32.gmra.mrb[140].mxu0 %v12647_v45  ;;  %10324 = vmatmul.mubr.f32.gmra.mrb[188].mxu1 %v12648_v44 }
 0x422   :  { %10382 = vmatprep.mubr.f32.mxu0 %v12649_v53  ;;  %10326 = vmatprep.mubr.f32.mxu1 %v12650_v15 }
 0x425   :  { %10383 = vmatmul.mubr.f32.gmra.mrb[142].mxu0 %v17567_v32  ;;  %10327 = vmatmul.mubr.f32.gmra.mrb[190].mxu1 %v12651_v2 }
 0x426   :  { %10473 = vmatprep.mubr.f32.mxu0 %v17568_v60  ;;  %10417 = vmatprep.mubr.f32.mxu1 %v17569_v29 }
 0x49b   :  { %v10083_v30 = vpop.f32.mrb[144].mxu1 }
 0x49c   :  { %v10139_v3 = vpop.f32.mrb[96].mxu0  ;;  %v2666_v50 = vpop.f32.mrb[145].mxu1 }
 0x49d   :  { %v2811_v33 = vpop.f32.mrb[97].mxu0  ;;  %v15038_v61 = vsub.f32 %v10083_v30, %v10139_v3 }
 0x49e   :  { %v15040_v27 = vsub.f32 %v2666_v50, %v2811_v33 }
 0x4a0   :  { %v10142_v47 = vpop.f32.mrb[98].mxu0  ;;  %v10086_v13 = vpop.f32.mrb[146].mxu1 }
 0x4a1   :  { %v2821_v11 = vpop.f32.mrb[99].mxu0  ;;  %v15042_v38 = vsub.f32 %v10086_v13, %v10142_v47  ;;  %v2676_v37 = vpop.f32.mrb[147].mxu1 }
 0x4a2   :  { %v15044_v51 = vsub.f32 %v2676_v37, %v2821_v11 }
 0x4a4   :  { %v10145_v0 = vpop.f32.mrb[100].mxu0  ;;  %v10089_v18 = vpop.f32.mrb[148].mxu1 }
 0x4a5   :  { %v2831_v52 = vpop.f32.mrb[101].mxu0  ;;  %v15046_v59 = vsub.f32 %v10089_v18, %v10145_v0  ;;  %v2686_v20 = vpop.f32.mrb[149].mxu1 }
 0x4a6   :  { %v15048_v4 = vsub.f32 %v2686_v20, %v2831_v52 }
 0x4a8   :  { %v10148_v55 = vpop.f32.mrb[102].mxu0  ;;  %v10092_v21 = vpop.f32.mrb[150].mxu1 }
 0x4a9   :  { %v2841_v40 = vpop.f32.mrb[103].mxu0  ;;  %v15050_v23 = vsub.f32 %v10092_v21, %v10148_v55  ;;  %v2696_v5 = vpop.f32.mrb[151].mxu1 }
 0x4aa   :  { %v15052_v62 = vsub.f32 %v2696_v5, %v2841_v40 }
 0x4ac   :  { %v10151_v14 = vpop.f32.mrb[104].mxu0  ;;  %v10095_v57 = vpop.f32.mrb[152].mxu1 }
 0x4ad   :  { %v2851_v54 = vpop.f32.mrb[105].mxu0  ;;  %v15054_v34 = vsub.f32 %v10095_v57, %v10151_v14  ;;  %v2706_v31 = vpop.f32.mrb[153].mxu1 }
 0x4ae   :  { %v15056_v49 = vsub.f32 %v2706_v31, %v2851_v54 }
 0x4b0   :  { %v15058_v39 = vpop.f32.mrb[106].mxu0  ;;  %v15060_v48 = vpop.f32.mrb[154].mxu1 }
 0x4b1   :  { %v15062_v12 = vpop.f32.mrb[107].mxu0  ;;  %v15066_v58 = vsub.f32 %v15060_v48, %v15058_v39  ;;  %v15068_v28 = vpop.f32.mrb[155].mxu1 }
 0x4b2   :  { %v15072_v26 = vsub.f32 %v15068_v28, %v15062_v12 }
 0x4b3   :  { %17570 = vst [vmem:[#allocation138_spill] sm:$0xff] %v15066_v58 }
 0x4b4   :  { %v15074_v56 = vpop.f32.mrb[108].mxu0  ;;  %v15076_v35 = vpop.f32.mrb[156].mxu1 }
 0x4b5   :  { %v15078_v41 = vpop.f32.mrb[109].mxu0  ;;  %v15082_v24 = vsub.f32 %v15076_v35, %v15074_v56  ;;  %v15084_v36 = vpop.f32.mrb[157].mxu1 }
 0x4b6   :  { %v15088_v10 = vsub.f32 %v15084_v36, %v15078_v41 }
 0x4b7   :  { %17571 = vst [vmem:[#allocation139_spill] sm:$0xff] %v15082_v24 }
 0x4b8   :  { %17572 = vst [vmem:[#allocation127_spill] sm:$0xff] %v15088_v10  ;;  %v15090_v8 = vpop.f32.mrb[110].mxu0  ;;  %v15092_v63 = vpop.f32.mrb[158].mxu1 }
 0x4b9   :  { %v15094_v46 = vpop.f32.mrb[111].mxu0  ;;  %v15098_v43 = vsub.f32 %v15092_v63, %v15090_v8  ;;  %v15100_v1 = vpop.f32.mrb[159].mxu1 }
 0x4ba   :  { %v15104_v25 = vsub.f32 %v15100_v1, %v15094_v46 }
 0x4bb   :  { %17573 = vst [vmem:[#allocation140_spill] sm:$0xff] %v15098_v43 }
 0x4bc   :  { %17574 = vst [vmem:[#allocation141_spill] sm:$0xff] %v15104_v25  ;;  %v15106_v19 = vpop.f32.mrb[112].mxu0  ;;  %v10195_v9 = vpop.f32.mrb[160].mxu1 }
 0x4bd   :  { %v15108_v22 = vpop.f32.mrb[113].mxu0  ;;  %v3052_v16 = vsub.f32 %v10195_v9, %v10083_v30  ;;  %v2956_v17 = vpop.f32.mrb[161].mxu1 }
 0x4be   :  { %v3051_v42 = vsub.f32 %v2956_v17, %v2666_v50 }
 0x4bf   :  { %v15110_v7 = vsub.f32 %v3052_v16, %v10139_v3 }
 0x4c0   :  { %v15112_v6 = vpop.f32.mrb[114].mxu0  ;;  %v15114_v45 = vsub.f32 %v3051_v42, %v2811_v33  ;;  %v10198_v44 = vpop.f32.mrb[162].mxu1 }
 0x4c1   :  { %17575 = vst [vmem:[#allocation119_spill] sm:$0xff] %v15110_v7  ;;  %v15116_v53 = vpop.f32.mrb[115].mxu0  ;;  %v3054_v15 = vsub.f32 %v10198_v44, %v10086_v13  ;;  %v2966_v32 = vpop.f32.mrb[163].mxu1 }
 0x4c2   :  { %17576 = vst [vmem:[#allocation135_spill] sm:$0xff] %v15114_v45  ;;  %v3053_v2 = vsub.f32 %v2966_v32, %v2676_v37 }
 0x4c3   :  { %v15118_v60 = vsub.f32 %v3054_v15, %v10142_v47 }
 0x4c4   :  { %v15120_v29 = vpop.f32.mrb[116].mxu0  ;;  %v15122_v43 = vsub.f32 %v3053_v2, %v2821_v11  ;;  %v10201_v30 = vpop.f32.mrb[164].mxu1 }
 0x4c5   :  { %17577 = vst [vmem:[#allocation120_spill] sm:$0xff] %v15118_v60  ;;  %v15124_v50 = vpop.f32.mrb[117].mxu0  ;;  %v3056_v3 = vsub.f32 %v10201_v30, %v10089_v18  ;;  %v2976_v9 = vpop.f32.mrb[165].mxu1 }
 0x4c6   :  { %17578 = vst [vmem:[#allocation128_spill] sm:$0xff] %v15122_v43  ;;  %v3055_v16 = vsub.f32 %v2976_v9, %v2686_v20 }
 0x4c7   :  { %v15126_v33 = vsub.f32 %v3056_v3, %v10145_v0 }
 0x4c8   :  { %v15128_v17 = vpop.f32.mrb[118].mxu0  ;;  %v15130_v42 = vsub.f32 %v3055_v16, %v2831_v52  ;;  %v10204_v13 = vpop.f32.mrb[166].mxu1 }
 0x4c9   :  { %17579 = vst [vmem:[#allocation142_spill] sm:$0xff] %v15126_v33  ;;  %v15132_v37 = vpop.f32.mrb[119].mxu0  ;;  %v3058_v47 = vsub.f32 %v10204_v13, %v10092_v21  ;;  %v2986_v44 = vpop.f32.mrb[167].mxu1 }
 0x4ca   :  { %17580 = vst [vmem:[#allocation143_spill] sm:$0xff] %v15130_v42  ;;  %v3057_v15 = vsub.f32 %v2986_v44, %v2696_v5 }
 0x4cb   :  { %v15134_v11 = vsub.f32 %v3058_v47, %v10148_v55 }
 0x4cc   :  { %v15136_v32 = vpop.f32.mrb[120].mxu0  ;;  %v15138_v2 = vsub.f32 %v3057_v15, %v2841_v40  ;;  %v10207_v18 = vpop.f32.mrb[168].mxu1 }
 0x4cd   :  { %17581 = vst [vmem:[#allocation129_spill] sm:$0xff] %v15134_v11  ;;  %v15140_v20 = vpop.f32.mrb[121].mxu0  ;;  %v3060_v0 = vsub.f32 %v10207_v18, %v10095_v57  ;;  %v2996_v30 = vpop.f32.mrb[169].mxu1  ;;  %v12658_v11 = vld [vmem:[#allocation24 + $0x10] sm:$0xff] }
 0x4ce   :  { %17582 = vst [vmem:[#allocation144_spill] sm:$0xff] %v15138_v2  ;;  %v3059_v3 = vsub.f32 %v2996_v30, %v2706_v31 }
 0x4cf   :  { %v15142_v52 = vsub.f32 %v3060_v0, %v10151_v14 }
 0x4d0   :  { %v15144_v9 = vpop.f32.mrb[122].mxu0  ;;  %v15146_v16 = vsub.f32 %v3059_v3, %v2851_v54  ;;  %v10210_v21 = vpop.f32.mrb[170].mxu1 }
 0x4d1   :  { %17583 = vst [vmem:[#allocation145_spill] sm:$0xff] %v15142_v52  ;;  %v15148_v5 = vpop.f32.mrb[123].mxu0  ;;  %v3062_v55 = vsub.f32 %v10210_v21, %v15060_v48  ;;  %v3006_v13 = vpop.f32.mrb[171].mxu1  ;;  %v12656_v52 = vld [vmem:[#allocation24 + $0x18] sm:$0xff] }
 0x4d2   :  { %17584 = vst [vmem:[#allocation137_spill] sm:$0xff] %v15146_v16  ;;  %v3061_v40 = vsub.f32 %v3006_v13, %v15068_v28 }
 0x4d3   :  { %v15153_v47 = vsub.f32 %v3062_v55, %v15058_v39 }
 0x4d4   :  { %v15155_v57 = vpop.f32.mrb[124].mxu0  ;;  %v15158_v14 = vsub.f32 %v3061_v40, %v15062_v12  ;;  %v10213_v31 = vpop.f32.mrb[172].mxu1 }
 0x4d5   :  { %17585 = vst [vmem:[#allocation121_spill] sm:$0xff] %v15153_v47  ;;  %v15160_v44 = vpop.f32.mrb[125].mxu0  ;;  %v3064_v54 = vsub.f32 %v10213_v31, %v15076_v35  ;;  %v3016_v15 = vpop.f32.mrb[173].mxu1 }
 0x4d6   :  { %17586 = vst [vmem:[#allocation122_spill] sm:$0xff] %v15158_v14  ;;  %v3063_v18 = vsub.f32 %v3016_v15, %v15084_v36 }
 0x4d7   :  { %v15165_v48 = vsub.f32 %v3064_v54, %v15074_v56 }
 0x4d8   :  { %v15167_v28 = vpop.f32.mrb[126].mxu0  ;;  %v15170_v39 = vsub.f32 %v3063_v18, %v15078_v41  ;;  %v10216_v0 = vpop.f32.mrb[174].mxu1 }
 0x4d9   :  { %17587 = vst [vmem:[#allocation130_spill] sm:$0xff] %v15165_v48  ;;  %v15172_v30 = vpop.f32.mrb[127].mxu0  ;;  %v3066_v12 = vsub.f32 %v10216_v0, %v15092_v63  ;;  %v3026_v3 = vpop.f32.mrb[175].mxu1 }
 0x4da   :  { %17588 = vst [vmem:[#allocation147_spill] sm:$0xff] %v15170_v39  ;;  %v3065_v21 = vsub.f32 %v3026_v3, %v15100_v1  ;;  %v12652_v1 = vld [vmem:[#allocation24 + $0x8] sm:$0xff]  ;;  %v12654_v3 = vld [vmem:[#allocation24] sm:$0xff] }
 0x4db   :  { %v15177_v35 = vsub.f32 %v3066_v12, %v15090_v8  ;;  %v12653_v8 = vld [vmem:[#allocation25 + $0x8] sm:$0xff] }
 0x4dc   :  { %v10363_v36 = vpop.f32.mrb[128].mxu0  ;;  %v15180_v56 = vsub.f32 %v3065_v21, %v15094_v46  ;;  %v10307_v55 = vpop.f32.mrb[176].mxu1  ;;  %v12655_v21 = vld [vmem:[#allocation25] sm:$0xff] }
 0x4dd   :  { %17589 = vst [vmem:[#allocation148_spill] sm:$0xff] %v15177_v35  ;;  %v3583_v13 = vsub.f32 %v10363_v36, %v15106_v19  ;;  %v3487_v41 = vpop.f32.mrb[129].mxu0  ;;  %v3567_v40 = vsub.f32 %v15106_v19, %v10307_v55  ;;  %v3342_v31 = vpop.f32.mrb[177].mxu1 }
 0x4de   :  { %17590 = vst [vmem:[#allocation131_spill] sm:$0xff] %v15180_v56  ;;  %v3582_v54 = vsub.f32 %v3487_v41, %v15108_v22  ;;  %v3566_v63 = vsub.f32 %v15108_v22, %v3342_v31 }
 0x4df   :  { %v3599_v15 = vsub.f32 %v3583_v13, %v10307_v55  ;;  %v3615_v18 = vmul.f32 %v12652_v1, %v3567_v40  ;;  %v3679_v0 = vmul.f32 %v12653_v8, %v3567_v40 }
 0x4e0   :  { %v3598_v12 = vsub.f32 %v3582_v54, %v3342_v31  ;;  %v3614_v46 = vmul.f32 %v12654_v3, %v3566_v63  ;;  %v3678_v35 = vmul.f32 %v12655_v21, %v3566_v63  ;;  %v10366_v56 = vpop.f32.mrb[130].mxu0  ;;  %v10310_v36 = vpop.f32.mrb[178].mxu1 }
 0x4e1   :  { %v3631_v48 = vmul.f32 %v12653_v8, %v3599_v15  ;;  %v3663_v39 = vmul.f32 %v12652_v1, %v3599_v15  ;;  %v3585_v19 = vsub.f32 %v10366_v56, %v15112_v6  ;;  %v3497_v47 = vpop.f32.mrb[131].mxu0  ;;  %v3569_v41 = vsub.f32 %v15112_v6, %v10310_v36  ;;  %v3352_v22 = vpop.f32.mrb[179].mxu1  ;;  %v12657_v1 = vld [vmem:[#allocation25 + $0x18] sm:$0xff] }
 0x4e2   :  { %v3630_v55 = vmul.f32 %v12655_v21, %v3598_v12  ;;  %v3662_v13 = vmul.f32 %v12654_v3, %v3598_v12  ;;  %v3584_v14 = vsub.f32 %v3497_v47, %v15116_v53  ;;  %v3568_v40 = vsub.f32 %v15116_v53, %v3352_v22 }
 0x4e3   :  { %v15190_v31 = vsub.f32 %v3615_v18, %v3631_v48  ;;  %v15192_v54 = vadd.f32 %v3679_v0, %v3663_v39  ;;  %v3601_v63 = vsub.f32 %v3585_v19, %v10310_v36  ;;  %v3617_v8 = vmul.f32 %v12656_v52, %v3569_v41  ;;  %v12659_v48 = vld [vmem:[#allocation25 + $0x10] sm:$0xff] }
 0x4e4   :  { %v15194_v15 = vsub.f32 %v3614_v46, %v3630_v55  ;;  %v15196_v56 = vadd.f32 %v3678_v35, %v3662_v13  ;;  %v3681_v6 = vmul.f32 %v12657_v1, %v3569_v41  ;;  %v3600_v16 = vsub.f32 %v3584_v14, %v3352_v22  ;;  %v10369_v21 = vpop.f32.mrb[132].mxu0  ;;  %v10313_v12 = vpop.f32.mrb[180].mxu1 }
 0x4e5   :  { %v3633_v3 = vmul.f32 %v12657_v1, %v3601_v63  ;;  %v3665_v47 = vmul.f32 %v12656_v52, %v3601_v63  ;;  %v3616_v53 = vmul.f32 %v12658_v11, %v3568_v40  ;;  %v3680_v18 = vmul.f32 %v12659_v48, %v3568_v40  ;;  %v3507_v39 = vpop.f32.mrb[133].mxu0  ;;  %v3362_v0 = vpop.f32.mrb[181].mxu1 }
 0x4e6   :  { %v3632_v36 = vmul.f32 %v12659_v48, %v3600_v16  ;;  %v3664_v19 = vmul.f32 %v12658_v11, %v3600_v16  ;;  %v3587_v46 = vsub.f32 %v10369_v21, %v15120_v29  ;;  %v3586_v35 = vsub.f32 %v3507_v39, %v15124_v50  ;;  %v12660_v16 = vld [vmem:[#allocation24 + $0x28] sm:$0xff] }
 0x4e7   :  { %v15200_v55 = vsub.f32 %v3617_v8, %v3633_v3  ;;  %v15202_v41 = vadd.f32 %v3681_v6, %v3665_v47  ;;  %v3571_v14 = vsub.f32 %v15120_v29, %v10313_v12  ;;  %v3570_v52 = vsub.f32 %v15124_v50, %v3362_v0  ;;  %v12661_v48 = vld [vmem:[#allocation25 + $0x28] sm:$0xff]  ;;  %v12662_v8 = vld [vmem:[#allocation24 + $0x20] sm:$0xff] }
 0x4e8   :  { %v15206_v22 = vsub.f32 %v3616_v53, %v3632_v36  ;;  %v15208_v13 = vadd.f32 %v3680_v18, %v3664_v19  ;;  %v3603_v40 = vsub.f32 %v3587_v46, %v10313_v12  ;;  %v3602_v63 = vsub.f32 %v3586_v35, %v3362_v0  ;;  %v10372_v1 = vpop.f32.mrb[134].mxu0  ;;  %v10316_v11 = vpop.f32.mrb[182].mxu1  ;;  %v12663_v6 = vld [vmem:[#allocation25 + $0x20] sm:$0xff] }
 0x4e9   :  { %v3619_v21 = vmul.f32 %v12660_v16, %v3571_v14  ;;  %v3683_v39 = vmul.f32 %v12661_v48, %v3571_v14  ;;  %v3618_v3 = vmul.f32 %v12662_v8, %v3570_v52  ;;  %v3682_v47 = vmul.f32 %v12663_v6, %v3570_v52  ;;  %v3517_v2 = vpop.f32.mrb[135].mxu0  ;;  %v3372_v29 = vpop.f32.mrb[183].mxu1 }
 0x4ea   :  { %v3635_v33 = vmul.f32 %v12661_v48, %v3603_v40  ;;  %v3667_v50 = vmul.f32 %v12660_v16, %v3603_v40  ;;  %v3634_v53 = vmul.f32 %v12663_v6, %v3602_v63  ;;  %v3666_v36 = vmul.f32 %v12662_v8, %v3602_v63 }
 0x4eb   :  { %v3589_v18 = vsub.f32 %v10372_v1, %v15128_v17  ;;  %v11993_v12 = vpack.c.bf16 %v15190_v31, %v15194_v15  ;;  %v12025_v0 = vpack.c.bf16 %v15192_v54, %v15196_v56  ;;  %v3588_v19 = vsub.f32 %v3517_v2, %v15132_v37 }
 0x4ec   :  { %v15216_v46 = vsub.f32 %v3619_v21, %v3635_v33  ;;  %v15218_v35 = vadd.f32 %v3683_v39, %v3667_v50  ;;  %v15220_v14 = vsub.f32 %v3618_v3, %v3634_v53  ;;  %v15222_v52 = vadd.f32 %v3682_v47, %v3666_v36  ;;  %v10375_v40 = vpop.f32.mrb[136].mxu0  ;;  %v10319_v63 = vpop.f32.mrb[184].mxu1  ;;  %v12664_v39 = vld [vmem:[#allocation24 + $0x38] sm:$0xff] }
 0x4ed   :  { %11994 = vmatprep.subr.bf16.mxu1 %v11993_v12  ;;  %12026 = vmatprep.subr.bf16.mxu0 %v12025_v0  ;;  %v3573_v1 = vsub.f32 %v15128_v17, %v10316_v11  ;;  %v3605_v16 = vsub.f32 %v3589_v18, %v10316_v11  ;;  %v3572_v48 = vsub.f32 %v15132_v37, %v3372_v29  ;;  %v3527_v8 = vpop.f32.mrb[137].mxu0  ;;  %v3382_v6 = vpop.f32.mrb[185].mxu1  ;;  %v12665_v47 = vld [vmem:[#allocation25 + $0x38] sm:$0xff]  ;;  %v12666_v17 = vld [vmem:[#allocation24 + $0x30] sm:$0xff] }
 0x4ee   :  { %11996 = vmatpush3.bf16.msra.mxu1 %v11993_v12  ;;  %12028 = vmatpush3.bf16.msra.mxu0 %v12025_v0  ;;  %v3604_v33 = vsub.f32 %v3588_v19, %v3372_v29  ;;  %v3591_v2 = vsub.f32 %v10375_v40, %v15136_v32  ;;  %v11997_v21 = vpack.c.bf16 %v15200_v55, %v15206_v22  ;;  %v12667_v18 = vld [vmem:[#allocation25 + $0x30] sm:$0xff] }
 0x4ef   :  { %v3621_v3 = vmul.f32 %v12664_v39, %v3573_v1  ;;  %v3637_v50 = vmul.f32 %v12665_v47, %v3605_v16  ;;  %v3669_v53 = vmul.f32 %v12664_v39, %v3605_v16  ;;  %v3685_v36 = vmul.f32 %v12665_v47, %v3573_v1 }
 0x4f0   :  { %v3620_v11 = vmul.f32 %v12666_v17, %v3572_v48  ;;  %v3636_v37 = vmul.f32 %v12667_v18, %v3604_v33  ;;  %v3668_v42 = vmul.f32 %v12666_v17, %v3604_v33  ;;  %v3684_v60 = vmul.f32 %v12667_v18, %v3572_v48  ;;  %11998 = vmatprep.subr.bf16.mxu1 %v11997_v21  ;;  %v10378_v12 = vpop.f32.mrb[138].mxu0  ;;  %v10322_v29 = vpop.f32.mrb[186].mxu1 }
 0x4f1   :  { %v15229_v0 = vsub.f32 %v3621_v3, %v3637_v50  ;;  %v15231_v19 = vadd.f32 %v3685_v36, %v3669_v53  ;;  %v12029_v40 = vpack.c.bf16 %v15202_v41, %v15208_v13  ;;  %v3590_v43 = vsub.f32 %v3527_v8, %v15140_v20  ;;  %v3537_v16 = vpop.f32.mrb[139].mxu0  ;;  %v3392_v1 = vpop.f32.mrb[187].mxu1  ;;  %v12668_v8 = vld [vmem:[#allocation24 + $0x48] sm:$0xff] }
 0x4f2   :  { %v15236_v39 = vsub.f32 %v3620_v11, %v3636_v37  ;;  %v15238_v47 = vadd.f32 %v3684_v60, %v3668_v42  ;;  %12000 = vmatpush3.bf16.msra.mxu1 %v11997_v21  ;;  %v3575_v48 = vsub.f32 %v15136_v32, %v10319_v63  ;;  %v3607_v33 = vsub.f32 %v3591_v2, %v10319_v63  ;;  %v12669_v11 = vld [vmem:[#allocation25 + $0x48] sm:$0xff]  ;;  %v12670_v32 = vld [vmem:[#allocation24 + $0x40] sm:$0xff] }
 0x4f3   :  { %12030 = vmatprep.subr.bf16.mxu0 %v12029_v40  ;;  %v3574_v3 = vsub.f32 %v15140_v20, %v3382_v6  ;;  %v3606_v50 = vsub.f32 %v3590_v43, %v3382_v6  ;;  %v3593_v53 = vsub.f32 %v10378_v12, %v15144_v9  ;;  %v12001_v36 = vpack.c.bf16 %v15216_v46, %v15220_v14  ;;  %v12671_v2 = vld [vmem:[#allocation25 + $0x40] sm:$0xff] }
 0x4f4   :  { %12032 = vmatpush3.bf16.msra.mxu0 %v12029_v40  ;;  %v3623_v17 = vmul.f32 %v12668_v8, %v3575_v48  ;;  %v3639_v18 = vmul.f32 %v12669_v11, %v3607_v33  ;;  %v3671_v60 = vmul.f32 %v12668_v8, %v3607_v33  ;;  %v3687_v42 = vmul.f32 %v12669_v11, %v3575_v48  ;;  %v10381_v21 = vpop.f32.mrb[140].mxu0  ;;  %v10325_v37 = vpop.f32.mrb[188].mxu1 }
 0x4f5   :  { %v3622_v63 = vmul.f32 %v12670_v32, %v3574_v3  ;;  %v3638_v7 = vmul.f32 %v12671_v2, %v3606_v50  ;;  %v3670_v20 = vmul.f32 %v12670_v32, %v3606_v50  ;;  %v3686_v43 = vmul.f32 %v12671_v2, %v3574_v3  ;;  %12002 = vmatprep.subr.bf16.mxu1 %v12001_v36  ;;  %v3547_v6 = vpop.f32.mrb[141].mxu0  ;;  %v3402_v12 = vpop.f32.mrb[189].mxu1 }
 0x4f6   :  { %v15245_v45 = vsub.f32 %v3623_v17, %v3639_v18  ;;  %v15247_v40 = vadd.f32 %v3687_v42, %v3671_v60  ;;  %v12033_v25 = vpack.c.bf16 %v15218_v35, %v15222_v52  ;;  %v3592_v48 = vsub.f32 %v3537_v16, %v15148_v5  ;;  %12004 = vmatpush3.bf16.msra.mxu1 %v12001_v36  ;;  %v12672_v16 = vld [vmem:[#allocation24 + $0x58] sm:$0xff] }
 0x4f7   :  { %v15252_v33 = vsub.f32 %v3622_v63, %v3638_v7  ;;  %v15254_v8 = vadd.f32 %v3686_v43, %v3670_v20  ;;  %v3577_v50 = vsub.f32 %v15144_v9, %v10322_v29  ;;  %v3609_v3 = vsub.f32 %v3593_v53, %v10322_v29  ;;  %v12673_v36 = vld [vmem:[#allocation25 + $0x58] sm:$0xff]  ;;  %v12674_v53 = vld [vmem:[#allocation24 + $0x50] sm:$0xff] }
 0x4f8   :  { %12034 = vmatprep.subr.bf16.mxu0 %v12033_v25  ;;  %v3576_v11 = vsub.f32 %v15148_v5, %v3392_v1  ;;  %v3608_v17 = vsub.f32 %v3592_v48, %v3392_v1  ;;  %v3595_v18 = vsub.f32 %v10381_v21, %v15155_v57  ;;  %v12005_v60 = vpack.c.bf16 %v15229_v0, %v15236_v39  ;;  %v10384_v42 = vpop.f32.mrb[142].mxu0  ;;  %v10328_v32 = vpop.f32.mrb[190].mxu1  ;;  %v12675_v5 = vld [vmem:[#allocation25 + $0x50] sm:$0xff] }
 0x4f9   :  { %12036 = vmatpush3.bf16.msra.mxu0 %v12033_v25  ;;  %v3625_v7 = vmul.f32 %v12672_v16, %v3577_v50  ;;  %v3641_v63 = vmul.f32 %v12673_v36, %v3609_v3  ;;  %v3673_v2 = vmul.f32 %v12672_v16, %v3609_v3  ;;  %v3689_v20 = vmul.f32 %v12673_v36, %v3577_v50  ;;  %v3557_v9 = vpop.f32.mrb[143].mxu0  ;;  %v3412_v29 = vpop.f32.mrb[191].mxu1 }
 0x4fa   :  { %v3624_v43 = vmul.f32 %v12674_v53, %v3576_v11  ;;  %v3640_v1 = vmul.f32 %v12675_v5, %v3608_v17  ;;  %v3672_v48 = vmul.f32 %v12674_v53, %v3608_v17  ;;  %v3688_v21 = vmul.f32 %v12675_v5, %v3576_v11  ;;  %12006 = vmatprep.subr.bf16.mxu1 %v12005_v60  ;;  %v12678_v5 = vld [vmem:[#allocation24 + $0x60] sm:$0xff] }
 0x4fb   :  { %v15261_v24 = vsub.f32 %v3625_v7, %v3641_v63  ;;  %v15263_v10 = vadd.f32 %v3689_v20, %v3673_v2  ;;  %v12037_v25 = vpack.c.bf16 %v15231_v19, %v15238_v47  ;;  %v3594_v58 = vsub.f32 %v3547_v6, %v15160_v44  ;;  %12008 = vmatpush3.bf16.msra.mxu1 %v12005_v60  ;;  %v12676_v2 = vld [vmem:[#allocation24 + $0x68] sm:$0xff] }
 0x4fc   :  { %v15268_v50 = vsub.f32 %v3624_v43, %v3640_v1  ;;  %v15270_v3 = vadd.f32 %v3688_v21, %v3672_v48  ;;  %v3579_v16 = vsub.f32 %v15155_v57, %v10325_v37  ;;  %v3611_v36 = vsub.f32 %v3595_v18, %v10325_v37  ;;  %v12677_v60 = vld [vmem:[#allocation25 + $0x68] sm:$0xff]  ;;  %v12679_v57 = vld [vmem:[#allocation25 + $0x60] sm:$0xff] }
 0x4fd   :  { %12038 = vmatprep.subr.bf16.mxu0 %v12037_v25  ;;  %v3578_v11 = vsub.f32 %v15160_v44, %v3402_v12  ;;  %v3610_v17 = vsub.f32 %v3594_v58, %v3402_v12  ;;  %v3597_v7 = vsub.f32 %v10384_v42, %v15167_v28  ;;  %v12009_v63 = vpack.c.bf16 %v15245_v45, %v15252_v33 }
 0x4fe   :  { %12040 = vmatpush3.bf16.msra.mxu0 %v12037_v25  ;;  %v3627_v6 = vmul.f32 %v12676_v2, %v3579_v16  ;;  %v3643_v20 = vmul.f32 %v12677_v60, %v3611_v36  ;;  %v3675_v53 = vmul.f32 %v12676_v2, %v3611_v36  ;;  %v3691_v43 = vmul.f32 %v12677_v60, %v3579_v16 }
 0x4ff   :  { %v3626_v1 = vmul.f32 %v12678_v5, %v3578_v11  ;;  %v3642_v37 = vmul.f32 %v12679_v57, %v3610_v17  ;;  %v3674_v18 = vmul.f32 %v12678_v5, %v3610_v17  ;;  %v3690_v48 = vmul.f32 %v12679_v57, %v3578_v11  ;;  %12010 = vmatprep.subr.bf16.mxu1 %v12009_v63  ;;  %v12682_v5 = vld [vmem:[#allocation24 + $0x70] sm:$0xff] }
 0x500   :  { %v3659_v58 = vsub.f32 %v3627_v6, %v3643_v20  ;;  %v3707_v44 = vadd.f32 %v3691_v43, %v3675_v53  ;;  %v12041_v12 = vpack.c.bf16 %v15247_v40, %v15254_v8  ;;  %v3596_v42 = vsub.f32 %v3557_v9, %v15172_v30  ;;  %12012 = vmatpush3.bf16.msra.mxu1 %v12009_v63  ;;  %v12680_v6 = vld [vmem:[#allocation24 + $0x78] sm:$0xff] }
 0x501   :  { %v3658_v21 = vsub.f32 %v3626_v1, %v3642_v37  ;;  %v3706_v25 = vadd.f32 %v3690_v48, %v3674_v18  ;;  %v3581_v36 = vsub.f32 %v15167_v28, %v10328_v32  ;;  %v3613_v16 = vsub.f32 %v3597_v7, %v10328_v32  ;;  %v12681_v9 = vld [vmem:[#allocation25 + $0x78] sm:$0xff]  ;;  %v12683_v32 = vld [vmem:[#allocation25 + $0x70] sm:$0xff] }
 0x502   :  { %12042 = vmatprep.subr.bf16.mxu0 %v12041_v12  ;;  %v3580_v2 = vsub.f32 %v15172_v30, %v3412_v29  ;;  %v3612_v60 = vsub.f32 %v3596_v42, %v3412_v29  ;;  %v12013_v11 = vpack.c.bf16 %v15261_v24, %v15268_v50  ;;  %v12045_v17 = vpack.c.bf16 %v15263_v10, %v15270_v3 }
 0x503   :  { %12044 = vmatpush3.bf16.msra.mxu0 %v12041_v12  ;;  %v3629_v20 = vmul.f32 %v12680_v6, %v3581_v36  ;;  %v3645_v63 = vmul.f32 %v12681_v9, %v3613_v16  ;;  %v3677_v53 = vmul.f32 %v12680_v6, %v3613_v16  ;;  %v3693_v43 = vmul.f32 %v12681_v9, %v3581_v36  ;;  %v12692_v9 = vld [vmem:[#allocation15 + $0x28] sm:$0xff] }
 0x504   :  { %v3628_v28 = vmul.f32 %v12682_v5, %v3580_v2  ;;  %v3644_v7 = vmul.f32 %v12683_v32, %v3612_v60  ;;  %v3676_v1 = vmul.f32 %v12682_v5, %v3612_v60  ;;  %v3692_v30 = vmul.f32 %v12683_v32, %v3580_v2  ;;  %12014 = vmatprep.subr.bf16.mxu1 %v12013_v11  ;;  %v17594_v5 = vld [vmem:[#allocation98_spill] sm:$0xff]  ;;  %v12697_v32 = vld [vmem:[#allocation15 + $0x40] sm:$0xff] }
 0x505   :  { %v3661_v29 = vsub.f32 %v3629_v20, %v3645_v63  ;;  %v3709_v57 = vadd.f32 %v3693_v43, %v3677_v53  ;;  %12046 = vmatprep.subr.bf16.mxu0 %v12045_v17  ;;  %12016 = vmatpush3.bf16.msra.mxu1 %v12013_v11  ;;  %v12017_v37 = vpack.c.bf16 %v3659_v58, %v3658_v21  ;;  %v17593_v20 = vld [vmem:[#allocation95_spill] sm:$0xff]  ;;  %v12693_v63 = vld [vmem:[#allocation15 + $0x30] sm:$0xff]  ;;  %v12694_v53 = vld [vmem:[#allocation16 + $0x28] sm:$0xff] }
 0x506   :  { %v3660_v18 = vsub.f32 %v3628_v28, %v3644_v7  ;;  %v3708_v48 = vadd.f32 %v3692_v30, %v3676_v1  ;;  %v12049_v12 = vpack.c.bf16 %v3707_v44, %v3706_v25  ;;  %v3710_v42 = vadd.f32 %v15196_v56, %v15194_v15  ;;  %v12695_v43 = vld [vmem:[#allocation16 + $0x30] sm:$0xff]  ;;  %v12696_v28 = vld [vmem:[#allocation15 + $0x38] sm:$0xff]  ;;  %v12699_v1 = vld [vmem:[#allocation16 + $0x40] sm:$0xff] }
 0x507   :  { %12048 = vmatpush3.bf16.msra.mxu0 %v12045_v17  ;;  %12018 = vmatprep.subr.bf16.mxu1 %v12017_v37  ;;  %v3711_v36 = vadd.f32 %v15192_v54, %v15190_v31  ;;  %v3712_v16 = vadd.f32 %v15208_v13, %v15206_v22  ;;  %v3713_v2 = vadd.f32 %v15202_v41, %v15200_v55  ;;  %v12698_v7 = vld [vmem:[#allocation16 + $0x38] sm:$0xff]  ;;  %v17595_v30 = vld [vmem:[#allocation101_spill] sm:$0xff] }
 0x508   :  { %12050 = vmatprep.subr.bf16.mxu0 %v12049_v12  ;;  %v12021_v60 = vpack.c.bf16 %v3661_v29, %v3660_v18  ;;  %v12053_v11 = vpack.c.bf16 %v3709_v57, %v3708_v48  ;;  %v3714_v6 = vadd.f32 %v15222_v52, %v15220_v14  ;;  %v3715_v15 = vadd.f32 %v15218_v35, %v15216_v46 }
 0x509   :  { %12020 = vmatpush3.bf16.msra.mxu1 %v12017_v37  ;;  %v12057_v56 = vpack.c.bf16 %v3711_v36, %v3710_v42  ;;  %v12061_v17 = vpack.c.bf16 %v3713_v2, %v3712_v16  ;;  %v3716_v31 = vadd.f32 %v15238_v47, %v15236_v39  ;;  %v3717_v54 = vadd.f32 %v15231_v19, %v15229_v0  ;;  %v12702_v37 = vld [vmem:[#allocation16 + $0x48] sm:$0xff]  ;;  %v12705_v42 = vld [vmem:[#allocation15 + $0x60] sm:$0xff]  ;;  %v12706_v36 = vld [vmem:[#allocation16 + $0x58] sm:$0xff] }
 0x50a   :  { %12022 = vmatprep.subr.bf16.mxu1 %v12021_v60  ;;  %v12065_v55 = vpack.c.bf16 %v3715_v15, %v3714_v6  ;;  %v3718_v41 = vadd.f32 %v15254_v8, %v15252_v33  ;;  %v3719_v22 = vadd.f32 %v15247_v40, %v15245_v45  ;;  %v3720_v13 = vadd.f32 %v15270_v3, %v15268_v50  ;;  %v17591_v40 = vld [vmem:[#allocation90_spill] sm:$0xff]  ;;  %v12684_v8 = vld [vmem:[#allocation15 + $0x8] sm:$0xff]  ;;  %v17592_v3 = vld [vmem:[#allocation92_spill] sm:$0xff] }
 0x50b   :  { %12052 = vmatpush3.bf16.msra.mxu0 %v12049_v12  ;;  %v12069_v46 = vpack.c.bf16 %v3717_v54, %v3716_v31  ;;  %v3721_v35 = vadd.f32 %v15263_v10, %v15261_v24  ;;  %v3722_v14 = vadd.f32 %v3706_v25, %v3658_v21  ;;  %v3723_v52 = vadd.f32 %v3707_v44, %v3659_v58  ;;  %v12685_v24 = vld [vmem:[#allocation15 + $0x10] sm:$0xff]  ;;  %v12686_v10 = vld [vmem:[#allocation16 + $0x8] sm:$0xff]  ;;  %v12688_v58 = vld [vmem:[#allocation15 + $0x18] sm:$0xff] }
 0x50c   :  { %12054 = vmatprep.subr.bf16.mxu0 %v12053_v11  ;;  %v12073_v0 = vpack.c.bf16 %v3719_v22, %v3718_v41  ;;  %v3724_v19 = vadd.f32 %v3708_v48, %v3660_v18  ;;  %v3725_v39 = vadd.f32 %v3709_v57, %v3661_v29  ;;  %v12687_v50 = vld [vmem:[#allocation16 + $0x10] sm:$0xff]  ;;  %v12689_v44 = vld [vmem:[#allocation15 + $0x20] sm:$0xff]  ;;  %v12690_v21 = vld [vmem:[#allocation16 + $0x18] sm:$0xff] }
 0x50d   :  { %12024 = vmatpush3.bf16.msra.mxu1 %v12021_v60  ;;  %v15310_v47 = vpack.c.bf16 %v3721_v35, %v3720_v13  ;;  %v15312_v33 = vpack.c.bf16 %v3723_v52, %v3722_v14  ;;  %v12691_v25 = vld [vmem:[#allocation16 + $0x20] sm:$0xff]  ;;  %v12700_v29 = vld [vmem:[#allocation15 + $0x48] sm:$0xff]  ;;  %v12701_v57 = vld [vmem:[#allocation15 + $0x50] sm:$0xff] }
 0x50e   :  { %12058 = vmatprep.subr.bf16.mxu1 %v12057_v56  ;;  %v15314_v45 = vpack.c.bf16 %v3725_v39, %v3724_v19  ;;  %v12703_v18 = vld [vmem:[#allocation16 + $0x50] sm:$0xff]  ;;  %v17596_v48 = vld [vmem:[#allocation45_spill] sm:$0xff]  ;;  %v12704_v12 = vld [vmem:[#allocation15 + $0x58] sm:$0xff] }
 0x50f   :  { %12056 = vmatpush3.bf16.msra.mxu0 %v12053_v11  ;;  %v12707_v16 = vld [vmem:[#allocation16 + $0x60] sm:$0xff]  ;;  %v17597_v2 = vld [vmem:[#allocation47_spill] sm:$0xff]  ;;  %v12708_v60 = vld [vmem:[#allocation15 + $0x68] sm:$0xff] }
 0x510   :  { %12090 = vmatprep.subr.bf16.mxu0 %v17591_v40  ;;  %10418 = vmatmul.mubr.f32.vlgmr.msra.gmra.mrb[192].mxu1 %v12684_v8  ;;  %v12709_v11 = vld [vmem:[#allocation15 + $0x70] sm:$0xff]  ;;  %v12710_v6 = vld [vmem:[#allocation16 + $0x68] sm:$0xff]  ;;  %v12713_v31 = vld [vmem:[#allocation18] sm:$0xff] }
 0x511   :  { %12060 = vmatpush3.bf16.msra.mxu1 %v12057_v56  ;;  %10420 = vmatprep.mubr.f32.mxu1 %v12685_v24  ;;  %v12711_v15 = vld [vmem:[#allocation16 + $0x70] sm:$0xff]  ;;  %v17598_v56 = vld [vmem:[#allocation49_spill] sm:$0xff]  ;;  %v12714_v54 = vld [vmem:[#allocation16 + $0x78] sm:$0xff] }
 0x512   :  { %10474 = vmatmul.mubr.f32.vlgmr.msra.gmra.mrb[144].mxu0 %v12686_v10  ;;  %12062 = vmatprep.subr.bf16.mxu1 %v12061_v17  ;;  %v12715_v41 = vld [vmem:[#allocation4] sm:$0xff]  ;;  %v17600_v22 = vld [vmem:[#allocation93_spill] sm:$0xff]  ;;  %v17601_v14 = vld [vmem:[#allocation94_spill] sm:$0xff] }
 0x513   :  { %12092 = vmatpush3.bf16.msra.mxu0 %v17591_v40  ;;  %10476 = vmatprep.mubr.f32.mxu0 %v12687_v50  ;;  %v12716_v13 = vld [vmem:[#allocation18 + $0x8] sm:$0xff]  ;;  %v12719_v52 = vld [vmem:[#allocation4 + $0x10] sm:$0xff]  ;;  %v12720_v19 = vld [vmem:[#allocation18 + $0x18] sm:$0xff] }
 0x514   :  { %12094 = vmatprep.subr.bf16.mxu0 %v17592_v3  ;;  %10421 = vmatmul.mubr.f32.gmra.mrb[194].mxu1 %v12688_v58  ;;  %v12718_v35 = vld [vmem:[#allocation4 + $0x8] sm:$0xff]  ;;  %v12721_v39 = vld [vmem:[#allocation18 + $0x20] sm:$0xff]  ;;  %v17604_v40 = vld [vmem:[#allocation99_spill] sm:$0xff] }
 0x515   :  { %12064 = vmatpush3.bf16.msra.mxu1 %v12061_v17  ;;  %10423 = vmatprep.mubr.f32.mxu1 %v12689_v44  ;;  %v12712_v17 = vld [vmem:[#allocation15 + $0x78] sm:$0xff]  ;;  %v12724_v8 = vld [vmem:[#allocation18 + $0x28] sm:$0xff]  ;;  %v12725_v24 = vld [vmem:[#allocation18 + $0x30] sm:$0xff] }
 0x516   :  { %10477 = vmatmul.mubr.f32.gmra.mrb[146].mxu0 %v12690_v21  ;;  %12066 = vmatprep.subr.bf16.mxu1 %v12065_v55  ;;  %v12726_v10 = vld [vmem:[#allocation4 + $0x28] sm:$0xff]  ;;  %v17605_v50 = vld [vmem:[#allocation100_spill] sm:$0xff]  ;;  %v17606_v58 = vld [vmem:[#allocation102_spill] sm:$0xff] }
 0x517   :  { %12096 = vmatpush3.bf16.msra.mxu0 %v17592_v3  ;;  %10479 = vmatprep.mubr.f32.mxu0 %v12691_v25  ;;  %v12727_v3 = vld [vmem:[#allocation4 + $0x30] sm:$0xff]  ;;  %v12728_v44 = vld [vmem:[#allocation18 + $0x38] sm:$0xff]  ;;  %v12729_v21 = vld [vmem:[#allocation18 + $0x40] sm:$0xff] }
 0x518   :  { %12098 = vmatprep.subr.bf16.mxu0 %v17593_v20  ;;  %10424 = vmatmul.mubr.f32.gmra.mrb[196].mxu1 %v12692_v9  ;;  %v12730_v25 = vld [vmem:[#allocation4 + $0x38] sm:$0xff]  ;;  %v12731_v9 = vld [vmem:[#allocation4 + $0x40] sm:$0xff] }
 0x519   :  { %12068 = vmatpush3.bf16.msra.mxu1 %v12065_v55  ;;  %10426 = vmatprep.mubr.f32.mxu1 %v12693_v63  ;;  %v17599_v55 = vld [vmem:[#allocation91_spill] sm:$0xff] }
 0x51a   :  { %10480 = vmatmul.mubr.f32.gmra.mrb[148].mxu0 %v12694_v53  ;;  %12070 = vmatprep.subr.bf16.mxu1 %v12069_v46  ;;  %v17608_v63 = vld [vmem:[#allocation103_spill] sm:$0xff]  ;;  %v12732_v53 = vld [vmem:[#allocation18 + $0x48] sm:$0xff] }
 0x51b   :  { %12100 = vmatpush3.bf16.msra.mxu0 %v17593_v20  ;;  %10482 = vmatprep.mubr.f32.mxu0 %v12695_v43  ;;  %v17607_v20 = vld [vmem:[#allocation44_spill] sm:$0xff]  ;;  %v12733_v43 = vld [vmem:[#allocation18 + $0x50] sm:$0xff] }
 0x51c   :  { %12102 = vmatprep.subr.bf16.mxu0 %v17594_v5  ;;  %10427 = vmatmul.mubr.f32.gmra.mrb[198].mxu1 %v12696_v28  ;;  %v17609_v28 = vld [vmem:[#allocation46_spill] sm:$0xff] }
 0x51d   :  { %12072 = vmatpush3.bf16.msra.mxu1 %v12069_v46  ;;  %10429 = vmatprep.mubr.f32.mxu1 %v12697_v32  ;;  %v12717_v46 = vld [vmem:[#allocation18 + $0x10] sm:$0xff] }
 0x51e   :  { %10483 = vmatmul.mubr.f32.gmra.mrb[150].mxu0 %v12698_v7  ;;  %12074 = vmatprep.subr.bf16.mxu1 %v12073_v0  ;;  %v12735_v32 = vld [vmem:[#allocation4 + $0x50] sm:$0xff]  ;;  %v17610_v7 = vld [vmem:[#allocation104_spill] sm:$0xff] }
 0x51f   :  { %12104 = vmatpush3.bf16.msra.mxu0 %v17594_v5  ;;  %10485 = vmatprep.mubr.f32.mxu0 %v12699_v1  ;;  %v12734_v5 = vld [vmem:[#allocation4 + $0x48] sm:$0xff]  ;;  %v12736_v1 = vld [vmem:[#allocation18 + $0x58] sm:$0xff] }
 0x520   :  { %12106 = vmatprep.subr.bf16.mxu0 %v17595_v30  ;;  %10430 = vmatmul.mubr.f32.gmra.mrb[200].mxu1 %v12700_v29  ;;  %v12738_v29 = vld [vmem:[#allocation4 + $0x58] sm:$0xff] }
 0x521   :  { %12076 = vmatpush3.bf16.msra.mxu1 %v12073_v0  ;;  %10432 = vmatprep.mubr.f32.mxu1 %v12701_v57  ;;  %v17602_v0 = vld [vmem:[#allocation96_spill] sm:$0xff] }
 0x522   :  { %10486 = vmatmul.mubr.f32.gmra.mrb[152].mxu0 %v12702_v37  ;;  %12078 = vmatprep.subr.bf16.mxu1 %v15310_v47  ;;  %v17611_v57 = vld [vmem:[#allocation48_spill] sm:$0xff] }
 0x523   :  { %12108 = vmatpush3.bf16.msra.mxu0 %v17595_v30  ;;  %10488 = vmatprep.mubr.f32.mxu0 %v12703_v18  ;;  %v12737_v30 = vld [vmem:[#allocation18 + $0x60] sm:$0xff]  ;;  %v17612_v18 = vld [vmem:[#allocation105_spill] sm:$0xff] }
 0x524   :  { %12110 = vmatprep.subr.bf16.mxu0 %v17596_v48  ;;  %10433 = vmatmul.mubr.f32.gmra.mrb[202].mxu1 %v12704_v12  ;;  %v12739_v37 = vld [vmem:[#allocation4 + $0x60] sm:$0xff]  ;;  %v12741_v12 = vld [vmem:[#allocation18 + $0x70] sm:$0xff] }
 0x525   :  { %12080 = vmatpush3.bf16.msra.mxu1 %v15310_v47  ;;  %10435 = vmatprep.mubr.f32.mxu1 %v12705_v42  ;;  %v12722_v47 = vld [vmem:[#allocation4 + $0x18] sm:$0xff]  ;;  %v12742_v42 = vld [vmem:[#allocation4 + $0x68] sm:$0xff] }
 0x526   :  { %10489 = vmatmul.mubr.f32.gmra.mrb[154].mxu0 %v12706_v36  ;;  %12082 = vmatprep.subr.bf16.mxu1 %v15312_v33  ;;  %v17613_v36 = vld [vmem:[#allocation50_spill] sm:$0xff] }
 0x527   :  { %12112 = vmatpush3.bf16.msra.mxu0 %v17596_v48  ;;  %10491 = vmatprep.mubr.f32.mxu0 %v12707_v16  ;;  %v12740_v48 = vld [vmem:[#allocation18 + $0x68] sm:$0xff]  ;;  %v12743_v16 = vld [vmem:[#allocation4 + $0x70] sm:$0xff] }
 0x528   :  { %12114 = vmatprep.subr.bf16.mxu0 %v17597_v2  ;;  %10436 = vmatmul.mubr.f32.gmra.mrb[204].mxu1 %v12708_v60  ;;  %v12744_v60 = vld [vmem:[#allocation18 + $0x78] sm:$0xff] }
 0x529   :  { %12084 = vmatpush3.bf16.msra.mxu1 %v15312_v33  ;;  %10438 = vmatprep.mubr.f32.mxu1 %v12709_v11  ;;  %v17603_v33 = vld [vmem:[#allocation97_spill] sm:$0xff]  ;;  %v12745_v11 = vld [vmem:[#allocation7] sm:$0xff] }
 0x52a   :  { %10492 = vmatmul.mubr.f32.gmra.mrb[156].mxu0 %v12710_v6  ;;  %12086 = vmatprep.subr.bf16.mxu1 %v15314_v45  ;;  %v12746_v6 = vld [vmem:[#allocation4 + $0x78] sm:$0xff] }
 0x52b   :  { %12116 = vmatpush3.bf16.msra.mxu0 %v17597_v2  ;;  %10494 = vmatprep.mubr.f32.mxu0 %v12711_v15  ;;  %v17614_v2 = vld [vmem:[#allocation51_spill] sm:$0xff]  ;;  %v12747_v15 = vld [vmem:[#allocation9] sm:$0xff] }
 0x52c   :  { %12118 = vmatprep.subr.bf16.mxu0 %v17598_v56  ;;  %10439 = vmatmul.mubr.f32.gmra.mrb[206].mxu1 %v12712_v17  ;;  %v12749_v17 = vld [vmem:[#allocation7 + $0x10] sm:$0xff] }
 0x52d   :  { %12088 = vmatpush3.bf16.msra.mxu1 %v15314_v45  ;;  %10529 = vmatprep.mubr.f32.mxu1 %v12713_v31  ;;  %v12723_v45 = vld [vmem:[#allocation4 + $0x20] sm:$0xff]  ;;  %v12750_v31 = vld [vmem:[#allocation9 + $0x8] sm:$0xff] }
 0x52e   :  { %10495 = vmatmul.mubr.f32.gmra.mrb[158].mxu0 %v12714_v54  ;;  %12122 = vmatprep.subr.bf16.mxu1 %v17599_v55  ;;  %v12751_v54 = vld [vmem:[#allocation9 + $0x10] sm:$0xff] }
 0x52f   :  { %12120 = vmatpush3.bf16.msra.mxu0 %v17598_v56  ;;  %10585 = vmatprep.mubr.f32.mxu0 %v12715_v41  ;;  %v12748_v56 = vld [vmem:[#allocation7 + $0x8] sm:$0xff]  ;;  %v12753_v41 = vld [vmem:[#allocation7 + $0x20] sm:$0xff] }
 0x530   :  { %12154 = vmatprep.subr.bf16.mxu0 %v17600_v22  ;;  %10530 = vmatmul.mubr.f32.vlgmr.msra.gmra.mrb[208].mxu1 %v12716_v13  ;;  %v12755_v13 = vld [vmem:[#allocation9 + $0x20] sm:$0xff] }
 0x531   :  { %12124 = vmatpush3.bf16.msra.mxu1 %v17599_v55  ;;  %10532 = vmatprep.mubr.f32.mxu1 %v12717_v46  ;;  %v12752_v55 = vld [vmem:[#allocation7 + $0x18] sm:$0xff]  ;;  %v12756_v46 = vld [vmem:[#allocation7 + $0x28] sm:$0xff] }
 0x532   :  { %10586 = vmatmul.mubr.f32.vlgmr.msra.gmra.mrb[160].mxu0 %v12718_v35  ;;  %12126 = vmatprep.subr.bf16.mxu1 %v17601_v14  ;;  %v12757_v35 = vld [vmem:[#allocation7 + $0x30] sm:$0xff] }
 0x533   :  { %12156 = vmatpush3.bf16.msra.mxu0 %v17600_v22  ;;  %10588 = vmatprep.mubr.f32.mxu0 %v12719_v52  ;;  %v12754_v22 = vld [vmem:[#allocation9 + $0x18] sm:$0xff]  ;;  %v12759_v52 = vld [vmem:[#allocation9 + $0x30] sm:$0xff] }
 0x534   :  { %12158 = vmatprep.subr.bf16.mxu0 %v17602_v0  ;;  %10533 = vmatmul.mubr.f32.gmra.mrb[210].mxu1 %v12720_v19  ;;  %v12761_v19 = vld [vmem:[#allocation7 + $0x40] sm:$0xff] }
 0x535   :  { %12128 = vmatpush3.bf16.msra.mxu1 %v17601_v14  ;;  %10535 = vmatprep.mubr.f32.mxu1 %v12721_v39  ;;  %v12758_v14 = vld [vmem:[#allocation9 + $0x28] sm:$0xff]  ;;  %v12762_v39 = vld [vmem:[#allocation9 + $0x38] sm:$0xff] }
 0x536   :  { %10589 = vmatmul.mubr.f32.gmra.mrb[162].mxu0 %v12722_v47  ;;  %12130 = vmatprep.subr.bf16.mxu1 %v17603_v33  ;;  %v12763_v47 = vld [vmem:[#allocation9 + $0x40] sm:$0xff] }
 0x537   :  { %12160 = vmatpush3.bf16.msra.mxu0 %v17602_v0  ;;  %10591 = vmatprep.mubr.f32.mxu0 %v12723_v45  ;;  %v12760_v0 = vld [vmem:[#allocation7 + $0x38] sm:$0xff]  ;;  %v12765_v45 = vld [vmem:[#allocation7 + $0x50] sm:$0xff] }
 0x538   :  { %12162 = vmatprep.subr.bf16.mxu0 %v17604_v40  ;;  %10536 = vmatmul.mubr.f32.gmra.mrb[212].mxu1 %v12724_v8  ;;  %v12767_v8 = vld [vmem:[#allocation9 + $0x50] sm:$0xff] }
 0x539   :  { %12132 = vmatpush3.bf16.msra.mxu1 %v17603_v33  ;;  %10538 = vmatprep.mubr.f32.mxu1 %v12725_v24  ;;  %v12764_v33 = vld [vmem:[#allocation7 + $0x48] sm:$0xff]  ;;  %v12768_v24 = vld [vmem:[#allocation7 + $0x58] sm:$0xff] }
 0x53a   :  { %10592 = vmatmul.mubr.f32.gmra.mrb[164].mxu0 %v12726_v10  ;;  %12134 = vmatprep.subr.bf16.mxu1 %v17605_v50  ;;  %v12769_v10 = vld [vmem:[#allocation7 + $0x60] sm:$0xff] }
 0x53b   :  { %12164 = vmatpush3.bf16.msra.mxu0 %v17604_v40  ;;  %10594 = vmatprep.mubr.f32.mxu0 %v12727_v3  ;;  %v12766_v40 = vld [vmem:[#allocation9 + $0x48] sm:$0xff]  ;;  %v12771_v3 = vld [vmem:[#allocation9 + $0x60] sm:$0xff] }
 0x53c   :  { %12166 = vmatprep.subr.bf16.mxu0 %v17606_v58  ;;  %10539 = vmatmul.mubr.f32.gmra.mrb[214].mxu1 %v12728_v44  ;;  %v12773_v44 = vld [vmem:[#allocation7 + $0x70] sm:$0xff] }
 0x53d   :  { %12136 = vmatpush3.bf16.msra.mxu1 %v17605_v50  ;;  %10541 = vmatprep.mubr.f32.mxu1 %v12729_v21  ;;  %v12770_v50 = vld [vmem:[#allocation9 + $0x58] sm:$0xff]  ;;  %v12774_v21 = vld [vmem:[#allocation9 + $0x68] sm:$0xff] }
 0x53e   :  { %10595 = vmatmul.mubr.f32.gmra.mrb[166].mxu0 %v12730_v25  ;;  %12138 = vmatprep.subr.bf16.mxu1 %v17607_v20  ;;  %v12775_v25 = vld [vmem:[#allocation9 + $0x70] sm:$0xff] }
 0x53f   :  { %12168 = vmatpush3.bf16.msra.mxu0 %v17606_v58  ;;  %10597 = vmatprep.mubr.f32.mxu0 %v12731_v9  ;;  %v12772_v58 = vld [vmem:[#allocation7 + $0x68] sm:$0xff]  ;;  %v12777_v9 = vld [vmem:[#allocation15] sm:$0xff] }
 0x540   :  { %12170 = vmatprep.subr.bf16.mxu0 %v17608_v63  ;;  %10542 = vmatmul.mubr.f32.gmra.mrb[216].mxu1 %v12732_v53  ;;  %v12779_v53 = vld [vmem:[#allocation16] sm:$0xff] }
 0x541   :  { %12140 = vmatpush3.bf16.msra.mxu1 %v17607_v20  ;;  %10544 = vmatprep.mubr.f32.mxu1 %v12733_v43  ;;  %v12776_v20 = vld [vmem:[#allocation7 + $0x78] sm:$0xff] }
 0x542   :  { %10598 = vmatmul.mubr.f32.gmra.mrb[168].mxu0 %v12734_v5  ;;  %12142 = vmatprep.subr.bf16.mxu1 %v17609_v28 }
 0x543   :  { %12172 = vmatpush3.bf16.msra.mxu0 %v17608_v63  ;;  %10600 = vmatprep.mubr.f32.mxu0 %v12735_v32  ;;  %v12778_v63 = vld [vmem:[#allocation9 + $0x78] sm:$0xff] }
 0x544   :  { %12174 = vmatprep.subr.bf16.mxu0 %v17610_v7  ;;  %10545 = vmatmul.mubr.f32.gmra.mrb[218].mxu1 %v12736_v1 }
 0x545   :  { %12144 = vmatpush3.bf16.msra.mxu1 %v17609_v28  ;;  %10547 = vmatprep.mubr.f32.mxu1 %v12737_v30 }
 0x546   :  { %10601 = vmatmul.mubr.f32.gmra.mrb[170].mxu0 %v12738_v29  ;;  %12146 = vmatprep.subr.bf16.mxu1 %v17611_v57 }
 0x547   :  { %12176 = vmatpush3.bf16.msra.mxu0 %v17610_v7  ;;  %10603 = vmatprep.mubr.f32.mxu0 %v12739_v37 }
 0x548   :  { %12178 = vmatprep.subr.bf16.mxu0 %v17612_v18  ;;  %10548 = vmatmul.mubr.f32.gmra.mrb[220].mxu1 %v12740_v48 }
 0x549   :  { %12148 = vmatpush3.bf16.msra.mxu1 %v17611_v57  ;;  %10550 = vmatprep.mubr.f32.mxu1 %v12741_v12 }
 0x54a   :  { %10604 = vmatmul.mubr.f32.gmra.mrb[172].mxu0 %v12742_v42  ;;  %12150 = vmatprep.subr.bf16.mxu1 %v17613_v36 }
 0x54b   :  { %12180 = vmatpush3.bf16.msra.mxu0 %v17612_v18  ;;  %10606 = vmatprep.mubr.f32.mxu0 %v12743_v16 }
 0x54c   :  { %12182 = vmatprep.subr.bf16.mxu0 %v17614_v2  ;;  %10551 = vmatmul.mubr.f32.gmra.mrb[222].mxu1 %v12744_v60 }
 0x54d   :  { %12152 = vmatpush3.bf16.msra.mxu1 %v17613_v36  ;;  %10641 = vmatprep.mubr.f32.mxu1 %v12745_v11 }
 0x54e   :  { %10607 = vmatmul.mubr.f32.gmra.mrb[174].mxu0 %v12746_v6 }
 0x54f   :  { %12184 = vmatpush3.bf16.msra.mxu0 %v17614_v2  ;;  %10697 = vmatprep.mubr.f32.mxu0 %v12747_v15 }
 0x550   :  { %10642 = vmatmul.mubr.f32.vlgmr.msra.gmra.mrb[224].mxu1 %v12748_v56 }
 0x551   :  { %10644 = vmatprep.mubr.f32.mxu1 %v12749_v17 }
 0x552   :  { %10698 = vmatmul.mubr.f32.vlgmr.msra.gmra.mrb[176].mxu0 %v12750_v31 }
 0x553   :  { %10700 = vmatprep.mubr.f32.mxu0 %v12751_v54 }
 0x554   :  { %10645 = vmatmul.mubr.f32.gmra.mrb[226].mxu1 %v12752_v55 }
 0x555   :  { %10647 = vmatprep.mubr.f32.mxu1 %v12753_v41 }
 0x556   :  { %10701 = vmatmul.mubr.f32.gmra.mrb[178].mxu0 %v12754_v22 }
 0x557   :  { %10703 = vmatprep.mubr.f32.mxu0 %v12755_v13 }
 0x558   :  { %10648 = vmatmul.mubr.f32.gmra.mrb[228].mxu1 %v12756_v46 }
 0x559   :  { %10650 = vmatprep.mubr.f32.mxu1 %v12757_v35 }
 0x55a   :  { %10704 = vmatmul.mubr.f32.gmra.mrb[180].mxu0 %v12758_v14 }
 0x55b   :  { %10706 = vmatprep.mubr.f32.mxu0 %v12759_v52 }
 0x55c   :  { %10651 = vmatmul.mubr.f32.gmra.mrb[230].mxu1 %v12760_v0 }
 0x55d   :  { %10653 = vmatprep.mubr.f32.mxu1 %v12761_v19 }
 0x55e   :  { %10707 = vmatmul.mubr.f32.gmra.mrb[182].mxu0 %v12762_v39 }
 0x55f   :  { %10709 = vmatprep.mubr.f32.mxu0 %v12763_v47 }
 0x560   :  { %10654 = vmatmul.mubr.f32.gmra.mrb[232].mxu1 %v12764_v33 }
 0x561   :  { %10656 = vmatprep.mubr.f32.mxu1 %v12765_v45 }
 0x562   :  { %10710 = vmatmul.mubr.f32.gmra.mrb[184].mxu0 %v12766_v40 }
 0x563   :  { %10712 = vmatprep.mubr.f32.mxu0 %v12767_v8 }
 0x564   :  { %10657 = vmatmul.mubr.f32.gmra.mrb[234].mxu1 %v12768_v24 }
 0x565   :  { %10659 = vmatprep.mubr.f32.mxu1 %v12769_v10 }
 0x566   :  { %10713 = vmatmul.mubr.f32.gmra.mrb[186].mxu0 %v12770_v50 }
 0x567   :  { %10715 = vmatprep.mubr.f32.mxu0 %v12771_v3 }
 0x568   :  { %10660 = vmatmul.mubr.f32.gmra.mrb[236].mxu1 %v12772_v58 }
 0x569   :  { %10662 = vmatprep.mubr.f32.mxu1 %v12773_v44 }
 0x56a   :  { %10716 = vmatmul.mubr.f32.gmra.mrb[188].mxu0 %v12774_v21 }
 0x56b   :  { %10718 = vmatprep.mubr.f32.mxu0 %v12775_v25 }
 0x56c   :  { %10663 = vmatmul.mubr.f32.gmra.mrb[238].mxu1 %v12776_v20 }
 0x56d   :  { %10753 = vmatprep.mubr.f32.mxu1 %v12777_v9 }
 0x56e   :  { %10719 = vmatmul.mubr.f32.gmra.mrb[190].mxu0 %v12778_v63 }
 0x56f   :  { %10809 = vmatprep.mubr.f32.mxu0 %v12779_v53 }
 0x5e3   :  { %v10419_v43 = vpop.f32.mrb[192].mxu1 }
 0x5e4   :  { %v3792_v5 = vpop.f32.mrb[193].mxu1 }
 0x5e5   :  { %v10475_v28 = vpop.f32.mrb[144].mxu0 }
 0x5e6   :  { %v3937_v32 = vpop.f32.mrb[145].mxu0  ;;  %v15370_v7 = vsub.f32 %v10419_v43, %v10475_v28 }
 0x5e7   :  { %v15372_v1 = vsub.f32 %v3792_v5, %v3937_v32  ;;  %v10422_v30 = vpop.f32.mrb[194].mxu1 }
 0x5e8   :  { %17615 = vst [vmem:[#allocation149_spill] sm:$0xff] %v15370_v7  ;;  %v3802_v29 = vpop.f32.mrb[195].mxu1 }
 0x5e9   :  { %17616 = vst [vmem:[#allocation123_spill] sm:$0xff] %v15372_v1  ;;  %v10478_v57 = vpop.f32.mrb[146].mxu0  ;;  %v12806_v1 = vld [vmem:[#allocation24 + $0x60] sm:$0xff] }
 0x5ea   :  { %v3947_v37 = vpop.f32.mrb[147].mxu0  ;;  %v15374_v18 = vsub.f32 %v10422_v30, %v10478_v57 }
 0x5eb   :  { %v15376_v48 = vsub.f32 %v3802_v29, %v3947_v37  ;;  %v10425_v12 = vpop.f32.mrb[196].mxu1 }
 0x5ec   :  { %17617 = vst [vmem:[#allocation124_spill] sm:$0xff] %v15374_v18  ;;  %v3812_v42 = vpop.f32.mrb[197].mxu1 }
 0x5ed   :  { %17618 = vst [vmem:[#allocation132_spill] sm:$0xff] %v15376_v48  ;;  %v10481_v36 = vpop.f32.mrb[148].mxu0 }
 0x5ee   :  { %v3957_v16 = vpop.f32.mrb[149].mxu0  ;;  %v15378_v2 = vsub.f32 %v10425_v12, %v10481_v36 }
 0x5ef   :  { %v15380_v60 = vsub.f32 %v3812_v42, %v3957_v16  ;;  %v10428_v11 = vpop.f32.mrb[198].mxu1 }
 0x5f0   :  { %17619 = vst [vmem:[#allocation150_spill] sm:$0xff] %v15378_v2  ;;  %v3822_v6 = vpop.f32.mrb[199].mxu1 }
 0x5f1   :  { %17620 = vst [vmem:[#allocation151_spill] sm:$0xff] %v15380_v60  ;;  %v10484_v15 = vpop.f32.mrb[150].mxu0  ;;  %v12799_v60 = vld [vmem:[#allocation25 + $0x40] sm:$0xff] }
 0x5f2   :  { %v3967_v56 = vpop.f32.mrb[151].mxu0  ;;  %v15382_v17 = vsub.f32 %v10428_v11, %v10484_v15 }
 0x5f3   :  { %v15384_v31 = vsub.f32 %v3822_v6, %v3967_v56  ;;  %v15386_v54 = vpop.f32.mrb[200].mxu1 }
 0x5f4   :  { %17621 = vst [vmem:[#allocation133_spill] sm:$0xff] %v15382_v17  ;;  %v15388_v55 = vpop.f32.mrb[201].mxu1 }
 0x5f5   :  { %17622 = vst [vmem:[#allocation153_spill] sm:$0xff] %v15384_v31  ;;  %v10487_v41 = vpop.f32.mrb[152].mxu0 }
 0x5f6   :  { %v3977_v22 = vpop.f32.mrb[153].mxu0  ;;  %v15391_v13 = vsub.f32 %v15386_v54, %v10487_v41 }
 0x5f7   :  { %v15394_v46 = vsub.f32 %v15388_v55, %v3977_v22  ;;  %v15396_v35 = vpop.f32.mrb[202].mxu1 }
 0x5f8   :  { %17623 = vst [vmem:[#allocation154_spill] sm:$0xff] %v15391_v13  ;;  %v15398_v14 = vpop.f32.mrb[203].mxu1 }
 0x5f9   :  { %17624 = vst [vmem:[#allocation146_spill] sm:$0xff] %v15394_v46  ;;  %v10490_v52 = vpop.f32.mrb[154].mxu0 }
 0x5fa   :  { %v3987_v0 = vpop.f32.mrb[155].mxu0  ;;  %v15401_v19 = vsub.f32 %v15396_v35, %v10490_v52 }
 0x5fb   :  { %v15404_v39 = vsub.f32 %v15398_v14, %v3987_v0  ;;  %v15406_v47 = vpop.f32.mrb[204].mxu1 }
 0x5fc   :  { %17625 = vst [vmem:[#allocation125_spill] sm:$0xff] %v15401_v19  ;;  %v15408_v33 = vpop.f32.mrb[205].mxu1 }
 0x5fd   :  { %17626 = vst [vmem:[#allocation126_spill] sm:$0xff] %v15404_v39  ;;  %v15410_v45 = vpop.f32.mrb[156].mxu0 }
 0x5fe   :  { %v15412_v40 = vpop.f32.mrb[157].mxu0  ;;  %v15416_v8 = vsub.f32 %v15406_v47, %v15410_v45 }
 0x5ff   :  { %v15420_v24 = vsub.f32 %v15408_v33, %v15412_v40  ;;  %v15422_v10 = vpop.f32.mrb[206].mxu1 }
 0x600   :  { %17627 = vst [vmem:[#allocation134_spill] sm:$0xff] %v15416_v8  ;;  %v15424_v50 = vpop.f32.mrb[207].mxu1 }
 0x601   :  { %17628 = vst [vmem:[#allocation155_spill] sm:$0xff] %v15420_v24  ;;  %v15426_v3 = vpop.f32.mrb[158].mxu0 }
 0x602   :  { %v15428_v58 = vpop.f32.mrb[159].mxu0  ;;  %v15432_v44 = vsub.f32 %v15422_v10, %v15426_v3 }
 0x603   :  { %v15436_v21 = vsub.f32 %v15424_v50, %v15428_v58  ;;  %v10531_v25 = vpop.f32.mrb[208].mxu1 }
 0x604   :  { %17629 = vst [vmem:[#allocation136_spill] sm:$0xff] %v15432_v44  ;;  %v4178_v20 = vsub.f32 %v10531_v25, %v10419_v43  ;;  %v4082_v9 = vpop.f32.mrb[209].mxu1 }
 0x605   :  { %17630 = vst [vmem:[#allocation156_spill] sm:$0xff] %v15436_v21  ;;  %v15438_v63 = vpop.f32.mrb[160].mxu0  ;;  %v4177_v53 = vsub.f32 %v4082_v9, %v3792_v5 }
 0x606   :  { %v15440_v8 = vpop.f32.mrb[161].mxu0  ;;  %v15442_v24 = vsub.f32 %v4178_v20, %v10475_v28 }
 0x607   :  { %v15444_v19 = vsub.f32 %v4177_v53, %v3937_v32  ;;  %v10534_v39 = vpop.f32.mrb[210].mxu1 }
 0x608   :  { %17631 = vst [vmem:[#allocation157_spill] sm:$0xff] %v15442_v24  ;;  %v4180_v13 = vsub.f32 %v10534_v39, %v10422_v30  ;;  %v4092_v46 = vpop.f32.mrb[211].mxu1 }
 0x609   :  { %17632 = vst [vmem:[#allocation152_spill] sm:$0xff] %v15444_v19  ;;  %v15446_v44 = vpop.f32.mrb[162].mxu0  ;;  %v4179_v17 = vsub.f32 %v4092_v46, %v3802_v29 }
 0x60a   :  { %v15448_v31 = vpop.f32.mrb[163].mxu0  ;;  %v15450_v21 = vsub.f32 %v4180_v13, %v10478_v57 }
 0x60b   :  { %v15452_v43 = vsub.f32 %v4179_v17, %v3947_v37  ;;  %v10537_v25 = vpop.f32.mrb[212].mxu1 }
 0x60c   :  { %17633 = vst [vmem:[#allocation158_spill] sm:$0xff] %v15450_v21  ;;  %v4182_v5 = vsub.f32 %v10537_v25, %v10425_v12  ;;  %v4102_v9 = vpop.f32.mrb[213].mxu1  ;;  %v12786_v21 = vld [vmem:[#allocation24 + $0x10] sm:$0xff] }
 0x60d   :  { %17634 = vst [vmem:[#allocation66_spill] sm:$0xff] %v15452_v43  ;;  %v15454_v2 = vpop.f32.mrb[164].mxu0  ;;  %v4181_v28 = vsub.f32 %v4102_v9, %v3812_v42 }
 0x60e   :  { %v15456_v32 = vpop.f32.mrb[165].mxu0  ;;  %v15458_v20 = vsub.f32 %v4182_v5, %v10481_v36 }
 0x60f   :  { %v15460_v30 = vsub.f32 %v4181_v28, %v3957_v16  ;;  %v10540_v39 = vpop.f32.mrb[214].mxu1 }
 0x610   :  { %17635 = vst [vmem:[#allocation68_spill] sm:$0xff] %v15458_v20  ;;  %v4184_v29 = vsub.f32 %v10540_v39, %v10428_v11  ;;  %v4112_v46 = vpop.f32.mrb[215].mxu1 }
 0x611   :  { %17636 = vst [vmem:[#allocation71_spill] sm:$0xff] %v15460_v30  ;;  %v15462_v53 = vpop.f32.mrb[166].mxu0  ;;  %v4183_v57 = vsub.f32 %v4112_v46, %v3822_v6 }
 0x612   :  { %v15464_v37 = vpop.f32.mrb[167].mxu0  ;;  %v15466_v17 = vsub.f32 %v4184_v29, %v10484_v15 }
 0x613   :  { %v15468_v12 = vsub.f32 %v4183_v57, %v3967_v56  ;;  %v10543_v13 = vpop.f32.mrb[216].mxu1 }
 0x614   :  { %17637 = vst [vmem:[#allocation74_spill] sm:$0xff] %v15466_v17  ;;  %v4186_v42 = vsub.f32 %v10543_v13, %v15386_v54  ;;  %v4122_v25 = vpop.f32.mrb[217].mxu1 }
 0x615   :  { %17638 = vst [vmem:[#allocation77_spill] sm:$0xff] %v15468_v12  ;;  %v15471_v36 = vpop.f32.mrb[168].mxu0  ;;  %v4185_v16 = vsub.f32 %v4122_v25, %v15388_v55  ;;  %v12785_v12 = vld [vmem:[#allocation25 + $0x18] sm:$0xff] }
 0x616   :  { %v15474_v5 = vpop.f32.mrb[169].mxu0  ;;  %v15476_v11 = vsub.f32 %v4186_v42, %v10487_v41 }
 0x617   :  { %v15478_v9 = vsub.f32 %v4185_v16, %v3977_v22  ;;  %v10546_v6 = vpop.f32.mrb[218].mxu1 }
 0x618   :  { %17639 = vst [vmem:[#allocation80_spill] sm:$0xff] %v15476_v11  ;;  %v4188_v15 = vsub.f32 %v10546_v6, %v15396_v35  ;;  %v4132_v28 = vpop.f32.mrb[219].mxu1 }
 0x619   :  { %17640 = vst [vmem:[#allocation83_spill] sm:$0xff] %v15478_v9  ;;  %v15481_v56 = vpop.f32.mrb[170].mxu0  ;;  %v4187_v39 = vsub.f32 %v4132_v28, %v15398_v14 }
 0x61a   :  { %v15484_v54 = vpop.f32.mrb[171].mxu0  ;;  %v15486_v29 = vsub.f32 %v4188_v15, %v10490_v52 }
 0x61b   :  { %v15488_v46 = vsub.f32 %v4187_v39, %v3987_v0  ;;  %v10549_v55 = vpop.f32.mrb[220].mxu1 }
 0x61c   :  { %17641 = vst [vmem:[#allocation86_spill] sm:$0xff] %v15486_v29  ;;  %v4190_v41 = vsub.f32 %v10549_v55, %v15406_v47  ;;  %v4142_v57 = vpop.f32.mrb[221].mxu1 }
 0x61d   :  { %17642 = vst [vmem:[#allocation67_spill] sm:$0xff] %v15488_v46  ;;  %v15491_v22 = vpop.f32.mrb[172].mxu0  ;;  %v4189_v13 = vsub.f32 %v4142_v57, %v15408_v33 }
 0x61e   :  { %v15494_v35 = vpop.f32.mrb[173].mxu0  ;;  %v15497_v42 = vsub.f32 %v4190_v41, %v15410_v45 }
 0x61f   :  { %v15500_v14 = vsub.f32 %v4189_v13, %v15412_v40  ;;  %v10552_v52 = vpop.f32.mrb[222].mxu1 }
 0x620   :  { %17643 = vst [vmem:[#allocation69_spill] sm:$0xff] %v15497_v42  ;;  %v4192_v0 = vsub.f32 %v10552_v52, %v15422_v10  ;;  %v4152_v25 = vpop.f32.mrb[223].mxu1  ;;  %v12780_v52 = vld [vmem:[#allocation24 + $0x8] sm:$0xff] }
 0x621   :  { %17644 = vst [vmem:[#allocation70_spill] sm:$0xff] %v15500_v14  ;;  %v15503_v16 = vpop.f32.mrb[174].mxu0  ;;  %v4191_v47 = vsub.f32 %v4152_v25, %v15424_v50  ;;  %v12783_v14 = vld [vmem:[#allocation25] sm:$0xff] }
 0x622   :  { %v15506_v6 = vpop.f32.mrb[175].mxu0  ;;  %v15509_v33 = vsub.f32 %v4192_v0, %v15426_v3  ;;  %v12781_v0 = vld [vmem:[#allocation25 + $0x8] sm:$0xff] }
 0x623   :  { %v15512_v15 = vsub.f32 %v4191_v47, %v15428_v58  ;;  %v10643_v45 = vpop.f32.mrb[224].mxu1 }
 0x624   :  { %17645 = vst [vmem:[#allocation72_spill] sm:$0xff] %v15509_v33  ;;  %v4693_v40 = vsub.f32 %v15438_v63, %v10643_v45  ;;  %v4468_v28 = vpop.f32.mrb[225].mxu1 }
 0x625   :  { %17646 = vst [vmem:[#allocation73_spill] sm:$0xff] %v15512_v15  ;;  %v10699_v39 = vpop.f32.mrb[176].mxu0  ;;  %v4692_v10 = vsub.f32 %v15440_v8, %v4468_v28  ;;  %v12782_v15 = vld [vmem:[#allocation24] sm:$0xff] }
 0x626   :  { %v4709_v55 = vsub.f32 %v10699_v39, %v15438_v63  ;;  %v4613_v41 = vpop.f32.mrb[177].mxu0  ;;  %v4741_v3 = vmul.f32 %v12780_v52, %v4693_v40  ;;  %v4805_v25 = vmul.f32 %v12781_v0, %v4693_v40 }
 0x627   :  { %v4708_v50 = vsub.f32 %v4613_v41, %v15440_v8  ;;  %v10646_v57 = vpop.f32.mrb[226].mxu1  ;;  %v4740_v42 = vmul.f32 %v12782_v15, %v4692_v10  ;;  %v4804_v29 = vmul.f32 %v12783_v14, %v4692_v10 }
 0x628   :  { %v4725_v13 = vsub.f32 %v4709_v55, %v10643_v45  ;;  %v4695_v58 = vsub.f32 %v15446_v44, %v10646_v57  ;;  %v4478_v47 = vpop.f32.mrb[227].mxu1  ;;  %v12784_v55 = vld [vmem:[#allocation24 + $0x18] sm:$0xff] }
 0x629   :  { %v4724_v33 = vsub.f32 %v4708_v50, %v4468_v28  ;;  %v10702_v46 = vpop.f32.mrb[178].mxu0  ;;  %v4694_v63 = vsub.f32 %v15448_v31, %v4478_v47 }
 0x62a   :  { %v4757_v39 = vmul.f32 %v12781_v0, %v4725_v13  ;;  %v4789_v11 = vmul.f32 %v12780_v52, %v4725_v13  ;;  %v4711_v8 = vsub.f32 %v10702_v46, %v15446_v44  ;;  %v4623_v45 = vpop.f32.mrb[179].mxu0  ;;  %v4743_v41 = vmul.f32 %v12784_v55, %v4695_v58 }
 0x62b   :  { %v4756_v9 = vmul.f32 %v12783_v14, %v4724_v33  ;;  %v4788_v40 = vmul.f32 %v12782_v15, %v4724_v33  ;;  %v4710_v17 = vsub.f32 %v4623_v45, %v15448_v31  ;;  %v4807_v28 = vmul.f32 %v12785_v12, %v4695_v58  ;;  %v10649_v50 = vpop.f32.mrb[228].mxu1  ;;  %v12787_v14 = vld [vmem:[#allocation25 + $0x10] sm:$0xff] }
 0x62c   :  { %v15522_v20 = vsub.f32 %v4741_v3, %v4757_v39  ;;  %v15524_v10 = vadd.f32 %v4805_v25, %v4789_v11  ;;  %v4727_v30 = vsub.f32 %v4711_v8, %v10646_v57  ;;  %v4742_v0 = vmul.f32 %v12786_v21, %v4694_v63  ;;  %v4488_v13 = vpop.f32.mrb[229].mxu1 }
 0x62d   :  { %v15526_v52 = vsub.f32 %v4740_v42, %v4756_v9  ;;  %v15528_v44 = vadd.f32 %v4804_v29, %v4788_v40  ;;  %v4726_v46 = vsub.f32 %v4710_v17, %v4478_v47  ;;  %v4806_v33 = vmul.f32 %v12787_v14, %v4694_v63  ;;  %v10705_v15 = vpop.f32.mrb[180].mxu0  ;;  %v12788_v63 = vld [vmem:[#allocation24 + $0x28] sm:$0xff] }
 0x62e   :  { %v4759_v31 = vmul.f32 %v12785_v12, %v4727_v30  ;;  %v4791_v45 = vmul.f32 %v12784_v55, %v4727_v30  ;;  %v4713_v58 = vsub.f32 %v10705_v15, %v15454_v2  ;;  %v4633_v3 = vpop.f32.mrb[181].mxu0  ;;  %v4697_v11 = vsub.f32 %v15454_v2, %v10649_v50  ;;  %v12789_v2 = vld [vmem:[#allocation25 + $0x28] sm:$0xff] }
 0x62f   :  { %v4758_v25 = vmul.f32 %v12787_v14, %v4726_v46  ;;  %v4790_v57 = vmul.f32 %v12786_v21, %v4726_v46  ;;  %v4712_v39 = vsub.f32 %v4633_v3, %v15456_v32  ;;  %v4696_v9 = vsub.f32 %v15456_v32, %v4488_v13  ;;  %v10652_v42 = vpop.f32.mrb[230].mxu1  ;;  %v12790_v32 = vld [vmem:[#allocation24 + $0x20] sm:$0xff] }
 0x630   :  { %v15534_v29 = vsub.f32 %v4743_v41, %v4759_v31  ;;  %v15536_v17 = vadd.f32 %v4807_v28, %v4791_v45  ;;  %v4729_v47 = vsub.f32 %v4713_v58, %v10649_v50  ;;  %v4745_v12 = vmul.f32 %v12788_v63, %v4697_v11  ;;  %v4498_v30 = vpop.f32.mrb[231].mxu1  ;;  %v12791_v41 = vld [vmem:[#allocation25 + $0x20] sm:$0xff] }
 0x631   :  { %v15538_v8 = vsub.f32 %v4742_v0, %v4758_v25  ;;  %v15540_v55 = vadd.f32 %v4806_v33, %v4790_v57  ;;  %v4809_v40 = vmul.f32 %v12789_v2, %v4697_v11  ;;  %v4728_v21 = vsub.f32 %v4712_v39, %v4488_v13  ;;  %v10708_v46 = vpop.f32.mrb[182].mxu0 }
 0x632   :  { %v4761_v14 = vmul.f32 %v12789_v2, %v4729_v47  ;;  %v4793_v15 = vmul.f32 %v12788_v63, %v4729_v47  ;;  %v4744_v3 = vmul.f32 %v12790_v32, %v4696_v9  ;;  %v4808_v31 = vmul.f32 %v12791_v41, %v4696_v9  ;;  %v4643_v28 = vpop.f32.mrb[183].mxu0 }
 0x633   :  { %v4760_v45 = vmul.f32 %v12791_v41, %v4728_v21  ;;  %v4792_v50 = vmul.f32 %v12790_v32, %v4728_v21  ;;  %v4715_v58 = vsub.f32 %v10708_v46, %v15462_v53  ;;  %v12185_v0 = vpack.c.bf16 %v15522_v20, %v15526_v52  ;;  %v10655_v33 = vpop.f32.mrb[232].mxu1 }
 0x634   :  { %v15545_v25 = vsub.f32 %v4745_v12, %v4761_v14  ;;  %v15547_v11 = vadd.f32 %v4809_v40, %v4793_v15  ;;  %v12217_v13 = vpack.c.bf16 %v15524_v10, %v15528_v44  ;;  %v4714_v57 = vsub.f32 %v4643_v28, %v15464_v37  ;;  %v4508_v39 = vpop.f32.mrb[233].mxu1  ;;  %v12792_v15 = vld [vmem:[#allocation24 + $0x38] sm:$0xff] }
 0x635   :  { %v15552_v9 = vsub.f32 %v4744_v3, %v4760_v45  ;;  %v15554_v47 = vadd.f32 %v4808_v31, %v4792_v50  ;;  %12186 = vmatprep.subr.bf16.mxu1 %v12185_v0  ;;  %v4699_v63 = vsub.f32 %v15462_v53, %v10652_v42  ;;  %v4731_v2 = vsub.f32 %v4715_v58, %v10652_v42  ;;  %v10711_v21 = vpop.f32.mrb[184].mxu0  ;;  %v12793_v3 = vld [vmem:[#allocation25 + $0x38] sm:$0xff]  ;;  %v12794_v50 = vld [vmem:[#allocation24 + $0x30] sm:$0xff] }
 0x636   :  { %12218 = vmatprep.subr.bf16.mxu0 %v12217_v13  ;;  %12188 = vmatpush3.bf16.msra.mxu1 %v12185_v0  ;;  %v4698_v12 = vsub.f32 %v15464_v37, %v4498_v30  ;;  %v4730_v40 = vsub.f32 %v4714_v57, %v4498_v30  ;;  %v4717_v46 = vsub.f32 %v10711_v21, %v15471_v36  ;;  %v4653_v14 = vpop.f32.mrb[185].mxu0  ;;  %v12795_v42 = vld [vmem:[#allocation25 + $0x30] sm:$0xff] }
 0x637   :  { %12220 = vmatpush3.bf16.msra.mxu0 %v12217_v13  ;;  %v4747_v32 = vmul.f32 %v12792_v15, %v4699_v63  ;;  %v4763_v41 = vmul.f32 %v12793_v3, %v4731_v2  ;;  %v4795_v31 = vmul.f32 %v12792_v15, %v4731_v2  ;;  %v4811_v28 = vmul.f32 %v12793_v3, %v4699_v63  ;;  %v10658_v45 = vpop.f32.mrb[234].mxu1 }
 0x638   :  { %v4746_v53 = vmul.f32 %v12794_v50, %v4698_v12  ;;  %v4762_v58 = vmul.f32 %v12795_v42, %v4730_v40  ;;  %v4794_v43 = vmul.f32 %v12794_v50, %v4730_v40  ;;  %v4810_v0 = vmul.f32 %v12795_v42, %v4698_v12  ;;  %v4518_v24 = vpop.f32.mrb[235].mxu1 }
 0x639   :  { %v15559_v37 = vsub.f32 %v4747_v32, %v4763_v41  ;;  %v15561_v30 = vadd.f32 %v4811_v28, %v4795_v31  ;;  %v12189_v13 = vpack.c.bf16 %v15534_v29, %v15538_v8  ;;  %v12221_v57 = vpack.c.bf16 %v15536_v17, %v15540_v55  ;;  %v10714_v2 = vpop.f32.mrb[186].mxu0  ;;  %v12796_v28 = vld [vmem:[#allocation24 + $0x48] sm:$0xff] }
 0x63a   :  { %v15567_v63 = vsub.f32 %v4746_v53, %v4762_v58  ;;  %v15569_v21 = vadd.f32 %v4810_v0, %v4794_v43  ;;  %v4716_v15 = vsub.f32 %v4653_v14, %v15474_v5  ;;  %v4701_v12 = vsub.f32 %v15471_v36, %v10655_v33  ;;  %v4663_v40 = vpop.f32.mrb[187].mxu0  ;;  %v12797_v53 = vld [vmem:[#allocation25 + $0x48] sm:$0xff]  ;;  %v12798_v0 = vld [vmem:[#allocation24 + $0x40] sm:$0xff] }
 0x63b   :  { %12190 = vmatprep.subr.bf16.mxu1 %v12189_v13  ;;  %12222 = vmatprep.subr.bf16.mxu0 %v12221_v57  ;;  %v4733_v32 = vsub.f32 %v4717_v46, %v10655_v33  ;;  %v4700_v3 = vsub.f32 %v15474_v5, %v4508_v39  ;;  %v4719_v41 = vsub.f32 %v10714_v2, %v15481_v56  ;;  %v10661_v31 = vpop.f32.mrb[236].mxu1 }
 0x63c   :  { %12192 = vmatpush3.bf16.msra.mxu1 %v12189_v13  ;;  %12224 = vmatpush3.bf16.msra.mxu0 %v12221_v57  ;;  %v4749_v50 = vmul.f32 %v12796_v28, %v4701_v12  ;;  %v4813_v43 = vmul.f32 %v12797_v53, %v4701_v12  ;;  %v4732_v42 = vsub.f32 %v4716_v15, %v4508_v39  ;;  %v15575_v58 = vpop.f32.mrb[237].mxu1 }
 0x63d   :  { %v4765_v14 = vmul.f32 %v12797_v53, %v4733_v32  ;;  %v4797_v36 = vmul.f32 %v12796_v28, %v4733_v32  ;;  %v4748_v19 = vmul.f32 %v12798_v0, %v4700_v3  ;;  %v4812_v33 = vmul.f32 %v12799_v60, %v4700_v3  ;;  %v10717_v46 = vpop.f32.mrb[188].mxu0 }
 0x63e   :  { %v4764_v5 = vmul.f32 %v12799_v60, %v4732_v42  ;;  %v4796_v18 = vmul.f32 %v12798_v0, %v4732_v42  ;;  %v12193_v13 = vpack.c.bf16 %v15545_v25, %v15552_v9  ;;  %v12225_v57 = vpack.c.bf16 %v15547_v11, %v15554_v47  ;;  %v4673_v2 = vpop.f32.mrb[189].mxu0 }
 0x63f   :  { %v15581_v12 = vsub.f32 %v4749_v50, %v4765_v14  ;;  %v15583_v39 = vadd.f32 %v4813_v43, %v4797_v36  ;;  %v4718_v15 = vsub.f32 %v4663_v40, %v15484_v54  ;;  %v4703_v32 = vsub.f32 %v15481_v56, %v10658_v45  ;;  %v10664_v28 = vpop.f32.mrb[238].mxu1  ;;  %v12800_v50 = vld [vmem:[#allocation24 + $0x58] sm:$0xff] }
 0x640   :  { %v15587_v3 = vsub.f32 %v4748_v19, %v4764_v5  ;;  %v15589_v60 = vadd.f32 %v4812_v33, %v4796_v18  ;;  %12194 = vmatprep.subr.bf16.mxu1 %v12193_v13  ;;  %12226 = vmatprep.subr.bf16.mxu0 %v12225_v57  ;;  %v4735_v53 = vsub.f32 %v4719_v41, %v10658_v45  ;;  %v15591_v42 = vpop.f32.mrb[239].mxu1  ;;  %v12801_v43 = vld [vmem:[#allocation25 + $0x58] sm:$0xff]  ;;  %v12802_v5 = vld [vmem:[#allocation24 + $0x50] sm:$0xff] }
 0x641   :  { %12196 = vmatpush3.bf16.msra.mxu1 %v12193_v13  ;;  %12228 = vmatpush3.bf16.msra.mxu0 %v12225_v57  ;;  %v4751_v14 = vmul.f32 %v12800_v50, %v4703_v32  ;;  %v4815_v36 = vmul.f32 %v12801_v43, %v4703_v32  ;;  %v4702_v40 = vsub.f32 %v15484_v54, %v4518_v24  ;;  %v10720_v0 = vpop.f32.mrb[190].mxu0  ;;  %v12803_v45 = vld [vmem:[#allocation25 + $0x50] sm:$0xff] }
 0x642   :  { %v4767_v56 = vmul.f32 %v12801_v43, %v4735_v53  ;;  %v4799_v48 = vmul.f32 %v12800_v50, %v4735_v53  ;;  %v4734_v19 = vsub.f32 %v4718_v15, %v4518_v24  ;;  %v4721_v18 = vsub.f32 %v10717_v46, %v15491_v22  ;;  %v4683_v33 = vpop.f32.mrb[191].mxu0 }
 0x643   :  { %v4750_v7 = vmul.f32 %v12802_v5, %v4702_v40  ;;  %v4814_v41 = vmul.f32 %v12803_v45, %v4702_v40  ;;  %v12197_v13 = vpack.c.bf16 %v15559_v37, %v15567_v63  ;;  %v12229_v57 = vpack.c.bf16 %v15561_v30, %v15569_v21 }
 0x644   :  { %v15599_v32 = vsub.f32 %v4751_v14, %v4767_v56  ;;  %v15601_v54 = vadd.f32 %v4815_v36, %v4799_v48  ;;  %v4766_v43 = vmul.f32 %v12803_v45, %v4734_v19  ;;  %v4798_v53 = vmul.f32 %v12802_v5, %v4734_v19  ;;  %v12804_v48 = vld [vmem:[#allocation24 + $0x68] sm:$0xff] }
 0x645   :  { %12198 = vmatprep.subr.bf16.mxu1 %v12197_v13  ;;  %12230 = vmatprep.subr.bf16.mxu0 %v12229_v57  ;;  %v4720_v24 = vsub.f32 %v4673_v2, %v15494_v35  ;;  %v4705_v46 = vsub.f32 %v15491_v22, %v10661_v31  ;;  %v4737_v15 = vsub.f32 %v4721_v18, %v10661_v31  ;;  %v12805_v56 = vld [vmem:[#allocation25 + $0x68] sm:$0xff]  ;;  %v12807_v31 = vld [vmem:[#allocation25 + $0x60] sm:$0xff] }
 0x646   :  { %v15605_v50 = vsub.f32 %v4750_v7, %v4766_v43  ;;  %v15607_v40 = vadd.f32 %v4814_v41, %v4798_v53  ;;  %12200 = vmatpush3.bf16.msra.mxu1 %v12197_v13  ;;  %12232 = vmatpush3.bf16.msra.mxu0 %v12229_v57  ;;  %v4704_v14 = vsub.f32 %v15494_v35, %v15575_v58 }
 0x647   :  { %v4753_v36 = vmul.f32 %v12804_v48, %v4705_v46  ;;  %v4769_v19 = vmul.f32 %v12805_v56, %v4737_v15  ;;  %v4801_v5 = vmul.f32 %v12804_v48, %v4737_v15  ;;  %v4817_v45 = vmul.f32 %v12805_v56, %v4705_v46 }
 0x648   :  { %v4736_v2 = vsub.f32 %v4720_v24, %v15575_v58  ;;  %v4752_v22 = vmul.f32 %v12806_v1, %v4704_v14  ;;  %v4816_v7 = vmul.f32 %v12807_v31, %v4704_v14  ;;  %v4723_v18 = vsub.f32 %v10720_v0, %v15503_v16 }
 0x649   :  { %v15613_v41 = vsub.f32 %v4753_v36, %v4769_v19  ;;  %v15615_v13 = vadd.f32 %v4817_v45, %v4801_v5  ;;  %v12201_v35 = vpack.c.bf16 %v15581_v12, %v15587_v3  ;;  %v12233_v57 = vpack.c.bf16 %v15583_v39, %v15589_v60  ;;  %v12808_v36 = vld [vmem:[#allocation24 + $0x78] sm:$0xff] }
 0x64a   :  { %v4768_v43 = vmul.f32 %v12807_v31, %v4736_v2  ;;  %v4800_v53 = vmul.f32 %v12806_v1, %v4736_v2  ;;  %v4722_v58 = vsub.f32 %v4683_v33, %v15506_v6  ;;  %v4707_v24 = vsub.f32 %v15503_v16, %v10664_v28  ;;  %v12809_v1 = vld [vmem:[#allocation25 + $0x78] sm:$0xff]  ;;  %v12811_v2 = vld [vmem:[#allocation25 + $0x70] sm:$0xff] }
 0x64b   :  { %12202 = vmatprep.subr.bf16.mxu1 %v12201_v35  ;;  %12234 = vmatprep.subr.bf16.mxu0 %v12233_v57  ;;  %v4739_v46 = vsub.f32 %v4723_v18, %v10664_v28  ;;  %v4706_v0 = vsub.f32 %v15506_v6, %v15591_v42  ;;  %v12205_v15 = vpack.c.bf16 %v15599_v32, %v15605_v50  ;;  %v12810_v28 = vld [vmem:[#allocation24 + $0x70] sm:$0xff] }
 0x64c   :  { %v4784_v14 = vsub.f32 %v4752_v22, %v4768_v43  ;;  %v4832_v48 = vadd.f32 %v4816_v7, %v4800_v53  ;;  %12204 = vmatpush3.bf16.msra.mxu1 %v12201_v35  ;;  %12236 = vmatpush3.bf16.msra.mxu0 %v12233_v57  ;;  %v4755_v56 = vmul.f32 %v12808_v36, %v4707_v24 }
 0x64d   :  { %v4771_v19 = vmul.f32 %v12809_v1, %v4739_v46  ;;  %v4803_v33 = vmul.f32 %v12808_v36, %v4739_v46  ;;  %v4819_v5 = vmul.f32 %v12809_v1, %v4707_v24  ;;  %v4738_v16 = vsub.f32 %v4722_v58, %v15591_v42  ;;  %12206 = vmatprep.subr.bf16.mxu1 %v12205_v15  ;;  %v17649_v1 = vld [vmem:[#allocation55_spill] sm:$0xff] }
 0x64e   :  { %v4754_v45 = vmul.f32 %v12810_v28, %v4706_v0  ;;  %v4818_v6 = vmul.f32 %v12811_v2, %v4706_v0  ;;  %v12237_v31 = vpack.c.bf16 %v15601_v54, %v15607_v40  ;;  %v12209_v22 = vpack.c.bf16 %v15613_v41, %v4784_v14 }
 0x64f   :  { %v4787_v7 = vsub.f32 %v4755_v56, %v4771_v19  ;;  %v4835_v18 = vadd.f32 %v4819_v5, %v4803_v33  ;;  %v4770_v35 = vmul.f32 %v12811_v2, %v4738_v16  ;;  %v4802_v57 = vmul.f32 %v12810_v28, %v4738_v16  ;;  %v12819_v19 = vld [vmem:[#allocation15 + $0x20] sm:$0xff]  ;;  %v12820_v33 = vld [vmem:[#allocation15 + $0x28] sm:$0xff]  ;;  %v12822_v16 = vld [vmem:[#allocation16 + $0x30] sm:$0xff] }
 0x650   :  { %12238 = vmatprep.subr.bf16.mxu0 %v12237_v31  ;;  %12208 = vmatpush3.bf16.msra.mxu1 %v12205_v15  ;;  %v12241_v43 = vpack.c.bf16 %v15615_v13, %v4832_v48  ;;  %v4836_v42 = vadd.f32 %v15528_v44, %v15526_v52  ;;  %v4837_v53 = vadd.f32 %v15524_v10, %v15522_v20  ;;  %v12821_v5 = vld [vmem:[#allocation16 + $0x28] sm:$0xff]  ;;  %v12824_v2 = vld [vmem:[#allocation15 + $0x38] sm:$0xff] }
 0x651   :  { %v4786_v58 = vsub.f32 %v4754_v45, %v4770_v35  ;;  %v4834_v24 = vadd.f32 %v4818_v6, %v4802_v57  ;;  %12240 = vmatpush3.bf16.msra.mxu0 %v12237_v31  ;;  %12210 = vmatprep.subr.bf16.mxu1 %v12209_v22  ;;  %v4838_v46 = vadd.f32 %v15540_v55, %v15538_v8  ;;  %v17650_v28 = vld [vmem:[#allocation57_spill] sm:$0xff]  ;;  %v12823_v45 = vld [vmem:[#allocation15 + $0x30] sm:$0xff]  ;;  %v12825_v6 = vld [vmem:[#allocation16 + $0x38] sm:$0xff] }
 0x652   :  { %12242 = vmatprep.subr.bf16.mxu0 %v12241_v43  ;;  %v12249_v0 = vpack.c.bf16 %v4837_v53, %v4836_v42  ;;  %v4839_v15 = vadd.f32 %v15536_v17, %v15534_v29  ;;  %v4840_v36 = vadd.f32 %v15554_v47, %v15552_v9  ;;  %v4841_v52 = vadd.f32 %v15547_v11, %v15545_v25  ;;  %v12826_v31 = vld [vmem:[#allocation16 + $0x40] sm:$0xff]  ;;  %v12829_v35 = vld [vmem:[#allocation16 + $0x48] sm:$0xff]  ;;  %v12830_v57 = vld [vmem:[#allocation16 + $0x50] sm:$0xff] }
 0x653   :  { %v12213_v44 = vpack.c.bf16 %v4787_v7, %v4786_v58  ;;  %v12245_v20 = vpack.c.bf16 %v4835_v18, %v4834_v24  ;;  %v4842_v10 = vadd.f32 %v15569_v21, %v15567_v63  ;;  %v4843_v56 = vadd.f32 %v15561_v30, %v15559_v37  ;;  %v12831_v42 = vld [vmem:[#allocation15 + $0x50] sm:$0xff]  ;;  %v12832_v53 = vld [vmem:[#allocation15 + $0x58] sm:$0xff] }
 0x654   :  { %12212 = vmatpush3.bf16.msra.mxu1 %v12209_v22  ;;  %v12253_v8 = vpack.c.bf16 %v4839_v15, %v4838_v46  ;;  %v12257_v55 = vpack.c.bf16 %v4841_v52, %v4840_v36  ;;  %v4844_v29 = vadd.f32 %v15589_v60, %v15587_v3  ;;  %v4845_v17 = vadd.f32 %v15583_v39, %v15581_v12  ;;  %v17647_v60 = vld [vmem:[#allocation106_spill] sm:$0xff]  ;;  %v17651_v22 = vld [vmem:[#allocation59_spill] sm:$0xff]  ;;  %v12836_v15 = vld [vmem:[#allocation15 + $0x68] sm:$0xff] }
 0x655   :  { %12244 = vmatpush3.bf16.msra.mxu0 %v12241_v43  ;;  %12214 = vmatprep.subr.bf16.mxu1 %v12213_v44  ;;  %v12261_v25 = vpack.c.bf16 %v4843_v56, %v4842_v10  ;;  %v4846_v11 = vadd.f32 %v15607_v40, %v15605_v50  ;;  %v4847_v9 = vadd.f32 %v15601_v54, %v15599_v32  ;;  %v12812_v32 = vld [vmem:[#allocation15 + $0x8] sm:$0xff]  ;;  %v12814_v50 = vld [vmem:[#allocation16 + $0x10] sm:$0xff]  ;;  %v17653_v46 = vld [vmem:[#allocation63_spill] sm:$0xff] }
 0x656   :  { %12246 = vmatprep.subr.bf16.mxu0 %v12245_v20  ;;  %v15656_v47 = vpack.c.bf16 %v4845_v17, %v4844_v29  ;;  %v4848_v37 = vadd.f32 %v4832_v48, %v4784_v14  ;;  %v4849_v30 = vadd.f32 %v15615_v13, %v15613_v41  ;;  %v4850_v63 = vadd.f32 %v4834_v24, %v4786_v58  ;;  %v12813_v54 = vld [vmem:[#allocation16 + $0x8] sm:$0xff]  ;;  %v12815_v41 = vld [vmem:[#allocation15 + $0x10] sm:$0xff]  ;;  %v12816_v13 = vld [vmem:[#allocation15 + $0x18] sm:$0xff] }
 0x657   :  { %v15660_v21 = vpack.c.bf16 %v4847_v9, %v4846_v11  ;;  %v4851_v12 = vadd.f32 %v4835_v18, %v4787_v7  ;;  %v17648_v40 = vld [vmem:[#allocation53_spill] sm:$0xff]  ;;  %v12817_v14 = vld [vmem:[#allocation16 + $0x18] sm:$0xff]  ;;  %v12818_v48 = vld [vmem:[#allocation16 + $0x20] sm:$0xff] }
 0x658   :  { %12216 = vmatpush3.bf16.msra.mxu1 %v12213_v44  ;;  %v15662_v39 = vpack.c.bf16 %v4849_v30, %v4848_v37  ;;  %v12827_v7 = vld [vmem:[#allocation15 + $0x40] sm:$0xff]  ;;  %v12828_v18 = vld [vmem:[#allocation15 + $0x48] sm:$0xff]  ;;  %v12833_v58 = vld [vmem:[#allocation16 + $0x58] sm:$0xff] }
 0x659   :  { %12248 = vmatpush3.bf16.msra.mxu0 %v12245_v20  ;;  %12250 = vmatprep.subr.bf16.mxu1 %v12249_v0  ;;  %v15664_v3 = vpack.c.bf16 %v4851_v12, %v4850_v63  ;;  %v17652_v43 = vld [vmem:[#allocation61_spill] sm:$0xff]  ;;  %v12834_v24 = vld [vmem:[#allocation16 + $0x60] sm:$0xff]  ;;  %v12838_v52 = vld [vmem:[#allocation16 + $0x70] sm:$0xff] }
 0x65a   :  { %12282 = vmatprep.subr.bf16.mxu0 %v17647_v60  ;;  %v12837_v36 = vld [vmem:[#allocation16 + $0x68] sm:$0xff]  ;;  %v12839_v20 = vld [vmem:[#allocation15 + $0x70] sm:$0xff]  ;;  %v12840_v10 = vld [vmem:[#allocation15 + $0x78] sm:$0xff] }
 0x65b   :  { %10754 = vmatmul.mubr.f32.vlgmr.msra.gmra.mrb[240].mxu1 %v12812_v32  ;;  %v17654_v44 = vld [vmem:[#allocation113_spill] sm:$0xff]  ;;  %v12841_v56 = vld [vmem:[#allocation16 + $0x78] sm:$0xff]  ;;  %v12842_v29 = vld [vmem:[#allocation4] sm:$0xff] }
 0x65c   :  { %10810 = vmatmul.mubr.f32.vlgmr.msra.gmra.mrb[192].mxu0 %v12813_v54  ;;  %12252 = vmatpush3.bf16.msra.mxu1 %v12249_v0  ;;  %v12835_v0 = vld [vmem:[#allocation15 + $0x60] sm:$0xff]  ;;  %v12845_v11 = vld [vmem:[#allocation18 + $0x8] sm:$0xff]  ;;  %v17657_v9 = vld [vmem:[#allocation54_spill] sm:$0xff] }
 0x65d   :  { %12284 = vmatpush3.bf16.msra.mxu0 %v17647_v60  ;;  %10812 = vmatprep.mubr.f32.mxu0 %v12814_v50  ;;  %v12843_v17 = vld [vmem:[#allocation18] sm:$0xff]  ;;  %v12846_v37 = vld [vmem:[#allocation4 + $0x10] sm:$0xff]  ;;  %v12848_v63 = vld [vmem:[#allocation4 + $0x18] sm:$0xff] }
 0x65e   :  { %12286 = vmatprep.subr.bf16.mxu0 %v17648_v40  ;;  %10756 = vmatprep.mubr.f32.mxu1 %v12815_v41  ;;  %v12847_v30 = vld [vmem:[#allocation18 + $0x10] sm:$0xff]  ;;  %v17659_v12 = vld [vmem:[#allocation56_spill] sm:$0xff]  ;;  %v12852_v32 = vld [vmem:[#allocation4 + $0x28] sm:$0xff] }
 0x65f   :  { %12254 = vmatprep.subr.bf16.mxu1 %v12253_v8  ;;  %10757 = vmatmul.mubr.f32.gmra.mrb[242].mxu1 %v12816_v13  ;;  %v12851_v60 = vld [vmem:[#allocation18 + $0x20] sm:$0xff]  ;;  %v12853_v54 = vld [vmem:[#allocation18 + $0x28] sm:$0xff]  ;;  %v17661_v50 = vld [vmem:[#allocation58_spill] sm:$0xff] }
 0x660   :  { %10813 = vmatmul.mubr.f32.gmra.mrb[194].mxu0 %v12817_v14  ;;  %12256 = vmatpush3.bf16.msra.mxu1 %v12253_v8  ;;  %v17655_v8 = vld [vmem:[#allocation52_spill] sm:$0xff]  ;;  %v12854_v41 = vld [vmem:[#allocation4 + $0x30] sm:$0xff]  ;;  %v12856_v14 = vld [vmem:[#allocation4 + $0x38] sm:$0xff] }
 0x661   :  { %12288 = vmatpush3.bf16.msra.mxu0 %v17648_v40  ;;  %10815 = vmatprep.mubr.f32.mxu0 %v12818_v48  ;;  %v17662_v40 = vld [vmem:[#allocation110_spill] sm:$0xff]  ;;  %v12857_v48 = vld [vmem:[#allocation18 + $0x38] sm:$0xff] }
 0x662   :  { %12290 = vmatprep.subr.bf16.mxu0 %v17649_v1  ;;  %10759 = vmatprep.mubr.f32.mxu1 %v12819_v19  ;;  %v12855_v13 = vld [vmem:[#allocation18 + $0x30] sm:$0xff]  ;;  %v17664_v19 = vld [vmem:[#allocation111_spill] sm:$0xff] }
 0x663   :  { %12258 = vmatprep.subr.bf16.mxu1 %v12257_v55  ;;  %10760 = vmatmul.mubr.f32.gmra.mrb[244].mxu1 %v12820_v33  ;;  %v12858_v33 = vld [vmem:[#allocation4 + $0x40] sm:$0xff] }
 0x664   :  { %10816 = vmatmul.mubr.f32.gmra.mrb[196].mxu0 %v12821_v5  ;;  %12260 = vmatpush3.bf16.msra.mxu1 %v12257_v55  ;;  %v17656_v55 = vld [vmem:[#allocation107_spill] sm:$0xff]  ;;  %v12859_v5 = vld [vmem:[#allocation18 + $0x40] sm:$0xff] }
 0x665   :  { %12292 = vmatpush3.bf16.msra.mxu0 %v17649_v1  ;;  %10818 = vmatprep.mubr.f32.mxu0 %v12822_v16  ;;  %v17663_v1 = vld [vmem:[#allocation60_spill] sm:$0xff]  ;;  %v12860_v16 = vld [vmem:[#allocation4 + $0x48] sm:$0xff] }
 0x666   :  { %12294 = vmatprep.subr.bf16.mxu0 %v17650_v28  ;;  %10762 = vmatprep.mubr.f32.mxu1 %v12823_v45  ;;  %v17665_v45 = vld [vmem:[#allocation62_spill] sm:$0xff] }
 0x667   :  { %12262 = vmatprep.subr.bf16.mxu1 %v12261_v25  ;;  %10763 = vmatmul.mubr.f32.gmra.mrb[246].mxu1 %v12824_v2  ;;  %v17666_v2 = vld [vmem:[#allocation112_spill] sm:$0xff] }
 0x668   :  { %10819 = vmatmul.mubr.f32.gmra.mrb[198].mxu0 %v12825_v6  ;;  %12264 = vmatpush3.bf16.msra.mxu1 %v12261_v25  ;;  %v12844_v25 = vld [vmem:[#allocation4 + $0x8] sm:$0xff]  ;;  %v12862_v6 = vld [vmem:[#allocation4 + $0x50] sm:$0xff] }
 0x669   :  { %12296 = vmatpush3.bf16.msra.mxu0 %v17650_v28  ;;  %10821 = vmatprep.mubr.f32.mxu0 %v12826_v31  ;;  %v12861_v28 = vld [vmem:[#allocation18 + $0x48] sm:$0xff]  ;;  %v12863_v31 = vld [vmem:[#allocation18 + $0x50] sm:$0xff] }
 0x66a   :  { %12298 = vmatprep.subr.bf16.mxu0 %v17651_v22  ;;  %10765 = vmatprep.mubr.f32.mxu1 %v12827_v7  ;;  %v12865_v7 = vld [vmem:[#allocation18 + $0x58] sm:$0xff] }
 0x66b   :  { %12266 = vmatprep.subr.bf16.mxu1 %v15656_v47  ;;  %10766 = vmatmul.mubr.f32.gmra.mrb[248].mxu1 %v12828_v18  ;;  %v17667_v18 = vld [vmem:[#allocation64_spill] sm:$0xff] }
 0x66c   :  { %10822 = vmatmul.mubr.f32.gmra.mrb[200].mxu0 %v12829_v35  ;;  %12268 = vmatpush3.bf16.msra.mxu1 %v15656_v47  ;;  %v17658_v47 = vld [vmem:[#allocation108_spill] sm:$0xff]  ;;  %v17668_v35 = vld [vmem:[#allocation114_spill] sm:$0xff] }
 0x66d   :  { %12300 = vmatpush3.bf16.msra.mxu0 %v17651_v22  ;;  %10824 = vmatprep.mubr.f32.mxu0 %v12830_v57  ;;  %v12864_v22 = vld [vmem:[#allocation4 + $0x58] sm:$0xff]  ;;  %v12866_v57 = vld [vmem:[#allocation4 + $0x60] sm:$0xff] }
 0x66e   :  { %12302 = vmatprep.subr.bf16.mxu0 %v17652_v43  ;;  %10768 = vmatprep.mubr.f32.mxu1 %v12831_v42  ;;  %v12868_v42 = vld [vmem:[#allocation4 + $0x68] sm:$0xff] }
 0x66f   :  { %12270 = vmatprep.subr.bf16.mxu1 %v15660_v21  ;;  %10769 = vmatmul.mubr.f32.gmra.mrb[250].mxu1 %v12832_v53  ;;  %v12869_v53 = vld [vmem:[#allocation18 + $0x68] sm:$0xff] }
 0x670   :  { %10825 = vmatmul.mubr.f32.gmra.mrb[202].mxu0 %v12833_v58  ;;  %12272 = vmatpush3.bf16.msra.mxu1 %v15660_v21  ;;  %v12849_v21 = vld [vmem:[#allocation18 + $0x18] sm:$0xff] }
 0x671   :  { %12304 = vmatpush3.bf16.msra.mxu0 %v17652_v43  ;;  %10827 = vmatprep.mubr.f32.mxu0 %v12834_v24  ;;  %v12867_v43 = vld [vmem:[#allocation18 + $0x60] sm:$0xff]  ;;  %v17669_v58 = vld [vmem:[#allocation115_spill] sm:$0xff] }
 0x672   :  { %12306 = vmatprep.subr.bf16.mxu0 %v17653_v46  ;;  %10771 = vmatprep.mubr.f32.mxu1 %v12835_v0  ;;  %v17670_v24 = vld [vmem:[#allocation116_spill] sm:$0xff]  ;;  %v12871_v0 = vld [vmem:[#allocation18 + $0x70] sm:$0xff] }
 0x673   :  { %12274 = vmatprep.subr.bf16.mxu1 %v15662_v39  ;;  %10772 = vmatmul.mubr.f32.gmra.mrb[252].mxu1 %v12836_v15  ;;  %v12872_v15 = vld [vmem:[#allocation4 + $0x78] sm:$0xff] }
 0x674   :  { %10828 = vmatmul.mubr.f32.gmra.mrb[204].mxu0 %v12837_v36  ;;  %12276 = vmatpush3.bf16.msra.mxu1 %v15662_v39  ;;  %v17660_v39 = vld [vmem:[#allocation109_spill] sm:$0xff]  ;;  %v12873_v36 = vld [vmem:[#allocation18 + $0x78] sm:$0xff] }
 0x675   :  { %12308 = vmatpush3.bf16.msra.mxu0 %v17653_v46  ;;  %10830 = vmatprep.mubr.f32.mxu0 %v12838_v52  ;;  %v12870_v46 = vld [vmem:[#allocation4 + $0x70] sm:$0xff]  ;;  %v12874_v52 = vld [vmem:[#allocation9] sm:$0xff] }
 0x676   :  { %12310 = vmatprep.subr.bf16.mxu0 %v17654_v44  ;;  %10774 = vmatprep.mubr.f32.mxu1 %v12839_v20  ;;  %v12876_v20 = vld [vmem:[#allocation9 + $0x8] sm:$0xff] }
 0x677   :  { %12278 = vmatprep.subr.bf16.mxu1 %v15664_v3  ;;  %10775 = vmatmul.mubr.f32.gmra.mrb[254].mxu1 %v12840_v10  ;;  %v12877_v10 = vld [vmem:[#allocation7 + $0x8] sm:$0xff] }
 0x678   :  { %10831 = vmatmul.mubr.f32.gmra.mrb[206].mxu0 %v12841_v56  ;;  %12280 = vmatpush3.bf16.msra.mxu1 %v15664_v3  ;;  %v12850_v3 = vld [vmem:[#allocation4 + $0x20] sm:$0xff]  ;;  %v12878_v56 = vld [vmem:[#allocation9 + $0x10] sm:$0xff] }
 0x679   :  { %12312 = vmatpush3.bf16.msra.mxu0 %v17654_v44  ;;  %12314 = vmatprep.subr.bf16.mxu1 %v17655_v8  ;;  %v12875_v44 = vld [vmem:[#allocation7] sm:$0xff] }
 0x67a   :  { %12346 = vmatprep.subr.bf16.mxu0 %v17656_v55  ;;  %10921 = vmatprep.mubr.f32.mxu0 %v12842_v29  ;;  %v12881_v29 = vld [vmem:[#allocation7 + $0x18] sm:$0xff] }
 0x67b   :  { %10865 = vmatprep.mubr.f32.mxu1 %v12843_v17  ;;  %v12882_v17 = vld [vmem:[#allocation9 + $0x20] sm:$0xff] }
 0x67c   :  { %10922 = vmatmul.mubr.f32.vlgmr.msra.gmra.mrb[208].mxu0 %v12844_v25  ;;  %10866 = vmatmul.mubr.f32.vlgmr.msra.gmra.mrb[0].mxu1 %v12845_v11  ;;  %v12883_v25 = vld [vmem:[#allocation7 + $0x20] sm:$0xff]  ;;  %v12884_v11 = vld [vmem:[#allocation9 + $0x28] sm:$0xff] }
 0x67d   :  { %12316 = vmatpush3.bf16.msra.mxu1 %v17655_v8  ;;  %12348 = vmatpush3.bf16.msra.mxu0 %v17656_v55  ;;  %v12879_v8 = vld [vmem:[#allocation7 + $0x10] sm:$0xff]  ;;  %v12880_v55 = vld [vmem:[#allocation9 + $0x18] sm:$0xff] }
 0x67e   :  { %12318 = vmatprep.subr.bf16.mxu1 %v17657_v9  ;;  %12350 = vmatprep.subr.bf16.mxu0 %v17658_v47 }
 0x67f   :  { %10924 = vmatprep.mubr.f32.mxu0 %v12846_v37  ;;  %10868 = vmatprep.mubr.f32.mxu1 %v12847_v30  ;;  %v12887_v37 = vld [vmem:[#allocation7 + $0x30] sm:$0xff]  ;;  %v12888_v30 = vld [vmem:[#allocation9 + $0x38] sm:$0xff] }
 0x680   :  { %10925 = vmatmul.mubr.f32.gmra.mrb[210].mxu0 %v12848_v63  ;;  %10869 = vmatmul.mubr.f32.gmra.mrb[2].mxu1 %v12849_v21  ;;  %v12889_v63 = vld [vmem:[#allocation7 + $0x38] sm:$0xff]  ;;  %v12890_v21 = vld [vmem:[#allocation9 + $0x40] sm:$0xff] }
 0x681   :  { %12320 = vmatpush3.bf16.msra.mxu1 %v17657_v9  ;;  %12352 = vmatpush3.bf16.msra.mxu0 %v17658_v47  ;;  %v12885_v9 = vld [vmem:[#allocation7 + $0x28] sm:$0xff]  ;;  %v12886_v47 = vld [vmem:[#allocation9 + $0x30] sm:$0xff] }
 0x682   :  { %12322 = vmatprep.subr.bf16.mxu1 %v17659_v12  ;;  %12354 = vmatprep.subr.bf16.mxu0 %v17660_v39 }
 0x683   :  { %10927 = vmatprep.mubr.f32.mxu0 %v12850_v3  ;;  %10871 = vmatprep.mubr.f32.mxu1 %v12851_v60  ;;  %v12893_v3 = vld [vmem:[#allocation7 + $0x48] sm:$0xff]  ;;  %v12894_v60 = vld [vmem:[#allocation9 + $0x50] sm:$0xff] }
 0x684   :  { %10928 = vmatmul.mubr.f32.gmra.mrb[212].mxu0 %v12852_v32  ;;  %10872 = vmatmul.mubr.f32.gmra.mrb[4].mxu1 %v12853_v54  ;;  %v12895_v32 = vld [vmem:[#allocation7 + $0x50] sm:$0xff]  ;;  %v12896_v54 = vld [vmem:[#allocation9 + $0x58] sm:$0xff] }
 0x685   :  { %12324 = vmatpush3.bf16.msra.mxu1 %v17659_v12  ;;  %12356 = vmatpush3.bf16.msra.mxu0 %v17660_v39  ;;  %v12891_v12 = vld [vmem:[#allocation7 + $0x40] sm:$0xff]  ;;  %v12892_v39 = vld [vmem:[#allocation9 + $0x48] sm:$0xff] }
 0x686   :  { %12326 = vmatprep.subr.bf16.mxu1 %v17661_v50  ;;  %12358 = vmatprep.subr.bf16.mxu0 %v17662_v40 }
 0x687   :  { %10930 = vmatprep.mubr.f32.mxu0 %v12854_v41  ;;  %10874 = vmatprep.mubr.f32.mxu1 %v12855_v13  ;;  %v12899_v41 = vld [vmem:[#allocation7 + $0x60] sm:$0xff]  ;;  %v12900_v13 = vld [vmem:[#allocation9 + $0x68] sm:$0xff] }
 0x688   :  { %10931 = vmatmul.mubr.f32.gmra.mrb[214].mxu0 %v12856_v14  ;;  %10875 = vmatmul.mubr.f32.gmra.mrb[6].mxu1 %v12857_v48  ;;  %v12901_v14 = vld [vmem:[#allocation7 + $0x68] sm:$0xff]  ;;  %v12902_v48 = vld [vmem:[#allocation9 + $0x70] sm:$0xff] }
 0x689   :  { %12328 = vmatpush3.bf16.msra.mxu1 %v17661_v50  ;;  %12360 = vmatpush3.bf16.msra.mxu0 %v17662_v40  ;;  %v12897_v50 = vld [vmem:[#allocation7 + $0x58] sm:$0xff]  ;;  %v12898_v40 = vld [vmem:[#allocation9 + $0x60] sm:$0xff] }
 0x68a   :  { %12330 = vmatprep.subr.bf16.mxu1 %v17663_v1  ;;  %12362 = vmatprep.subr.bf16.mxu0 %v17664_v19 }
 0x68b   :  { %10933 = vmatprep.mubr.f32.mxu0 %v12858_v33  ;;  %10877 = vmatprep.mubr.f32.mxu1 %v12859_v5  ;;  %v12905_v33 = vld [vmem:[#allocation7 + $0x78] sm:$0xff]  ;;  %v12906_v5 = vld [vmem:[#allocation15] sm:$0xff] }
 0x68c   :  { %10934 = vmatmul.mubr.f32.gmra.mrb[216].mxu0 %v12860_v16  ;;  %10878 = vmatmul.mubr.f32.gmra.mrb[8].mxu1 %v12861_v28  ;;  %v12907_v16 = vld [vmem:[#allocation16] sm:$0xff] }
 0x68d   :  { %12332 = vmatpush3.bf16.msra.mxu1 %v17663_v1  ;;  %12364 = vmatpush3.bf16.msra.mxu0 %v17664_v19  ;;  %v12903_v1 = vld [vmem:[#allocation7 + $0x70] sm:$0xff]  ;;  %v12904_v19 = vld [vmem:[#allocation9 + $0x78] sm:$0xff] }
 0x68e   :  { %12334 = vmatprep.subr.bf16.mxu1 %v17665_v45  ;;  %12366 = vmatprep.subr.bf16.mxu0 %v17666_v2 }
 0x68f   :  { %10936 = vmatprep.mubr.f32.mxu0 %v12862_v6  ;;  %10880 = vmatprep.mubr.f32.mxu1 %v12863_v31 }
 0x690   :  { %10937 = vmatmul.mubr.f32.gmra.mrb[218].mxu0 %v12864_v22  ;;  %10881 = vmatmul.mubr.f32.gmra.mrb[10].mxu1 %v12865_v7 }
 0x691   :  { %12336 = vmatpush3.bf16.msra.mxu1 %v17665_v45  ;;  %12368 = vmatpush3.bf16.msra.mxu0 %v17666_v2 }
 0x692   :  { %12338 = vmatprep.subr.bf16.mxu1 %v17667_v18  ;;  %12370 = vmatprep.subr.bf16.mxu0 %v17668_v35 }
 0x693   :  { %10939 = vmatprep.mubr.f32.mxu0 %v12866_v57  ;;  %10883 = vmatprep.mubr.f32.mxu1 %v12867_v43 }
 0x694   :  { %10940 = vmatmul.mubr.f32.gmra.mrb[220].mxu0 %v12868_v42  ;;  %10884 = vmatmul.mubr.f32.gmra.mrb[12].mxu1 %v12869_v53 }
 0x695   :  { %12340 = vmatpush3.bf16.msra.mxu1 %v17667_v18  ;;  %12372 = vmatpush3.bf16.msra.mxu0 %v17668_v35 }
 0x696   :  { %12342 = vmatprep.subr.bf16.mxu1 %v17669_v58  ;;  %12374 = vmatprep.subr.bf16.mxu0 %v17670_v24 }
 0x697   :  { %10942 = vmatprep.mubr.f32.mxu0 %v12870_v46  ;;  %10886 = vmatprep.mubr.f32.mxu1 %v12871_v0 }
 0x698   :  { %10943 = vmatmul.mubr.f32.gmra.mrb[222].mxu0 %v12872_v15  ;;  %10887 = vmatmul.mubr.f32.gmra.mrb[14].mxu1 %v12873_v36 }
 0x699   :  { %12344 = vmatpush3.bf16.msra.mxu1 %v17669_v58  ;;  %12376 = vmatpush3.bf16.msra.mxu0 %v17670_v24 }
 0x69a   :  { %11033 = vmatprep.mubr.f32.mxu0 %v12874_v52  ;;  %10977 = vmatprep.mubr.f32.mxu1 %v12875_v44 }
 0x69c   :  { %11034 = vmatmul.mubr.f32.vlgmr.msra.gmra.mrb[224].mxu0 %v12876_v20  ;;  %10978 = vmatmul.mubr.f32.vlgmr.msra.gmra.mrb[16].mxu1 %v12877_v10 }
 0x69d   :  { %11036 = vmatprep.mubr.f32.mxu0 %v12878_v56  ;;  %10980 = vmatprep.mubr.f32.mxu1 %v12879_v8 }
 0x6a0   :  { %11037 = vmatmul.mubr.f32.gmra.mrb[226].mxu0 %v12880_v55  ;;  %10981 = vmatmul.mubr.f32.gmra.mrb[18].mxu1 %v12881_v29 }
 0x6a1   :  { %11039 = vmatprep.mubr.f32.mxu0 %v12882_v17  ;;  %10983 = vmatprep.mubr.f32.mxu1 %v12883_v25 }
 0x6a4   :  { %11040 = vmatmul.mubr.f32.gmra.mrb[228].mxu0 %v12884_v11  ;;  %10984 = vmatmul.mubr.f32.gmra.mrb[20].mxu1 %v12885_v9 }
 0x6a5   :  { %11042 = vmatprep.mubr.f32.mxu0 %v12886_v47  ;;  %10986 = vmatprep.mubr.f32.mxu1 %v12887_v37 }
 0x6a8   :  { %11043 = vmatmul.mubr.f32.gmra.mrb[230].mxu0 %v12888_v30  ;;  %10987 = vmatmul.mubr.f32.gmra.mrb[22].mxu1 %v12889_v63 }
 0x6a9   :  { %11045 = vmatprep.mubr.f32.mxu0 %v12890_v21  ;;  %10989 = vmatprep.mubr.f32.mxu1 %v12891_v12 }
 0x6ac   :  { %11046 = vmatmul.mubr.f32.gmra.mrb[232].mxu0 %v12892_v39  ;;  %10990 = vmatmul.mubr.f32.gmra.mrb[24].mxu1 %v12893_v3 }
 0x6ad   :  { %11048 = vmatprep.mubr.f32.mxu0 %v12894_v60  ;;  %10992 = vmatprep.mubr.f32.mxu1 %v12895_v32 }
 0x6b0   :  { %11049 = vmatmul.mubr.f32.gmra.mrb[234].mxu0 %v12896_v54  ;;  %10993 = vmatmul.mubr.f32.gmra.mrb[26].mxu1 %v12897_v50 }
 0x6b1   :  { %11051 = vmatprep.mubr.f32.mxu0 %v12898_v40  ;;  %10995 = vmatprep.mubr.f32.mxu1 %v12899_v41 }
 0x6b4   :  { %11052 = vmatmul.mubr.f32.gmra.mrb[236].mxu0 %v12900_v13  ;;  %10996 = vmatmul.mubr.f32.gmra.mrb[28].mxu1 %v12901_v14 }
 0x6b5   :  { %11054 = vmatprep.mubr.f32.mxu0 %v12902_v48  ;;  %10998 = vmatprep.mubr.f32.mxu1 %v12903_v1 }
 0x6b8   :  { %11055 = vmatmul.mubr.f32.gmra.mrb[238].mxu0 %v12904_v19  ;;  %10999 = vmatmul.mubr.f32.gmra.mrb[30].mxu1 %v12905_v33 }
 0x6b9   :  { %11089 = vmatprep.mubr.f32.mxu1 %v12906_v5  ;;  %11145 = vmatprep.mubr.f32.mxu0 %v12907_v16 }
 0x72e   :  { %v10755_v28 = vpop.f32.mrb[240].mxu1 }
 0x72f   :  { %v10811_v45 = vpop.f32.mrb[192].mxu0  ;;  %v4918_v2 = vpop.f32.mrb[241].mxu1 }
 0x730   :  { %v5063_v6 = vpop.f32.mrb[193].mxu0  ;;  %v15722_v31 = vsub.f32 %v10755_v28, %v10811_v45 }
 0x731   :  { %v15724_v22 = vsub.f32 %v4918_v2, %v5063_v6 }
 0x732   :  { %17671 = vst [vmem:[#allocation75_spill] sm:$0xff] %v15722_v31  ;;  %v10758_v7 = vpop.f32.mrb[242].mxu1 }
 0x733   :  { %17672 = vst [vmem:[#allocation76_spill] sm:$0xff] %v15724_v22  ;;  %v10814_v18 = vpop.f32.mrb[194].mxu0  ;;  %v4928_v35 = vpop.f32.mrb[243].mxu1 }
 0x734   :  { %v5073_v57 = vpop.f32.mrb[195].mxu0  ;;  %v15726_v43 = vsub.f32 %v10758_v7, %v10814_v18 }
 0x735   :  { %v15728_v42 = vsub.f32 %v4928_v35, %v5073_v57 }
 0x736   :  { %17673 = vst [vmem:[#allocation78_spill] sm:$0xff] %v15726_v43  ;;  %v10761_v53 = vpop.f32.mrb[244].mxu1 }
 0x737   :  { %17674 = vst [vmem:[#allocation79_spill] sm:$0xff] %v15728_v42  ;;  %v10817_v58 = vpop.f32.mrb[196].mxu0  ;;  %v4938_v24 = vpop.f32.mrb[245].mxu1 }
 0x738   :  { %v5083_v46 = vpop.f32.mrb[197].mxu0  ;;  %v15730_v0 = vsub.f32 %v10761_v53, %v10817_v58 }
 0x739   :  { %v15732_v15 = vsub.f32 %v4938_v24, %v5083_v46 }
 0x73a   :  { %17675 = vst [vmem:[#allocation81_spill] sm:$0xff] %v15730_v0  ;;  %v10764_v36 = vpop.f32.mrb[246].mxu1 }
 0x73b   :  { %17676 = vst [vmem:[#allocation82_spill] sm:$0xff] %v15732_v15  ;;  %v10820_v52 = vpop.f32.mrb[198].mxu0  ;;  %v4948_v44 = vpop.f32.mrb[247].mxu1 }
 0x73c   :  { %v5093_v20 = vpop.f32.mrb[199].mxu0  ;;  %v15734_v10 = vsub.f32 %v10764_v36, %v10820_v52 }
 0x73d   :  { %v15736_v56 = vsub.f32 %v4948_v44, %v5093_v20 }
 0x73e   :  { %17677 = vst [vmem:[#allocation84_spill] sm:$0xff] %v15734_v10  ;;  %v15738_v8 = vpop.f32.mrb[248].mxu1 }
 0x73f   :  { %17678 = vst [vmem:[#allocation85_spill] sm:$0xff] %v15736_v56  ;;  %v10823_v55 = vpop.f32.mrb[200].mxu0  ;;  %v15740_v29 = vpop.f32.mrb[249].mxu1 }
 0x740   :  { %v5103_v17 = vpop.f32.mrb[201].mxu0  ;;  %v15743_v25 = vsub.f32 %v15738_v8, %v10823_v55 }
 0x741   :  { %v15746_v11 = vsub.f32 %v15740_v29, %v5103_v17 }
 0x742   :  { %17679 = vst [vmem:[#allocation87_spill] sm:$0xff] %v15743_v25  ;;  %v15748_v9 = vpop.f32.mrb[250].mxu1 }
 0x743   :  { %17680 = vst [vmem:[#allocation88_spill] sm:$0xff] %v15746_v11  ;;  %v15750_v47 = vpop.f32.mrb[202].mxu0  ;;  %v15752_v37 = vpop.f32.mrb[251].mxu1 }
 0x744   :  { %v15754_v30 = vpop.f32.mrb[203].mxu0  ;;  %v15758_v63 = vsub.f32 %v15748_v9, %v15750_v47 }
 0x745   :  { %v15762_v21 = vsub.f32 %v15752_v37, %v15754_v30 }
 0x746   :  { %17681 = vst [vmem:[#allocation89_spill] sm:$0xff] %v15758_v63  ;;  %v15764_v12 = vpop.f32.mrb[252].mxu1 }
 0x747   :  { %17682 = vst [vmem:[#allocation65_spill] sm:$0xff] %v15762_v21  ;;  %v15766_v39 = vpop.f32.mrb[204].mxu0  ;;  %v15768_v3 = vpop.f32.mrb[253].mxu1 }
 0x748   :  { %v15770_v60 = vpop.f32.mrb[205].mxu0  ;;  %v15774_v32 = vsub.f32 %v15764_v12, %v15766_v39 }
 0x749   :  { %v15778_v54 = vsub.f32 %v15768_v3, %v15770_v60 }
 0x74a   :  { %17683 = vst [vmem:[#allocation117_spill] sm:$0xff] %v15774_v32  ;;  %v15780_v50 = vpop.f32.mrb[254].mxu1 }
 0x74b   :  { %17684 = vst [vmem:[#allocation118_spill] sm:$0xff] %v15778_v54  ;;  %v15782_v40 = vpop.f32.mrb[206].mxu0  ;;  %v15784_v41 = vpop.f32.mrb[255].mxu1 }
 0x74c   :  { %v15786_v13 = vpop.f32.mrb[207].mxu0  ;;  %v15790_v14 = vsub.f32 %v15780_v50, %v15782_v40 }
 0x74d   :  { %v15794_v48 = vsub.f32 %v15784_v41, %v15786_v13 }
 0x74e   :  { %17685 = vst [vmem:[#allocation90_spill] sm:$0xff] %v15790_v14 }
 0x74f   :  { %17686 = vst [vmem:[#allocation92_spill] sm:$0xff] %v15794_v48  ;;  %v15796_v1 = vpop.f32.mrb[208].mxu0  ;;  %v10867_v19 = vpop.f32.mrb[0].mxu1 }
 0x750   :  { %v15798_v33 = vpop.f32.mrb[209].mxu0  ;;  %v5304_v5 = vsub.f32 %v10867_v19, %v10755_v28  ;;  %v5208_v16 = vpop.f32.mrb[1].mxu1 }
 0x751   :  { %v5303_v32 = vsub.f32 %v5208_v16, %v4918_v2 }
 0x752   :  { %v15800_v54 = vsub.f32 %v5304_v5, %v10811_v45 }
 0x753   :  { %v15802_v63 = vpop.f32.mrb[210].mxu0  ;;  %v15804_v21 = vsub.f32 %v5303_v32, %v5063_v6  ;;  %v10870_v25 = vpop.f32.mrb[2].mxu1 }
 0x754   :  { %17687 = vst [vmem:[#allocation95_spill] sm:$0xff] %v15800_v54  ;;  %v15806_v14 = vpop.f32.mrb[211].mxu0  ;;  %v5306_v11 = vsub.f32 %v10870_v25, %v10758_v7  ;;  %v5218_v10 = vpop.f32.mrb[3].mxu1 }
 0x755   :  { %17688 = vst [vmem:[#allocation98_spill] sm:$0xff] %v15804_v21  ;;  %v5305_v48 = vsub.f32 %v5218_v10, %v4928_v35 }
 0x756   :  { %v15808_v56 = vsub.f32 %v5306_v11, %v10814_v18 }
 0x757   :  { %v15810_v0 = vpop.f32.mrb[212].mxu0  ;;  %v15812_v15 = vsub.f32 %v5305_v48, %v5073_v57  ;;  %v10873_v28 = vpop.f32.mrb[4].mxu1 }
 0x758   :  { %17689 = vst [vmem:[#allocation101_spill] sm:$0xff] %v15808_v56  ;;  %v15814_v2 = vpop.f32.mrb[213].mxu0  ;;  %v5308_v45 = vsub.f32 %v10873_v28, %v10761_v53  ;;  %v5228_v19 = vpop.f32.mrb[5].mxu1 }
 0x759   :  { %17690 = vst [vmem:[#allocation45_spill] sm:$0xff] %v15812_v15  ;;  %v5307_v5 = vsub.f32 %v5228_v19, %v4938_v24 }
 0x75a   :  { %v15816_v6 = vsub.f32 %v5308_v45, %v10817_v58 }
 0x75b   :  { %v15818_v32 = vpop.f32.mrb[214].mxu0  ;;  %v15820_v16 = vsub.f32 %v5307_v5, %v5083_v46  ;;  %v10876_v7 = vpop.f32.mrb[6].mxu1 }
 0x75c   :  { %17691 = vst [vmem:[#allocation47_spill] sm:$0xff] %v15816_v6  ;;  %v15822_v35 = vpop.f32.mrb[215].mxu0  ;;  %v5310_v18 = vsub.f32 %v10876_v7, %v10764_v36  ;;  %v5238_v10 = vpop.f32.mrb[7].mxu1 }
 0x75d   :  { %17692 = vst [vmem:[#allocation49_spill] sm:$0xff] %v15820_v16  ;;  %v5309_v25 = vsub.f32 %v5238_v10, %v4948_v44 }
 0x75e   :  { %v15824_v57 = vsub.f32 %v5310_v18, %v10820_v52 }
 0x75f   :  { %v15826_v11 = vpop.f32.mrb[216].mxu0  ;;  %v15828_v48 = vsub.f32 %v5309_v25, %v5093_v20  ;;  %v10879_v53 = vpop.f32.mrb[8].mxu1 }
 0x760   :  { %17693 = vst [vmem:[#allocation91_spill] sm:$0xff] %v15824_v57  ;;  %v15830_v24 = vpop.f32.mrb[217].mxu0  ;;  %v5312_v58 = vsub.f32 %v10879_v53, %v15738_v8  ;;  %v5248_v28 = vpop.f32.mrb[9].mxu1  ;;  %v12914_v57 = vld [vmem:[#allocation24 + $0x10] sm:$0xff] }
 0x761   :  { %17694 = vst [vmem:[#allocation93_spill] sm:$0xff] %v15828_v48  ;;  %v5311_v46 = vsub.f32 %v5248_v28, %v15740_v29 }
 0x762   :  { %v15834_v45 = vsub.f32 %v5312_v58, %v10823_v55 }
 0x763   :  { %v15836_v19 = vpop.f32.mrb[218].mxu0  ;;  %v15838_v36 = vsub.f32 %v5311_v46, %v5103_v17  ;;  %v10882_v52 = vpop.f32.mrb[10].mxu1 }
 0x764   :  { %17695 = vst [vmem:[#allocation94_spill] sm:$0xff] %v15834_v45  ;;  %v15840_v44 = vpop.f32.mrb[219].mxu0  ;;  %v5314_v20 = vsub.f32 %v10882_v52, %v15748_v9  ;;  %v5258_v5 = vpop.f32.mrb[11].mxu1  ;;  %v12912_v45 = vld [vmem:[#allocation24 + $0x18] sm:$0xff] }
 0x765   :  { %17696 = vst [vmem:[#allocation96_spill] sm:$0xff] %v15838_v36  ;;  %v5313_v7 = vsub.f32 %v5258_v5, %v15752_v37 }
 0x766   :  { %v15845_v18 = vsub.f32 %v5314_v20, %v15750_v47 }
 0x767   :  { %v15847_v8 = vpop.f32.mrb[220].mxu0  ;;  %v15850_v55 = vsub.f32 %v5313_v7, %v15754_v30  ;;  %v10885_v29 = vpop.f32.mrb[12].mxu1 }
 0x768   :  { %17697 = vst [vmem:[#allocation97_spill] sm:$0xff] %v15845_v18  ;;  %v15852_v10 = vpop.f32.mrb[221].mxu0  ;;  %v5316_v17 = vsub.f32 %v10885_v29, %v15764_v12  ;;  %v5268_v25 = vpop.f32.mrb[13].mxu1 }
 0x769   :  { %17698 = vst [vmem:[#allocation99_spill] sm:$0xff] %v15850_v55  ;;  %v5315_v53 = vsub.f32 %v5268_v25, %v15768_v3 }
 0x76a   :  { %v15857_v9 = vsub.f32 %v5316_v17, %v15766_v39 }
 0x76b   :  { %v15859_v37 = vpop.f32.mrb[222].mxu0  ;;  %v15862_v47 = vsub.f32 %v5315_v53, %v15770_v60  ;;  %v10888_v58 = vpop.f32.mrb[14].mxu1 }
 0x76c   :  { %17699 = vst [vmem:[#allocation100_spill] sm:$0xff] %v15857_v9  ;;  %v15864_v28 = vpop.f32.mrb[223].mxu0  ;;  %v5318_v30 = vsub.f32 %v10888_v58, %v15780_v50  ;;  %v5278_v46 = vpop.f32.mrb[15].mxu1 }
 0x76d   :  { %17700 = vst [vmem:[#allocation102_spill] sm:$0xff] %v15862_v47  ;;  %v5317_v52 = vsub.f32 %v5278_v46, %v15784_v41  ;;  %v12908_v41 = vld [vmem:[#allocation24 + $0x8] sm:$0xff]  ;;  %v12910_v46 = vld [vmem:[#allocation24] sm:$0xff] }
 0x76e   :  { %v15869_v12 = vsub.f32 %v5318_v30, %v15782_v40  ;;  %v12909_v40 = vld [vmem:[#allocation25 + $0x8] sm:$0xff] }
 0x76f   :  { %v11035_v3 = vpop.f32.mrb[224].mxu0  ;;  %v15872_v39 = vsub.f32 %v5317_v52, %v15786_v13  ;;  %v10979_v20 = vpop.f32.mrb[16].mxu1  ;;  %v12911_v52 = vld [vmem:[#allocation25] sm:$0xff] }
 0x770   :  { %17701 = vst [vmem:[#allocation44_spill] sm:$0xff] %v15869_v12  ;;  %v5835_v5 = vsub.f32 %v11035_v3, %v15796_v1  ;;  %v5739_v60 = vpop.f32.mrb[225].mxu0  ;;  %v5819_v7 = vsub.f32 %v15796_v1, %v10979_v20  ;;  %v5594_v29 = vpop.f32.mrb[17].mxu1 }
 0x771   :  { %17702 = vst [vmem:[#allocation103_spill] sm:$0xff] %v15872_v39  ;;  %v5834_v17 = vsub.f32 %v5739_v60, %v15798_v33  ;;  %v5818_v50 = vsub.f32 %v15798_v33, %v5594_v29 }
 0x772   :  { %v5851_v25 = vsub.f32 %v5835_v5, %v10979_v20  ;;  %v5867_v53 = vmul.f32 %v12908_v41, %v5819_v7  ;;  %v5931_v58 = vmul.f32 %v12909_v40, %v5819_v7 }
 0x773   :  { %v5850_v30 = vsub.f32 %v5834_v17, %v5594_v29  ;;  %v5866_v13 = vmul.f32 %v12910_v46, %v5818_v50  ;;  %v5930_v12 = vmul.f32 %v12911_v52, %v5818_v50  ;;  %v11038_v39 = vpop.f32.mrb[226].mxu0  ;;  %v10982_v3 = vpop.f32.mrb[18].mxu1 }
 0x774   :  { %v5883_v9 = vmul.f32 %v12909_v40, %v5851_v25  ;;  %v5915_v47 = vmul.f32 %v12908_v41, %v5851_v25  ;;  %v5837_v1 = vsub.f32 %v11038_v39, %v15802_v63  ;;  %v5749_v18 = vpop.f32.mrb[227].mxu0  ;;  %v5821_v60 = vsub.f32 %v15802_v63, %v10982_v3  ;;  %v5604_v33 = vpop.f32.mrb[19].mxu1  ;;  %v12913_v41 = vld [vmem:[#allocation25 + $0x18] sm:$0xff] }
 0x775   :  { %v5882_v20 = vmul.f32 %v12911_v52, %v5850_v30  ;;  %v5914_v5 = vmul.f32 %v12910_v46, %v5850_v30  ;;  %v5836_v55 = vsub.f32 %v5749_v18, %v15806_v14  ;;  %v5820_v7 = vsub.f32 %v15806_v14, %v5604_v33 }
 0x776   :  { %v15882_v29 = vsub.f32 %v5867_v53, %v5883_v9  ;;  %v15884_v17 = vadd.f32 %v5931_v58, %v5915_v47  ;;  %v5853_v50 = vsub.f32 %v5837_v1, %v10982_v3  ;;  %v5869_v40 = vmul.f32 %v12912_v45, %v5821_v60  ;;  %v12915_v9 = vld [vmem:[#allocation25 + $0x10] sm:$0xff] }
 0x777   :  { %v15886_v25 = vsub.f32 %v5866_v13, %v5882_v20  ;;  %v15888_v39 = vadd.f32 %v5930_v12, %v5914_v5  ;;  %v5933_v63 = vmul.f32 %v12913_v41, %v5821_v60  ;;  %v5852_v36 = vsub.f32 %v5836_v55, %v5604_v33  ;;  %v11041_v52 = vpop.f32.mrb[228].mxu0  ;;  %v10985_v30 = vpop.f32.mrb[20].mxu1 }
 0x778   :  { %v5885_v46 = vmul.f32 %v12913_v41, %v5853_v50  ;;  %v5917_v18 = vmul.f32 %v12912_v45, %v5853_v50  ;;  %v5868_v14 = vmul.f32 %v12914_v57, %v5820_v7  ;;  %v5932_v53 = vmul.f32 %v12915_v9, %v5820_v7  ;;  %v5759_v47 = vpop.f32.mrb[229].mxu0  ;;  %v5614_v58 = vpop.f32.mrb[21].mxu1 }
 0x779   :  { %v5884_v3 = vmul.f32 %v12915_v9, %v5852_v36  ;;  %v5916_v1 = vmul.f32 %v12914_v57, %v5852_v36  ;;  %v5839_v13 = vsub.f32 %v11041_v52, %v15810_v0  ;;  %v5838_v12 = vsub.f32 %v5759_v47, %v15814_v2  ;;  %v12916_v36 = vld [vmem:[#allocation24 + $0x28] sm:$0xff] }
 0x77a   :  { %v15892_v20 = vsub.f32 %v5869_v40, %v5885_v46  ;;  %v15894_v60 = vadd.f32 %v5933_v63, %v5917_v18  ;;  %v5823_v55 = vsub.f32 %v15810_v0, %v10985_v30  ;;  %v5822_v45 = vsub.f32 %v15814_v2, %v5614_v58  ;;  %v12917_v9 = vld [vmem:[#allocation25 + $0x28] sm:$0xff]  ;;  %v12918_v40 = vld [vmem:[#allocation24 + $0x20] sm:$0xff] }
 0x77b   :  { %v15898_v33 = vsub.f32 %v5868_v14, %v5884_v3  ;;  %v15900_v5 = vadd.f32 %v5932_v53, %v5916_v1  ;;  %v5855_v7 = vsub.f32 %v5839_v13, %v10985_v30  ;;  %v5854_v50 = vsub.f32 %v5838_v12, %v5614_v58  ;;  %v11044_v41 = vpop.f32.mrb[230].mxu0  ;;  %v10988_v57 = vpop.f32.mrb[22].mxu1  ;;  %v12919_v63 = vld [vmem:[#allocation25 + $0x20] sm:$0xff] }
 0x77c   :  { %v5871_v52 = vmul.f32 %v12916_v36, %v5823_v55  ;;  %v5935_v47 = vmul.f32 %v12917_v9, %v5823_v55  ;;  %v5870_v46 = vmul.f32 %v12918_v40, %v5822_v45  ;;  %v5934_v18 = vmul.f32 %v12919_v63, %v5822_v45  ;;  %v5769_v48 = vpop.f32.mrb[231].mxu0  ;;  %v5624_v0 = vpop.f32.mrb[23].mxu1 }
 0x77d   :  { %v5887_v6 = vmul.f32 %v12917_v9, %v5855_v7  ;;  %v5919_v2 = vmul.f32 %v12916_v36, %v5855_v7  ;;  %v5886_v14 = vmul.f32 %v12919_v63, %v5854_v50  ;;  %v5918_v3 = vmul.f32 %v12918_v40, %v5854_v50 }
 0x77e   :  { %v5841_v53 = vsub.f32 %v11044_v41, %v15818_v32  ;;  %v12377_v30 = vpack.c.bf16 %v15882_v29, %v15886_v25  ;;  %v12409_v58 = vpack.c.bf16 %v15884_v17, %v15888_v39  ;;  %v5840_v1 = vsub.f32 %v5769_v48, %v15822_v35 }
 0x77f   :  { %v15908_v13 = vsub.f32 %v5871_v52, %v5887_v6  ;;  %v15910_v12 = vadd.f32 %v5935_v47, %v5919_v2  ;;  %v15912_v55 = vsub.f32 %v5870_v46, %v5886_v14  ;;  %v15914_v45 = vadd.f32 %v5934_v18, %v5918_v3  ;;  %v11047_v7 = vpop.f32.mrb[232].mxu0  ;;  %v10991_v50 = vpop.f32.mrb[24].mxu1  ;;  %v12920_v47 = vld [vmem:[#allocation24 + $0x38] sm:$0xff] }
 0x780   :  { %12378 = vmatprep.subr.bf16.mxu1 %v12377_v30  ;;  %12410 = vmatprep.subr.bf16.mxu0 %v12409_v58  ;;  %v5825_v41 = vsub.f32 %v15818_v32, %v10988_v57  ;;  %v5857_v36 = vsub.f32 %v5841_v53, %v10988_v57  ;;  %v5824_v9 = vsub.f32 %v15822_v35, %v5624_v0  ;;  %v5779_v40 = vpop.f32.mrb[233].mxu0  ;;  %v5634_v63 = vpop.f32.mrb[25].mxu1  ;;  %v12921_v18 = vld [vmem:[#allocation25 + $0x38] sm:$0xff]  ;;  %v12922_v32 = vld [vmem:[#allocation24 + $0x30] sm:$0xff] }
 0x781   :  { %12380 = vmatpush3.bf16.msra.mxu1 %v12377_v30  ;;  %12412 = vmatpush3.bf16.msra.mxu0 %v12409_v58  ;;  %v5856_v6 = vsub.f32 %v5840_v1, %v5624_v0  ;;  %v5843_v48 = vsub.f32 %v11047_v7, %v15826_v11  ;;  %v12381_v52 = vpack.c.bf16 %v15892_v20, %v15898_v33  ;;  %v12923_v53 = vld [vmem:[#allocation25 + $0x30] sm:$0xff] }
 0x782   :  { %v5873_v46 = vmul.f32 %v12920_v47, %v5825_v41  ;;  %v5889_v2 = vmul.f32 %v12921_v18, %v5857_v36  ;;  %v5921_v14 = vmul.f32 %v12920_v47, %v5857_v36  ;;  %v5937_v3 = vmul.f32 %v12921_v18, %v5825_v41 }
 0x783   :  { %v5872_v57 = vmul.f32 %v12922_v32, %v5824_v9  ;;  %v5888_v35 = vmul.f32 %v12923_v53, %v5856_v6  ;;  %v5920_v16 = vmul.f32 %v12922_v32, %v5856_v6  ;;  %v5936_v56 = vmul.f32 %v12923_v53, %v5824_v9  ;;  %12382 = vmatprep.subr.bf16.mxu1 %v12381_v52  ;;  %v11050_v30 = vpop.f32.mrb[234].mxu0  ;;  %v10994_v0 = vpop.f32.mrb[26].mxu1 }
 0x784   :  { %v15921_v58 = vsub.f32 %v5873_v46, %v5889_v2  ;;  %v15923_v1 = vadd.f32 %v5937_v3, %v5921_v14  ;;  %v12413_v7 = vpack.c.bf16 %v15894_v60, %v15900_v5  ;;  %v5842_v15 = vsub.f32 %v5779_v40, %v15830_v24  ;;  %v5789_v36 = vpop.f32.mrb[235].mxu0  ;;  %v5644_v41 = vpop.f32.mrb[27].mxu1  ;;  %v12924_v40 = vld [vmem:[#allocation24 + $0x48] sm:$0xff] }
 0x785   :  { %v15928_v47 = vsub.f32 %v5872_v57, %v5888_v35  ;;  %v15930_v18 = vadd.f32 %v5936_v56, %v5920_v16  ;;  %12384 = vmatpush3.bf16.msra.mxu1 %v12381_v52  ;;  %v5827_v9 = vsub.f32 %v15826_v11, %v10991_v50  ;;  %v5859_v6 = vsub.f32 %v5843_v48, %v10991_v50  ;;  %v12925_v57 = vld [vmem:[#allocation25 + $0x48] sm:$0xff]  ;;  %v12926_v11 = vld [vmem:[#allocation24 + $0x40] sm:$0xff] }
 0x786   :  { %12414 = vmatprep.subr.bf16.mxu0 %v12413_v7  ;;  %v5826_v46 = vsub.f32 %v15830_v24, %v5634_v63  ;;  %v5858_v2 = vsub.f32 %v5842_v15, %v5634_v63  ;;  %v5845_v14 = vsub.f32 %v11050_v30, %v15836_v19  ;;  %v12385_v3 = vpack.c.bf16 %v15908_v13, %v15912_v55  ;;  %v12927_v48 = vld [vmem:[#allocation25 + $0x40] sm:$0xff] }
 0x787   :  { %12416 = vmatpush3.bf16.msra.mxu0 %v12413_v7  ;;  %v5875_v32 = vmul.f32 %v12924_v40, %v5827_v9  ;;  %v5891_v53 = vmul.f32 %v12925_v57, %v5859_v6  ;;  %v5923_v56 = vmul.f32 %v12924_v40, %v5859_v6  ;;  %v5939_v16 = vmul.f32 %v12925_v57, %v5827_v9  ;;  %v11053_v52 = vpop.f32.mrb[236].mxu0  ;;  %v10997_v35 = vpop.f32.mrb[28].mxu1 }
 0x788   :  { %v5874_v50 = vmul.f32 %v12926_v11, %v5826_v46  ;;  %v5890_v54 = vmul.f32 %v12927_v48, %v5858_v2  ;;  %v5922_v24 = vmul.f32 %v12926_v11, %v5858_v2  ;;  %v5938_v15 = vmul.f32 %v12927_v48, %v5826_v46  ;;  %12386 = vmatprep.subr.bf16.mxu1 %v12385_v3  ;;  %v5799_v63 = vpop.f32.mrb[237].mxu0  ;;  %v5654_v30 = vpop.f32.mrb[29].mxu1 }
 0x789   :  { %v15937_v21 = vsub.f32 %v5875_v32, %v5891_v53  ;;  %v15939_v7 = vadd.f32 %v5939_v16, %v5923_v56  ;;  %v12417_v43 = vpack.c.bf16 %v15910_v12, %v15914_v45  ;;  %v5844_v9 = vsub.f32 %v5789_v36, %v15840_v44  ;;  %12388 = vmatpush3.bf16.msra.mxu1 %v12385_v3  ;;  %v12928_v36 = vld [vmem:[#allocation24 + $0x58] sm:$0xff] }
 0x78a   :  { %v15944_v6 = vsub.f32 %v5874_v50, %v5890_v54  ;;  %v15946_v40 = vadd.f32 %v5938_v15, %v5922_v24  ;;  %v5829_v2 = vsub.f32 %v15836_v19, %v10994_v0  ;;  %v5861_v46 = vsub.f32 %v5845_v14, %v10994_v0  ;;  %v12929_v3 = vld [vmem:[#allocation25 + $0x58] sm:$0xff]  ;;  %v12930_v14 = vld [vmem:[#allocation24 + $0x50] sm:$0xff] }
 0x78b   :  { %12418 = vmatprep.subr.bf16.mxu0 %v12417_v43  ;;  %v5828_v57 = vsub.f32 %v15840_v44, %v5644_v41  ;;  %v5860_v32 = vsub.f32 %v5844_v9, %v5644_v41  ;;  %v5847_v53 = vsub.f32 %v11053_v52, %v15847_v8  ;;  %v12389_v56 = vpack.c.bf16 %v15921_v58, %v15928_v47  ;;  %v11056_v16 = vpop.f32.mrb[238].mxu0  ;;  %v11000_v11 = vpop.f32.mrb[30].mxu1  ;;  %v12931_v44 = vld [vmem:[#allocation25 + $0x50] sm:$0xff] }
 0x78c   :  { %12420 = vmatpush3.bf16.msra.mxu0 %v12417_v43  ;;  %v5877_v54 = vmul.f32 %v12928_v36, %v5829_v2  ;;  %v5893_v50 = vmul.f32 %v12929_v3, %v5861_v46  ;;  %v5925_v48 = vmul.f32 %v12928_v36, %v5861_v46  ;;  %v5941_v24 = vmul.f32 %v12929_v3, %v5829_v2  ;;  %v5809_v19 = vpop.f32.mrb[239].mxu0  ;;  %v5664_v0 = vpop.f32.mrb[31].mxu1 }
 0x78d   :  { %v5876_v15 = vmul.f32 %v12930_v14, %v5828_v57  ;;  %v5892_v41 = vmul.f32 %v12931_v44, %v5860_v32  ;;  %v5924_v9 = vmul.f32 %v12930_v14, %v5860_v32  ;;  %v5940_v52 = vmul.f32 %v12931_v44, %v5828_v57  ;;  %12390 = vmatprep.subr.bf16.mxu1 %v12389_v56  ;;  %v12934_v44 = vld [vmem:[#allocation24 + $0x60] sm:$0xff] }
 0x78e   :  { %v15953_v42 = vsub.f32 %v5877_v54, %v5893_v50  ;;  %v15955_v31 = vadd.f32 %v5941_v24, %v5925_v48  ;;  %v12421_v43 = vpack.c.bf16 %v15923_v1, %v15930_v18  ;;  %v5846_v22 = vsub.f32 %v5799_v63, %v15852_v10  ;;  %12392 = vmatpush3.bf16.msra.mxu1 %v12389_v56  ;;  %v12932_v48 = vld [vmem:[#allocation24 + $0x68] sm:$0xff] }
 0x78f   :  { %v15960_v2 = vsub.f32 %v5876_v15, %v5892_v41  ;;  %v15962_v46 = vadd.f32 %v5940_v52, %v5924_v9  ;;  %v5831_v36 = vsub.f32 %v15847_v8, %v10997_v35  ;;  %v5863_v3 = vsub.f32 %v5847_v53, %v10997_v35  ;;  %v12933_v56 = vld [vmem:[#allocation25 + $0x68] sm:$0xff]  ;;  %v12935_v8 = vld [vmem:[#allocation25 + $0x60] sm:$0xff] }
 0x790   :  { %12422 = vmatprep.subr.bf16.mxu0 %v12421_v43  ;;  %v5830_v57 = vsub.f32 %v15852_v10, %v5654_v30  ;;  %v5862_v32 = vsub.f32 %v5846_v22, %v5654_v30  ;;  %v5849_v54 = vsub.f32 %v11056_v16, %v15859_v37  ;;  %v12393_v50 = vpack.c.bf16 %v15937_v21, %v15944_v6 }
 0x791   :  { %12424 = vmatpush3.bf16.msra.mxu0 %v12421_v43  ;;  %v5879_v63 = vmul.f32 %v12932_v48, %v5831_v36  ;;  %v5895_v24 = vmul.f32 %v12933_v56, %v5863_v3  ;;  %v5927_v14 = vmul.f32 %v12932_v48, %v5863_v3  ;;  %v5943_v15 = vmul.f32 %v12933_v56, %v5831_v36  ;;  %v12936_v56 = vld [vmem:[#allocation24 + $0x78] sm:$0xff] }
 0x792   :  { %v5878_v41 = vmul.f32 %v12934_v44, %v5830_v57  ;;  %v5894_v35 = vmul.f32 %v12935_v8, %v5862_v32  ;;  %v5926_v53 = vmul.f32 %v12934_v44, %v5862_v32  ;;  %v5942_v9 = vmul.f32 %v12935_v8, %v5830_v57  ;;  %12394 = vmatprep.subr.bf16.mxu1 %v12393_v50  ;;  %v12938_v44 = vld [vmem:[#allocation24 + $0x70] sm:$0xff] }
 0x793   :  { %v15969_v22 = vsub.f32 %v5879_v63, %v5895_v24  ;;  %v5959_v10 = vadd.f32 %v5943_v15, %v5927_v14  ;;  %v12425_v30 = vpack.c.bf16 %v15939_v7, %v15946_v40  ;;  %v5848_v16 = vsub.f32 %v5809_v19, %v15864_v28  ;;  %12396 = vmatpush3.bf16.msra.mxu1 %v12393_v50  ;;  %v12937_v19 = vld [vmem:[#allocation25 + $0x78] sm:$0xff] }
 0x794   :  { %v5910_v52 = vsub.f32 %v5878_v41, %v5894_v35  ;;  %v5958_v43 = vadd.f32 %v5942_v9, %v5926_v53  ;;  %v5833_v36 = vsub.f32 %v15859_v37, %v11000_v11  ;;  %v5865_v3 = vsub.f32 %v5849_v54, %v11000_v11  ;;  %v12939_v11 = vld [vmem:[#allocation25 + $0x70] sm:$0xff] }
 0x795   :  { %12426 = vmatprep.subr.bf16.mxu0 %v12425_v30  ;;  %v5832_v48 = vsub.f32 %v15864_v28, %v5664_v0  ;;  %v5864_v32 = vsub.f32 %v5848_v16, %v5664_v0  ;;  %v12397_v57 = vpack.c.bf16 %v15953_v42, %v15960_v2  ;;  %v12429_v63 = vpack.c.bf16 %v15955_v31, %v15962_v46 }
 0x796   :  { %12428 = vmatpush3.bf16.msra.mxu0 %v12425_v30  ;;  %v5881_v24 = vmul.f32 %v12936_v56, %v5833_v36  ;;  %v5897_v50 = vmul.f32 %v12937_v19, %v5865_v3  ;;  %v5929_v14 = vmul.f32 %v12936_v56, %v5865_v3  ;;  %v5945_v15 = vmul.f32 %v12937_v19, %v5833_v36  ;;  %v12943_v19 = vld [vmem:[#allocation16 + $0x10] sm:$0xff] }
 0x797   :  { %v5880_v37 = vmul.f32 %v12938_v44, %v5832_v48  ;;  %v5896_v54 = vmul.f32 %v12939_v11, %v5864_v32  ;;  %v5928_v41 = vmul.f32 %v12938_v44, %v5864_v32  ;;  %v5944_v28 = vmul.f32 %v12939_v11, %v5832_v48  ;;  %12398 = vmatprep.subr.bf16.mxu1 %v12397_v57  ;;  %v6691_v44 = vld [vmem:[#allocation19 + $0x30] sm:$0xff]  ;;  %v12946_v11 = vld [vmem:[#allocation16 + $0x18] sm:$0xff] }
 0x798   :  { %v5913_v0 = vsub.f32 %v5881_v24, %v5897_v50  ;;  %v5961_v8 = vadd.f32 %v5945_v15, %v5929_v14  ;;  %12430 = vmatprep.subr.bf16.mxu0 %v12429_v63  ;;  %12400 = vmatpush3.bf16.msra.mxu1 %v12397_v57  ;;  %v12401_v35 = vpack.c.bf16 %v15969_v22, %v5910_v52  ;;  %v6686_v24 = vld [vmem:[#allocation19 + $0x8] sm:$0xff]  ;;  %v12944_v50 = vld [vmem:[#allocation15 + $0x18] sm:$0xff]  ;;  %v12945_v15 = vld [vmem:[#allocation15 + $0x20] sm:$0xff] }
 0x799   :  { %v5912_v53 = vsub.f32 %v5880_v37, %v5896_v54  ;;  %v5960_v9 = vadd.f32 %v5944_v28, %v5928_v41  ;;  %v12433_v30 = vpack.c.bf16 %v5959_v10, %v5958_v43  ;;  %v5962_v16 = vadd.f32 %v15888_v39, %v15886_v25  ;;  %v6692_v37 = vld [vmem:[#allocation19 + $0x38] sm:$0xff]  ;;  %v12947_v54 = vld [vmem:[#allocation16 + $0x20] sm:$0xff]  ;;  %v12948_v41 = vld [vmem:[#allocation15 + $0x28] sm:$0xff] }
 0x79a   :  { %12432 = vmatpush3.bf16.msra.mxu0 %v12429_v63  ;;  %12402 = vmatprep.subr.bf16.mxu1 %v12401_v35  ;;  %v5963_v36 = vadd.f32 %v15884_v17, %v15882_v29  ;;  %v5964_v3 = vadd.f32 %v15900_v5, %v15898_v33  ;;  %v5965_v48 = vadd.f32 %v15894_v60, %v15892_v20  ;;  %v6685_v63 = vld [vmem:[#allocation19] sm:$0xff] }
 0x79b   :  { %12434 = vmatprep.subr.bf16.mxu0 %v12433_v30  ;;  %v12405_v32 = vpack.c.bf16 %v5913_v0, %v5912_v53  ;;  %v12437_v57 = vpack.c.bf16 %v5961_v8, %v5960_v9  ;;  %v5966_v56 = vadd.f32 %v15914_v45, %v15912_v55  ;;  %v5967_v25 = vadd.f32 %v15910_v12, %v15908_v13 }
 0x79c   :  { %12404 = vmatpush3.bf16.msra.mxu1 %v12401_v35  ;;  %v12441_v39 = vpack.c.bf16 %v5963_v36, %v5962_v16  ;;  %v12445_v29 = vpack.c.bf16 %v5965_v48, %v5964_v3  ;;  %v5968_v17 = vadd.f32 %v15930_v18, %v15928_v47  ;;  %v5969_v20 = vadd.f32 %v15923_v1, %v15921_v58  ;;  %v6694_v35 = vld [vmem:[#allocation19 + $0x48] sm:$0xff]  ;;  %v12953_v36 = vld [vmem:[#allocation15 + $0x40] sm:$0xff]  ;;  %v6695_v3 = vld [vmem:[#allocation19 + $0x50] sm:$0xff] }
 0x79d   :  { %12406 = vmatprep.subr.bf16.mxu1 %v12405_v32  ;;  %v12449_v60 = vpack.c.bf16 %v5967_v25, %v5966_v56  ;;  %v5970_v33 = vadd.f32 %v15946_v40, %v15944_v6  ;;  %v5971_v5 = vadd.f32 %v15939_v7, %v15937_v21  ;;  %v5972_v13 = vadd.f32 %v15962_v46, %v15960_v2  ;;  %v6687_v21 = vld [vmem:[#allocation19 + $0x10] sm:$0xff]  ;;  %v6688_v7 = vld [vmem:[#allocation19 + $0x18] sm:$0xff]  ;;  %v12956_v56 = vld [vmem:[#allocation15 + $0x48] sm:$0xff] }
 0x79e   :  { %12436 = vmatpush3.bf16.msra.mxu0 %v12433_v30  ;;  %v16003_v12 = vpack.c.bf16 %v5969_v20, %v5968_v17  ;;  %v5973_v55 = vadd.f32 %v15955_v31, %v15953_v42  ;;  %v5974_v45 = vadd.f32 %v5958_v43, %v5910_v52  ;;  %v5975_v58 = vadd.f32 %v5959_v10, %v15969_v22  ;;  %v12940_v31 = vld [vmem:[#allocation15 + $0x8] sm:$0xff]  ;;  %v12941_v22 = vld [vmem:[#allocation15 + $0x10] sm:$0xff]  ;;  %v6689_v10 = vld [vmem:[#allocation19 + $0x20] sm:$0xff] }
 0x79f   :  { %12438 = vmatprep.subr.bf16.mxu0 %v12437_v57  ;;  %v12473_v1 = vpack.c.bf16 %v6686_v24, %v6685_v63  ;;  %v16008_v47 = vpack.c.bf16 %v5971_v5, %v5970_v33  ;;  %v5976_v18 = vadd.f32 %v5960_v9, %v5912_v53  ;;  %v5977_v6 = vadd.f32 %v5961_v8, %v5913_v0  ;;  %v6690_v52 = vld [vmem:[#allocation19 + $0x28] sm:$0xff]  ;;  %v12949_v0 = vld [vmem:[#allocation15 + $0x30] sm:$0xff]  ;;  %v6693_v8 = vld [vmem:[#allocation19 + $0x40] sm:$0xff] }
 0x7a0   :  { %12408 = vmatpush3.bf16.msra.mxu1 %v12405_v32  ;;  %v16010_v40 = vpack.c.bf16 %v5973_v55, %v5972_v13  ;;  %v16012_v2 = vpack.c.bf16 %v5975_v58, %v5974_v45  ;;  %v12477_v42 = vpack.c.bf16 %v6688_v7, %v6687_v21  ;;  %v12942_v43 = vld [vmem:[#allocation16 + $0x8] sm:$0xff]  ;;  %v12481_v14 = vpack.c.bf16 %v6690_v52, %v6689_v10  ;;  %v12951_v9 = vld [vmem:[#allocation16 + $0x30] sm:$0xff]  ;;  %v12952_v30 = vld [vmem:[#allocation15 + $0x38] sm:$0xff] }
 0x7a1   :  { %12442 = vmatprep.subr.bf16.mxu1 %v12441_v39  ;;  %v16014_v46 = vpack.c.bf16 %v5977_v6, %v5976_v18  ;;  %v12485_v28 = vpack.c.bf16 %v6692_v37, %v6691_v44  ;;  %v12950_v53 = vld [vmem:[#allocation16 + $0x28] sm:$0xff]  ;;  %v12489_v16 = vpack.c.bf16 %v6694_v35, %v6693_v8  ;;  %v6696_v48 = vld [vmem:[#allocation19 + $0x58] sm:$0xff]  ;;  %v6697_v63 = vld [vmem:[#allocation19 + $0x60] sm:$0xff] }
 0x7a2   :  { %12440 = vmatpush3.bf16.msra.mxu0 %v12437_v57  ;;  %v12954_v32 = vld [vmem:[#allocation16 + $0x38] sm:$0xff]  ;;  %v12955_v57 = vld [vmem:[#allocation16 + $0x40] sm:$0xff]  ;;  %v12493_v25 = vpack.c.bf16 %v6696_v48, %v6695_v3  ;;  %v6698_v24 = vld [vmem:[#allocation19 + $0x68] sm:$0xff] }
 0x7a3   :  { %11090 = vmatmul.mubr.f32.vlgmr.msra.gmra.mrb[32].mxu1 %v12940_v31  ;;  %12474 = vmatprep.subr.bf16.mxu0 %v12473_v1  ;;  %v12959_v17 = vld [vmem:[#allocation16 + $0x50] sm:$0xff]  ;;  %v12960_v20 = vld [vmem:[#allocation15 + $0x58] sm:$0xff]  ;;  %v12961_v33 = vld [vmem:[#allocation15 + $0x60] sm:$0xff] }
 0x7a4   :  { %12444 = vmatpush3.bf16.msra.mxu1 %v12441_v39  ;;  %11092 = vmatprep.mubr.f32.mxu1 %v12941_v22  ;;  %v12957_v39 = vld [vmem:[#allocation15 + $0x50] sm:$0xff]  ;;  %v6700_v13 = vld [vmem:[#allocation19 + $0x78] sm:$0xff]  ;;  %v12963_v55 = vld [vmem:[#allocation16 + $0x60] sm:$0xff] }
 0x7a5   :  { %11146 = vmatmul.mubr.f32.vlgmr.msra.gmra.mrb[240].mxu0 %v12942_v43  ;;  %12446 = vmatprep.subr.bf16.mxu1 %v12445_v29  ;;  %v6699_v5 = vld [vmem:[#allocation19 + $0x70] sm:$0xff]  ;;  %v6701_v45 = vld [vmem:[#allocation21] sm:$0xff]  ;;  %v6702_v58 = vld [vmem:[#allocation21 + $0x8] sm:$0xff] }
 0x7a6   :  { %12476 = vmatpush3.bf16.msra.mxu0 %v12473_v1  ;;  %11148 = vmatprep.mubr.f32.mxu0 %v12943_v19  ;;  %v12964_v1 = vld [vmem:[#allocation15 + $0x68] sm:$0xff]  ;;  %v12965_v18 = vld [vmem:[#allocation15 + $0x70] sm:$0xff]  ;;  %v12505_v21 = vpack.c.bf16 %v6702_v58, %v6701_v45  ;;  %v6704_v31 = vld [vmem:[#allocation21 + $0x18] sm:$0xff] }
 0x7a7   :  { %11093 = vmatmul.mubr.f32.gmra.mrb[34].mxu1 %v12944_v50  ;;  %12478 = vmatprep.subr.bf16.mxu0 %v12477_v42  ;;  %v12966_v6 = vld [vmem:[#allocation16 + $0x68] sm:$0xff]  ;;  %v12967_v7 = vld [vmem:[#allocation16 + $0x70] sm:$0xff]  ;;  %v12969_v22 = vld [vmem:[#allocation18] sm:$0xff] }
 0x7a8   :  { %12448 = vmatpush3.bf16.msra.mxu1 %v12445_v29  ;;  %11095 = vmatprep.mubr.f32.mxu1 %v12945_v15  ;;  %v12958_v29 = vld [vmem:[#allocation16 + $0x48] sm:$0xff]  ;;  %v6705_v52 = vld [vmem:[#allocation21 + $0x20] sm:$0xff]  ;;  %v12972_v50 = vld [vmem:[#allocation18 + $0x10] sm:$0xff] }
 0x7a9   :  { %11149 = vmatmul.mubr.f32.gmra.mrb[242].mxu0 %v12946_v11  ;;  %12450 = vmatprep.subr.bf16.mxu1 %v12449_v60  ;;  %v6706_v43 = vld [vmem:[#allocation21 + $0x28] sm:$0xff]  ;;  %v6708_v15 = vld [vmem:[#allocation21 + $0x38] sm:$0xff]  ;;  %v12974_v37 = vld [vmem:[#allocation18 + $0x20] sm:$0xff] }
 0x7aa   :  { %12480 = vmatpush3.bf16.msra.mxu0 %v12477_v42  ;;  %11151 = vmatprep.mubr.f32.mxu0 %v12947_v54  ;;  %v12968_v42 = vld [vmem:[#allocation15 + $0x78] sm:$0xff]  ;;  %v12971_v19 = vld [vmem:[#allocation18 + $0x8] sm:$0xff]  ;;  %v6709_v54 = vld [vmem:[#allocation21 + $0x40] sm:$0xff] }
 0x7ab   :  { %11096 = vmatmul.mubr.f32.gmra.mrb[36].mxu1 %v12948_v41  ;;  %12482 = vmatprep.subr.bf16.mxu0 %v12481_v14  ;;  %v12973_v44 = vld [vmem:[#allocation18 + $0x18] sm:$0xff]  ;;  %v6710_v41 = vld [vmem:[#allocation21 + $0x48] sm:$0xff]  ;;  %v6711_v35 = vld [vmem:[#allocation21 + $0x50] sm:$0xff] }
 0x7ac   :  { %12452 = vmatpush3.bf16.msra.mxu1 %v12449_v60  ;;  %11098 = vmatprep.mubr.f32.mxu1 %v12949_v0  ;;  %v12497_v60 = vpack.c.bf16 %v6698_v24, %v6697_v63  ;;  %v12976_v0 = vld [vmem:[#allocation18 + $0x30] sm:$0xff]  ;;  %v12521_v8 = vpack.c.bf16 %v6710_v41, %v6709_v54  ;;  %v6714_v3 = vld [vmem:[#allocation21 + $0x68] sm:$0xff]  ;;  %v12982_v63 = vld [vmem:[#allocation18 + $0x60] sm:$0xff] }
 0x7ad   :  { %11152 = vmatmul.mubr.f32.gmra.mrb[244].mxu0 %v12950_v53  ;;  %12454 = vmatprep.subr.bf16.mxu1 %v16003_v12  ;;  %v6712_v53 = vld [vmem:[#allocation21 + $0x58] sm:$0xff]  ;;  %v12979_v48 = vld [vmem:[#allocation18 + $0x48] sm:$0xff]  ;;  %v17703_v24 = vld [vmem:[#allocation138_spill] sm:$0xff] }
 0x7ae   :  { %12484 = vmatpush3.bf16.msra.mxu0 %v12481_v14  ;;  %11154 = vmatprep.mubr.f32.mxu0 %v12951_v9  ;;  %v6707_v14 = vld [vmem:[#allocation21 + $0x30] sm:$0xff]  ;;  %v12977_v9 = vld [vmem:[#allocation18 + $0x38] sm:$0xff] }
 0x7af   :  { %11099 = vmatmul.mubr.f32.gmra.mrb[38].mxu1 %v12952_v30  ;;  %12486 = vmatprep.subr.bf16.mxu0 %v12485_v28  ;;  %v12517_v11 = vpack.c.bf16 %v6708_v15, %v6707_v14  ;;  %v12978_v30 = vld [vmem:[#allocation18 + $0x40] sm:$0xff]  ;;  %v17709_v45 = vld [vmem:[#allocation123_spill] sm:$0xff]  ;;  %v17728_v14 = vld [vmem:[#allocation154_spill] sm:$0xff] }
 0x7b0   :  { %12456 = vmatpush3.bf16.msra.mxu1 %v16003_v12  ;;  %11101 = vmatprep.mubr.f32.mxu1 %v12953_v36  ;;  %v12962_v12 = vld [vmem:[#allocation16 + $0x58] sm:$0xff]  ;;  %v6713_v36 = vld [vmem:[#allocation21 + $0x60] sm:$0xff]  ;;  %v17729_v15 = vld [vmem:[#allocation126_spill] sm:$0xff] }
 0x7b1   :  { %11155 = vmatmul.mubr.f32.gmra.mrb[246].mxu0 %v12954_v32  ;;  %12458 = vmatprep.subr.bf16.mxu1 %v16008_v47  ;;  %v12980_v32 = vld [vmem:[#allocation18 + $0x50] sm:$0xff]  ;;  %v17710_v58 = vld [vmem:[#allocation119_spill] sm:$0xff] }
 0x7b2   :  { %12488 = vmatpush3.bf16.msra.mxu0 %v12485_v28  ;;  %11157 = vmatprep.mubr.f32.mxu0 %v12955_v57  ;;  %v12975_v28 = vld [vmem:[#allocation18 + $0x28] sm:$0xff]  ;;  %v12529_v57 = vpack.c.bf16 %v6714_v3, %v6713_v36  ;;  %v17733_v54 = vld [vmem:[#allocation155_spill] sm:$0xff]  ;;  %v17734_v41 = vld [vmem:[#allocation130_spill] sm:$0xff] }
 0x7b3   :  { %11102 = vmatmul.mubr.f32.gmra.mrb[40].mxu1 %v12956_v56  ;;  %12490 = vmatprep.subr.bf16.mxu0 %v12489_v16  ;;  %v6715_v56 = vld [vmem:[#allocation21 + $0x70] sm:$0xff]  ;;  %v17740_v36 = vld [vmem:[#allocation136_spill] sm:$0xff] }
 0x7b4   :  { %12460 = vmatpush3.bf16.msra.mxu1 %v16008_v47  ;;  %11104 = vmatprep.mubr.f32.mxu1 %v12957_v39  ;;  %v12501_v47 = vpack.c.bf16 %v6700_v13, %v6699_v5  ;;  %v12981_v39 = vld [vmem:[#allocation18 + $0x58] sm:$0xff]  ;;  %v17706_v5 = vld [vmem:[#allocation141_spill] sm:$0xff]  ;;  %v17741_v3 = vld [vmem:[#allocation76_spill] sm:$0xff] }
 0x7b5   :  { %11158 = vmatmul.mubr.f32.gmra.mrb[248].mxu0 %v12958_v29  ;;  %12462 = vmatprep.subr.bf16.mxu1 %v16010_v40  ;;  %v12985_v13 = vld [vmem:[#allocation18 + $0x78] sm:$0xff] }
 0x7b6   :  { %12492 = vmatpush3.bf16.msra.mxu0 %v12489_v16  ;;  %11160 = vmatprep.mubr.f32.mxu0 %v12959_v17  ;;  %v12525_v16 = vpack.c.bf16 %v6712_v53, %v6711_v35  ;;  %v17704_v17 = vld [vmem:[#allocation127_spill] sm:$0xff]  ;;  %v6717_v35 = vld [vmem:[#allocation22] sm:$0xff]  ;;  %v6718_v53 = vld [vmem:[#allocation22 + $0x8] sm:$0xff] }
 0x7b7   :  { %11105 = vmatmul.mubr.f32.gmra.mrb[42].mxu1 %v12960_v20  ;;  %12494 = vmatprep.subr.bf16.mxu0 %v12493_v25  ;;  %v12983_v20 = vld [vmem:[#allocation18 + $0x68] sm:$0xff] }
 0x7b8   :  { %12464 = vmatpush3.bf16.msra.mxu1 %v16010_v40  ;;  %11107 = vmatprep.mubr.f32.mxu1 %v12961_v33  ;;  %v6703_v40 = vld [vmem:[#allocation21 + $0x10] sm:$0xff]  ;;  %v17705_v33 = vld [vmem:[#allocation139_spill] sm:$0xff] }
 0x7b9   :  { %11161 = vmatmul.mubr.f32.gmra.mrb[250].mxu0 %v12962_v12  ;;  %12466 = vmatprep.subr.bf16.mxu1 %v16012_v2  ;;  %v12509_v10 = vpack.c.bf16 %v6704_v31, %v6703_v40  ;;  %v17707_v12 = vld [vmem:[#allocation135_spill] sm:$0xff]  ;;  %v17718_v31 = vld [vmem:[#allocation142_spill] sm:$0xff] }
 0x7ba   :  { %12496 = vmatpush3.bf16.msra.mxu0 %v12493_v25  ;;  %11163 = vmatprep.mubr.f32.mxu0 %v12963_v55  ;;  %v6716_v25 = vld [vmem:[#allocation21 + $0x78] sm:$0xff]  ;;  %v17708_v55 = vld [vmem:[#allocation140_spill] sm:$0xff] }
 0x7bb   :  { %11108 = vmatmul.mubr.f32.gmra.mrb[44].mxu1 %v12964_v1  ;;  %12498 = vmatprep.subr.bf16.mxu0 %v12497_v60  ;;  %v12533_v29 = vpack.c.bf16 %v6716_v25, %v6715_v56  ;;  %v17711_v1 = vld [vmem:[#allocation128_spill] sm:$0xff]  ;;  %v17717_v40 = vld [vmem:[#allocation151_spill] sm:$0xff]  ;;  %v17743_v25 = vld [vmem:[#allocation66_spill] sm:$0xff] }
 0x7bc   :  { %12468 = vmatpush3.bf16.msra.mxu1 %v16012_v2  ;;  %11110 = vmatprep.mubr.f32.mxu1 %v12965_v18  ;;  %v12970_v2 = vld [vmem:[#allocation16 + $0x78] sm:$0xff]  ;;  %v17713_v18 = vld [vmem:[#allocation132_spill] sm:$0xff] }
 0x7bd   :  { %11164 = vmatmul.mubr.f32.gmra.mrb[252].mxu0 %v12966_v6  ;;  %12470 = vmatprep.subr.bf16.mxu1 %v16014_v46  ;;  %v17714_v6 = vld [vmem:[#allocation120_spill] sm:$0xff] }
 0x7be   :  { %12500 = vmatpush3.bf16.msra.mxu0 %v12497_v60  ;;  %11166 = vmatprep.mubr.f32.mxu0 %v12967_v7  ;;  %v12984_v60 = vld [vmem:[#allocation18 + $0x70] sm:$0xff]  ;;  %v17716_v7 = vld [vmem:[#allocation124_spill] sm:$0xff] }
 0x7bf   :  { %11111 = vmatmul.mubr.f32.gmra.mrb[46].mxu1 %v12968_v42  ;;  %12502 = vmatprep.subr.bf16.mxu0 %v12501_v47  ;;  %v17719_v42 = vld [vmem:[#allocation144_spill] sm:$0xff] }
 0x7c0   :  { %12472 = vmatpush3.bf16.msra.mxu1 %v16014_v46  ;;  %11201 = vmatprep.mubr.f32.mxu1 %v12969_v22  ;;  %v12513_v46 = vpack.c.bf16 %v6706_v43, %v6705_v52  ;;  %v17720_v22 = vld [vmem:[#allocation150_spill] sm:$0xff]  ;;  %v17723_v52 = vld [vmem:[#allocation137_spill] sm:$0xff] }
 0x7c1   :  { %11167 = vmatmul.mubr.f32.gmra.mrb[254].mxu0 %v12970_v2  ;;  %12506 = vmatprep.subr.bf16.mxu1 %v12505_v21  ;;  %v17721_v2 = vld [vmem:[#allocation153_spill] sm:$0xff] }
 0x7c2   :  { %12504 = vmatpush3.bf16.msra.mxu0 %v12501_v47  ;;  %11257 = vmatprep.mubr.f32.mxu0 %v15040_v27  ;;  %v17712_v47 = vld [vmem:[#allocation149_spill] sm:$0xff] }
 0x7c3   :  { %11202 = vmatmul.mubr.f32.vlgmr.msra.gmra.mrb[48].mxu1 %v12971_v19  ;;  %v17724_v43 = vld [vmem:[#allocation133_spill] sm:$0xff]  ;;  %v17725_v19 = vld [vmem:[#allocation146_spill] sm:$0xff] }
 0x7c4   :  { %12508 = vmatpush3.bf16.msra.mxu1 %v12505_v21  ;;  %11204 = vmatprep.mubr.f32.mxu1 %v12972_v50  ;;  %v17715_v21 = vld [vmem:[#allocation143_spill] sm:$0xff]  ;;  %v17726_v50 = vld [vmem:[#allocation145_spill] sm:$0xff] }
 0x7c5   :  { %11258 = vmatmul.mubr.f32.vlgmr.msra.gmra.mrb[0].mxu0 %v15038_v61  ;;  %12510 = vmatprep.subr.bf16.mxu1 %v12509_v10 }
 0x7c6   :  { %11260 = vmatprep.mubr.f32.mxu0 %v15044_v51 }
 0x7c7   :  { %11205 = vmatmul.mubr.f32.gmra.mrb[50].mxu1 %v12973_v44  ;;  %v17730_v44 = vld [vmem:[#allocation121_spill] sm:$0xff] }
 0x7c8   :  { %12512 = vmatpush3.bf16.msra.mxu1 %v12509_v10  ;;  %11207 = vmatprep.mubr.f32.mxu1 %v12974_v37  ;;  %v17722_v10 = vld [vmem:[#allocation129_spill] sm:$0xff]  ;;  %v17731_v37 = vld [vmem:[#allocation147_spill] sm:$0xff] }
 0x7c9   :  { %11261 = vmatmul.mubr.f32.gmra.mrb[2].mxu0 %v15042_v38  ;;  %12514 = vmatprep.subr.bf16.mxu1 %v12513_v46 }
 0x7ca   :  { %11263 = vmatprep.mubr.f32.mxu0 %v15048_v4 }
 0x7cb   :  { %11208 = vmatmul.mubr.f32.gmra.mrb[52].mxu1 %v12975_v28  ;;  %v17735_v28 = vld [vmem:[#allocation131_spill] sm:$0xff] }
 0x7cc   :  { %12516 = vmatpush3.bf16.msra.mxu1 %v12513_v46  ;;  %11210 = vmatprep.mubr.f32.mxu1 %v12976_v0  ;;  %v17727_v46 = vld [vmem:[#allocation122_spill] sm:$0xff] }
 0x7cd   :  { %11264 = vmatmul.mubr.f32.gmra.mrb[4].mxu0 %v15046_v59  ;;  %12518 = vmatprep.subr.bf16.mxu1 %v12517_v11  ;;  %v17736_v0 = vld [vmem:[#allocation134_spill] sm:$0xff] }
 0x7ce   :  { %11266 = vmatprep.mubr.f32.mxu0 %v15052_v62 }
 0x7cf   :  { %11211 = vmatmul.mubr.f32.gmra.mrb[54].mxu1 %v12977_v9  ;;  %v17738_v9 = vld [vmem:[#allocation148_spill] sm:$0xff] }
 0x7d0   :  { %12520 = vmatpush3.bf16.msra.mxu1 %v12517_v11  ;;  %11213 = vmatprep.mubr.f32.mxu1 %v12978_v30  ;;  %v17732_v11 = vld [vmem:[#allocation125_spill] sm:$0xff]  ;;  %v12537_v30 = vpack.c.bf16 %v6718_v53, %v6717_v35  ;;  %v17747_v35 = vld [vmem:[#allocation71_spill] sm:$0xff]  ;;  %v17748_v53 = vld [vmem:[#allocation78_spill] sm:$0xff] }
 0x7d1   :  { %11267 = vmatmul.mubr.f32.gmra.mrb[6].mxu0 %v15050_v23  ;;  %12522 = vmatprep.subr.bf16.mxu1 %v12521_v8 }
 0x7d2   :  { %11269 = vmatprep.mubr.f32.mxu0 %v15056_v49  ;;  %12538 = vmatprep.subr.bf16.mxu0 %v12537_v30 }
 0x7d3   :  { %11214 = vmatmul.mubr.f32.gmra.mrb[56].mxu1 %v12979_v48  ;;  %12540 = vmatpush3.bf16.msra.mxu0 %v12537_v30  ;;  %v6719_v48 = vld [vmem:[#allocation22 + $0x10] sm:$0xff] }
 0x7d4   :  { %12524 = vmatpush3.bf16.msra.mxu1 %v12521_v8  ;;  %11216 = vmatprep.mubr.f32.mxu1 %v12980_v32  ;;  %v17737_v8 = vld [vmem:[#allocation156_spill] sm:$0xff]  ;;  %v6720_v32 = vld [vmem:[#allocation22 + $0x18] sm:$0xff]  ;;  %v17749_v30 = vld [vmem:[#allocation82_spill] sm:$0xff] }
 0x7d5   :  { %11270 = vmatmul.mubr.f32.gmra.mrb[8].mxu0 %v15054_v34  ;;  %12526 = vmatprep.subr.bf16.mxu1 %v12525_v16  ;;  %v12541_v56 = vpack.c.bf16 %v6720_v32, %v6719_v48  ;;  %v6723_v48 = vld [vmem:[#allocation22 + $0x30] sm:$0xff]  ;;  %v6724_v32 = vld [vmem:[#allocation22 + $0x38] sm:$0xff] }
 0x7d6   :  { %11272 = vmatprep.mubr.f32.mxu0 %v15072_v26 }
 0x7d7   :  { %11217 = vmatmul.mubr.f32.gmra.mrb[58].mxu1 %v12981_v39  ;;  %v17744_v39 = vld [vmem:[#allocation75_spill] sm:$0xff]  ;;  %12542 = vmatprep.subr.bf16.mxu0 %v12541_v56 }
 0x7d8   :  { %12528 = vmatpush3.bf16.msra.mxu1 %v12525_v16  ;;  %11219 = vmatprep.mubr.f32.mxu1 %v12982_v63  ;;  %v17739_v16 = vld [vmem:[#allocation152_spill] sm:$0xff]  ;;  %v17745_v63 = vld [vmem:[#allocation79_spill] sm:$0xff] }
 0x7d9   :  { %11273 = vmatmul.mubr.f32.gmra.mrb[10].mxu0 %v17703_v24  ;;  %12530 = vmatprep.subr.bf16.mxu1 %v12529_v57 }
 0x7da   :  { %11275 = vmatprep.mubr.f32.mxu0 %v17704_v17  ;;  %12544 = vmatpush3.bf16.msra.mxu0 %v12541_v56  ;;  %v17752_v56 = vld [vmem:[#allocation81_spill] sm:$0xff] }
 0x7db   :  { %11220 = vmatmul.mubr.f32.gmra.mrb[60].mxu1 %v12983_v20  ;;  %v6722_v20 = vld [vmem:[#allocation22 + $0x28] sm:$0xff] }
 0x7dc   :  { %12532 = vmatpush3.bf16.msra.mxu1 %v12529_v57  ;;  %11222 = vmatprep.mubr.f32.mxu1 %v12984_v60  ;;  %v17742_v57 = vld [vmem:[#allocation157_spill] sm:$0xff]  ;;  %v17746_v60 = vld [vmem:[#allocation158_spill] sm:$0xff] }
 0x7dd   :  { %11276 = vmatmul.mubr.f32.gmra.mrb[12].mxu0 %v17705_v33  ;;  %12534 = vmatprep.subr.bf16.mxu1 %v12533_v29 }
 0x7de   :  { %11278 = vmatprep.mubr.f32.mxu0 %v17706_v5 }
 0x7df   :  { %11223 = vmatmul.mubr.f32.gmra.mrb[62].mxu1 %v12985_v13 }
 0x7e0   :  { %12536 = vmatpush3.bf16.msra.mxu1 %v12533_v29  ;;  %11385 = vmatprep.mubr.f32.mxu1 %v17707_v12  ;;  %v6721_v29 = vld [vmem:[#allocation22 + $0x20] sm:$0xff] }
 0x7e1   :  { %11279 = vmatmul.mubr.f32.gmra.mrb[14].mxu0 %v17708_v55  ;;  %v12545_v13 = vpack.c.bf16 %v6722_v20, %v6721_v29  ;;  %v6725_v29 = vld [vmem:[#allocation22 + $0x40] sm:$0xff]  ;;  %v6726_v20 = vld [vmem:[#allocation22 + $0x48] sm:$0xff] }
 0x7e2   :  { %11281 = vmatprep.mubr.f32.mxu0 %v17709_v45 }
 0x7e3   :  { %11386 = vmatmul.mubr.f32.vlgmr.msra.gmra.mrb[64].mxu1 %v17710_v58  ;;  %12546 = vmatprep.subr.bf16.mxu0 %v12545_v13 }
 0x7e4   :  { %11388 = vmatprep.mubr.f32.mxu1 %v17711_v1  ;;  %12548 = vmatpush3.bf16.msra.mxu0 %v12545_v13  ;;  %v17756_v13 = vld [vmem:[#allocation84_spill] sm:$0xff] }
 0x7e5   :  { %11282 = vmatmul.mubr.f32.gmra.mrb[16].mxu0 %v17712_v47 }
 0x7e6   :  { %11284 = vmatprep.mubr.f32.mxu0 %v17713_v18 }
 0x7e7   :  { %11389 = vmatmul.mubr.f32.gmra.mrb[66].mxu1 %v17714_v6 }
 0x7e8   :  { %11391 = vmatprep.mubr.f32.mxu1 %v17715_v21 }
 0x7e9   :  { %11285 = vmatmul.mubr.f32.gmra.mrb[18].mxu0 %v17716_v7 }
 0x7ea   :  { %11287 = vmatprep.mubr.f32.mxu0 %v17717_v40 }
 0x7eb   :  { %11392 = vmatmul.mubr.f32.gmra.mrb[68].mxu1 %v17718_v31 }
 0x7ec   :  { %11394 = vmatprep.mubr.f32.mxu1 %v17719_v42 }
 0x7ed   :  { %11288 = vmatmul.mubr.f32.gmra.mrb[20].mxu0 %v17720_v22 }
 0x7ee   :  { %11290 = vmatprep.mubr.f32.mxu0 %v17721_v2 }
 0x7ef   :  { %11395 = vmatmul.mubr.f32.gmra.mrb[70].mxu1 %v17722_v10 }
 0x7f0   :  { %11397 = vmatprep.mubr.f32.mxu1 %v17723_v52 }
 0x7f1   :  { %11291 = vmatmul.mubr.f32.gmra.mrb[22].mxu0 %v17724_v43 }
 0x7f2   :  { %11293 = vmatprep.mubr.f32.mxu0 %v17725_v19 }
 0x7f3   :  { %11398 = vmatmul.mubr.f32.gmra.mrb[72].mxu1 %v17726_v50 }
 0x7f4   :  { %11400 = vmatprep.mubr.f32.mxu1 %v17727_v46 }
 0x7f5   :  { %11294 = vmatmul.mubr.f32.gmra.mrb[24].mxu0 %v17728_v14 }
 0x7f6   :  { %11296 = vmatprep.mubr.f32.mxu0 %v17729_v15 }
 0x7f7   :  { %11401 = vmatmul.mubr.f32.gmra.mrb[74].mxu1 %v17730_v44 }
 0x7f8   :  { %11403 = vmatprep.mubr.f32.mxu1 %v17731_v37 }
 0x7f9   :  { %11297 = vmatmul.mubr.f32.gmra.mrb[26].mxu0 %v17732_v11  ;;  %v17761_v11 = vld [vmem:[#allocation65_spill] sm:$0xff] }
 0x7fa   :  { %11299 = vmatprep.mubr.f32.mxu0 %v17733_v54 }
 0x7fb   :  { %11404 = vmatmul.mubr.f32.gmra.mrb[76].mxu1 %v17734_v41 }
 0x7fc   :  { %11406 = vmatprep.mubr.f32.mxu1 %v17735_v28 }
 0x7fd   :  { %11300 = vmatmul.mubr.f32.gmra.mrb[28].mxu0 %v17736_v0  ;;  %v17757_v0 = vld [vmem:[#allocation88_spill] sm:$0xff] }
 0x7fe   :  { %11302 = vmatprep.mubr.f32.mxu0 %v17737_v8  ;;  %v12553_v8 = vpack.c.bf16 %v6726_v20, %v6725_v29  ;;  %v6729_v29 = vld [vmem:[#allocation22 + $0x60] sm:$0xff]  ;;  %v6730_v20 = vld [vmem:[#allocation22 + $0x68] sm:$0xff] }
 0x7ff   :  { %11407 = vmatmul.mubr.f32.gmra.mrb[78].mxu1 %v17738_v9  ;;  %v12561_v15 = vpack.c.bf16 %v6730_v20, %v6729_v29  ;;  %v17770_v29 = vld [vmem:[#allocation72_spill] sm:$0xff]  ;;  %v17771_v20 = vld [vmem:[#allocation98_spill] sm:$0xff] }
 0x800   :  { %11409 = vmatprep.mubr.f32.mxu1 %v17739_v16 }
 0x801   :  { %11303 = vmatmul.mubr.f32.gmra.mrb[30].mxu0 %v17740_v36  ;;  %v17753_v36 = vld [vmem:[#allocation85_spill] sm:$0xff] }
 0x802   :  { %11305 = vmatprep.mubr.f32.mxu0 %v17741_v3  ;;  %v12549_v3 = vpack.c.bf16 %v6724_v32, %v6723_v48  ;;  %v6727_v48 = vld [vmem:[#allocation22 + $0x50] sm:$0xff]  ;;  %v6728_v32 = vld [vmem:[#allocation22 + $0x58] sm:$0xff] }
 0x803   :  { %11410 = vmatmul.mubr.f32.gmra.mrb[80].mxu1 %v17742_v57  ;;  %v12557_v54 = vpack.c.bf16 %v6728_v32, %v6727_v48  ;;  %v6732_v48 = vld [vmem:[#allocation22 + $0x78] sm:$0xff]  ;;  %v17765_v32 = vld [vmem:[#allocation118_spill] sm:$0xff] }
 0x804   :  { %11412 = vmatprep.mubr.f32.mxu1 %v17743_v25  ;;  %12550 = vmatprep.subr.bf16.mxu0 %v12549_v3 }
 0x805   :  { %11306 = vmatmul.mubr.f32.gmra.mrb[32].mxu0 %v17744_v39  ;;  %v17750_v39 = vld [vmem:[#allocation68_spill] sm:$0xff] }
 0x806   :  { %11308 = vmatprep.mubr.f32.mxu0 %v17745_v63  ;;  %v17751_v63 = vld [vmem:[#allocation77_spill] sm:$0xff]  ;;  %12552 = vmatpush3.bf16.msra.mxu0 %v12549_v3  ;;  %v17760_v3 = vld [vmem:[#allocation87_spill] sm:$0xff] }
 0x807   :  { %11413 = vmatmul.mubr.f32.gmra.mrb[82].mxu1 %v17746_v60  ;;  %12554 = vmatprep.subr.bf16.mxu0 %v12553_v8 }
 0x808   :  { %11415 = vmatprep.mubr.f32.mxu1 %v17747_v35 }
 0x809   :  { %11309 = vmatmul.mubr.f32.gmra.mrb[34].mxu0 %v17748_v53  ;;  %v17754_v53 = vld [vmem:[#allocation74_spill] sm:$0xff] }
 0x80a   :  { %11311 = vmatprep.mubr.f32.mxu0 %v17749_v30  ;;  %v17755_v30 = vld [vmem:[#allocation83_spill] sm:$0xff]  ;;  %12556 = vmatpush3.bf16.msra.mxu0 %v12553_v8  ;;  %v17764_v8 = vld [vmem:[#allocation89_spill] sm:$0xff] }
 0x80b   :  { %11416 = vmatmul.mubr.f32.gmra.mrb[84].mxu1 %v17750_v39  ;;  %12558 = vmatprep.subr.bf16.mxu0 %v12557_v54 }
 0x80c   :  { %11418 = vmatprep.mubr.f32.mxu1 %v17751_v63 }
 0x80d   :  { %11312 = vmatmul.mubr.f32.gmra.mrb[36].mxu0 %v17752_v56  ;;  %v17758_v56 = vld [vmem:[#allocation80_spill] sm:$0xff] }
 0x80e   :  { %11314 = vmatprep.mubr.f32.mxu0 %v17753_v36  ;;  %v17759_v36 = vld [vmem:[#allocation67_spill] sm:$0xff]  ;;  %12560 = vmatpush3.bf16.msra.mxu0 %v12557_v54  ;;  %v17768_v54 = vld [vmem:[#allocation117_spill] sm:$0xff] }
 0x80f   :  { %11419 = vmatmul.mubr.f32.gmra.mrb[86].mxu1 %v17754_v53  ;;  %12562 = vmatprep.subr.bf16.mxu0 %v12561_v15 }
 0x810   :  { %11421 = vmatprep.mubr.f32.mxu1 %v17755_v30 }
 0x811   :  { %11315 = vmatmul.mubr.f32.gmra.mrb[38].mxu0 %v17756_v13  ;;  %v17762_v13 = vld [vmem:[#allocation86_spill] sm:$0xff] }
 0x812   :  { %11317 = vmatprep.mubr.f32.mxu0 %v17757_v0  ;;  %v17763_v0 = vld [vmem:[#allocation70_spill] sm:$0xff]  ;;  %12564 = vmatpush3.bf16.msra.mxu0 %v12561_v15  ;;  %v17774_v15 = vld [vmem:[#allocation45_spill] sm:$0xff] }
 0x813   :  { %11422 = vmatmul.mubr.f32.gmra.mrb[88].mxu1 %v17758_v56  ;;  %v6731_v56 = vld [vmem:[#allocation22 + $0x70] sm:$0xff] }
 0x814   :  { %11424 = vmatprep.mubr.f32.mxu1 %v17759_v36  ;;  %v17766_v36 = vld [vmem:[#allocation69_spill] sm:$0xff] }
 0x815   :  { %11318 = vmatmul.mubr.f32.gmra.mrb[40].mxu0 %v17760_v3  ;;  %v12565_v3 = vpack.c.bf16 %v6732_v48, %v6731_v56  ;;  %v17775_v56 = vld [vmem:[#allocation101_spill] sm:$0xff] }
 0x816   :  { %11320 = vmatprep.mubr.f32.mxu0 %v17761_v11  ;;  %v17767_v11 = vld [vmem:[#allocation73_spill] sm:$0xff] }
 0x817   :  { %11425 = vmatmul.mubr.f32.gmra.mrb[90].mxu1 %v17762_v13  ;;  %12566 = vmatprep.subr.bf16.mxu0 %v12565_v3  ;;  %v17769_v13 = vld [vmem:[#allocation92_spill] sm:$0xff]  ;;  %v17776_v48 = vld [vmem:[#allocation49_spill] sm:$0xff] }
 0x818   :  { %11427 = vmatprep.mubr.f32.mxu1 %v17763_v0  ;;  %12568 = vmatpush3.bf16.msra.mxu0 %v12565_v3  ;;  %v17773_v0 = vld [vmem:[#allocation95_spill] sm:$0xff]  ;;  %v17780_v3 = vld [vmem:[#allocation96_spill] sm:$0xff] }
 0x819   :  { %11321 = vmatmul.mubr.f32.gmra.mrb[42].mxu0 %v17764_v8  ;;  %v17772_v8 = vld [vmem:[#allocation90_spill] sm:$0xff] }
 0x81a   :  { %11323 = vmatprep.mubr.f32.mxu0 %v17765_v32  ;;  %v17777_v32 = vld [vmem:[#allocation47_spill] sm:$0xff] }
 0x81b   :  { %11428 = vmatmul.mubr.f32.gmra.mrb[92].mxu1 %v17766_v36 }
 0x81c   :  { %11430 = vmatprep.mubr.f32.mxu1 %v17767_v11 }
 0x81d   :  { %11324 = vmatmul.mubr.f32.gmra.mrb[44].mxu0 %v17768_v54  ;;  %v17778_v54 = vld [vmem:[#allocation93_spill] sm:$0xff] }
 0x81e   :  { %11326 = vmatprep.mubr.f32.mxu0 %v17769_v13  ;;  %v17779_v13 = vld [vmem:[#allocation91_spill] sm:$0xff] }
 0x81f   :  { %11431 = vmatmul.mubr.f32.gmra.mrb[94].mxu1 %v17770_v29  ;;  %v17781_v29 = vld [vmem:[#allocation94_spill] sm:$0xff] }
 0x820   :  { %11433 = vmatprep.mubr.f32.mxu1 %v17771_v20  ;;  %v17782_v20 = vld [vmem:[#allocation99_spill] sm:$0xff] }
 0x821   :  { %11327 = vmatmul.mubr.f32.gmra.mrb[46].mxu0 %v17772_v8  ;;  %v17783_v8 = vld [vmem:[#allocation97_spill] sm:$0xff] }
 0x823   :  { %11434 = vmatmul.mubr.f32.gmra.mrb[96].mxu1 %v17773_v0  ;;  %v17784_v0 = vld [vmem:[#allocation102_spill] sm:$0xff] }
 0x824   :  { %11436 = vmatprep.mubr.f32.mxu1 %v17774_v15  ;;  %v17785_v15 = vld [vmem:[#allocation100_spill] sm:$0xff] }
 0x827   :  { %11437 = vmatmul.mubr.f32.gmra.mrb[98].mxu1 %v17775_v56  ;;  %v17786_v56 = vld [vmem:[#allocation103_spill] sm:$0xff] }
 0x828   :  { %11439 = vmatprep.mubr.f32.mxu1 %v17776_v48  ;;  %v17787_v48 = vld [vmem:[#allocation44_spill] sm:$0xff] }
 0x82b   :  { %11440 = vmatmul.mubr.f32.gmra.mrb[100].mxu1 %v17777_v32 }
 0x82c   :  { %11442 = vmatprep.mubr.f32.mxu1 %v17778_v54 }
 0x82f   :  { %11443 = vmatmul.mubr.f32.gmra.mrb[102].mxu1 %v17779_v13 }
 0x830   :  { %11445 = vmatprep.mubr.f32.mxu1 %v17780_v3 }
 0x833   :  { %11446 = vmatmul.mubr.f32.gmra.mrb[104].mxu1 %v17781_v29 }
 0x834   :  { %11448 = vmatprep.mubr.f32.mxu1 %v17782_v20 }
 0x837   :  { %11449 = vmatmul.mubr.f32.gmra.mrb[106].mxu1 %v17783_v8 }
 0x838   :  { %11451 = vmatprep.mubr.f32.mxu1 %v17784_v0 }
 0x83b   :  { %11452 = vmatmul.mubr.f32.gmra.mrb[108].mxu1 %v17785_v15 }
 0x83c   :  { %11454 = vmatprep.mubr.f32.mxu1 %v17786_v56 }
 0x83f   :  { %11455 = vmatmul.mubr.f32.gmra.mrb[110].mxu1 %v17787_v48 }
 0x876   :  { %v16122_v32 = vpop.f32.mrb[32].mxu1 }
 0x877   :  { %v16124_v54 = vpop.f32.mrb[33].mxu1 }
 0x878   :  { %v16126_v13 = vpop.f32.mrb[240].mxu0 }
 0x879   :  { %v16130_v29 = vsub.f32 %v16122_v32, %v16126_v13  ;;  %v16132_v20 = vpop.f32.mrb[241].mxu0 }
 0x87a   :  { %v16136_v0 = vsub.f32 %v16124_v54, %v16132_v20  ;;  %v16138_v15 = vpop.f32.mrb[34].mxu1 }
 0x87b   :  { %v16140_v56 = vpop.f32.mrb[35].mxu1 }
 0x87c   :  { %v16142_v48 = vpop.f32.mrb[242].mxu0  ;;  %11329 = vmatprep.mubr.f32.mxu0 %v16136_v0 }
 0x87d   :  { %v16147_v8 = vsub.f32 %v16138_v15, %v16142_v48  ;;  %v16149_v3 = vpop.f32.mrb[243].mxu0  ;;  %11330 = vmatmul.mubr.f32.gmra.mrb[48].mxu0 %v16130_v29 }
 0x87e   :  { %v16154_v11 = vsub.f32 %v16140_v56, %v16149_v3  ;;  %v16156_v36 = vpop.f32.mrb[36].mxu1 }
 0x87f   :  { %v16158_v14 = vpop.f32.mrb[37].mxu1 }
 0x880   :  { %v16160_v30 = vpop.f32.mrb[244].mxu0  ;;  %11332 = vmatprep.mubr.f32.mxu0 %v16154_v11 }
 0x881   :  { %v16165_v19 = vsub.f32 %v16156_v36, %v16160_v30  ;;  %v16167_v53 = vpop.f32.mrb[245].mxu0  ;;  %11333 = vmatmul.mubr.f32.gmra.mrb[50].mxu0 %v16147_v8 }
 0x882   :  { %v16172_v43 = vsub.f32 %v16158_v14, %v16167_v53  ;;  %v16174_v63 = vpop.f32.mrb[38].mxu1 }
 0x883   :  { %v16176_v2 = vpop.f32.mrb[39].mxu1 }
 0x884   :  { %v16178_v39 = vpop.f32.mrb[246].mxu0  ;;  %11335 = vmatprep.mubr.f32.mxu0 %v16172_v43 }
 0x885   :  { %v16183_v22 = vsub.f32 %v16174_v63, %v16178_v39  ;;  %v16185_v35 = vpop.f32.mrb[247].mxu0  ;;  %11336 = vmatmul.mubr.f32.gmra.mrb[52].mxu0 %v16165_v19 }
 0x886   :  { %v16190_v40 = vsub.f32 %v16176_v2, %v16185_v35  ;;  %v16192_v60 = vpop.f32.mrb[40].mxu1 }
 0x887   :  { %v16194_v7 = vpop.f32.mrb[41].mxu1 }
 0x888   :  { %v16196_v25 = vpop.f32.mrb[248].mxu0  ;;  %11338 = vmatprep.mubr.f32.mxu0 %v16190_v40 }
 0x889   :  { %v16201_v18 = vsub.f32 %v16192_v60, %v16196_v25  ;;  %v16203_v57 = vpop.f32.mrb[249].mxu0  ;;  %11339 = vmatmul.mubr.f32.gmra.mrb[54].mxu0 %v16183_v22 }
 0x88a   :  { %v16208_v47 = vsub.f32 %v16194_v7, %v16203_v57  ;;  %v16210_v16 = vpop.f32.mrb[42].mxu1 }
 0x88b   :  { %v16212_v45 = vpop.f32.mrb[43].mxu1 }
 0x88c   :  { %17788 = vst [vmem:[#allocation46_spill] sm:$0xff] %v16208_v47  ;;  %17789 = vst [vmem:[#allocation104_spill] sm:$0xff] %v16212_v45  ;;  %v16214_v9 = vpop.f32.mrb[250].mxu0  ;;  %11341 = vmatprep.mubr.f32.mxu0 %v16208_v47 }
 0x88d   :  { %17790 = vst [vmem:[#allocation48_spill] sm:$0xff] %v16214_v9  ;;  %v16219_v55 = vsub.f32 %v16210_v16, %v16214_v9  ;;  %v16221_v28 = vpop.f32.mrb[251].mxu0  ;;  %11342 = vmatmul.mubr.f32.gmra.mrb[56].mxu0 %v16201_v18 }
 0x88e   :  { %17792 = vst [vmem:[#allocation50_spill] sm:$0xff] %v16221_v28  ;;  %v16226_v5 = vsub.f32 %v16212_v45, %v16221_v28  ;;  %v16228_v41 = vpop.f32.mrb[44].mxu1 }
 0x88f   :  { %17791 = vst [vmem:[#allocation105_spill] sm:$0xff] %v16219_v55  ;;  %17794 = vst [vmem:[#allocation106_spill] sm:$0xff] %v16228_v41  ;;  %v16230_v33 = vpop.f32.mrb[45].mxu1 }
 0x890   :  { %17793 = vst [vmem:[#allocation51_spill] sm:$0xff] %v16226_v5  ;;  %17795 = vst [vmem:[#allocation53_spill] sm:$0xff] %v16230_v33  ;;  %v16232_v37 = vpop.f32.mrb[252].mxu0  ;;  %11344 = vmatprep.mubr.f32.mxu0 %v16226_v5 }
 0x891   :  { %17796 = vst [vmem:[#allocation55_spill] sm:$0xff] %v16232_v37  ;;  %v16237_v17 = vsub.f32 %v16228_v41, %v16232_v37  ;;  %v16239_v44 = vpop.f32.mrb[253].mxu0  ;;  %11345 = vmatmul.mubr.f32.gmra.mrb[58].mxu0 %v16219_v55 }
 0x892   :  { %17797 = vst [vmem:[#allocation57_spill] sm:$0xff] %v16239_v44  ;;  %v16244_v24 = vsub.f32 %v16230_v33, %v16239_v44  ;;  %v16246_v28 = vpop.f32.mrb[46].mxu1 }
 0x893   :  { %17799 = vst [vmem:[#allocation61_spill] sm:$0xff] %v16246_v28  ;;  %v16248_v9 = vpop.f32.mrb[47].mxu1 }
 0x894   :  { %17798 = vst [vmem:[#allocation59_spill] sm:$0xff] %v16244_v24  ;;  %17800 = vst [vmem:[#allocation63_spill] sm:$0xff] %v16248_v9  ;;  %v16250_v47 = vpop.f32.mrb[254].mxu0  ;;  %11347 = vmatprep.mubr.f32.mxu0 %v16244_v24 }
 0x895   :  { %17801 = vst [vmem:[#allocation113_spill] sm:$0xff] %v16250_v47  ;;  %v16255_v37 = vsub.f32 %v16246_v28, %v16250_v47  ;;  %v16257_v5 = vpop.f32.mrb[255].mxu0  ;;  %11348 = vmatmul.mubr.f32.gmra.mrb[60].mxu0 %v16237_v17  ;;  %v6621_v47 = vadd.f32 %v17707_v12, %v15040_v27 }
 0x896   :  { %17802 = vst [vmem:[#allocation52_spill] sm:$0xff] %v16257_v5  ;;  %v16262_v44 = vsub.f32 %v16248_v9, %v16257_v5  ;;  %v11203_v33 = vpop.f32.mrb[48].mxu1 }
 0x897   :  { %v6430_v41 = vsub.f32 %v11203_v33, %v16122_v32  ;;  %v6334_v55 = vpop.f32.mrb[49].mxu1  ;;  %v6622_v32 = vadd.f32 %v17710_v58, %v15038_v61 }
 0x898   :  { %17803 = vst [vmem:[#allocation107_spill] sm:$0xff] %v16262_v44  ;;  %v16265_v45 = vpop.f32.mrb[0].mxu0  ;;  %11350 = vmatprep.mubr.f32.mxu0 %v16262_v44  ;;  %v6429_v24 = vsub.f32 %v6334_v55, %v16124_v54  ;;  %v6623_v54 = vadd.f32 %v17711_v1, %v15044_v51 }
 0x899   :  { %v16271_v28 = vpop.f32.mrb[1].mxu0  ;;  %11351 = vmatmul.mubr.f32.gmra.mrb[62].mxu0 %v16255_v37  ;;  %v6446_v5 = vsub.f32 %v6430_v41, %v16126_v13 }
 0x89a   :  { %11513 = vmatprep.mubr.f32.mxu0 %v6621_v47  ;;  %v6445_v9 = vsub.f32 %v6429_v24, %v16132_v20  ;;  %v11206_v33 = vpop.f32.mrb[50].mxu1  ;;  %v6625_v20 = vadd.f32 %v17715_v21, %v15048_v4 }
 0x89b   :  { %v16279_v44 = vadd.f32 %v6446_v5, %v16130_v29  ;;  %v6432_v27 = vsub.f32 %v11206_v33, %v16138_v15  ;;  %v6344_v12 = vpop.f32.mrb[51].mxu1  ;;  %v6624_v29 = vadd.f32 %v17714_v6, %v15042_v38  ;;  %v6629_v33 = vadd.f32 %v17723_v52, %v15056_v49 }
 0x89c   :  { %v16282_v55 = vpop.f32.mrb[2].mxu0  ;;  %v6431_v41 = vsub.f32 %v6344_v12, %v16140_v56  ;;  %11457 = vmatprep.mubr.f32.mxu1 %v6445_v9  ;;  %v16288_v24 = vadd.f32 %v6445_v9, %v16136_v0 }
 0x89d   :  { %v16290_v47 = vpop.f32.mrb[3].mxu0  ;;  %11514 = vmatmul.mubr.f32.vlgmr.msra.gmra.mrb[64].mxu0 %v6622_v32  ;;  %v6448_v61 = vsub.f32 %v6432_v27, %v16142_v48  ;;  %11458 = vmatmul.mubr.f32.gmra.mrb[112].mxu1 %v6446_v5  ;;  %v6627_v48 = vadd.f32 %v17719_v42, %v15052_v62  ;;  %v6631_v27 = vadd.f32 %v17727_v46, %v15072_v26  ;;  %v17812_v26 = vld [vmem:[#allocation105_spill] sm:$0xff] }
 0x89e   :  { %11516 = vmatprep.mubr.f32.mxu0 %v6623_v54  ;;  %v6447_v58 = vsub.f32 %v6431_v41, %v16149_v3  ;;  %v11209_v13 = vpop.f32.mrb[52].mxu1  ;;  %v17806_v54 = vld [vmem:[#allocation46_spill] sm:$0xff] }
 0x89f   :  { %v16297_v51 = vadd.f32 %v6448_v61, %v16147_v8  ;;  %v6434_v1 = vsub.f32 %v11209_v13, %v16156_v36  ;;  %v6354_v0 = vpop.f32.mrb[53].mxu1  ;;  %v6626_v8 = vadd.f32 %v17718_v31, %v15046_v59  ;;  %v17811_v13 = vld [vmem:[#allocation121_spill] sm:$0xff] }
 0x8a0   :  { %v16300_v9 = vpop.f32.mrb[4].mxu0  ;;  %v6433_v5 = vsub.f32 %v6354_v0, %v16158_v14  ;;  %11460 = vmatprep.mubr.f32.mxu1 %v6447_v58  ;;  %v16306_v15 = vadd.f32 %v6447_v58, %v16154_v11  ;;  %v17810_v58 = vld [vmem:[#allocation138_spill] sm:$0xff] }
 0x8a1   :  { %v16308_v56 = vpop.f32.mrb[5].mxu0  ;;  %11517 = vmatmul.mubr.f32.gmra.mrb[66].mxu0 %v6624_v29  ;;  %v6450_v38 = vsub.f32 %v6434_v1, %v16160_v30  ;;  %11461 = vmatmul.mubr.f32.gmra.mrb[114].mxu1 %v6448_v61  ;;  %v6632_v29 = vadd.f32 %v17811_v13, %v17810_v58  ;;  %v17813_v1 = vld [vmem:[#allocation106_spill] sm:$0xff] }
 0x8a2   :  { %11519 = vmatprep.mubr.f32.mxu0 %v6625_v20  ;;  %v6449_v6 = vsub.f32 %v6433_v5, %v16167_v53  ;;  %v11212_v36 = vpop.f32.mrb[54].mxu1 }
 0x8a3   :  { %v16315_v4 = vadd.f32 %v6450_v38, %v16165_v19  ;;  %v6436_v21 = vsub.f32 %v11212_v36, %v16174_v63  ;;  %v6364_v14 = vpop.f32.mrb[55].mxu1  ;;  %v6628_v63 = vadd.f32 %v17722_v10, %v15050_v23 }
 0x8a4   :  { %v16318_v11 = vpop.f32.mrb[6].mxu0  ;;  %v6435_v30 = vsub.f32 %v6364_v14, %v16176_v2  ;;  %11463 = vmatprep.mubr.f32.mxu1 %v6449_v6  ;;  %v16324_v53 = vadd.f32 %v6449_v6, %v16172_v43  ;;  %v17816_v6 = vld [vmem:[#allocation147_spill] sm:$0xff] }
 0x8a5   :  { %v16326_v3 = vpop.f32.mrb[7].mxu0  ;;  %11520 = vmatmul.mubr.f32.gmra.mrb[68].mxu0 %v6626_v8  ;;  %v6452_v59 = vsub.f32 %v6436_v21, %v16178_v39  ;;  %11464 = vmatmul.mubr.f32.gmra.mrb[116].mxu1 %v6450_v38  ;;  %v17815_v38 = vld [vmem:[#allocation127_spill] sm:$0xff]  ;;  %v17817_v8 = vld [vmem:[#allocation53_spill] sm:$0xff] }
 0x8a6   :  { %11522 = vmatprep.mubr.f32.mxu0 %v6627_v48  ;;  %v6451_v31 = vsub.f32 %v6435_v30, %v16185_v35  ;;  %v11215_v19 = vpop.f32.mrb[56].mxu1  ;;  %v6633_v36 = vadd.f32 %v17816_v6, %v17815_v38  ;;  %v17818_v14 = vld [vmem:[#allocation51_spill] sm:$0xff] }
 0x8a7   :  { %v16333_v62 = vadd.f32 %v6452_v59, %v16183_v22  ;;  %v6438_v42 = vsub.f32 %v11215_v19, %v16192_v60  ;;  %v6374_v2 = vpop.f32.mrb[57].mxu1  ;;  %v6630_v60 = vadd.f32 %v17726_v50, %v15054_v34  ;;  %v17808_v34 = vld [vmem:[#allocation48_spill] sm:$0xff]  ;;  %v17809_v50 = vld [vmem:[#allocation50_spill] sm:$0xff]  ;;  %v17821_v19 = vld [vmem:[#allocation57_spill] sm:$0xff] }
 0x8a8   :  { %v16336_v43 = vpop.f32.mrb[8].mxu0  ;;  %v6437_v39 = vsub.f32 %v6374_v2, %v16194_v7  ;;  %11466 = vmatprep.mubr.f32.mxu1 %v6451_v31  ;;  %v16342_v35 = vadd.f32 %v6451_v31, %v16190_v40  ;;  %v17822_v2 = vld [vmem:[#allocation139_spill] sm:$0xff] }
 0x8a9   :  { %v16344_v32 = vpop.f32.mrb[9].mxu0  ;;  %11523 = vmatmul.mubr.f32.gmra.mrb[70].mxu0 %v6628_v63  ;;  %v6454_v23 = vsub.f32 %v6438_v42, %v16196_v25  ;;  %11467 = vmatmul.mubr.f32.gmra.mrb[118].mxu1 %v6452_v59  ;;  %v17805_v25 = vld [vmem:[#allocation104_spill] sm:$0xff]  ;;  %v17820_v59 = vld [vmem:[#allocation55_spill] sm:$0xff] }
 0x8aa   :  { %11525 = vmatprep.mubr.f32.mxu0 %v6629_v33  ;;  %v6453_v22 = vsub.f32 %v6437_v39, %v16203_v57  ;;  %v11218_v10 = vpop.f32.mrb[58].mxu1  ;;  %v17823_v33 = vld [vmem:[#allocation130_spill] sm:$0xff] }
 0x8ab   :  { %v16351_v49 = vadd.f32 %v6454_v23, %v16201_v18  ;;  %v6440_v7 = vsub.f32 %v11218_v10, %v16210_v16  ;;  %v6384_v40 = vpop.f32.mrb[59].mxu1  ;;  %v6634_v39 = vadd.f32 %v17823_v33, %v17822_v2 }
 0x8ac   :  { %v16354_v52 = vpop.f32.mrb[10].mxu0  ;;  %v6439_v12 = vsub.f32 %v6384_v40, %v17805_v25  ;;  %11469 = vmatprep.mubr.f32.mxu1 %v6453_v22  ;;  %v16360_v57 = vadd.f32 %v6453_v22, %v17806_v54  ;;  %v17824_v22 = vld [vmem:[#allocation61_spill] sm:$0xff] }
 0x8ad   :  { %17804 = vst [vmem:[#allocation54_spill] sm:$0xff] %v16354_v52  ;;  %v16362_v41 = vpop.f32.mrb[11].mxu0  ;;  %11526 = vmatmul.mubr.f32.gmra.mrb[72].mxu0 %v6630_v60  ;;  %v6456_v18 = vsub.f32 %v6440_v7, %v17808_v34  ;;  %11470 = vmatmul.mubr.f32.gmra.mrb[120].mxu1 %v6454_v23  ;;  %v17826_v40 = vld [vmem:[#allocation141_spill] sm:$0xff]  ;;  %v17829_v34 = vld [vmem:[#allocation59_spill] sm:$0xff] }
 0x8ae   :  { %17807 = vst [vmem:[#allocation108_spill] sm:$0xff] %v16362_v41  ;;  %11528 = vmatprep.mubr.f32.mxu0 %v6631_v27  ;;  %v6455_v16 = vsub.f32 %v6439_v12, %v17809_v50  ;;  %v11221_v61 = vpop.f32.mrb[60].mxu1  ;;  %v17827_v27 = vld [vmem:[#allocation131_spill] sm:$0xff] }
 0x8af   :  { %v16369_v46 = vadd.f32 %v6456_v18, %v17812_v26  ;;  %v6442_v0 = vsub.f32 %v11221_v61, %v17813_v1  ;;  %v6394_v20 = vpop.f32.mrb[61].mxu1  ;;  %v6635_v25 = vadd.f32 %v17827_v27, %v17826_v40  ;;  %v17828_v12 = vld [vmem:[#allocation63_spill] sm:$0xff]  ;;  %v17832_v61 = vld [vmem:[#allocation52_spill] sm:$0xff]  ;;  %v17844_v40 = vld [vmem:[#allocation66_spill] sm:$0xff] }
 0x8b0   :  { %v16372_v5 = vpop.f32.mrb[12].mxu0  ;;  %v6441_v21 = vsub.f32 %v6394_v20, %v17817_v8  ;;  %11472 = vmatprep.mubr.f32.mxu1 %v6455_v16  ;;  %v16378_v48 = vadd.f32 %v6455_v16, %v17818_v14  ;;  %v17831_v16 = vld [vmem:[#allocation113_spill] sm:$0xff]  ;;  %v17834_v26 = vld [vmem:[#allocation148_spill] sm:$0xff]  ;;  %v17836_v8 = vld [vmem:[#allocation123_spill] sm:$0xff] }
 0x8b1   :  { %17814 = vst [vmem:[#allocation56_spill] sm:$0xff] %v16372_v5  ;;  %v16380_v30 = vpop.f32.mrb[13].mxu0  ;;  %11529 = vmatmul.mubr.f32.gmra.mrb[74].mxu0 %v6632_v29  ;;  %v6458_v31 = vsub.f32 %v6442_v0, %v17820_v59  ;;  %11473 = vmatmul.mubr.f32.gmra.mrb[122].mxu1 %v6456_v18  ;;  %v17833_v29 = vld [vmem:[#allocation140_spill] sm:$0xff]  ;;  %v17838_v59 = vld [vmem:[#allocation107_spill] sm:$0xff] }
 0x8b2   :  { %17819 = vst [vmem:[#allocation109_spill] sm:$0xff] %v16380_v30  ;;  %11531 = vmatprep.mubr.f32.mxu0 %v6633_v36  ;;  %v6457_v63 = vsub.f32 %v6441_v21, %v17821_v19  ;;  %v11224_v42 = vpop.f32.mrb[62].mxu1  ;;  %v6636_v1 = vadd.f32 %v17834_v26, %v17833_v29  ;;  %v17837_v21 = vld [vmem:[#allocation152_spill] sm:$0xff]  ;;  %v17849_v26 = vld [vmem:[#allocation151_spill] sm:$0xff] }
 0x8b3   :  { %v16387_v23 = vadd.f32 %v6458_v31, %v16237_v17  ;;  %v6444_v10 = vsub.f32 %v11224_v42, %v17824_v22  ;;  %v6404_v60 = vpop.f32.mrb[63].mxu1  ;;  %v6637_v14 = vadd.f32 %v17837_v21, %v17836_v8  ;;  %v17841_v42 = vld [vmem:[#allocation157_spill] sm:$0xff]  ;;  %v17852_v21 = vld [vmem:[#allocation150_spill] sm:$0xff] }
 0x8b4   :  { %v16390_v7 = vpop.f32.mrb[14].mxu0  ;;  %v6443_v54 = vsub.f32 %v6404_v60, %v17828_v12  ;;  %11475 = vmatprep.mubr.f32.mxu1 %v6457_v63  ;;  %v16396_v18 = vadd.f32 %v6457_v63, %v17829_v34  ;;  %v17840_v63 = vld [vmem:[#allocation149_spill] sm:$0xff]  ;;  %v17843_v60 = vld [vmem:[#allocation132_spill] sm:$0xff]  ;;  %v17847_v34 = vld [vmem:[#allocation158_spill] sm:$0xff] }
 0x8b5   :  { %17825 = vst [vmem:[#allocation58_spill] sm:$0xff] %v16390_v7  ;;  %v16398_v50 = vpop.f32.mrb[15].mxu0  ;;  %11532 = vmatmul.mubr.f32.gmra.mrb[76].mxu0 %v6634_v39  ;;  %v6460_v17 = vsub.f32 %v6444_v10, %v17831_v16  ;;  %11476 = vmatmul.mubr.f32.gmra.mrb[124].mxu1 %v6458_v31  ;;  %v6638_v2 = vadd.f32 %v17841_v42, %v17840_v63 }
 0x8b6   :  { %17830 = vst [vmem:[#allocation110_spill] sm:$0xff] %v16398_v50  ;;  %11534 = vmatprep.mubr.f32.mxu0 %v6635_v25  ;;  %v6459_v58 = vsub.f32 %v6443_v54, %v17832_v61  ;;  %v16402_v13 = vpop.f32.mrb[64].mxu1  ;;  %v6639_v27 = vadd.f32 %v17844_v40, %v17843_v60  ;;  %v17846_v54 = vld [vmem:[#allocation124_spill] sm:$0xff]  ;;  %v17856_v60 = vld [vmem:[#allocation77_spill] sm:$0xff] }
 0x8b7   :  { %v16407_v0 = vadd.f32 %v6460_v17, %v16255_v37  ;;  %v7889_v20 = vsub.f32 %v16265_v45, %v16402_v13  ;;  %v16411_v38 = vpop.f32.mrb[65].mxu1  ;;  %v6640_v16 = vadd.f32 %v17847_v34, %v17846_v54  ;;  %v17859_v34 = vld [vmem:[#allocation133_spill] sm:$0xff] }
 0x8b8   :  { %v16413_v6 = vpop.f32.mrb[16].mxu0  ;;  %v7888_v36 = vsub.f32 %v16271_v28, %v16411_v38  ;;  %11478 = vmatprep.mubr.f32.mxu1 %v6459_v58  ;;  %v16420_v31 = vadd.f32 %v6459_v58, %v17838_v59 }
 0x8b9   :  { %17835 = vst [vmem:[#allocation60_spill] sm:$0xff] %v16413_v6  ;;  %8081 = vst [vmem:[#allocation30 + $0x8] sm:$0xff] %v7889_v20  ;;  %v16422_v37 = vpop.f32.mrb[17].mxu0  ;;  %11535 = vmatmul.mubr.f32.gmra.mrb[78].mxu0 %v6636_v1  ;;  %11479 = vmatmul.mubr.f32.gmra.mrb[126].mxu1 %v6460_v17  ;;  %v17850_v1 = vld [vmem:[#allocation71_spill] sm:$0xff] }
 0x8ba   :  { %17839 = vst [vmem:[#allocation111_spill] sm:$0xff] %v16422_v37  ;;  %8080 = vst [vmem:[#allocation30] sm:$0xff] %v7888_v36  ;;  %11537 = vmatprep.mubr.f32.mxu0 %v6637_v14  ;;  %v16424_v19 = vpop.f32.mrb[66].mxu1  ;;  %v6641_v20 = vadd.f32 %v17850_v1, %v17849_v26  ;;  %v17853_v14 = vld [vmem:[#allocation68_spill] sm:$0xff] }
 0x8bb   :  { %v7891_v33 = vsub.f32 %v16282_v55, %v16424_v19  ;;  %v16430_v39 = vpop.f32.mrb[67].mxu1  ;;  %v6642_v59 = vadd.f32 %v17853_v14, %v17852_v21  ;;  %v17863_v21 = vld [vmem:[#allocation146_spill] sm:$0xff]  ;;  %v17864_v14 = vld [vmem:[#allocation83_spill] sm:$0xff] }
 0x8bc   :  { %v16432_v22 = vpop.f32.mrb[18].mxu0  ;;  %v7890_v10 = vsub.f32 %v16290_v47, %v16430_v39 }
 0x8bd   :  { %17842 = vst [vmem:[#allocation62_spill] sm:$0xff] %v16432_v22  ;;  %8083 = vst [vmem:[#allocation30 + $0x18] sm:$0xff] %v7891_v33  ;;  %v16438_v25 = vpop.f32.mrb[19].mxu0  ;;  %11538 = vmatmul.mubr.f32.gmra.mrb[80].mxu0 %v6638_v2 }
 0x8be   :  { %17845 = vst [vmem:[#allocation112_spill] sm:$0xff] %v16438_v25  ;;  %8082 = vst [vmem:[#allocation30 + $0x10] sm:$0xff] %v7890_v10  ;;  %11540 = vmatprep.mubr.f32.mxu0 %v6639_v27  ;;  %v16440_v12 = vpop.f32.mrb[68].mxu1  ;;  %v17855_v10 = vld [vmem:[#allocation153_spill] sm:$0xff] }
 0x8bf   :  { %v7893_v17 = vsub.f32 %v16300_v9, %v16440_v12  ;;  %v16446_v61 = vpop.f32.mrb[69].mxu1  ;;  %v6643_v40 = vadd.f32 %v17856_v60, %v17855_v10  ;;  %v17867_v10 = vld [vmem:[#allocation154_spill] sm:$0xff]  ;;  %v17868_v60 = vld [vmem:[#allocation80_spill] sm:$0xff] }
 0x8c0   :  { %v16448_v58 = vpop.f32.mrb[20].mxu0  ;;  %v7892_v29 = vsub.f32 %v16308_v56, %v16446_v61 }
 0x8c1   :  { %17848 = vst [vmem:[#allocation64_spill] sm:$0xff] %v16448_v58  ;;  %8085 = vst [vmem:[#allocation30 + $0x28] sm:$0xff] %v7893_v17  ;;  %v16454_v36 = vpop.f32.mrb[21].mxu0  ;;  %11541 = vmatmul.mubr.f32.gmra.mrb[82].mxu0 %v6640_v16  ;;  %v17860_v16 = vld [vmem:[#allocation74_spill] sm:$0xff] }
 0x8c2   :  { %17851 = vst [vmem:[#allocation114_spill] sm:$0xff] %v16454_v36  ;;  %8084 = vst [vmem:[#allocation30 + $0x20] sm:$0xff] %v7892_v29  ;;  %11543 = vmatprep.mubr.f32.mxu0 %v6641_v20  ;;  %v16456_v8 = vpop.f32.mrb[70].mxu1  ;;  %v6644_v17 = vadd.f32 %v17860_v16, %v17859_v34 }
 0x8c3   :  { %v7895_v63 = vsub.f32 %v16318_v11, %v16456_v8  ;;  %v16462_v42 = vpop.f32.mrb[71].mxu1 }
 0x8c4   :  { %v16464_v2 = vpop.f32.mrb[22].mxu0  ;;  %v7894_v33 = vsub.f32 %v16326_v3, %v16462_v42 }
 0x8c5   :  { %17854 = vst [vmem:[#allocation115_spill] sm:$0xff] %v16464_v2  ;;  %8087 = vst [vmem:[#allocation30 + $0x38] sm:$0xff] %v7895_v63  ;;  %v16470_v27 = vpop.f32.mrb[23].mxu0  ;;  %11544 = vmatmul.mubr.f32.gmra.mrb[84].mxu0 %v6642_v59  ;;  %v6645_v59 = vadd.f32 %v17864_v14, %v17863_v21  ;;  %v17871_v21 = vld [vmem:[#allocation126_spill] sm:$0xff]  ;;  %v17872_v14 = vld [vmem:[#allocation67_spill] sm:$0xff] }
 0x8c6   :  { %17857 = vst [vmem:[#allocation116_spill] sm:$0xff] %v16470_v27  ;;  %8086 = vst [vmem:[#allocation30 + $0x30] sm:$0xff] %v7894_v33  ;;  %11546 = vmatprep.mubr.f32.mxu0 %v6643_v40  ;;  %v16472_v54 = vpop.f32.mrb[72].mxu1  ;;  %v6646_v40 = vadd.f32 %v17868_v60, %v17867_v10  ;;  %v17875_v10 = vld [vmem:[#allocation125_spill] sm:$0xff]  ;;  %v17876_v60 = vld [vmem:[#allocation86_spill] sm:$0xff] }
 0x8c7   :  { %17858 = vst [vmem:[#allocation135_spill] sm:$0xff] %v16472_v54  ;;  %v7897_v29 = vsub.f32 %v16336_v43, %v16472_v54  ;;  %v16478_v26 = vpop.f32.mrb[73].mxu1 }
 0x8c8   :  { %17861 = vst [vmem:[#allocation119_spill] sm:$0xff] %v16478_v26  ;;  %v16480_v1 = vpop.f32.mrb[24].mxu0  ;;  %v7896_v20 = vsub.f32 %v16344_v32, %v16478_v26 }
 0x8c9   :  { %17862 = vst [vmem:[#allocation128_spill] sm:$0xff] %v16480_v1  ;;  %8089 = vst [vmem:[#allocation30 + $0x48] sm:$0xff] %v7897_v29  ;;  %v16486_v63 = vpop.f32.mrb[25].mxu0  ;;  %11547 = vmatmul.mubr.f32.gmra.mrb[86].mxu0 %v6644_v17  ;;  %v6647_v17 = vadd.f32 %v17872_v14, %v17871_v21  ;;  %v17879_v21 = vld [vmem:[#allocation155_spill] sm:$0xff]  ;;  %v17880_v14 = vld [vmem:[#allocation70_spill] sm:$0xff] }
 0x8ca   :  { %17865 = vst [vmem:[#allocation120_spill] sm:$0xff] %v16486_v63  ;;  %8088 = vst [vmem:[#allocation30 + $0x40] sm:$0xff] %v7896_v20  ;;  %11549 = vmatprep.mubr.f32.mxu0 %v6645_v59  ;;  %v16488_v33 = vpop.f32.mrb[74].mxu1 }
 0x8cb   :  { %17866 = vst [vmem:[#allocation143_spill] sm:$0xff] %v16488_v33  ;;  %v7899_v34 = vsub.f32 %v16354_v52, %v16488_v33  ;;  %v16494_v16 = vpop.f32.mrb[75].mxu1  ;;  %v6648_v33 = vadd.f32 %v17876_v60, %v17875_v10  ;;  %v17883_v10 = vld [vmem:[#allocation134_spill] sm:$0xff]  ;;  %v17884_v60 = vld [vmem:[#allocation69_spill] sm:$0xff] }
 0x8cc   :  { %17869 = vst [vmem:[#allocation142_spill] sm:$0xff] %v16494_v16  ;;  %v16496_v26 = vpop.f32.mrb[26].mxu0  ;;  %v7898_v29 = vsub.f32 %v16362_v41, %v16494_v16 }
 0x8cd   :  { %17870 = vst [vmem:[#allocation144_spill] sm:$0xff] %v16496_v26  ;;  %8091 = vst [vmem:[#allocation30 + $0x58] sm:$0xff] %v7899_v34  ;;  %v16502_v20 = vpop.f32.mrb[27].mxu0  ;;  %11550 = vmatmul.mubr.f32.gmra.mrb[88].mxu0 %v6646_v40  ;;  %v6649_v40 = vadd.f32 %v17880_v14, %v17879_v21  ;;  %v17887_v21 = vld [vmem:[#allocation156_spill] sm:$0xff]  ;;  %v17888_v14 = vld [vmem:[#allocation73_spill] sm:$0xff] }
 0x8ce   :  { %17873 = vst [vmem:[#allocation129_spill] sm:$0xff] %v16502_v20  ;;  %8090 = vst [vmem:[#allocation30 + $0x50] sm:$0xff] %v7898_v29  ;;  %11552 = vmatprep.mubr.f32.mxu0 %v6647_v17  ;;  %v16504_v59 = vpop.f32.mrb[76].mxu1 }
 0x8cf   :  { %17874 = vst [vmem:[#allocation137_spill] sm:$0xff] %v16504_v59  ;;  %v7901_v52 = vsub.f32 %v16372_v5, %v16504_v59  ;;  %v16510_v54 = vpop.f32.mrb[77].mxu1  ;;  %v6650_v59 = vadd.f32 %v17884_v60, %v17883_v10  ;;  %v17890_v10 = vld [vmem:[#allocation136_spill] sm:$0xff] }
 0x8d0   :  { %17877 = vst [vmem:[#allocation145_spill] sm:$0xff] %v16510_v54  ;;  %v16512_v16 = vpop.f32.mrb[28].mxu0  ;;  %v7900_v34 = vsub.f32 %v16380_v30, %v16510_v54  ;;  %v17891_v60 = vld [vmem:[#allocation72_spill] sm:$0xff] }
 0x8d1   :  { %17878 = vst [vmem:[#allocation122_spill] sm:$0xff] %v16512_v16  ;;  %8093 = vst [vmem:[#allocation30 + $0x68] sm:$0xff] %v7901_v52  ;;  %v16518_v29 = vpop.f32.mrb[29].mxu0  ;;  %11553 = vmatmul.mubr.f32.gmra.mrb[90].mxu0 %v6648_v33  ;;  %v6651_v33 = vadd.f32 %v17888_v14, %v17887_v21  ;;  %v17893_v21 = vld [vmem:[#allocation76_spill] sm:$0xff]  ;;  %v17894_v14 = vld [vmem:[#allocation98_spill] sm:$0xff] }
 0x8d2   :  { %17881 = vst [vmem:[#allocation104_spill] sm:$0xff] %v16518_v29  ;;  %8092 = vst [vmem:[#allocation30 + $0x60] sm:$0xff] %v7900_v34  ;;  %11555 = vmatprep.mubr.f32.mxu0 %v6649_v40  ;;  %v16520_v17 = vpop.f32.mrb[78].mxu1 }
 0x8d3   :  { %17882 = vst [vmem:[#allocation46_spill] sm:$0xff] %v16520_v17  ;;  %v7903_v5 = vsub.f32 %v16390_v7, %v16520_v17  ;;  %v16526_v41 = vpop.f32.mrb[79].mxu1  ;;  %v6652_v17 = vadd.f32 %v17891_v60, %v17890_v10  ;;  %v17896_v10 = vld [vmem:[#allocation75_spill] sm:$0xff] }
 0x8d4   :  { %17885 = vst [vmem:[#allocation48_spill] sm:$0xff] %v16526_v41  ;;  %v16528_v54 = vpop.f32.mrb[30].mxu0  ;;  %v7902_v52 = vsub.f32 %v16398_v50, %v16526_v41  ;;  %v17897_v60 = vld [vmem:[#allocation95_spill] sm:$0xff] }
 0x8d5   :  { %17886 = vst [vmem:[#allocation50_spill] sm:$0xff] %v16528_v54  ;;  %8095 = vst [vmem:[#allocation30 + $0x78] sm:$0xff] %v7903_v5  ;;  %v16534_v34 = vpop.f32.mrb[31].mxu0  ;;  %11556 = vmatmul.mubr.f32.gmra.mrb[92].mxu0 %v6650_v59  ;;  %v6653_v59 = vadd.f32 %v17894_v14, %v17893_v21  ;;  %v17899_v21 = vld [vmem:[#allocation79_spill] sm:$0xff]  ;;  %v17900_v14 = vld [vmem:[#allocation45_spill] sm:$0xff] }
 0x8d6   :  { %8094 = vst [vmem:[#allocation30 + $0x70] sm:$0xff] %v7902_v52  ;;  %11558 = vmatprep.mubr.f32.mxu0 %v6651_v33  ;;  %v16536_v40 = vpop.f32.mrb[80].mxu1 }
 0x8d7   :  { %17889 = vst [vmem:[#allocation138_spill] sm:$0xff] %v16536_v40  ;;  %v7905_v7 = vsub.f32 %v16413_v6, %v16536_v40  ;;  %v16542_v30 = vpop.f32.mrb[81].mxu1  ;;  %v6654_v40 = vadd.f32 %v17897_v60, %v17896_v10  ;;  %v17902_v10 = vld [vmem:[#allocation78_spill] sm:$0xff]  ;;  %v17903_v60 = vld [vmem:[#allocation101_spill] sm:$0xff] }
 0x8d8   :  { %17892 = vst [vmem:[#allocation121_spill] sm:$0xff] %v16542_v30  ;;  %v16544_v41 = vpop.f32.mrb[32].mxu0  ;;  %v7904_v5 = vsub.f32 %v16422_v37, %v16542_v30 }
 0x8d9   :  { %8097 = vst [vmem:[#allocation30 + $0x88] sm:$0xff] %v7905_v7  ;;  %v16550_v52 = vpop.f32.mrb[33].mxu0  ;;  %11559 = vmatmul.mubr.f32.gmra.mrb[94].mxu0 %v6652_v17  ;;  %v6655_v17 = vadd.f32 %v17900_v14, %v17899_v21  ;;  %v17905_v21 = vld [vmem:[#allocation82_spill] sm:$0xff]  ;;  %v17906_v14 = vld [vmem:[#allocation49_spill] sm:$0xff] }
 0x8da   :  { %8096 = vst [vmem:[#allocation30 + $0x80] sm:$0xff] %v7904_v5  ;;  %11561 = vmatprep.mubr.f32.mxu0 %v6653_v59  ;;  %v16552_v33 = vpop.f32.mrb[82].mxu1 }
 0x8db   :  { %17895 = vst [vmem:[#allocation105_spill] sm:$0xff] %v16552_v33  ;;  %v7907_v6 = vsub.f32 %v16432_v22, %v16552_v33  ;;  %v16558_v50 = vpop.f32.mrb[83].mxu1  ;;  %v6656_v33 = vadd.f32 %v17903_v60, %v17902_v10  ;;  %v17908_v10 = vld [vmem:[#allocation81_spill] sm:$0xff]  ;;  %v17909_v60 = vld [vmem:[#allocation47_spill] sm:$0xff] }
 0x8dc   :  { %17898 = vst [vmem:[#allocation106_spill] sm:$0xff] %v16558_v50  ;;  %v16560_v30 = vpop.f32.mrb[34].mxu0  ;;  %v7906_v7 = vsub.f32 %v16438_v25, %v16558_v50 }
 0x8dd   :  { %8099 = vst [vmem:[#allocation30 + $0x98] sm:$0xff] %v7907_v6  ;;  %v16566_v5 = vpop.f32.mrb[35].mxu0  ;;  %11562 = vmatmul.mubr.f32.gmra.mrb[96].mxu0 %v6654_v40  ;;  %v6657_v40 = vadd.f32 %v17906_v14, %v17905_v21  ;;  %v17911_v21 = vld [vmem:[#allocation85_spill] sm:$0xff] }
 0x8de   :  { %8098 = vst [vmem:[#allocation30 + $0x90] sm:$0xff] %v7906_v7  ;;  %11564 = vmatprep.mubr.f32.mxu0 %v6655_v17  ;;  %v16568_v59 = vpop.f32.mrb[84].mxu1  ;;  %v17912_v14 = vld [vmem:[#allocation93_spill] sm:$0xff] }
 0x8df   :  { %17901 = vst [vmem:[#allocation127_spill] sm:$0xff] %v16568_v59  ;;  %v7909_v22 = vsub.f32 %v16448_v58, %v16568_v59  ;;  %v16574_v37 = vpop.f32.mrb[85].mxu1  ;;  %v6658_v59 = vadd.f32 %v17909_v60, %v17908_v10  ;;  %v17914_v10 = vld [vmem:[#allocation84_spill] sm:$0xff]  ;;  %v17915_v60 = vld [vmem:[#allocation91_spill] sm:$0xff] }
 0x8e0   :  { %17904 = vst [vmem:[#allocation147_spill] sm:$0xff] %v16574_v37  ;;  %v16576_v50 = vpop.f32.mrb[36].mxu0  ;;  %v7908_v6 = vsub.f32 %v16454_v36, %v16574_v37 }
 0x8e1   :  { %8101 = vst [vmem:[#allocation30 + $0xa8] sm:$0xff] %v7909_v22  ;;  %v16582_v7 = vpop.f32.mrb[37].mxu0  ;;  %11565 = vmatmul.mubr.f32.gmra.mrb[98].mxu0 %v6656_v33  ;;  %v6659_v33 = vadd.f32 %v17912_v14, %v17911_v21  ;;  %v17917_v21 = vld [vmem:[#allocation88_spill] sm:$0xff] }
 0x8e2   :  { %8100 = vst [vmem:[#allocation30 + $0xa0] sm:$0xff] %v7908_v6  ;;  %11567 = vmatprep.mubr.f32.mxu0 %v6657_v40  ;;  %v16584_v17 = vpop.f32.mrb[86].mxu1  ;;  %v17918_v14 = vld [vmem:[#allocation96_spill] sm:$0xff] }
 0x8e3   :  { %17907 = vst [vmem:[#allocation53_spill] sm:$0xff] %v16584_v17  ;;  %v7911_v58 = vsub.f32 %v16464_v2, %v16584_v17  ;;  %v16590_v25 = vpop.f32.mrb[87].mxu1  ;;  %v6660_v17 = vadd.f32 %v17915_v60, %v17914_v10  ;;  %v17921_v10 = vld [vmem:[#allocation87_spill] sm:$0xff]  ;;  %v17922_v60 = vld [vmem:[#allocation94_spill] sm:$0xff] }
 0x8e4   :  { %17910 = vst [vmem:[#allocation51_spill] sm:$0xff] %v16590_v25  ;;  %v16592_v37 = vpop.f32.mrb[38].mxu0  ;;  %v7910_v22 = vsub.f32 %v16470_v27, %v16590_v25 }
 0x8e5   :  { %8103 = vst [vmem:[#allocation30 + $0xb8] sm:$0xff] %v7911_v58  ;;  %v16598_v6 = vpop.f32.mrb[39].mxu0  ;;  %11568 = vmatmul.mubr.f32.gmra.mrb[100].mxu0 %v6658_v59  ;;  %v6661_v59 = vadd.f32 %v17918_v14, %v17917_v21  ;;  %v17925_v21 = vld [vmem:[#allocation65_spill] sm:$0xff]  ;;  %v17926_v14 = vld [vmem:[#allocation99_spill] sm:$0xff] }
 0x8e6   :  { %8102 = vst [vmem:[#allocation30 + $0xb0] sm:$0xff] %v7910_v22  ;;  %11570 = vmatprep.mubr.f32.mxu0 %v6659_v33  ;;  %v16600_v40 = vpop.f32.mrb[88].mxu1 }
 0x8e7   :  { %17913 = vst [vmem:[#allocation55_spill] sm:$0xff] %v16600_v40  ;;  %v7913_v2 = vsub.f32 %v16480_v1, %v16600_v40  ;;  %v16606_v36 = vpop.f32.mrb[89].mxu1  ;;  %v6662_v40 = vadd.f32 %v17922_v60, %v17921_v10  ;;  %v17929_v10 = vld [vmem:[#allocation89_spill] sm:$0xff] }
 0x8e8   :  { %17916 = vst [vmem:[#allocation57_spill] sm:$0xff] %v16606_v36  ;;  %v16608_v25 = vpop.f32.mrb[40].mxu0  ;;  %v7912_v58 = vsub.f32 %v16486_v63, %v16606_v36  ;;  %v17930_v60 = vld [vmem:[#allocation97_spill] sm:$0xff] }
 0x8e9   :  { %8105 = vst [vmem:[#allocation30 + $0xc8] sm:$0xff] %v7913_v2  ;;  %v16614_v22 = vpop.f32.mrb[41].mxu0  ;;  %11571 = vmatmul.mubr.f32.gmra.mrb[102].mxu0 %v6660_v17  ;;  %v6663_v17 = vadd.f32 %v17926_v14, %v17925_v21  ;;  %v17933_v21 = vld [vmem:[#allocation118_spill] sm:$0xff] }
 0x8ea   :  { %17919 = vst [vmem:[#allocation139_spill] sm:$0xff] %v16614_v22  ;;  %8104 = vst [vmem:[#allocation30 + $0xc0] sm:$0xff] %v7912_v58  ;;  %11573 = vmatprep.mubr.f32.mxu0 %v6661_v59  ;;  %v16616_v33 = vpop.f32.mrb[90].mxu1  ;;  %v17934_v14 = vld [vmem:[#allocation102_spill] sm:$0xff] }
 0x8eb   :  { %17920 = vst [vmem:[#allocation130_spill] sm:$0xff] %v16616_v33  ;;  %v7915_v1 = vsub.f32 %v16496_v26, %v16616_v33  ;;  %v16622_v27 = vpop.f32.mrb[91].mxu1  ;;  %v6664_v33 = vadd.f32 %v17930_v60, %v17929_v10  ;;  %v17937_v10 = vld [vmem:[#allocation117_spill] sm:$0xff]  ;;  %v17938_v60 = vld [vmem:[#allocation100_spill] sm:$0xff] }
 0x8ec   :  { %17923 = vst [vmem:[#allocation61_spill] sm:$0xff] %v16622_v27  ;;  %v16624_v36 = vpop.f32.mrb[42].mxu0  ;;  %v7914_v2 = vsub.f32 %v16502_v20, %v16622_v27 }
 0x8ed   :  { %17924 = vst [vmem:[#allocation141_spill] sm:$0xff] %v16624_v36  ;;  %8107 = vst [vmem:[#allocation30 + $0xd8] sm:$0xff] %v7915_v1  ;;  %v16630_v58 = vpop.f32.mrb[43].mxu0  ;;  %11574 = vmatmul.mubr.f32.gmra.mrb[104].mxu0 %v6662_v40  ;;  %v6665_v40 = vadd.f32 %v17934_v14, %v17933_v21  ;;  %v17941_v21 = vld [vmem:[#allocation92_spill] sm:$0xff]  ;;  %v17942_v14 = vld [vmem:[#allocation103_spill] sm:$0xff] }
 0x8ee   :  { %17927 = vst [vmem:[#allocation131_spill] sm:$0xff] %v16630_v58  ;;  %8106 = vst [vmem:[#allocation30 + $0xd0] sm:$0xff] %v7914_v2  ;;  %11576 = vmatprep.mubr.f32.mxu0 %v6663_v17  ;;  %v16632_v59 = vpop.f32.mrb[92].mxu1 }
 0x8ef   :  { %17928 = vst [vmem:[#allocation63_spill] sm:$0xff] %v16632_v59  ;;  %v7917_v26 = vsub.f32 %v16512_v16, %v16632_v59  ;;  %v16638_v63 = vpop.f32.mrb[93].mxu1  ;;  %v6666_v59 = vadd.f32 %v17938_v60, %v17937_v10  ;;  %v17944_v10 = vld [vmem:[#allocation90_spill] sm:$0xff]  ;;  %v17945_v60 = vld [vmem:[#allocation44_spill] sm:$0xff] }
 0x8f0   :  { %17931 = vst [vmem:[#allocation59_spill] sm:$0xff] %v16638_v63  ;;  %v16640_v27 = vpop.f32.mrb[44].mxu0  ;;  %v7916_v1 = vsub.f32 %v16518_v29, %v16638_v63 }
 0x8f1   :  { %17932 = vst [vmem:[#allocation113_spill] sm:$0xff] %v16640_v27  ;;  %8109 = vst [vmem:[#allocation30 + $0xe8] sm:$0xff] %v7917_v26  ;;  %v16646_v2 = vpop.f32.mrb[45].mxu0  ;;  %11577 = vmatmul.mubr.f32.gmra.mrb[106].mxu0 %v6664_v33  ;;  %v6667_v33 = vadd.f32 %v17942_v14, %v17941_v21 }
 0x8f2   :  { %17935 = vst [vmem:[#allocation52_spill] sm:$0xff] %v16646_v2  ;;  %8108 = vst [vmem:[#allocation30 + $0xe0] sm:$0xff] %v7916_v1  ;;  %11579 = vmatprep.mubr.f32.mxu0 %v6665_v40  ;;  %v16648_v17 = vpop.f32.mrb[94].mxu1 }
 0x8f3   :  { %17936 = vst [vmem:[#allocation140_spill] sm:$0xff] %v16648_v17  ;;  %v7919_v16 = vsub.f32 %v16528_v54, %v16648_v17  ;;  %v16654_v20 = vpop.f32.mrb[95].mxu1  ;;  %v6668_v17 = vadd.f32 %v17945_v60, %v17944_v10 }
 0x8f4   :  { %17939 = vst [vmem:[#allocation148_spill] sm:$0xff] %v16654_v20  ;;  %v16656_v63 = vpop.f32.mrb[46].mxu0  ;;  %v7918_v26 = vsub.f32 %v16534_v34, %v16654_v20 }
 0x8f5   :  { %17940 = vst [vmem:[#allocation123_spill] sm:$0xff] %v16656_v63  ;;  %8111 = vst [vmem:[#allocation30 + $0xf8] sm:$0xff] %v7919_v16  ;;  %v16662_v1 = vpop.f32.mrb[47].mxu0  ;;  %11580 = vmatmul.mubr.f32.gmra.mrb[108].mxu0 %v6666_v59 }
 0x8f6   :  { %17943 = vst [vmem:[#allocation152_spill] sm:$0xff] %v16662_v1  ;;  %8110 = vst [vmem:[#allocation30 + $0xf0] sm:$0xff] %v7918_v26  ;;  %11582 = vmatprep.mubr.f32.mxu0 %v6667_v33  ;;  %v16664_v40 = vpop.f32.mrb[96].mxu1 }
 0x8f7   :  { %v7921_v54 = vsub.f32 %v16544_v41, %v16664_v40  ;;  %v16670_v29 = vpop.f32.mrb[97].mxu1 }
 0x8f8   :  { %v7920_v20 = vsub.f32 %v16550_v52, %v16670_v29 }
 0x8f9   :  { %8113 = vst [vmem:[#allocation30 + $0x108] sm:$0xff] %v7921_v54  ;;  %11583 = vmatmul.mubr.f32.gmra.mrb[110].mxu0 %v6668_v17 }
 0x8fa   :  { %8112 = vst [vmem:[#allocation30 + $0x100] sm:$0xff] %v7920_v20  ;;  %11585 = vmatprep.mubr.f32.mxu0 %v16288_v24  ;;  %v16675_v16 = vpop.f32.mrb[98].mxu1 }
 0x8fb   :  { %v7923_v59 = vsub.f32 %v16560_v30, %v16675_v16  ;;  %v16679_v26 = vpop.f32.mrb[99].mxu1 }
 0x8fc   :  { %v7922_v21 = vsub.f32 %v16566_v5, %v16679_v26 }
 0x8fd   :  { %8115 = vst [vmem:[#allocation30 + $0x118] sm:$0xff] %v7923_v59  ;;  %11586 = vmatmul.mubr.f32.gmra.mrb[112].mxu0 %v16279_v44 }
 0x8fe   :  { %8114 = vst [vmem:[#allocation30 + $0x110] sm:$0xff] %v7922_v21  ;;  %11588 = vmatprep.mubr.f32.mxu0 %v16306_v15  ;;  %v16685_v54 = vpop.f32.mrb[100].mxu1 }
 0x8ff   :  { %v7925_v24 = vsub.f32 %v16576_v50, %v16685_v54  ;;  %v16689_v20 = vpop.f32.mrb[101].mxu1 }
 0x900   :  { %v7924_v17 = vsub.f32 %v16582_v7, %v16689_v20 }
 0x901   :  { %8117 = vst [vmem:[#allocation30 + $0x128] sm:$0xff] %v7925_v24  ;;  %11589 = vmatmul.mubr.f32.gmra.mrb[114].mxu0 %v16297_v51 }
 0x902   :  { %8116 = vst [vmem:[#allocation30 + $0x120] sm:$0xff] %v7924_v17  ;;  %11591 = vmatprep.mubr.f32.mxu0 %v16324_v53  ;;  %v16695_v44 = vpop.f32.mrb[102].mxu1 }
 0x903   :  { %v7927_v15 = vsub.f32 %v16592_v37, %v16695_v44  ;;  %v16699_v14 = vpop.f32.mrb[103].mxu1 }
 0x904   :  { %v7926_v33 = vsub.f32 %v16598_v6, %v16699_v14 }
 0x905   :  { %8119 = vst [vmem:[#allocation30 + $0x138] sm:$0xff] %v7927_v15  ;;  %11592 = vmatmul.mubr.f32.gmra.mrb[116].mxu0 %v16315_v4 }
 0x906   :  { %8118 = vst [vmem:[#allocation30 + $0x130] sm:$0xff] %v7926_v33  ;;  %11594 = vmatprep.mubr.f32.mxu0 %v16342_v35  ;;  %v16705_v51 = vpop.f32.mrb[104].mxu1 }
 0x907   :  { %17946 = vst [vmem:[#allocation107_spill] sm:$0xff] %v16705_v51  ;;  %v7929_v53 = vsub.f32 %v16608_v25, %v16705_v51  ;;  %v16709_v10 = vpop.f32.mrb[105].mxu1 }
 0x908   :  { %17947 = vst [vmem:[#allocation149_spill] sm:$0xff] %v16709_v10  ;;  %v7928_v60 = vsub.f32 %v16614_v22, %v16709_v10 }
 0x909   :  { %8121 = vst [vmem:[#allocation30 + $0x148] sm:$0xff] %v7929_v53  ;;  %11595 = vmatmul.mubr.f32.gmra.mrb[118].mxu0 %v16333_v62 }
 0x90a   :  { %8120 = vst [vmem:[#allocation30 + $0x140] sm:$0xff] %v7928_v60  ;;  %11597 = vmatprep.mubr.f32.mxu0 %v16360_v57  ;;  %v16715_v4 = vpop.f32.mrb[106].mxu1 }
 0x90b   :  { %17948 = vst [vmem:[#allocation157_spill] sm:$0xff] %v16715_v4  ;;  %v7931_v35 = vsub.f32 %v16624_v36, %v16715_v4  ;;  %v16719_v59 = vpop.f32.mrb[107].mxu1 }
 0x90c   :  { %17949 = vst [vmem:[#allocation132_spill] sm:$0xff] %v16719_v59  ;;  %v7930_v21 = vsub.f32 %v16630_v58, %v16719_v59 }
 0x90d   :  { %8123 = vst [vmem:[#allocation30 + $0x158] sm:$0xff] %v7931_v35  ;;  %11598 = vmatmul.mubr.f32.gmra.mrb[120].mxu0 %v16351_v49 }
 0x90e   :  { %8122 = vst [vmem:[#allocation30 + $0x150] sm:$0xff] %v7930_v21  ;;  %11600 = vmatprep.mubr.f32.mxu0 %v16378_v48  ;;  %v16725_v62 = vpop.f32.mrb[108].mxu1 }
 0x90f   :  { %17950 = vst [vmem:[#allocation66_spill] sm:$0xff] %v16725_v62  ;;  %v7933_v57 = vsub.f32 %v16640_v27, %v16725_v62  ;;  %v16729_v24 = vpop.f32.mrb[109].mxu1 }
 0x910   :  { %17951 = vst [vmem:[#allocation124_spill] sm:$0xff] %v16729_v24  ;;  %v7932_v17 = vsub.f32 %v16646_v2, %v16729_v24 }
 0x911   :  { %8125 = vst [vmem:[#allocation30 + $0x168] sm:$0xff] %v7933_v57  ;;  %11601 = vmatmul.mubr.f32.gmra.mrb[122].mxu0 %v16369_v46 }
 0x912   :  { %8124 = vst [vmem:[#allocation30 + $0x160] sm:$0xff] %v7932_v17  ;;  %11603 = vmatprep.mubr.f32.mxu0 %v16396_v18  ;;  %v16735_v49 = vpop.f32.mrb[110].mxu1 }
 0x913   :  { %17952 = vst [vmem:[#allocation158_spill] sm:$0xff] %v16735_v49  ;;  %v7935_v48 = vsub.f32 %v16656_v63, %v16735_v49  ;;  %v16739_v15 = vpop.f32.mrb[111].mxu1 }
 0x914   :  { %17953 = vst [vmem:[#allocation151_spill] sm:$0xff] %v16739_v15  ;;  %v7934_v33 = vsub.f32 %v16662_v1, %v16739_v15 }
 0x915   :  { %8127 = vst [vmem:[#allocation30 + $0x178] sm:$0xff] %v7935_v48  ;;  %11604 = vmatmul.mubr.f32.gmra.mrb[124].mxu0 %v16387_v23 }
 0x916   :  { %8126 = vst [vmem:[#allocation30 + $0x170] sm:$0xff] %v7934_v33  ;;  %11606 = vmatprep.mubr.f32.mxu0 %v16420_v31 }
 0x919   :  { %11607 = vmatmul.mubr.f32.gmra.mrb[126].mxu0 %v16407_v0 }
 0x950   :  { %v16746_v46 = vpop.f32.mrb[48].mxu0 }
 0x951   :  { %v16748_v18 = vpop.f32.mrb[49].mxu0 }
 0x954   :  { %v16750_v53 = vpop.f32.mrb[50].mxu0 }
 0x955   :  { %v16752_v60 = vpop.f32.mrb[51].mxu0 }
 0x958   :  { %v16754_v35 = vpop.f32.mrb[52].mxu0 }
 0x959   :  { %v16756_v21 = vpop.f32.mrb[53].mxu0 }
 0x95c   :  { %v16758_v57 = vpop.f32.mrb[54].mxu0 }
 0x95d   :  { %v16760_v23 = vpop.f32.mrb[55].mxu0 }
 0x960   :  { %v16762_v17 = vpop.f32.mrb[56].mxu0 }
 0x961   :  { %v16764_v31 = vpop.f32.mrb[57].mxu0 }
 0x964   :  { %v16766_v0 = vpop.f32.mrb[58].mxu0 }
 0x965   :  { %v16768_v48 = vpop.f32.mrb[59].mxu0 }
 0x968   :  { %v16770_v33 = vpop.f32.mrb[60].mxu0 }
 0x969   :  { %v16772_v15 = vpop.f32.mrb[61].mxu0 }
 0x96c   :  { %v16774_v49 = vpop.f32.mrb[62].mxu0 }
 0x96d   :  { %17954 = vst [vmem:[#allocation71_spill] sm:$0xff] %v16774_v49  ;;  %v16776_v1 = vpop.f32.mrb[63].mxu0 }
 0x96e   :  { %17955 = vst [vmem:[#allocation150_spill] sm:$0xff] %v16776_v1 }
 0x970   :  { %v11515_v63 = vpop.f32.mrb[64].mxu0  ;;  %v16778_v24 = vpop.f32.mrb[112].mxu1 }
 0x971   :  { %17956 = vst [vmem:[#allocation68_spill] sm:$0xff] %v16778_v24  ;;  %v7953_v62 = vsub.f32 %v11515_v63, %v16265_v45  ;;  %v7569_v2 = vpop.f32.mrb[65].mxu0  ;;  %v7937_v27 = vsub.f32 %v16746_v46, %v16778_v24  ;;  %v16783_v59 = vpop.f32.mrb[113].mxu1 }
 0x972   :  { %v7952_v4 = vsub.f32 %v7569_v2, %v16271_v28  ;;  %v7936_v58 = vsub.f32 %v16748_v18, %v16783_v59 }
 0x973   :  { %v8017_v36 = vsub.f32 %v7953_v62, %v16402_v13  ;;  %8129 = vst [vmem:[#allocation30 + $0x188] sm:$0xff] %v7937_v27 }
 0x974   :  { %v8016_v10 = vsub.f32 %v7952_v4, %v16411_v38  ;;  %v11518_v51 = vpop.f32.mrb[66].mxu0  ;;  %8128 = vst [vmem:[#allocation30 + $0x180] sm:$0xff] %v7936_v58  ;;  %v16790_v22 = vpop.f32.mrb[114].mxu1 }
 0x975   :  { %8145 = vst [vmem:[#allocation31 + $0x8] sm:$0xff] %v8017_v36  ;;  %v7955_v45 = vsub.f32 %v11518_v51, %v16282_v55  ;;  %v7579_v63 = vpop.f32.mrb[67].mxu0  ;;  %v7939_v24 = vsub.f32 %v16750_v53, %v16790_v22  ;;  %v16795_v28 = vpop.f32.mrb[115].mxu1 }
 0x976   :  { %8144 = vst [vmem:[#allocation31] sm:$0xff] %v8016_v10  ;;  %v7954_v2 = vsub.f32 %v7579_v63, %v16290_v47  ;;  %v7938_v13 = vsub.f32 %v16752_v60, %v16795_v28 }
 0x977   :  { %v8019_v38 = vsub.f32 %v7955_v45, %v16424_v19  ;;  %8131 = vst [vmem:[#allocation30 + $0x198] sm:$0xff] %v7939_v24 }
 0x978   :  { %v8018_v27 = vsub.f32 %v7954_v2, %v16430_v39  ;;  %v11521_v36 = vpop.f32.mrb[68].mxu0  ;;  %8130 = vst [vmem:[#allocation30 + $0x190] sm:$0xff] %v7938_v13  ;;  %v16802_v55 = vpop.f32.mrb[116].mxu1 }
 0x979   :  { %8147 = vst [vmem:[#allocation31 + $0x18] sm:$0xff] %v8019_v38  ;;  %v7957_v58 = vsub.f32 %v11521_v36, %v16300_v9  ;;  %v7589_v51 = vpop.f32.mrb[69].mxu0  ;;  %v7941_v10 = vsub.f32 %v16754_v35, %v16802_v55  ;;  %v16807_v47 = vpop.f32.mrb[117].mxu1 }
 0x97a   :  { %8146 = vst [vmem:[#allocation31 + $0x10] sm:$0xff] %v8018_v27  ;;  %v7956_v4 = vsub.f32 %v7589_v51, %v16308_v56  ;;  %v7940_v19 = vsub.f32 %v16756_v21, %v16807_v47 }
 0x97b   :  { %v8021_v39 = vsub.f32 %v7957_v58, %v16440_v12  ;;  %8133 = vst [vmem:[#allocation30 + $0x1a8] sm:$0xff] %v7941_v10 }
 0x97c   :  { %v8020_v62 = vsub.f32 %v7956_v4, %v16446_v61  ;;  %v11524_v24 = vpop.f32.mrb[70].mxu0  ;;  %8132 = vst [vmem:[#allocation30 + $0x1a0] sm:$0xff] %v7940_v19  ;;  %v16814_v9 = vpop.f32.mrb[118].mxu1  ;;  %v17958_v19 = vld [vmem:[#allocation119_spill] sm:$0xff] }
 0x97d   :  { %8149 = vst [vmem:[#allocation31 + $0x28] sm:$0xff] %v8021_v39  ;;  %v7959_v45 = vsub.f32 %v11524_v24, %v16318_v11  ;;  %v7599_v63 = vpop.f32.mrb[71].mxu0  ;;  %v7943_v2 = vsub.f32 %v16758_v57, %v16814_v9  ;;  %v16819_v56 = vpop.f32.mrb[119].mxu1  ;;  %v17959_v24 = vld [vmem:[#allocation54_spill] sm:$0xff] }
 0x97e   :  { %8148 = vst [vmem:[#allocation31 + $0x20] sm:$0xff] %v8020_v62  ;;  %v7958_v13 = vsub.f32 %v7599_v63, %v16326_v3  ;;  %v7942_v12 = vsub.f32 %v16760_v23, %v16819_v56 }
 0x97f   :  { %v8023_v61 = vsub.f32 %v7959_v45, %v16456_v8  ;;  %8135 = vst [vmem:[#allocation30 + $0x1b8] sm:$0xff] %v7943_v2 }
 0x980   :  { %v8022_v38 = vsub.f32 %v7958_v13, %v16462_v42  ;;  %v11527_v27 = vpop.f32.mrb[72].mxu0  ;;  %8134 = vst [vmem:[#allocation30 + $0x1b0] sm:$0xff] %v7942_v12  ;;  %v16826_v11 = vpop.f32.mrb[120].mxu1  ;;  %v17957_v42 = vld [vmem:[#allocation135_spill] sm:$0xff]  ;;  %v17960_v13 = vld [vmem:[#allocation108_spill] sm:$0xff] }
 0x981   :  { %8151 = vst [vmem:[#allocation31 + $0x38] sm:$0xff] %v8023_v61  ;;  %v7961_v36 = vsub.f32 %v11527_v27, %v16336_v43  ;;  %v7609_v58 = vpop.f32.mrb[73].mxu0  ;;  %v7945_v51 = vsub.f32 %v16762_v17, %v16826_v11  ;;  %v16831_v3 = vpop.f32.mrb[121].mxu1 }
 0x982   :  { %8150 = vst [vmem:[#allocation31 + $0x30] sm:$0xff] %v8022_v38  ;;  %v7960_v10 = vsub.f32 %v7609_v58, %v16344_v32  ;;  %v7944_v8 = vsub.f32 %v16764_v31, %v16831_v3  ;;  %v17961_v38 = vld [vmem:[#allocation143_spill] sm:$0xff] }
 0x983   :  { %v8025_v4 = vsub.f32 %v7961_v36, %v17957_v42  ;;  %8137 = vst [vmem:[#allocation30 + $0x1c8] sm:$0xff] %v7945_v51  ;;  %v17962_v36 = vld [vmem:[#allocation142_spill] sm:$0xff] }
 0x984   :  { %v8024_v39 = vsub.f32 %v7960_v10, %v17958_v19  ;;  %v11530_v62 = vpop.f32.mrb[74].mxu0  ;;  %8136 = vst [vmem:[#allocation30 + $0x1c0] sm:$0xff] %v7944_v8  ;;  %v16838_v43 = vpop.f32.mrb[122].mxu1  ;;  %v17963_v8 = vld [vmem:[#allocation56_spill] sm:$0xff] }
 0x985   :  { %8153 = vst [vmem:[#allocation31 + $0x48] sm:$0xff] %v8025_v4  ;;  %v7963_v45 = vsub.f32 %v11530_v62, %v17959_v24  ;;  %v7619_v63 = vpop.f32.mrb[75].mxu0  ;;  %v7947_v2 = vsub.f32 %v16766_v0, %v16838_v43  ;;  %v16843_v32 = vpop.f32.mrb[123].mxu1  ;;  %v17965_v62 = vld [vmem:[#allocation109_spill] sm:$0xff] }
 0x986   :  { %8152 = vst [vmem:[#allocation31 + $0x40] sm:$0xff] %v8024_v39  ;;  %v7962_v12 = vsub.f32 %v7619_v63, %v17960_v13  ;;  %v7946_v61 = vsub.f32 %v16768_v48, %v16843_v32  ;;  %v17966_v63 = vld [vmem:[#allocation137_spill] sm:$0xff] }
 0x987   :  { %v8027_v27 = vsub.f32 %v7963_v45, %v17961_v38  ;;  %8139 = vst [vmem:[#allocation30 + $0x1d8] sm:$0xff] %v7947_v2  ;;  %v17967_v13 = vld [vmem:[#allocation145_spill] sm:$0xff] }
 0x988   :  { %v8026_v58 = vsub.f32 %v7962_v12, %v17962_v36  ;;  %v11533_v51 = vpop.f32.mrb[76].mxu0  ;;  %8138 = vst [vmem:[#allocation30 + $0x1d0] sm:$0xff] %v7946_v61  ;;  %v16850_v10 = vpop.f32.mrb[124].mxu1 }
 0x989   :  { %8155 = vst [vmem:[#allocation31 + $0x58] sm:$0xff] %v8027_v27  ;;  %v7965_v42 = vsub.f32 %v11533_v51, %v17963_v8  ;;  %v7629_v4 = vpop.f32.mrb[77].mxu0  ;;  %v7949_v19 = vsub.f32 %v16770_v33, %v16850_v10  ;;  %v16855_v39 = vpop.f32.mrb[125].mxu1  ;;  %v17969_v27 = vld [vmem:[#allocation58_spill] sm:$0xff] }
 0x98a   :  { %17964 = vst [vmem:[#allocation153_spill] sm:$0xff] %v16855_v39  ;;  %8154 = vst [vmem:[#allocation31 + $0x50] sm:$0xff] %v8026_v58  ;;  %v7964_v24 = vsub.f32 %v7629_v4, %v17965_v62  ;;  %v7948_v45 = vsub.f32 %v16772_v15, %v16855_v39  ;;  %v17972_v62 = vld [vmem:[#allocation46_spill] sm:$0xff] }
 0x98b   :  { %v8029_v2 = vsub.f32 %v7965_v42, %v17966_v63  ;;  %8141 = vst [vmem:[#allocation30 + $0x1e8] sm:$0xff] %v7949_v19  ;;  %v17971_v42 = vld [vmem:[#allocation110_spill] sm:$0xff] }
 0x98c   :  { %v8028_v12 = vsub.f32 %v7964_v24, %v17967_v13  ;;  %v11536_v61 = vpop.f32.mrb[78].mxu0  ;;  %8140 = vst [vmem:[#allocation30 + $0x1e0] sm:$0xff] %v7948_v45  ;;  %v16862_v38 = vpop.f32.mrb[126].mxu1  ;;  %v17973_v45 = vld [vmem:[#allocation48_spill] sm:$0xff] }
 0x98d   :  { %17968 = vst [vmem:[#allocation77_spill] sm:$0xff] %v16862_v38  ;;  %8157 = vst [vmem:[#allocation31 + $0x68] sm:$0xff] %v8029_v2  ;;  %v7967_v36 = vsub.f32 %v11536_v61, %v17969_v27  ;;  %v7639_v58 = vpop.f32.mrb[79].mxu0  ;;  %v7951_v51 = vsub.f32 %v16774_v49, %v16862_v38  ;;  %v16867_v8 = vpop.f32.mrb[127].mxu1  ;;  %v17974_v13 = vld [vmem:[#allocation60_spill] sm:$0xff] }
 0x98e   :  { %17970 = vst [vmem:[#allocation133_spill] sm:$0xff] %v16867_v8  ;;  %8156 = vst [vmem:[#allocation31 + $0x60] sm:$0xff] %v8028_v12  ;;  %v7966_v4 = vsub.f32 %v7639_v58, %v17971_v42  ;;  %v7950_v19 = vsub.f32 %v16776_v1, %v16867_v8 }
 0x98f   :  { %v8031_v24 = vsub.f32 %v7967_v36, %v17972_v62  ;;  %8143 = vst [vmem:[#allocation30 + $0x1f8] sm:$0xff] %v7951_v51 }
 0x990   :  { %v8030_v63 = vsub.f32 %v7966_v4, %v17973_v45  ;;  %v11539_v2 = vpop.f32.mrb[80].mxu0  ;;  %8142 = vst [vmem:[#allocation30 + $0x1f0] sm:$0xff] %v7950_v19 }
 0x991   :  { %8159 = vst [vmem:[#allocation31 + $0x78] sm:$0xff] %v8031_v24  ;;  %v7969_v61 = vsub.f32 %v11539_v2, %v17974_v13  ;;  %v7649_v27 = vpop.f32.mrb[81].mxu0 }
 0x992   :  { %13349 = shalt.err (!%p13346_p6)
}
 0x993   :  { %s13350_s11 = scalar_lea.hbm %s17016_s16, 8192 }
 0x994   :  { %p13351_p7 = scmp.ne.s32.totalorder %s17016_s16, %s13350_s11  ;;  %p13354_p8 = scmp.lt.u32.totalorder %s13350_s11, %s17016_s16 }
 0x996   :  { %p13356_p9 = pnand %p13354_p8, %p13351_p7 }
 0x998   :  { %13359 = shalt.err (!%p13356_p9)
}
 0x999   :  { %8219 = dma.vmem_to_hbm [thread:$0]  %s8214_s1, 8192, %s17016_s16, [#allocation6], %s13406_s22, %s13406_s22, %s13407_s23   ;;  %8158 = vst [vmem:[#allocation31 + $0x70] sm:$0xff] %v8030_v63  ;;  %v17975_v12 = vld [vmem:[#allocation111_spill] sm:$0xff]  ;;  %v17976_v58 = vld [vmem:[#allocation138_spill] sm:$0xff]  ;;  %v17977_v42 = vld [vmem:[#allocation121_spill] sm:$0xff] }
 0x99a   :  { %v7968_v36 = vsub.f32 %v7649_v27, %v17975_v12  ;;  %v8033_v51 = vsub.f32 %v7969_v61, %v17976_v58  ;;  %v11542_v19 = vpop.f32.mrb[82].mxu0  ;;  %v17978_v62 = vld [vmem:[#allocation62_spill] sm:$0xff]  ;;  %v17979_v2 = vld [vmem:[#allocation112_spill] sm:$0xff]  ;;  %v17980_v8 = vld [vmem:[#allocation105_spill] sm:$0xff]  ;;  %s13423_s16 = smov [#allocation31]  }
 0x99b   :  { %v7971_v24 = vsub.f32 %v11542_v19, %v17978_v62  ;;  %v7659_v45 = vpop.f32.mrb[83].mxu0  ;;  %v17981_v1 = vld [vmem:[#allocation106_spill] sm:$0xff]  ;;  %v17982_v63 = vld [vmem:[#allocation64_spill] sm:$0xff]  ;;  %v17984_v58 = vld [vmem:[#allocation127_spill] sm:$0xff]  ;;  %s8225_s17 = sshll.u32 %s13423_s16, 4  ;;  %s8226_s17 = int_to_ptr.vmem [resolvable:$true] %s8225_s17 }
 0x99c   :  { %v8032_v4 = vsub.f32 %v7968_v36, %v17977_v42  ;;  %8161 = vst [vmem:[#allocation31 + $0x88] sm:$0xff] %v8033_v51  ;;  %v7970_v13 = vsub.f32 %v7659_v45, %v17979_v2  ;;  %v11545_v39 = vpop.f32.mrb[84].mxu0  ;;  %v17983_v61 = vld [vmem:[#allocation114_spill] sm:$0xff]  ;;  %v17985_v42 = vld [vmem:[#allocation147_spill] sm:$0xff]  ;;  %s13360_s4 = scalar_lea.vmem %s8226_s17, 8192  ;;  %p13365_p11 = scmp.lt.s32.totalorder %s8226_s17, %s8226_s17 }
 0x99d   :  { %v8035_v38 = vsub.f32 %v7971_v24, %v17980_v8  ;;  %v7973_v27 = vsub.f32 %v11545_v39, %v17982_v63  ;;  %v7669_v12 = vpop.f32.mrb[85].mxu0  ;;  %v17987_v8 = vld [vmem:[#allocation116_spill] sm:$0xff]  ;;  %v17988_v24 = vld [vmem:[#allocation53_spill] sm:$0xff]  ;;  %p13361_p10 = scmp.ne.s32.totalorder %s8226_s17, %s13360_s4  ;;  %p13366_p12 = scmp.lt.s32.totalorder %s13360_s4, %s13360_s4 }
 0x99e   :  { %8160 = vst [vmem:[#allocation31 + $0x80] sm:$0xff] %v8032_v4  ;;  %v8034_v49 = vsub.f32 %v7970_v13, %v17981_v1  ;;  %v7972_v36 = vsub.f32 %v7669_v12, %v17983_v61  ;;  %v11548_v62 = vpop.f32.mrb[86].mxu0  ;;  %v17986_v4 = vld [vmem:[#allocation115_spill] sm:$0xff] }
 0x99f   :  { %8163 = vst [vmem:[#allocation31 + $0x98] sm:$0xff] %v8035_v38  ;;  %v8037_v51 = vsub.f32 %v7973_v27, %v17984_v58  ;;  %v7975_v45 = vsub.f32 %v11548_v62, %v17986_v4  ;;  %v7679_v2 = vpop.f32.mrb[87].mxu0  ;;  %v17989_v13 = vld [vmem:[#allocation51_spill] sm:$0xff]  ;;  %v17991_v27 = vld [vmem:[#allocation120_spill] sm:$0xff]  ;;  %p13367_p13 = por %p13366_p12, %p13365_p11 }
 0x9a0   :  { %8162 = vst [vmem:[#allocation31 + $0x90] sm:$0xff] %v8034_v49  ;;  %v8036_v19 = vsub.f32 %v7972_v36, %v17985_v42  ;;  %v7974_v1 = vsub.f32 %v7679_v2, %v17987_v8  ;;  %v11551_v63 = vpop.f32.mrb[88].mxu0  ;;  %v17990_v49 = vld [vmem:[#allocation128_spill] sm:$0xff]  ;;  %v17992_v58 = vld [vmem:[#allocation55_spill] sm:$0xff]  ;;  %v17993_v42 = vld [vmem:[#allocation57_spill] sm:$0xff] }
 0x9a1   :  { %8165 = vst [vmem:[#allocation31 + $0xa8] sm:$0xff] %v8037_v51  ;;  %v8039_v38 = vsub.f32 %v7975_v45, %v17988_v24  ;;  %v7977_v12 = vsub.f32 %v11551_v63, %v17990_v49  ;;  %v7689_v61 = vpop.f32.mrb[89].mxu0  ;;  %v17995_v45 = vld [vmem:[#allocation129_spill] sm:$0xff]  ;;  %v17996_v24 = vld [vmem:[#allocation130_spill] sm:$0xff]  ;;  %p13368_p0 = pnand %p13367_p13, %p13361_p10 }
 0x9a2   :  { %8164 = vst [vmem:[#allocation31 + $0xa0] sm:$0xff] %v8036_v19  ;;  %v8038_v39 = vsub.f32 %v7974_v1, %v17989_v13  ;;  %v7976_v36 = vsub.f32 %v7689_v61, %v17991_v27  ;;  %v17994_v19 = vld [vmem:[#allocation144_spill] sm:$0xff]  ;;  %v17997_v13 = vld [vmem:[#allocation61_spill] sm:$0xff] }
 0x9a3   :  { %8167 = vst [vmem:[#allocation31 + $0xb8] sm:$0xff] %v8039_v38  ;;  %v8041_v51 = vsub.f32 %v7977_v12, %v17992_v58  ;;  %v17999_v12 = vld [vmem:[#allocation104_spill] sm:$0xff]  ;;  %v18000_v58 = vld [vmem:[#allocation63_spill] sm:$0xff] }
 0x9a4   :  { %8166 = vst [vmem:[#allocation31 + $0xb0] sm:$0xff] %v8038_v39  ;;  %v8040_v62 = vsub.f32 %v7976_v36, %v17993_v42  ;;  %v11554_v4 = vpop.f32.mrb[90].mxu0  ;;  %v17998_v39 = vld [vmem:[#allocation122_spill] sm:$0xff]  ;;  %v18001_v42 = vld [vmem:[#allocation59_spill] sm:$0xff] }
 0x9a5   :  { %8169 = vst [vmem:[#allocation31 + $0xc8] sm:$0xff] %v8041_v51  ;;  %v7979_v2 = vsub.f32 %v11554_v4, %v17994_v19  ;;  %v7699_v8 = vpop.f32.mrb[91].mxu0 }
 0x9a6   :  { %8168 = vst [vmem:[#allocation31 + $0xc0] sm:$0xff] %v8040_v62  ;;  %v7978_v1 = vsub.f32 %v7699_v8, %v17995_v45  ;;  %v18002_v62 = vld [vmem:[#allocation50_spill] sm:$0xff] }
 0x9a7   :  { %v8043_v38 = vsub.f32 %v7979_v2, %v17996_v24 }
 0x9a8   :  { %v8042_v63 = vsub.f32 %v7978_v1, %v17997_v13  ;;  %v11557_v49 = vpop.f32.mrb[92].mxu0  ;;  %v18003_v1 = vld [vmem:[#allocation140_spill] sm:$0xff] }
 0x9a9   :  { %8171 = vst [vmem:[#allocation31 + $0xd8] sm:$0xff] %v8043_v38  ;;  %v7981_v61 = vsub.f32 %v11557_v49, %v17998_v39  ;;  %v7709_v27 = vpop.f32.mrb[93].mxu0  ;;  %v18004_v38 = vld [vmem:[#allocation148_spill] sm:$0xff] }
 0x9aa   :  { %8170 = vst [vmem:[#allocation31 + $0xd0] sm:$0xff] %v8042_v63  ;;  %v7980_v36 = vsub.f32 %v7709_v27, %v17999_v12 }
 0x9ab   :  { %v8045_v51 = vsub.f32 %v7981_v61, %v18000_v58 }
 0x9ac   :  { %v8044_v4 = vsub.f32 %v7980_v36, %v18001_v42  ;;  %v11560_v19 = vpop.f32.mrb[94].mxu0 }
 0x9ad   :  { %8173 = vst [vmem:[#allocation31 + $0xe8] sm:$0xff] %v8045_v51  ;;  %v7983_v8 = vsub.f32 %v11560_v19, %v18002_v62  ;;  %v7719_v45 = vpop.f32.mrb[95].mxu0 }
 0x9ae   :  { %8172 = vst [vmem:[#allocation31 + $0xe0] sm:$0xff] %v8044_v4  ;;  %v7982_v2 = vsub.f32 %v7719_v45, %v16534_v34 }
 0x9af   :  { %v8047_v24 = vsub.f32 %v7983_v8, %v18003_v1  ;;  %v18006_v1 = vld [vmem:[#allocation107_spill] sm:$0xff] }
 0x9b0   :  { %v8046_v13 = vsub.f32 %v7982_v2, %v18004_v38  ;;  %v11563_v49 = vpop.f32.mrb[96].mxu0  ;;  %v18007_v38 = vld [vmem:[#allocation149_spill] sm:$0xff] }
 0x9b1   :  { %8175 = vst [vmem:[#allocation31 + $0xf8] sm:$0xff] %v8047_v24  ;;  %v7985_v63 = vsub.f32 %v11563_v49, %v16544_v41  ;;  %v7729_v39 = vpop.f32.mrb[97].mxu0  ;;  %v18008_v49 = vld [vmem:[#allocation141_spill] sm:$0xff] }
 0x9b2   :  { %8174 = vst [vmem:[#allocation31 + $0xf0] sm:$0xff] %v8046_v13  ;;  %v7984_v61 = vsub.f32 %v7729_v39, %v16550_v52  ;;  %v18010_v39 = vld [vmem:[#allocation157_spill] sm:$0xff] }
 0x9b3   :  { %v8049_v27 = vsub.f32 %v7985_v63, %v16664_v40 }
 0x9b4   :  { %v8048_v12 = vsub.f32 %v7984_v61, %v16670_v29  ;;  %v11566_v36 = vpop.f32.mrb[98].mxu0 }
 0x9b5   :  { %8177 = vst [vmem:[#allocation31 + $0x108] sm:$0xff] %v8049_v27  ;;  %v7987_v34 = vsub.f32 %v11566_v36, %v16560_v30  ;;  %v7739_v58 = vpop.f32.mrb[99].mxu0  ;;  %v18011_v27 = vld [vmem:[#allocation132_spill] sm:$0xff]  ;;  %v18012_v36 = vld [vmem:[#allocation113_spill] sm:$0xff] }
 0x9b6   :  { %8176 = vst [vmem:[#allocation31 + $0x100] sm:$0xff] %v8048_v12  ;;  %v7986_v51 = vsub.f32 %v7739_v58, %v16566_v5 }
 0x9b7   :  { %v8051_v42 = vsub.f32 %v7987_v34, %v16675_v16 }
 0x9b8   :  { %v8050_v41 = vsub.f32 %v7986_v51, %v16679_v26  ;;  %v11569_v4 = vpop.f32.mrb[100].mxu0  ;;  %v18013_v51 = vld [vmem:[#allocation52_spill] sm:$0xff] }
 0x9b9   :  { %8179 = vst [vmem:[#allocation31 + $0x118] sm:$0xff] %v8051_v42  ;;  %v7989_v52 = vsub.f32 %v11569_v4, %v16576_v50  ;;  %v7749_v19 = vpop.f32.mrb[101].mxu0 }
 0x9ba   :  { %8178 = vst [vmem:[#allocation31 + $0x110] sm:$0xff] %v8050_v41  ;;  %v7988_v29 = vsub.f32 %v7749_v19, %v16582_v7  ;;  %v18014_v41 = vld [vmem:[#allocation66_spill] sm:$0xff] }
 0x9bb   :  { %v8053_v40 = vsub.f32 %v7989_v52, %v16685_v54  ;;  %v18005_v54 = vld [vmem:[#allocation139_spill] sm:$0xff]  ;;  %v18015_v52 = vld [vmem:[#allocation124_spill] sm:$0xff] }
 0x9bc   :  { %v8052_v30 = vsub.f32 %v7988_v29, %v16689_v20  ;;  %v11572_v62 = vpop.f32.mrb[102].mxu0 }
 0x9bd   :  { %8181 = vst [vmem:[#allocation31 + $0x128] sm:$0xff] %v8053_v40  ;;  %v7991_v5 = vsub.f32 %v11572_v62, %v16592_v37  ;;  %v7759_v8 = vpop.f32.mrb[103].mxu0  ;;  %v18016_v40 = vld [vmem:[#allocation123_spill] sm:$0xff] }
 0x9be   :  { %8180 = vst [vmem:[#allocation31 + $0x120] sm:$0xff] %v8052_v30  ;;  %v7990_v16 = vsub.f32 %v7759_v8, %v16598_v6 }
 0x9bf   :  { %v8055_v26 = vsub.f32 %v7991_v5, %v16695_v44  ;;  %v18009_v44 = vld [vmem:[#allocation131_spill] sm:$0xff]  ;;  %v18017_v5 = vld [vmem:[#allocation152_spill] sm:$0xff] }
 0x9c0   :  { %v8054_v50 = vsub.f32 %v7990_v16, %v16699_v14  ;;  %v11575_v45 = vpop.f32.mrb[104].mxu0  ;;  %v18018_v16 = vld [vmem:[#allocation158_spill] sm:$0xff] }
 0x9c1   :  { %8183 = vst [vmem:[#allocation31 + $0x138] sm:$0xff] %v8055_v26  ;;  %v7993_v7 = vsub.f32 %v11575_v45, %v16608_v25  ;;  %v7769_v2 = vpop.f32.mrb[105].mxu0 }
 0x9c2   :  { %8182 = vst [vmem:[#allocation31 + $0x130] sm:$0xff] %v8054_v50  ;;  %v7992_v20 = vsub.f32 %v7769_v2, %v18005_v54  ;;  %v18019_v50 = vld [vmem:[#allocation151_spill] sm:$0xff] }
 0x9c3   :  { %v8057_v24 = vsub.f32 %v7993_v7, %v18006_v1  ;;  %v18020_v1 = vld [vmem:[#allocation68_spill] sm:$0xff] }
 0x9c4   :  { %v8056_v37 = vsub.f32 %v7992_v20, %v18007_v38  ;;  %v11578_v13 = vpop.f32.mrb[106].mxu0 }
 0x9c5   :  { %8185 = vst [vmem:[#allocation31 + $0x148] sm:$0xff] %v8057_v24  ;;  %v7995_v6 = vsub.f32 %v11578_v13, %v18008_v49  ;;  %v7779_v63 = vpop.f32.mrb[107].mxu0 }
 0x9c6   :  { %8184 = vst [vmem:[#allocation31 + $0x140] sm:$0xff] %v8056_v37  ;;  %v7994_v14 = vsub.f32 %v7779_v63, %v18009_v44 }
 0x9c7   :  { %v8059_v61 = vsub.f32 %v7995_v6, %v18010_v39 }
 0x9c8   :  { %v8058_v25 = vsub.f32 %v7994_v14, %v18011_v27  ;;  %v11581_v12 = vpop.f32.mrb[108].mxu0 }
 0x9c9   :  { %8187 = vst [vmem:[#allocation31 + $0x158] sm:$0xff] %v8059_v61  ;;  %v7997_v34 = vsub.f32 %v11581_v12, %v18012_v36  ;;  %v7789_v58 = vpop.f32.mrb[109].mxu0 }
 0x9ca   :  { %8186 = vst [vmem:[#allocation31 + $0x150] sm:$0xff] %v8058_v25  ;;  %v7996_v42 = vsub.f32 %v7789_v58, %v18013_v51 }
 0x9cb   :  { %v8061_v4 = vsub.f32 %v7997_v34, %v18014_v41 }
 0x9cc   :  { %v8060_v19 = vsub.f32 %v7996_v42, %v18015_v52  ;;  %v11584_v29 = vpop.f32.mrb[110].mxu0  ;;  %v18021_v42 = vld [vmem:[#allocation153_spill] sm:$0xff] }
 0x9cd   :  { %8189 = vst [vmem:[#allocation31 + $0x168] sm:$0xff] %v8061_v4  ;;  %v7999_v30 = vsub.f32 %v11584_v29, %v18016_v40  ;;  %v7799_v62 = vpop.f32.mrb[111].mxu0  ;;  %v18022_v4 = vld [vmem:[#allocation71_spill] sm:$0xff]  ;;  %v18025_v29 = vld [vmem:[#allocation133_spill] sm:$0xff] }
 0x9ce   :  { %8188 = vst [vmem:[#allocation31 + $0x160] sm:$0xff] %v8060_v19  ;;  %v7998_v8 = vsub.f32 %v7799_v62, %v18017_v5  ;;  %v18024_v19 = vld [vmem:[#allocation77_spill] sm:$0xff] }
 0x9cf   :  { %v8063_v26 = vsub.f32 %v7999_v30, %v18018_v16 }
 0x9d0   :  { %v8062_v45 = vsub.f32 %v7998_v8, %v18019_v50  ;;  %v11587_v7 = vpop.f32.mrb[112].mxu0 }
 0x9d1   :  { %8191 = vst [vmem:[#allocation31 + $0x178] sm:$0xff] %v8063_v26  ;;  %v8001_v2 = vsub.f32 %v11587_v7, %v16746_v46  ;;  %v7809_v54 = vpop.f32.mrb[113].mxu0 }
 0x9d2   :  { %8190 = vst [vmem:[#allocation31 + $0x170] sm:$0xff] %v8062_v45  ;;  %v8000_v20 = vsub.f32 %v7809_v54, %v16748_v18 }
 0x9d3   :  { %v8065_v24 = vsub.f32 %v8001_v2, %v18020_v1 }
 0x9d4   :  { %v8064_v38 = vsub.f32 %v8000_v20, %v16783_v59  ;;  %v11590_v37 = vpop.f32.mrb[114].mxu0 }
 0x9d5   :  { %8193 = vst [vmem:[#allocation31 + $0x188] sm:$0xff] %v8065_v24  ;;  %v8003_v13 = vsub.f32 %v11590_v37, %v16750_v53  ;;  %v7819_v49 = vpop.f32.mrb[115].mxu0 }
 0x9d6   :  { %8192 = vst [vmem:[#allocation31 + $0x180] sm:$0xff] %v8064_v38  ;;  %v8002_v6 = vsub.f32 %v7819_v49, %v16752_v60 }
 0x9d7   :  { %v8067_v63 = vsub.f32 %v8003_v13, %v16790_v22 }
 0x9d8   :  { %v8066_v46 = vsub.f32 %v8002_v6, %v16795_v28  ;;  %v11593_v44 = vpop.f32.mrb[116].mxu0 }
 0x9d9   :  { %8195 = vst [vmem:[#allocation31 + $0x198] sm:$0xff] %v8067_v63  ;;  %v8005_v18 = vsub.f32 %v11593_v44, %v16754_v35  ;;  %v7829_v14 = vpop.f32.mrb[117].mxu0 }
 0x9da   :  { %8194 = vst [vmem:[#allocation31 + $0x190] sm:$0xff] %v8066_v46  ;;  %v8004_v59 = vsub.f32 %v7829_v14, %v16756_v21 }
 0x9db   :  { %v8069_v39 = vsub.f32 %v8005_v18, %v16802_v55 }
 0x9dc   :  { %v8068_v53 = vsub.f32 %v8004_v59, %v16807_v47  ;;  %v11596_v61 = vpop.f32.mrb[118].mxu0 }
 0x9dd   :  { %8197 = vst [vmem:[#allocation31 + $0x1a8] sm:$0xff] %v8069_v39  ;;  %v8007_v60 = vsub.f32 %v11596_v61, %v16758_v57  ;;  %v7839_v27 = vpop.f32.mrb[119].mxu0 }
 0x9de   :  { %8196 = vst [vmem:[#allocation31 + $0x1a0] sm:$0xff] %v8068_v53  ;;  %v8006_v22 = vsub.f32 %v7839_v27, %v16760_v23 }
 0x9df   :  { %v8071_v28 = vsub.f32 %v8007_v60, %v16814_v9 }
 0x9e0   :  { %v8070_v35 = vsub.f32 %v8006_v22, %v16819_v56  ;;  %v11599_v25 = vpop.f32.mrb[120].mxu0 }
 0x9e1   :  { %8199 = vst [vmem:[#allocation31 + $0x1b8] sm:$0xff] %v8071_v28  ;;  %v8009_v21 = vsub.f32 %v11599_v25, %v16762_v17  ;;  %v7849_v12 = vpop.f32.mrb[121].mxu0 }
 0x9e2   :  { %8198 = vst [vmem:[#allocation31 + $0x1b0] sm:$0xff] %v8070_v35  ;;  %v8008_v55 = vsub.f32 %v7849_v12, %v16764_v31 }
 0x9e3   :  { %v8073_v47 = vsub.f32 %v8009_v21, %v16826_v11 }
 0x9e4   :  { %v8072_v57 = vsub.f32 %v8008_v55, %v16831_v3  ;;  %v11602_v36 = vpop.f32.mrb[122].mxu0 }
 0x9e5   :  { %8201 = vst [vmem:[#allocation31 + $0x1c8] sm:$0xff] %v8073_v47  ;;  %v8011_v23 = vsub.f32 %v11602_v36, %v16766_v0  ;;  %v7859_v34 = vpop.f32.mrb[123].mxu0 }
 0x9e6   :  { %8200 = vst [vmem:[#allocation31 + $0x1c0] sm:$0xff] %v8072_v57  ;;  %v8010_v9 = vsub.f32 %v7859_v34, %v16768_v48 }
 0x9e7   :  { %v8075_v56 = vsub.f32 %v8011_v23, %v16838_v43  ;;  %v18023_v43 = vld [vmem:[#allocation150_spill] sm:$0xff] }
 0x9e8   :  { %v8074_v17 = vsub.f32 %v8010_v9, %v16843_v32  ;;  %v11605_v58 = vpop.f32.mrb[124].mxu0 }
 0x9e9   :  { %8203 = vst [vmem:[#allocation31 + $0x1d8] sm:$0xff] %v8075_v56  ;;  %v8013_v31 = vsub.f32 %v11605_v58, %v16770_v33  ;;  %v7869_v51 = vpop.f32.mrb[125].mxu0 }
 0x9ea   :  { %8202 = vst [vmem:[#allocation31 + $0x1d0] sm:$0xff] %v8074_v17  ;;  %v8012_v11 = vsub.f32 %v7869_v51, %v16772_v15 }
 0x9eb   :  { %v8077_v3 = vsub.f32 %v8013_v31, %v16850_v10 }
 0x9ec   :  { %v8076_v0 = vsub.f32 %v8012_v11, %v18021_v42  ;;  %v11608_v41 = vpop.f32.mrb[126].mxu0 }
 0x9ed   :  { %8205 = vst [vmem:[#allocation31 + $0x1e8] sm:$0xff] %v8077_v3  ;;  %v8015_v48 = vsub.f32 %v11608_v41, %v18022_v4  ;;  %v7879_v52 = vpop.f32.mrb[127].mxu0 }
 0x9ee   :  { %8204 = vst [vmem:[#allocation31 + $0x1e0] sm:$0xff] %v8076_v0  ;;  %v8014_v32 = vsub.f32 %v7879_v52, %v18023_v43 }
 0x9ef   :  { %v8079_v33 = vsub.f32 %v8015_v48, %v18024_v19 }
 0x9f0   :  { %v8078_v40 = vsub.f32 %v8014_v32, %v18025_v29 }
 0x9f1   :  { %8207 = vst [vmem:[#allocation31 + $0x1f8] sm:$0xff] %v8079_v33 }
 0x9f2   :  { %8206 = vst [vmem:[#allocation31 + $0x1f0] sm:$0xff] %v8078_v40 }
 0x9f3   :  { %13371 = shalt.err (!%p13368_p0)
}
 0x9f4   :  { %s18026_s0 = sld [smem:[#allocation161_spill]] }
 0x9fa   :  { %s13372_s8 = scalar_lea.hbm %s18026_s0, 8192 }
 0x9fb   :  { %p13373_p1 = scmp.ne.s32.totalorder %s18026_s0, %s13372_s8  ;;  %p13376_p2 = scmp.lt.u32.totalorder %s13372_s8, %s18026_s0 }
 0x9fd   :  { %p13378_p3 = pnand %p13376_p2, %p13373_p1 }
 0x9ff   :  { %13381 = shalt.err (!%p13378_p3)
}
 0xa00   :  { %8231 = dma.vmem_to_hbm [thread:$0]  %s8226_s17, 8192, %s18026_s0, [#allocation32], %s13406_s22, %s13406_s22, %s13407_s23  }
 0xa01   :  { %13400 = dma.done.wait [#allocation6], 8192  }
 0xa02   :  { %13401 = vsyncadd [#allocation6], 4294959104 }
 0xa03   :  { %13402 = dma.done.wait [#allocation32], 8192  }
 0xa04   :  { %13403 = vsyncadd [#allocation32], 4294959104 }
 0xa05   :  { %8238 = vsyncpa [#allocation5], 1 }
 0xa06   :  { %8239 = vsyncpa [#allocation8], 1 }
 0xa07   :  { %8240 = vsyncpa [#allocation11], 1 }
 0xa08   :  { %8241 = vsyncpa [#allocation14], 1 }
 0xa09   :  { %8242 = vsyncpa [#allocation17], 1 }
 0xa0a   :  { %8243 = vsyncpa [#allocation20], 1 }
 0xa0b   :  { %8244 = vsyncpa [#allocation23], 1 }
 0xa0c   :  { %8245 = vsyncpa [#allocation26], 1 }
 0xa0d   :  { %8246 = vsyncpa [#allocation29], 1 }
 0xa0e   :  { %8247 = vsyncpa [#allocation6], 1 }
 0xa0f   :  { %8248 = vsyncpa [#allocation32], 1 }

</bundles_post_ra>
